<compile_context>
chip_gen: v7x
topology: tpu7x:2x2x1
jax: 0.10.0
libtpu: 0.0.40
codegen_flags: <defaults>
</compile_context>

<pallas_src>
import jax
import jax.numpy as jnp
from jax.experimental import pallas as pl
from jax.experimental.pallas import tpu as pltpu

# ---- module hyper-parameters (from nn.py) ----
block_size = 64
char_encoding_len = 12
max_hidden_nodes = 2048
vocab_size = 65                     # |set(text)|; any value <= C(12,6)=924 is legal
dropout_rate = 0.2                  # identity at inference (eval mode)

INPUT_SIZE = char_encoding_len * block_size   # 768
H1 = max_hidden_nodes                         # 2048
H2 = H1 // 2                                  # 1024
H3 = H2                                       # 1024
H4 = H3 // 2                                  # 512
VOCAB_PAD = 128                               # lane-dense logits (65 -> 128)


def _round_up(x, m):
    return ((x + m - 1) // m) * m


def _mlp_kernel(x_ref,
                w1_hbm, b1_ref,
                w2_hbm, b2_ref,
                w3_hbm, b3_ref,
                w4_hbm, b4_ref,
                w5_hbm, b5_ref,
                out_ref,
                w1v, w2v, w3v, w4v, w5v, sem):
    """One batch tile of the fused 5-layer MLP.

    Weights live in HBM (memory_space=pl.ANY) and are DMA'd once (grid step 0) into
    single-buffered VMEM scratch; the per-layer waits let fc1 compute overlap the
    fc2..fc5 weight DMAs.  Steps > 0 reuse the resident scratch.  Activations are
    bf16, accumulation f32.
    """
    first = pl.program_id(0) == 0

    @pl.when(first)
    def _start_weight_dmas():
        pltpu.make_async_copy(w1_hbm, w1v, sem.at[0]).start()
        pltpu.make_async_copy(w2_hbm, w2v, sem.at[1]).start()
        pltpu.make_async_copy(w3_hbm, w3v, sem.at[2]).start()
        pltpu.make_async_copy(w4_hbm, w4v, sem.at[3]).start()
        pltpu.make_async_copy(w5_hbm, w5v, sem.at[4]).start()

    h = x_ref[...]                                   # bf16 already (cast in wrapper)

    # fc1 + relu   (dropout do1 is identity at inference)
    @pl.when(first)
    def _():
        pltpu.make_async_copy(w1_hbm, w1v, sem.at[0]).wait()
    h = jnp.dot(h, w1v[...], preferred_element_type=jnp.float32) + b1_ref[...]
    h = jnp.maximum(h, 0.0).astype(jnp.bfloat16)

    # fc2 + relu   (do2 identity)
    @pl.when(first)
    def _():
        pltpu.make_async_copy(w2_hbm, w2v, sem.at[1]).wait()
    h = jnp.dot(h, w2v[...], preferred_element_type=jnp.float32) + b2_ref[...]
    h = jnp.maximum(h, 0.0).astype(jnp.bfloat16)

    # fc3 + relu   (do3 identity)
    @pl.when(first)
    def _():
        pltpu.make_async_copy(w3_hbm, w3v, sem.at[2]).wait()
    h = jnp.dot(h, w3v[...], preferred_element_type=jnp.float32) + b3_ref[...]
    h = jnp.maximum(h, 0.0).astype(jnp.bfloat16)

    # fc4 + relu   (do4 identity)
    @pl.when(first)
    def _():
        pltpu.make_async_copy(w4_hbm, w4v, sem.at[3]).wait()
    h = jnp.dot(h, w4v[...], preferred_element_type=jnp.float32) + b4_ref[...]
    h = jnp.maximum(h, 0.0).astype(jnp.bfloat16)

    # fc5 -> logits (padded to 128 lanes; padded columns are exact zeros)
    @pl.when(first)
    def _():
        pltpu.make_async_copy(w5_hbm, w5v, sem.at[4]).wait()
    logits = jnp.dot(h, w5v[...], preferred_element_type=jnp.float32) + b5_ref[...]
    out_ref[...] = logits.astype(out_ref.dtype)


def simple_language_model_forward(x, params, *, max_tile_b=256):
    """x: (B, 768) float32 (or bf16).  Returns logits (B, vocab_size) float32.

    max_tile_b=256 is sized for v7x's 64 MiB VMEM (weights ~10 MiB single-buffered +
    activation slabs stay well under the 48 MiB limit); on v5e/v6e (128 MiB VMEM)
    max_tile_b=512 with a ~96 MiB vmem_limit_bytes is a reasonable retune.
    """
    B = x.shape[0]
    w1, b1, w2, b2, w3, b3, w4, b4, w5, b5 = params

    # bf16 activations into the kernel: halves x HBM traffic + VMEM tiles.
    x = x.astype(jnp.bfloat16)

    # Balanced batch tiles (multiple of 16 sublanes for bf16): B=257 -> 2 tiles of
    # 136 (Bp=272), not one 512-row tile.
    num_tiles = -(-B // max_tile_b)
    TILE_B = _round_up(-(-B // num_tiles), 16)
    Bp = TILE_B * num_tiles
    if Bp != B:
        x = jnp.pad(x, ((0, Bp - B), (0, 0)))

    grid = (num_tiles,)

    def bias_spec(b):
        # tiny (1, N) f32 bias, same block every step -> stays resident
        return pl.BlockSpec(b.shape, lambda i: (0, 0))

    weight_hbm = pl.BlockSpec(memory_space=pl.ANY)   # raw HBM ref; DMA'd manually

    flops = 2 * Bp * (INPUT_SIZE * H1 + H1 * H2 + H2 * H3 + H3 * H4 + H4 * VOCAB_PAD)
    weight_bytes = sum(int(p.size) * p.dtype.itemsize for p in params)
    bytes_accessed = int(weight_bytes + x.size * x.dtype.itemsize + Bp * VOCAB_PAD * 4)

    out = pl.pallas_call(
        _mlp_kernel,
        out_shape=jax.ShapeDtypeStruct((Bp, VOCAB_PAD), jnp.float32),
        grid=grid,
        in_specs=[
            pl.BlockSpec((TILE_B, INPUT_SIZE), lambda i: (i, 0)),
            weight_hbm, bias_spec(b1),
            weight_hbm, bias_spec(b2),
            weight_hbm, bias_spec(b3),
            weight_hbm, bias_spec(b4),
            weight_hbm, bias_spec(b5),
        ],
        out_specs=pl.BlockSpec((TILE_B, VOCAB_PAD), lambda i: (i, 0)),
        scratch_shapes=[
            pltpu.VMEM((INPUT_SIZE, H1), jnp.bfloat16),   # w1  3.0 MiB
            pltpu.VMEM((H1, H2), jnp.bfloat16),           # w2  4.0 MiB
            pltpu.VMEM((H2, H3), jnp.bfloat16),           # w3  2.0 MiB
            pltpu.VMEM((H3, H4), jnp.bfloat16),           # w4  1.0 MiB
            pltpu.VMEM((H4, VOCAB_PAD), jnp.bfloat16),    # w5  0.13 MiB
            pltpu.SemaphoreType.DMA((5,)),
        ],
        compiler_params=pltpu.CompilerParams(
            # Serial grid: required for the step-0 weight-caching scheme, and in the
            # weight-bandwidth-bound (small/medium B) regime 2-TC batch sharding on
            # v7x would double HBM weight traffic anyway.
            dimension_semantics=("arbitrary",),
            vmem_limit_bytes=48 * 1024 * 1024,
        ),
        cost_estimate=pl.CostEstimate(
            flops=flops, transcendentals=0, bytes_accessed=bytes_accessed),
    )(x, w1, b1, w2, b2, w3, b3, w4, b4, w5, b5)

    # un-pad batch and vocab lanes
    return out[:B, :vocab_size]


def init_params(key):
    """Deterministic PyTorch-like init: U(-1/sqrt(fan_in), 1/sqrt(fan_in)).
    Weights stored as bf16 (in_features, out_features); biases as f32 (1, out_features).
    Last layer is zero-padded from vocab_size to VOCAB_PAD lanes."""
    dims = [(INPUT_SIZE, H1), (H1, H2), (H2, H3), (H3, H4), (H4, vocab_size)]
    params = []
    for li, (fan_in, fan_out) in enumerate(dims):
        key, kw, kb = jax.random.split(key, 3)
        bound = 1.0 / jnp.sqrt(fan_in)
        w = jax.random.uniform(kw, (fan_in, fan_out), jnp.float32, -bound, bound)
        b = jax.random.uniform(kb, (1, fan_out), jnp.float32, -bound, bound)
        if li == len(dims) - 1:
            w = jnp.pad(w, ((0, 0), (0, VOCAB_PAD - fan_out)))
            b = jnp.pad(b, ((0, 0), (0, VOCAB_PAD - fan_out)))
        params += [w.astype(jnp.bfloat16), b.astype(jnp.float32)]
    return params


def reference_forward(x, params):
    """Plain-JAX reference with identical precision (bf16 mats, f32 accum)."""
    h = x.astype(jnp.bfloat16)
    for i in range(0, 8, 2):
        h = jnp.dot(h, params[i], preferred_element_type=jnp.float32) + params[i + 1]
        h = jnp.maximum(h, 0.0).astype(jnp.bfloat16)
    logits = jnp.dot(h, params[8], preferred_element_type=jnp.float32) + params[9]
    return logits[:, :vocab_size]


if __name__ == "__main__":
    key = jax.random.PRNGKey(0)
    key, kx = jax.random.split(key)

    B = 8  # small batch for the demo; kernel tiles/pads any B
    x = jax.random.normal(kx, (B, INPUT_SIZE), jnp.float32)
    params = init_params(key)

    logits = simple_language_model_forward(x, params)
    jax.block_until_ready(logits)

    ref = reference_forward(x, params)
    assert logits.shape == (B, vocab_size)
    assert jnp.allclose(logits, ref, atol=2e-2, rtol=2e-2), (
        float(jnp.max(jnp.abs(logits - ref))))

    # TODO(synk): cross-entropy loss path (targets != None) and training-mode
    # dropout / batch norm are not implemented in-kernel; eval/inference only.
    print("KERNEL_OK")
</pallas_src>

<mosaic_0001>
module attributes {stable_mosaic.version = 11 : i64} {
  func.func @_mlp_kernel(%arg0: i32, %arg1: memref<16x768xbf16, #tpu.memory_space<vmem>>, %arg2: memref<768x2048xbf16, #tpu.memory_space<any>>, %arg3: memref<1x2048xf32, #tpu.memory_space<vmem>>, %arg4: memref<2048x1024xbf16, #tpu.memory_space<any>>, %arg5: memref<1x1024xf32, #tpu.memory_space<vmem>>, %arg6: memref<1024x1024xbf16, #tpu.memory_space<any>>, %arg7: memref<1x1024xf32, #tpu.memory_space<vmem>>, %arg8: memref<1024x512xbf16, #tpu.memory_space<any>>, %arg9: memref<1x512xf32, #tpu.memory_space<vmem>>, %arg10: memref<512x128xbf16, #tpu.memory_space<any>>, %arg11: memref<1x128xf32, #tpu.memory_space<vmem>>, %arg12: memref<16x128xf32, #tpu.memory_space<vmem>>, %arg13: memref<768x2048xbf16, #tpu.memory_space<vmem>>, %arg14: memref<2048x1024xbf16, #tpu.memory_space<vmem>>, %arg15: memref<1024x1024xbf16, #tpu.memory_space<vmem>>, %arg16: memref<1024x512xbf16, #tpu.memory_space<vmem>>, %arg17: memref<512x128xbf16, #tpu.memory_space<vmem>>, %arg18: memref<5x!tpu.dma_semaphore, #tpu.memory_space<semaphore_mem>>) attributes {dimension_semantics = [#tpu.dimension_semantics<arbitrary>], iteration_bounds = array<i64: 1>, scalar_prefetch = 0 : i64, scratch_operands = 6 : i64, tpu.core_type = #tpu.core_type<tc>, window_params = [{transform_indices = @transform_0, window_bounds = array<i64: 16, 768>}, {}, {pipeline_mode = #tpu.pipeline_mode<synchronous>, transform_indices = @transform_2, window_bounds = array<i64: 1, 2048>}, {}, {pipeline_mode = #tpu.pipeline_mode<synchronous>, transform_indices = @transform_4, window_bounds = array<i64: 1, 1024>}, {}, {pipeline_mode = #tpu.pipeline_mode<synchronous>, transform_indices = @transform_6, window_bounds = array<i64: 1, 1024>}, {}, {pipeline_mode = #tpu.pipeline_mode<synchronous>, transform_indices = @transform_8, window_bounds = array<i64: 1, 512>}, {}, {pipeline_mode = #tpu.pipeline_mode<synchronous>, transform_indices = @transform_10, window_bounds = array<i64: 1, 128>}, {transform_indices = @transform_11, window_bounds = array<i64: 16, 128>}]} {
    %c0_i32 = arith.constant 0 : i32
    %0 = arith.cmpi eq, %arg0, %c0_i32 : i32
    %1 = arith.extui %0 : i1 to i32
    %c0_i32_0 = arith.constant 0 : i32
    %2 = arith.cmpi ne, %1, %c0_i32_0 : i32
    scf.if %2 {
      %c0_i32_37 = arith.constant 0 : i32
      %52 = tpu.memref_slice %arg18[%c0_i32_37] : memref<5x!tpu.dma_semaphore, #tpu.memory_space<semaphore_mem>> -> memref<1x!tpu.dma_semaphore, #tpu.memory_space<semaphore_mem>>
      %53 = tpu.memref_squeeze %52 : memref<1x!tpu.dma_semaphore, #tpu.memory_space<semaphore_mem>> -> memref<!tpu.dma_semaphore, #tpu.memory_space<semaphore_mem>>
      tpu.enqueue_dma source(%arg2 : memref<768x2048xbf16, #tpu.memory_space<any>>) target(%arg13 : memref<768x2048xbf16, #tpu.memory_space<vmem>>) target_semaphore(%53 : memref<!tpu.dma_semaphore, #tpu.memory_space<semaphore_mem>>)
      %c1_i32 = arith.constant 1 : i32
      %54 = tpu.memref_slice %arg18[%c1_i32] : memref<5x!tpu.dma_semaphore, #tpu.memory_space<semaphore_mem>> -> memref<1x!tpu.dma_semaphore, #tpu.memory_space<semaphore_mem>>
      %55 = tpu.memref_squeeze %54 : memref<1x!tpu.dma_semaphore, #tpu.memory_space<semaphore_mem>> -> memref<!tpu.dma_semaphore, #tpu.memory_space<semaphore_mem>>
      tpu.enqueue_dma source(%arg4 : memref<2048x1024xbf16, #tpu.memory_space<any>>) target(%arg14 : memref<2048x1024xbf16, #tpu.memory_space<vmem>>) target_semaphore(%55 : memref<!tpu.dma_semaphore, #tpu.memory_space<semaphore_mem>>)
      %c2_i32 = arith.constant 2 : i32
      %56 = tpu.memref_slice %arg18[%c2_i32] : memref<5x!tpu.dma_semaphore, #tpu.memory_space<semaphore_mem>> -> memref<1x!tpu.dma_semaphore, #tpu.memory_space<semaphore_mem>>
      %57 = tpu.memref_squeeze %56 : memref<1x!tpu.dma_semaphore, #tpu.memory_space<semaphore_mem>> -> memref<!tpu.dma_semaphore, #tpu.memory_space<semaphore_mem>>
      tpu.enqueue_dma source(%arg6 : memref<1024x1024xbf16, #tpu.memory_space<any>>) target(%arg15 : memref<1024x1024xbf16, #tpu.memory_space<vmem>>) target_semaphore(%57 : memref<!tpu.dma_semaphore, #tpu.memory_space<semaphore_mem>>)
      %c3_i32 = arith.constant 3 : i32
      %58 = tpu.memref_slice %arg18[%c3_i32] : memref<5x!tpu.dma_semaphore, #tpu.memory_space<semaphore_mem>> -> memref<1x!tpu.dma_semaphore, #tpu.memory_space<semaphore_mem>>
      %59 = tpu.memref_squeeze %58 : memref<1x!tpu.dma_semaphore, #tpu.memory_space<semaphore_mem>> -> memref<!tpu.dma_semaphore, #tpu.memory_space<semaphore_mem>>
      tpu.enqueue_dma source(%arg8 : memref<1024x512xbf16, #tpu.memory_space<any>>) target(%arg16 : memref<1024x512xbf16, #tpu.memory_space<vmem>>) target_semaphore(%59 : memref<!tpu.dma_semaphore, #tpu.memory_space<semaphore_mem>>)
      %c4_i32 = arith.constant 4 : i32
      %60 = tpu.memref_slice %arg18[%c4_i32] : memref<5x!tpu.dma_semaphore, #tpu.memory_space<semaphore_mem>> -> memref<1x!tpu.dma_semaphore, #tpu.memory_space<semaphore_mem>>
      %61 = tpu.memref_squeeze %60 : memref<1x!tpu.dma_semaphore, #tpu.memory_space<semaphore_mem>> -> memref<!tpu.dma_semaphore, #tpu.memory_space<semaphore_mem>>
      tpu.enqueue_dma source(%arg10 : memref<512x128xbf16, #tpu.memory_space<any>>) target(%arg17 : memref<512x128xbf16, #tpu.memory_space<vmem>>) target_semaphore(%61 : memref<!tpu.dma_semaphore, #tpu.memory_space<semaphore_mem>>)
    } else {
    }
    %c0 = arith.constant 0 : index
    %c0_1 = arith.constant 0 : index
    %3 = vector.load %arg1[%c0, %c0_1] : memref<16x768xbf16, #tpu.memory_space<vmem>>, vector<16x768xbf16>
    %4 = arith.extui %0 : i1 to i32
    %c0_i32_2 = arith.constant 0 : i32
    %5 = arith.cmpi ne, %4, %c0_i32_2 : i32
    scf.if %5 {
      %c0_i32_37 = arith.constant 0 : i32
      %52 = tpu.memref_slice %arg18[%c0_i32_37] : memref<5x!tpu.dma_semaphore, #tpu.memory_space<semaphore_mem>> -> memref<1x!tpu.dma_semaphore, #tpu.memory_space<semaphore_mem>>
      %53 = tpu.memref_squeeze %52 : memref<1x!tpu.dma_semaphore, #tpu.memory_space<semaphore_mem>> -> memref<!tpu.dma_semaphore, #tpu.memory_space<semaphore_mem>>
      tpu.wait_dma2 semaphore(%53 : memref<!tpu.dma_semaphore, #tpu.memory_space<semaphore_mem>>) src(%arg2 : memref<768x2048xbf16, #tpu.memory_space<any>>) dst(%arg13 : memref<768x2048xbf16, #tpu.memory_space<vmem>>)
    } else {
    }
    %c0_3 = arith.constant 0 : index
    %c0_4 = arith.constant 0 : index
    %6 = vector.load %arg13[%c0_3, %c0_4] : memref<768x2048xbf16, #tpu.memory_space<vmem>>, vector<768x2048xbf16>
    %cst = arith.constant dense<0.000000e+00> : vector<16x2048xf32>
    %7 = tpu.matmul %3, %6, %cst {dimension_numbers = #tpu.dot_dimension_numbers<[1], [0], [0], [1], [0, 0, 1, 1], [], []>} : vector<16x768xbf16>, vector<768x2048xbf16>, vector<16x2048xf32> -> vector<16x2048xf32>
    %c0_5 = arith.constant 0 : index
    %c0_6 = arith.constant 0 : index
    %8 = vector.load %arg3[%c0_5, %c0_6] : memref<1x2048xf32, #tpu.memory_space<vmem>>, vector<1x2048xf32>
    %9 = vector.broadcast %8 : vector<1x2048xf32> to vector<16x2048xf32>
    %10 = arith.addf %7, %9 : vector<16x2048xf32>
    %cst_7 = arith.constant 0.000000e+00 : f32
    %11 = vector.broadcast %cst_7 : f32 to vector<16x2048xf32>
    %12 = arith.maximumf %10, %11 : vector<16x2048xf32>
    %13 = arith.truncf %12 : vector<16x2048xf32> to vector<16x2048xbf16>
    %14 = arith.extui %0 : i1 to i32
    %c0_i32_8 = arith.constant 0 : i32
    %15 = arith.cmpi ne, %14, %c0_i32_8 : i32
    scf.if %15 {
      %c1_i32 = arith.constant 1 : i32
      %52 = tpu.memref_slice %arg18[%c1_i32] : memref<5x!tpu.dma_semaphore, #tpu.memory_space<semaphore_mem>> -> memref<1x!tpu.dma_semaphore, #tpu.memory_space<semaphore_mem>>
      %53 = tpu.memref_squeeze %52 : memref<1x!tpu.dma_semaphore, #tpu.memory_space<semaphore_mem>> -> memref<!tpu.dma_semaphore, #tpu.memory_space<semaphore_mem>>
      tpu.wait_dma2 semaphore(%53 : memref<!tpu.dma_semaphore, #tpu.memory_space<semaphore_mem>>) src(%arg4 : memref<2048x1024xbf16, #tpu.memory_space<any>>) dst(%arg14 : memref<2048x1024xbf16, #tpu.memory_space<vmem>>)
    } else {
    }
    %c0_9 = arith.constant 0 : index
    %c0_10 = arith.constant 0 : index
    %16 = vector.load %arg14[%c0_9, %c0_10] : memref<2048x1024xbf16, #tpu.memory_space<vmem>>, vector<2048x1024xbf16>
    %cst_11 = arith.constant dense<0.000000e+00> : vector<16x1024xf32>
    %17 = tpu.matmul %13, %16, %cst_11 {dimension_numbers = #tpu.dot_dimension_numbers<[1], [0], [0], [1], [0, 0, 1, 1], [], []>} : vector<16x2048xbf16>, vector<2048x1024xbf16>, vector<16x1024xf32> -> vector<16x1024xf32>
    %c0_12 = arith.constant 0 : index
    %c0_13 = arith.constant 0 : index
    %18 = vector.load %arg5[%c0_12, %c0_13] : memref<1x1024xf32, #tpu.memory_space<vmem>>, vector<1x1024xf32>
    %19 = vector.broadcast %18 : vector<1x1024xf32> to vector<16x1024xf32>
    %20 = arith.addf %17, %19 : vector<16x1024xf32>
    %cst_14 = arith.constant 0.000000e+00 : f32
    %21 = vector.broadcast %cst_14 : f32 to vector<16x1024xf32>
    %22 = arith.maximumf %20, %21 : vector<16x1024xf32>
    %23 = arith.truncf %22 : vector<16x1024xf32> to vector<16x1024xbf16>
    %24 = arith.extui %0 : i1 to i32
    %c0_i32_15 = arith.constant 0 : i32
    %25 = arith.cmpi ne, %24, %c0_i32_15 : i32
    scf.if %25 {
      %c2_i32 = arith.constant 2 : i32
      %52 = tpu.memref_slice %arg18[%c2_i32] : memref<5x!tpu.dma_semaphore, #tpu.memory_space<semaphore_mem>> -> memref<1x!tpu.dma_semaphore, #tpu.memory_space<semaphore_mem>>
      %53 = tpu.memref_squeeze %52 : memref<1x!tpu.dma_semaphore, #tpu.memory_space<semaphore_mem>> -> memref<!tpu.dma_semaphore, #tpu.memory_space<semaphore_mem>>
      tpu.wait_dma2 semaphore(%53 : memref<!tpu.dma_semaphore, #tpu.memory_space<semaphore_mem>>) src(%arg6 : memref<1024x1024xbf16, #tpu.memory_space<any>>) dst(%arg15 : memref<1024x1024xbf16, #tpu.memory_space<vmem>>)
    } else {
    }
    %c0_16 = arith.constant 0 : index
    %c0_17 = arith.constant 0 : index
    %26 = vector.load %arg15[%c0_16, %c0_17] : memref<1024x1024xbf16, #tpu.memory_space<vmem>>, vector<1024x1024xbf16>
    %cst_18 = arith.constant dense<0.000000e+00> : vector<16x1024xf32>
    %27 = tpu.matmul %23, %26, %cst_18 {dimension_numbers = #tpu.dot_dimension_numbers<[1], [0], [0], [1], [0, 0, 1, 1], [], []>} : vector<16x1024xbf16>, vector<1024x1024xbf16>, vector<16x1024xf32> -> vector<16x1024xf32>
    %c0_19 = arith.constant 0 : index
    %c0_20 = arith.constant 0 : index
    %28 = vector.load %arg7[%c0_19, %c0_20] : memref<1x1024xf32, #tpu.memory_space<vmem>>, vector<1x1024xf32>
    %29 = vector.broadcast %28 : vector<1x1024xf32> to vector<16x1024xf32>
    %30 = arith.addf %27, %29 : vector<16x1024xf32>
    %cst_21 = arith.constant 0.000000e+00 : f32
    %31 = vector.broadcast %cst_21 : f32 to vector<16x1024xf32>
    %32 = arith.maximumf %30, %31 : vector<16x1024xf32>
    %33 = arith.truncf %32 : vector<16x1024xf32> to vector<16x1024xbf16>
    %34 = arith.extui %0 : i1 to i32
    %c0_i32_22 = arith.constant 0 : i32
    %35 = arith.cmpi ne, %34, %c0_i32_22 : i32
    scf.if %35 {
      %c3_i32 = arith.constant 3 : i32
      %52 = tpu.memref_slice %arg18[%c3_i32] : memref<5x!tpu.dma_semaphore, #tpu.memory_space<semaphore_mem>> -> memref<1x!tpu.dma_semaphore, #tpu.memory_space<semaphore_mem>>
      %53 = tpu.memref_squeeze %52 : memref<1x!tpu.dma_semaphore, #tpu.memory_space<semaphore_mem>> -> memref<!tpu.dma_semaphore, #tpu.memory_space<semaphore_mem>>
      tpu.wait_dma2 semaphore(%53 : memref<!tpu.dma_semaphore, #tpu.memory_space<semaphore_mem>>) src(%arg8 : memref<1024x512xbf16, #tpu.memory_space<any>>) dst(%arg16 : memref<1024x512xbf16, #tpu.memory_space<vmem>>)
    } else {
    }
    %c0_23 = arith.constant 0 : index
    %c0_24 = arith.constant 0 : index
    %36 = vector.load %arg16[%c0_23, %c0_24] : memref<1024x512xbf16, #tpu.memory_space<vmem>>, vector<1024x512xbf16>
    %cst_25 = arith.constant dense<0.000000e+00> : vector<16x512xf32>
    %37 = tpu.matmul %33, %36, %cst_25 {dimension_numbers = #tpu.dot_dimension_numbers<[1], [0], [0], [1], [0, 0, 1, 1], [], []>} : vector<16x1024xbf16>, vector<1024x512xbf16>, vector<16x512xf32> -> vector<16x512xf32>
    %c0_26 = arith.constant 0 : index
    %c0_27 = arith.constant 0 : index
    %38 = vector.load %arg9[%c0_26, %c0_27] : memref<1x512xf32, #tpu.memory_space<vmem>>, vector<1x512xf32>
    %39 = vector.broadcast %38 : vector<1x512xf32> to vector<16x512xf32>
    %40 = arith.addf %37, %39 : vector<16x512xf32>
    %cst_28 = arith.constant 0.000000e+00 : f32
    %41 = vector.broadcast %cst_28 : f32 to vector<16x512xf32>
    %42 = arith.maximumf %40, %41 : vector<16x512xf32>
    %43 = arith.truncf %42 : vector<16x512xf32> to vector<16x512xbf16>
    %44 = arith.extui %0 : i1 to i32
    %c0_i32_29 = arith.constant 0 : i32
    %45 = arith.cmpi ne, %44, %c0_i32_29 : i32
    scf.if %45 {
      %c4_i32 = arith.constant 4 : i32
      %52 = tpu.memref_slice %arg18[%c4_i32] : memref<5x!tpu.dma_semaphore, #tpu.memory_space<semaphore_mem>> -> memref<1x!tpu.dma_semaphore, #tpu.memory_space<semaphore_mem>>
      %53 = tpu.memref_squeeze %52 : memref<1x!tpu.dma_semaphore, #tpu.memory_space<semaphore_mem>> -> memref<!tpu.dma_semaphore, #tpu.memory_space<semaphore_mem>>
      tpu.wait_dma2 semaphore(%53 : memref<!tpu.dma_semaphore, #tpu.memory_space<semaphore_mem>>) src(%arg10 : memref<512x128xbf16, #tpu.memory_space<any>>) dst(%arg17 : memref<512x128xbf16, #tpu.memory_space<vmem>>)
    } else {
    }
    %c0_30 = arith.constant 0 : index
    %c0_31 = arith.constant 0 : index
    %46 = vector.load %arg17[%c0_30, %c0_31] : memref<512x128xbf16, #tpu.memory_space<vmem>>, vector<512x128xbf16>
    %cst_32 = arith.constant dense<0.000000e+00> : vector<16x128xf32>
    %47 = tpu.matmul %43, %46, %cst_32 {dimension_numbers = #tpu.dot_dimension_numbers<[1], [0], [0], [1], [0, 0, 1, 1], [], []>} : vector<16x512xbf16>, vector<512x128xbf16>, vector<16x128xf32> -> vector<16x128xf32>
    %c0_33 = arith.constant 0 : index
    %c0_34 = arith.constant 0 : index
    %48 = vector.load %arg11[%c0_33, %c0_34] : memref<1x128xf32, #tpu.memory_space<vmem>>, vector<1x128xf32>
    %49 = vector.broadcast %48 : vector<1x128xf32> to vector<16x128xf32>
    %50 = arith.addf %47, %49 : vector<16x128xf32>
    %c0_35 = arith.constant 0 : index
    %c0_36 = arith.constant 0 : index
    %51 = vector.load %arg12[%c0_35, %c0_36] : memref<16x128xf32, #tpu.memory_space<vmem>>, vector<16x128xf32>
    tpu.vector_store %arg12[%c0_35, %c0_36], %50 {strides = array<i32>} : memref<16x128xf32, #tpu.memory_space<vmem>>, vector<16x128xf32>,
    return
  }
  func.func @transform_0(%arg0: i32) -> (i32, i32) {
    %c0_i32 = arith.constant 0 : i32
    %c0_i32_0 = arith.constant 0 : i32
    return %arg0, %c0_i32 : i32, i32
  }
  func.func @transform_2(%arg0: i32) -> (i32, i32) {
    %c0_i32 = arith.constant 0 : i32
    %c0_i32_0 = arith.constant 0 : i32
    %c0_i32_1 = arith.constant 0 : i32
    return %c0_i32, %c0_i32_0 : i32, i32
  }
  func.func @transform_4(%arg0: i32) -> (i32, i32) {
    %c0_i32 = arith.constant 0 : i32
    %c0_i32_0 = arith.constant 0 : i32
    %c0_i32_1 = arith.constant 0 : i32
    return %c0_i32, %c0_i32_0 : i32, i32
  }
  func.func @transform_6(%arg0: i32) -> (i32, i32) {
    %c0_i32 = arith.constant 0 : i32
    %c0_i32_0 = arith.constant 0 : i32
    %c0_i32_1 = arith.constant 0 : i32
    return %c0_i32, %c0_i32_0 : i32, i32
  }
  func.func @transform_8(%arg0: i32) -> (i32, i32) {
    %c0_i32 = arith.constant 0 : i32
    %c0_i32_0 = arith.constant 0 : i32
    %c0_i32_1 = arith.constant 0 : i32
    return %c0_i32, %c0_i32_0 : i32, i32
  }
  func.func @transform_10(%arg0: i32) -> (i32, i32) {
    %c0_i32 = arith.constant 0 : i32
    %c0_i32_0 = arith.constant 0 : i32
    %c0_i32_1 = arith.constant 0 : i32
    return %c0_i32, %c0_i32_0 : i32, i32
  }
  func.func @transform_11(%arg0: i32) -> (i32, i32) {
    %c0_i32 = arith.constant 0 : i32
    %c0_i32_0 = arith.constant 0 : i32
    return %arg0, %c0_i32 : i32, i32
  }
}

</mosaic_0001>

<bundles_post_ra>
// kernel: tpu_custom_call.1
= control target key start
LH: loop header
LB: loop body
LE: loop exit
PB: predicated region body
PF: predicated region fallthrough
CT: control target
= control target key end

     0   :  { %16 = vsyncpa [#allocation9], 0  ;;  %s8000_s0 = inlined_call_operand.hbm [shape: bf16[16,768], index: 0, kind: input, shape index: {}]   ;;  %s8001_s1 = inlined_call_operand.hbm [shape: bf16[768,2048], index: 1, kind: input, shape index: {}]   ;;  %s8002_s2 = inlined_call_operand.hbm [shape: f32[1,2048], index: 2, kind: input, shape index: {}]   ;;  %s8003_s3 = inlined_call_operand.hbm [shape: bf16[2048,1024], index: 3, kind: input, shape index: {}]   ;;  %s8004_s4 = inlined_call_operand.hbm [shape: f32[1,1024], index: 4, kind: input, shape index: {}]   ;;  %s8005_s5 = inlined_call_operand.hbm [shape: bf16[1024,1024], index: 5, kind: input, shape index: {}]   ;;  %s8006_s6 = inlined_call_operand.hbm [shape: f32[1,1024], index: 6, kind: input, shape index: {}]   ;;  %s8007_s7 = inlined_call_operand.hbm [shape: bf16[1024,512], index: 7, kind: input, shape index: {}]   ;;  %s8008_s8 = inlined_call_operand.hbm [shape: f32[1,512], index: 8, kind: input, shape index: {}]   ;;  %s8009_s9 = inlined_call_operand.hbm [shape: bf16[512,128], index: 9, kind: input, shape index: {}]   ;;  %s8010_s10 = inlined_call_operand.hbm [shape: f32[1,128], index: 10, kind: input, shape index: {}]   ;;  %s8011_s11 = inlined_call_operand.hbm [shape: f32[16,128], index: 11, kind: output, shape index: {}]  }
   0x1   :  { %17 = vsyncpa [#allocation12], 0 }
   0x2   :  { %18 = vsyncpa [#allocation15], 0 }
   0x3   :  { %19 = vsyncpa [#allocation18], 0 }
   0x4   :  { %20 = vsyncpa [#allocation10], 0  ;;  %s7423_s17 = smov [#allocation11]   ;;  %s7424_s19 = smov [#allocation14]  }
   0x5   :  { %s39_s18 = sshll.u32 %s7423_s17, 4  ;;  %s59_s20 = sshll.u32 %s7424_s19, 4  ;;  %s40_s18 = int_to_ptr.vmem [resolvable:$true] %s39_s18  ;;  %s60_s20 = int_to_ptr.vmem [resolvable:$true] %s59_s20 }
   0x6   :  { %s7227_s23 = scalar_lea.hbm %s8002_s2, 256 }
   0x7   :  { %p7228_p0 = scmp.ne.s32.totalorder %s8002_s2, %s7227_s23  ;;  %p7231_p1 = scmp.lt.u32.totalorder %s7227_s23, %s8002_s2 }
   0x9   :  { %p7233_p2 = pnand %p7231_p1, %p7228_p0 }
   0xb   :  { %7236 = shalt.err (!%p7233_p2)
}
   0xc   :  { %s7237_s28 = scalar_lea.vmem %s40_s18, 256  ;;  %p7242_p4 = scmp.lt.s32.totalorder %s40_s18, %s40_s18 }
   0xd   :  { %p7238_p3 = scmp.ne.s32.totalorder %s40_s18, %s7237_s28  ;;  %p7243_p5 = scmp.lt.s32.totalorder %s7237_s28, %s7237_s28 }
   0xf   :  { %p7244_p6 = por %p7243_p5, %p7242_p4 }
  0x11   :  { %p7245_p7 = pnand %p7244_p6, %p7238_p3 }
  0x13   :  { %7248 = shalt.err (!%p7245_p7)
}
  0x14   :  { %42 = dma.hbm_to_vmem [thread:$0]  %s8002_s2, 256, %s40_s18, [#allocation12]  }
  0x15   :  { %s7249_s14 = scalar_lea.hbm %s8006_s6, 128 }
  0x16   :  { %p7250_p8 = scmp.ne.s32.totalorder %s8006_s6, %s7249_s14  ;;  %p7253_p9 = scmp.lt.u32.totalorder %s7249_s14, %s8006_s6 }
  0x18   :  { %p7255_p10 = pnand %p7253_p9, %p7250_p8 }
  0x1a   :  { %7258 = shalt.err (!%p7255_p10)
}
  0x1b   :  { %s7259_s21 = scalar_lea.vmem %s60_s20, 128  ;;  %p7264_p12 = scmp.lt.s32.totalorder %s60_s20, %s60_s20 }
  0x1c   :  { %p7260_p11 = scmp.ne.s32.totalorder %s60_s20, %s7259_s21  ;;  %p7265_p13 = scmp.lt.s32.totalorder %s7259_s21, %s7259_s21 }
  0x1e   :  { %p7266_p0 = por %p7265_p13, %p7264_p12 }
  0x20   :  { %p7267_p1 = pnand %p7266_p0, %p7260_p11 }
  0x22   :  { %7270 = shalt.err (!%p7267_p1)
}
  0x23   :  { %62 = dma.hbm_to_vmem [thread:$0]  %s8006_s6, 128, %s60_s20, [#allocation15]  }
  0x24   :  { %s7425_s22 = smov [#allocation8]   ;;  %s7271_s26 = scalar_lea.hbm %s8000_s0, 768 }
  0x25   :  { %s26_s23 = sshll.u32 %s7425_s22, 4  ;;  %p7272_p2 = scmp.ne.s32.totalorder %s8000_s0, %s7271_s26  ;;  %s27_s23 = int_to_ptr.vmem [resolvable:$true] %s26_s23 }
  0x26   :  { %p7275_p3 = scmp.lt.u32.totalorder %s7271_s26, %s8000_s0 }
  0x28   :  { %p7277_p4 = pnand %p7275_p3, %p7272_p2 }
  0x2a   :  { %7280 = shalt.err (!%p7277_p4)
}
  0x2b   :  { %s7281_s12 = scalar_lea.vmem %s27_s23, 768  ;;  %p7286_p6 = scmp.lt.s32.totalorder %s27_s23, %s27_s23 }
  0x2c   :  { %p7282_p5 = scmp.ne.s32.totalorder %s27_s23, %s7281_s12  ;;  %p7287_p7 = scmp.lt.s32.totalorder %s7281_s12, %s7281_s12 }
  0x2e   :  { %p7288_p8 = por %p7287_p7, %p7286_p6 }
  0x30   :  { %p7289_p9 = pnand %p7288_p8, %p7282_p5 }
  0x32   :  { %7292 = shalt.err (!%p7289_p9)
}
  0x33   :  { %s7426_s6 = smov 384   ;;  %s7427_s20 = smov 24  }
  0x34   :  { %32 = dma.hbm_to_vmem [thread:$0]  %s8000_s0, 768, %s27_s23, [#allocation9], %s7426_s6, %s7426_s6, %s7427_s20  }
  0x35   :  { %s7428_s15 = smov [#allocation13]   ;;  %s7429_s17 = smov [#allocation16]  }
  0x36   :  { %s49_s16 = sshll.u32 %s7428_s15, 4  ;;  %s69_s19 = sshll.u32 %s7429_s17, 4  ;;  %s50_s16 = int_to_ptr.vmem [resolvable:$true] %s49_s16  ;;  %s70_s19 = int_to_ptr.vmem [resolvable:$true] %s69_s19 }
  0x37   :  { %s7293_s18 = scalar_lea.hbm %s8004_s4, 128 }
  0x38   :  { %p7294_p10 = scmp.ne.s32.totalorder %s8004_s4, %s7293_s18  ;;  %p7297_p11 = scmp.lt.u32.totalorder %s7293_s18, %s8004_s4 }
  0x3a   :  { %p7299_p12 = pnand %p7297_p11, %p7294_p10 }
  0x3c   :  { %7302 = shalt.err (!%p7299_p12)
}
  0x3d   :  { %s7303_s0 = scalar_lea.vmem %s50_s16, 128  ;;  %p7308_p0 = scmp.lt.s32.totalorder %s50_s16, %s50_s16 }
  0x3e   :  { %p7304_p13 = scmp.ne.s32.totalorder %s50_s16, %s7303_s0  ;;  %p7309_p1 = scmp.lt.s32.totalorder %s7303_s0, %s7303_s0 }
  0x40   :  { %p7310_p2 = por %p7309_p1, %p7308_p0 }
  0x42   :  { %p7311_p3 = pnand %p7310_p2, %p7304_p13 }
  0x44   :  { %7314 = shalt.err (!%p7311_p3)
}
  0x45   :  { %52 = dma.hbm_to_vmem [thread:$0]  %s8004_s4, 128, %s50_s16, [#allocation12]  }
  0x46   :  { %s7315_s30 = scalar_lea.hbm %s8008_s8, 64 }
  0x47   :  { %p7316_p4 = scmp.ne.s32.totalorder %s8008_s8, %s7315_s30  ;;  %p7319_p5 = scmp.lt.u32.totalorder %s7315_s30, %s8008_s8 }
  0x49   :  { %p7321_p6 = pnand %p7319_p5, %p7316_p4 }
  0x4b   :  { %7324 = shalt.err (!%p7321_p6)
}
  0x4c   :  { %s7325_s14 = scalar_lea.vmem %s70_s19, 64  ;;  %p7330_p8 = scmp.lt.s32.totalorder %s70_s19, %s70_s19 }
  0x4d   :  { %p7326_p7 = scmp.ne.s32.totalorder %s70_s19, %s7325_s14  ;;  %p7331_p9 = scmp.lt.s32.totalorder %s7325_s14, %s7325_s14 }
  0x4f   :  { %p7332_p10 = por %p7331_p9, %p7330_p8 }
  0x51   :  { %p7333_p11 = pnand %p7332_p10, %p7326_p7 }
  0x53   :  { %7336 = shalt.err (!%p7333_p11)
}
  0x54   :  { %72 = dma.hbm_to_vmem [thread:$0]  %s8008_s8, 64, %s70_s19, [#allocation15]  }
  0x55   :  { %s7430_s16 = smov [#allocation17]   ;;  %s7337_s18 = scalar_lea.hbm %s8010_s10, 16 }
  0x56   :  { %s79_s17 = sshll.u32 %s7430_s16, 4  ;;  %p7338_p12 = scmp.ne.s32.totalorder %s8010_s10, %s7337_s18  ;;  %s80_s17 = int_to_ptr.vmem [resolvable:$true] %s79_s17 }
  0x57   :  { %p7341_p13 = scmp.lt.u32.totalorder %s7337_s18, %s8010_s10 }
  0x59   :  { %p7343_p0 = pnand %p7341_p13, %p7338_p12 }
  0x5b   :  { %7346 = shalt.err (!%p7343_p0)
}
  0x5c   :  { %s7347_s0 = scalar_lea.vmem %s80_s17, 16  ;;  %s7351_s8 = scalar_lea.vmem %s80_s17, 32 }
  0x5d   :  { %p7348_p1 = scmp.ne.s32.totalorder %s80_s17, %s7347_s0  ;;  %p7352_p2 = scmp.lt.s32.totalorder %s80_s17, %s80_s17 }
  0x5e   :  { %p7353_p3 = scmp.lt.s32.totalorder %s7351_s8, %s7347_s0 }
  0x60   :  { %p7354_p4 = por %p7353_p3, %p7352_p2 }
  0x62   :  { %p7355_p5 = pnand %p7354_p4, %p7348_p1 }
  0x64   :  { %7358 = shalt.err (!%p7355_p5)
}
  0x65   :  { %82 = dma.hbm_to_vmem [thread:$0]  %s8010_s10, 16, %s80_s17, [#allocation18]  }
  0x66   :  { %7403 = dma.done.wait [#allocation9], 768  }
  0x67   :  { %7404 = vsyncadd [#allocation9], 4294966528 }
  0x68   :  { %7405 = dma.done.wait [#allocation12], 384  }
  0x69   :  { %7406 = vsyncadd [#allocation12], 4294966912 }
  0x6a   :  { %7407 = dma.done.wait [#allocation15], 192  }
  0x6b   :  { %7408 = vsyncadd [#allocation15], 4294967104 }
  0x6c   :  { %7409 = dma.done.wait [#allocation18], 16  }
  0x6d   :  { %7410 = vsyncadd [#allocation18], 4294967280 }
  0x6e   :  { %s110_s27 = sld [smem:[#allocation0]]   ;;  %s7431_s28 = smov [#allocation2]  }
  0x6f   :  { %s118_s29 = sshll.u32 %s7431_s28, 4  ;;  %s7432_s30 = smov 2048   ;;  %s119_s29 = int_to_ptr.vmem [resolvable:$true] %s118_s29 }
  0x70   :  { %122 = sst [smem:[#allocation21]] %s7432_s30  ;;  %s7433_s12 = smov 16  }
  0x71   :  { %124 = sst [smem:[#allocation21 + $0x1]] %s7432_s30  ;;  %s7434_s6 = smov 64  }
  0x72   :  { %126 = sst [smem:[#allocation21 + $0x2]] %s7433_s12  ;;  %s7435_s20 = smov 128  }
  0x73   :  { %128 = sst [smem:[#allocation21 + $0x3]] %s7434_s6  ;;  %s7436_s14 = smov 2  }
  0x74   :  { %s6808_s10 = sshll.u32 %s110_s27, 26  ;;  %130 = sst [smem:[#allocation21 + $0x4]] %s7435_s20 }
  0x75   :  { %s7591_s13 = sadd.s32 134217728, %s6808_s10  ;;  %132 = sst [smem:[#allocation21 + $0x5]] %s7436_s14 }
  0x76   :  { %s7437_s4 = smov 1024   ;;  %136 = sst [smem:[#allocation21 + $0x7]] %s7434_s6 }
  0x77   :  { %134 = sst [smem:[#allocation21 + $0x6]] %s7437_s4  ;;  %s7438_s15 = smov 4  }
  0x78   :  { %138 = sst [smem:[#allocation21 + $0x8]] %s7438_s15  ;;  %s7439_s16 = smov [#allocation7]  }
  0x79   :  { %s7440_s17 = smov [#allocation20]   ;;  %s7441_s18 = smov 8  }
  0x7a   :  { %140 = dma.general %s8001_s1, 98304, %s119_s29, %s7439_s16, %s7440_s17, [#allocation21], %s7591_s13, 0  }
  0x7b   :  { %157 = sst [smem:[#allocation23]] %s7437_s4  ;;  %s7442_s22 = smov [#allocation3]  }
  0x7c   :  { %159 = sst [smem:[#allocation23 + $0x1]] %s7437_s4  ;;  %s153_s24 = sshll.u32 %s7442_s22, 4  ;;  %s154_s24 = int_to_ptr.vmem [resolvable:$true] %s153_s24 }
  0x7d   :  { %161 = sst [smem:[#allocation23 + $0x2]] %s7441_s18  ;;  %s7443_s25 = smov 512  }
  0x7e   :  { %163 = sst [smem:[#allocation23 + $0x3]] %s7434_s6  ;;  %s7444_s1 = smov [#allocation7 + $0x1]  }
  0x7f   :  { %165 = sst [smem:[#allocation23 + $0x4]] %s7435_s20  ;;  %s7445_s26 = smov [#allocation22]  }
  0x80   :  { %167 = sst [smem:[#allocation23 + $0x5]] %s7436_s14  ;;  %s7446_s19 = smov [#allocation4]  }
  0x81   :  { %169 = sst [smem:[#allocation23 + $0x6]] %s7443_s25  ;;  %s188_s23 = sshll.u32 %s7446_s19, 4  ;;  %s189_s23 = int_to_ptr.vmem [resolvable:$true] %s188_s23 }
  0x82   :  { %171 = sst [smem:[#allocation23 + $0x7]] %s7434_s6  ;;  %s7447_s27 = smov [#allocation7 + $0x2]  }
  0x83   :  { %173 = sst [smem:[#allocation23 + $0x8]] %s7438_s15  ;;  %s7448_s28 = smov [#allocation24]  }
  0x84   :  { %175 = dma.general %s8003_s3, 131072, %s154_s24, %s7444_s1, %s7445_s26, [#allocation23], %s7591_s13, 0  }
  0x85   :  { %192 = sst [smem:[#allocation25]] %s7437_s4  ;;  %s7449_s30 = smov [#allocation5]  }
  0x86   :  { %194 = sst [smem:[#allocation25 + $0x1]] %s7437_s4  ;;  %s223_s12 = sshll.u32 %s7449_s30, 4  ;;  %s224_s12 = int_to_ptr.vmem [resolvable:$true] %s223_s12 }
  0x87   :  { %196 = sst [smem:[#allocation25 + $0x2]] %s7441_s18  ;;  %s7450_s10 = smov [#allocation6]  }
  0x88   :  { %198 = sst [smem:[#allocation25 + $0x3]] %s7434_s6  ;;  %s254_s4 = sshll.u32 %s7450_s10, 4  ;;  %s255_s4 = int_to_ptr.vmem [resolvable:$true] %s254_s4 }
  0x89   :  { %200 = sst [smem:[#allocation25 + $0x4]] %s7435_s20  ;;  %s7451_s16 = smov 256  }
  0x8a   :  { %202 = sst [smem:[#allocation25 + $0x5]] %s7436_s14  ;;  %s7453_s17 = smov [#allocation26]  }
  0x8b   :  { %204 = sst [smem:[#allocation25 + $0x6]] %s7443_s25 }
  0x8c   :  { %206 = sst [smem:[#allocation25 + $0x7]] %s7434_s6 }
  0x8d   :  { %208 = sst [smem:[#allocation25 + $0x8]] %s7438_s15 }
  0x8e   :  { %210 = dma.general %s8005_s5, 65536, %s189_s23, %s7447_s27, %s7448_s28, [#allocation25], %s7591_s13, 0  }
  0x8f   :  { %227 = sst [smem:[#allocation27]] %s7443_s25  ;;  %s7452_s5 = smov [#allocation7 + $0x3]  }
  0x90   :  { %229 = sst [smem:[#allocation27 + $0x1]] %s7443_s25 }
  0x91   :  { %231 = sst [smem:[#allocation27 + $0x2]] %s7438_s15 }
  0x92   :  { %233 = sst [smem:[#allocation27 + $0x3]] %s7434_s6 }
  0x93   :  { %235 = sst [smem:[#allocation27 + $0x4]] %s7435_s20  ;;  %s7359_s20 = scalar_lea.hbm %s8009_s9, 4096 }
  0x94   :  { %237 = sst [smem:[#allocation27 + $0x5]] %s7436_s14  ;;  %p7360_p6 = scmp.ne.s32.totalorder %s8009_s9, %s7359_s20 }
  0x95   :  { %239 = sst [smem:[#allocation27 + $0x6]] %s7451_s16  ;;  %p7363_p7 = scmp.lt.u32.totalorder %s7359_s20, %s8009_s9 }
  0x96   :  { %241 = sst [smem:[#allocation27 + $0x7]] %s7434_s6 }
  0x97   :  { %243 = sst [smem:[#allocation27 + $0x8]] %s7438_s15  ;;  %p7365_p8 = pnand %p7363_p7, %p7360_p6 }
  0x98   :  { %245 = dma.general %s8007_s7, 32768, %s224_s12, %s7452_s5, %s7453_s17, [#allocation27], %s7591_s13, 0  }
  0x99   :  { %7368 = shalt.err (!%p7365_p8)  }
  0x9a   :  { %s7369_s6 = scalar_lea.vmem %s255_s4, 4096  ;;  %p7374_p10 = scmp.lt.s32.totalorder %s255_s4, %s255_s4 }
  0x9b   :  { %p7370_p9 = scmp.ne.s32.totalorder %s255_s4, %s7369_s6  ;;  %p7375_p11 = scmp.lt.s32.totalorder %s7369_s6, %s7369_s6 }
  0x9d   :  { %p7376_p12 = por %p7375_p11, %p7374_p10 }
  0x9f   :  { %p7377_p13 = pnand %p7376_p12, %p7370_p9 }
  0xa1   :  { %7380 = shalt.err (!%p7377_p13)  }
  0xa2   :  { %257 = dma.hbm_to_vmem [thread:$0]  %s8009_s9, 4096, %s255_s4, [#allocation7 + $0x4]  ;;  %v7640_v0 = vld [vmem:[#allocation8] sm:$0xff]  ;;  %v7642_v1 = vld [vmem:[#allocation8 + $0x8] sm:$0xff]  ;;  %v7644_v2 = vld [vmem:[#allocation8 + $0x10] sm:$0xff] }
  0xa3   :  { %v7646_v3 = vld [vmem:[#allocation8 + $0x18] sm:$0xff]  ;;  %v7648_v4 = vld [vmem:[#allocation8 + $0x20] sm:$0xff]  ;;  %v7650_v5 = vld [vmem:[#allocation8 + $0x28] sm:$0xff] }
  0xa4   :  { %7411 = dma.done.wait [#allocation7], 98304 }
  0xa5   :  { %7412 = vsyncadd [#allocation7], 4294868992  ;;  %v7654_v6 = vcombine.high %v7640_v0, %v7646_v3  ;;  %v272_v7 = vld [vmem:[#allocation2 + $0x8] sm:$0xff]  ;;  %v274_v8 = vld [vmem:[#allocation2 + $0x18] sm:$0xff] }
  0xa6   :  { %v271_v9 = vld [vmem:[#allocation2] sm:$0xff]  ;;  %1153 = vmatprep.subr.bf16.mxu0 %v272_v7  ;;  %1282 = vmatprep.subr.bf16.mxu1 %v274_v8  ;;  %v273_v10 = vld [vmem:[#allocation2 + $0x10] sm:$0xff]  ;;  %v288_v11 = vld [vmem:[#allocation2 + $0x88] sm:$0xff] }
  0xa7   :  { %1185 = vmatprep.mubr.bf16.mxu0 %v7654_v6  ;;  %1314 = vmatprep.mubr.bf16.mxu1 %v7654_v6  ;;  %v290_v12 = vld [vmem:[#allocation2 + $0x98] sm:$0xff]  ;;  %v287_v13 = vld [vmem:[#allocation2 + $0x80] sm:$0xff]  ;;  %v289_v14 = vld [vmem:[#allocation2 + $0x90] sm:$0xff] }
  0xa8   :  { %1154 = vmatpush1.bf16.msra.mxu0 %v271_v9  ;;  %1283 = vmatpush1.bf16.msra.mxu1 %v273_v10  ;;  %v304_v15 = vld [vmem:[#allocation2 + $0x108] sm:$0xff]  ;;  %v306_v16 = vld [vmem:[#allocation2 + $0x118] sm:$0xff]  ;;  %v303_v17 = vld [vmem:[#allocation2 + $0x100] sm:$0xff] }
  0xa9   :  { %1155 = vmatprep.subr.bf16.mxu0 %v288_v11  ;;  %1284 = vmatprep.subr.bf16.mxu1 %v290_v12  ;;  %v305_v18 = vld [vmem:[#allocation2 + $0x110] sm:$0xff]  ;;  %v320_v19 = vld [vmem:[#allocation2 + $0x188] sm:$0xff]  ;;  %v322_v20 = vld [vmem:[#allocation2 + $0x198] sm:$0xff] }
  0xaa   :  { %v319_v21 = vld [vmem:[#allocation2 + $0x180] sm:$0xff]  ;;  %v321_v22 = vld [vmem:[#allocation2 + $0x190] sm:$0xff]  ;;  %v336_v23 = vld [vmem:[#allocation2 + $0x208] sm:$0xff] }
  0xab   :  { %v338_v24 = vld [vmem:[#allocation2 + $0x218] sm:$0xff]  ;;  %v335_v25 = vld [vmem:[#allocation2 + $0x200] sm:$0xff]  ;;  %v337_v26 = vld [vmem:[#allocation2 + $0x210] sm:$0xff] }
  0xac   :  { %1156 = vmatpush1.bf16.msra.mxu0 %v287_v13  ;;  %1285 = vmatpush1.bf16.msra.mxu1 %v289_v14  ;;  %v352_v27 = vld [vmem:[#allocation2 + $0x288] sm:$0xff]  ;;  %v354_v28 = vld [vmem:[#allocation2 + $0x298] sm:$0xff]  ;;  %v351_v29 = vld [vmem:[#allocation2 + $0x280] sm:$0xff] }
  0xad   :  { %1157 = vmatprep.subr.bf16.mxu0 %v304_v15  ;;  %1286 = vmatprep.subr.bf16.mxu1 %v306_v16  ;;  %v353_v30 = vld [vmem:[#allocation2 + $0x290] sm:$0xff]  ;;  %v368_v31 = vld [vmem:[#allocation2 + $0x308] sm:$0xff]  ;;  %v370_v32 = vld [vmem:[#allocation2 + $0x318] sm:$0xff]  ;;  %v7660_v16 = vcombine.low %v7640_v0, %v7646_v3 }
  0xae   :  { %v367_v33 = vld [vmem:[#allocation2 + $0x300] sm:$0xff]  ;;  %v369_v34 = vld [vmem:[#allocation2 + $0x310] sm:$0xff]  ;;  %v384_v35 = vld [vmem:[#allocation2 + $0x388] sm:$0xff] }
  0xaf   :  { %v386_v36 = vld [vmem:[#allocation2 + $0x398] sm:$0xff]  ;;  %v383_v37 = vld [vmem:[#allocation2 + $0x380] sm:$0xff]  ;;  %v385_v38 = vld [vmem:[#allocation2 + $0x390] sm:$0xff] }
  0xb0   :  { %1158 = vmatpush1.bf16.msra.mxu0 %v303_v17  ;;  %1287 = vmatpush1.bf16.msra.mxu1 %v305_v18  ;;  %v400_v39 = vld [vmem:[#allocation2 + $0x408] sm:$0xff]  ;;  %v402_v40 = vld [vmem:[#allocation2 + $0x418] sm:$0xff]  ;;  %v399_v41 = vld [vmem:[#allocation2 + $0x400] sm:$0xff] }
  0xb1   :  { %1159 = vmatprep.subr.bf16.mxu0 %v320_v19  ;;  %1288 = vmatprep.subr.bf16.mxu1 %v322_v20  ;;  %v401_v42 = vld [vmem:[#allocation2 + $0x410] sm:$0xff]  ;;  %v416_v43 = vld [vmem:[#allocation2 + $0x488] sm:$0xff]  ;;  %v418_v44 = vld [vmem:[#allocation2 + $0x498] sm:$0xff] }
  0xb2   :  { %v415_v45 = vld [vmem:[#allocation2 + $0x480] sm:$0xff]  ;;  %v417_v46 = vld [vmem:[#allocation2 + $0x490] sm:$0xff]  ;;  %v432_v47 = vld [vmem:[#allocation2 + $0x508] sm:$0xff] }
  0xb3   :  { %v434_v48 = vld [vmem:[#allocation2 + $0x518] sm:$0xff]  ;;  %v431_v49 = vld [vmem:[#allocation2 + $0x500] sm:$0xff]  ;;  %v433_v50 = vld [vmem:[#allocation2 + $0x510] sm:$0xff] }
  0xb4   :  { %1160 = vmatpush1.bf16.msra.mxu0 %v319_v21  ;;  %1289 = vmatpush1.bf16.msra.mxu1 %v321_v22  ;;  %v448_v51 = vld [vmem:[#allocation2 + $0x588] sm:$0xff]  ;;  %v450_v52 = vld [vmem:[#allocation2 + $0x598] sm:$0xff]  ;;  %v447_v53 = vld [vmem:[#allocation2 + $0x580] sm:$0xff]  ;;  %v7664_v21 = vcombine.high %v7642_v1, %v7648_v4 }
  0xb5   :  { %1161 = vmatprep.subr.bf16.mxu0 %v336_v23  ;;  %1290 = vmatprep.subr.bf16.mxu1 %v338_v24  ;;  %v449_v54 = vld [vmem:[#allocation2 + $0x590] sm:$0xff]  ;;  %v464_v55 = vld [vmem:[#allocation2 + $0x608] sm:$0xff]  ;;  %v466_v56 = vld [vmem:[#allocation2 + $0x618] sm:$0xff] }
  0xb6   :  { %v463_v57 = vld [vmem:[#allocation2 + $0x600] sm:$0xff]  ;;  %v465_v58 = vld [vmem:[#allocation2 + $0x610] sm:$0xff]  ;;  %v480_v59 = vld [vmem:[#allocation2 + $0x688] sm:$0xff] }
  0xb7   :  { %v482_v60 = vld [vmem:[#allocation2 + $0x698] sm:$0xff]  ;;  %v479_v61 = vld [vmem:[#allocation2 + $0x680] sm:$0xff]  ;;  %v481_v62 = vld [vmem:[#allocation2 + $0x690] sm:$0xff] }
  0xb8   :  { %1162 = vmatpush1.bf16.msra.mxu0 %v335_v25  ;;  %1291 = vmatpush1.bf16.msra.mxu1 %v337_v26  ;;  %v496_v63 = vld [vmem:[#allocation2 + $0x708] sm:$0xff]  ;;  %v498_v7 = vld [vmem:[#allocation2 + $0x718] sm:$0xff]  ;;  %v495_v8 = vld [vmem:[#allocation2 + $0x700] sm:$0xff] }
  0xb9   :  { %1163 = vmatprep.subr.bf16.mxu0 %v352_v27  ;;  %1292 = vmatprep.subr.bf16.mxu1 %v354_v28  ;;  %v497_v9 = vld [vmem:[#allocation2 + $0x710] sm:$0xff]  ;;  %v512_v10 = vld [vmem:[#allocation2 + $0x788] sm:$0xff]  ;;  %v514_v11 = vld [vmem:[#allocation2 + $0x798] sm:$0xff] }
  0xba   :  { %v511_v12 = vld [vmem:[#allocation2 + $0x780] sm:$0xff]  ;;  %v513_v13 = vld [vmem:[#allocation2 + $0x790] sm:$0xff]  ;;  %v528_v14 = vld [vmem:[#allocation2 + $0x808] sm:$0xff] }
  0xbb   :  { %v530_v15 = vld [vmem:[#allocation2 + $0x818] sm:$0xff]  ;;  %v527_v17 = vld [vmem:[#allocation2 + $0x800] sm:$0xff]  ;;  %v529_v18 = vld [vmem:[#allocation2 + $0x810] sm:$0xff] }
  0xbc   :  { %1164 = vmatpush1.bf16.msra.mxu0 %v351_v29  ;;  %1293 = vmatpush1.bf16.msra.mxu1 %v353_v30  ;;  %v544_v19 = vld [vmem:[#allocation2 + $0x888] sm:$0xff]  ;;  %v546_v20 = vld [vmem:[#allocation2 + $0x898] sm:$0xff]  ;;  %v543_v0 = vld [vmem:[#allocation2 + $0x880] sm:$0xff] }
  0xbd   :  { %1165 = vmatprep.subr.bf16.mxu0 %v368_v31  ;;  %1294 = vmatprep.subr.bf16.mxu1 %v370_v32  ;;  %v545_v3 = vld [vmem:[#allocation2 + $0x890] sm:$0xff]  ;;  %v560_v22 = vld [vmem:[#allocation2 + $0x908] sm:$0xff]  ;;  %v562_v23 = vld [vmem:[#allocation2 + $0x918] sm:$0xff] }
  0xbe   :  { %v559_v24 = vld [vmem:[#allocation2 + $0x900] sm:$0xff]  ;;  %v561_v25 = vld [vmem:[#allocation2 + $0x910] sm:$0xff]  ;;  %v576_v26 = vld [vmem:[#allocation2 + $0x988] sm:$0xff] }
  0xbf   :  { %v578_v27 = vld [vmem:[#allocation2 + $0x998] sm:$0xff]  ;;  %v575_v28 = vld [vmem:[#allocation2 + $0x980] sm:$0xff]  ;;  %v577_v29 = vld [vmem:[#allocation2 + $0x990] sm:$0xff] }
  0xc0   :  { %1166 = vmatpush1.bf16.msra.mxu0 %v367_v33  ;;  %1295 = vmatpush1.bf16.msra.mxu1 %v369_v34  ;;  %v592_v30 = vld [vmem:[#allocation2 + $0xa08] sm:$0xff]  ;;  %v594_v31 = vld [vmem:[#allocation2 + $0xa18] sm:$0xff]  ;;  %v591_v32 = vld [vmem:[#allocation2 + $0xa00] sm:$0xff] }
  0xc1   :  { %1167 = vmatprep.subr.bf16.mxu0 %v384_v35  ;;  %1296 = vmatprep.subr.bf16.mxu1 %v386_v36  ;;  %v593_v33 = vld [vmem:[#allocation2 + $0xa10] sm:$0xff]  ;;  %v608_v34 = vld [vmem:[#allocation2 + $0xa88] sm:$0xff]  ;;  %v610_v35 = vld [vmem:[#allocation2 + $0xa98] sm:$0xff] }
  0xc2   :  { %v607_v36 = vld [vmem:[#allocation2 + $0xa80] sm:$0xff] }
  0xc4   :  { %1168 = vmatpush1.bf16.msra.mxu0 %v383_v37  ;;  %1297 = vmatpush1.bf16.msra.mxu1 %v385_v38  ;;  %v609_v37 = vld [vmem:[#allocation2 + $0xa90] sm:$0xff]  ;;  %v624_v38 = vld [vmem:[#allocation2 + $0xb08] sm:$0xff] }
  0xc5   :  { %1169 = vmatprep.subr.bf16.mxu0 %v400_v39  ;;  %1298 = vmatprep.subr.bf16.mxu1 %v402_v40  ;;  %v626_v39 = vld [vmem:[#allocation2 + $0xb18] sm:$0xff]  ;;  %v623_v40 = vld [vmem:[#allocation2 + $0xb00] sm:$0xff] }
  0xc8   :  { %1170 = vmatpush1.bf16.msra.mxu0 %v399_v41  ;;  %1299 = vmatpush1.bf16.msra.mxu1 %v401_v42  ;;  %v625_v41 = vld [vmem:[#allocation2 + $0xb10] sm:$0xff]  ;;  %v640_v42 = vld [vmem:[#allocation2 + $0xb88] sm:$0xff] }
  0xc9   :  { %1171 = vmatprep.subr.bf16.mxu0 %v416_v43  ;;  %1300 = vmatprep.subr.bf16.mxu1 %v418_v44  ;;  %v642_v43 = vld [vmem:[#allocation2 + $0xb98] sm:$0xff]  ;;  %v639_v44 = vld [vmem:[#allocation2 + $0xb80] sm:$0xff] }
  0xcc   :  { %1172 = vmatpush1.bf16.msra.mxu0 %v415_v45  ;;  %1301 = vmatpush1.bf16.msra.mxu1 %v417_v46  ;;  %v641_v45 = vld [vmem:[#allocation2 + $0xb90] sm:$0xff]  ;;  %v656_v46 = vld [vmem:[#allocation2 + $0xc08] sm:$0xff] }
  0xcd   :  { %1173 = vmatprep.subr.bf16.mxu0 %v432_v47  ;;  %1302 = vmatprep.subr.bf16.mxu1 %v434_v48  ;;  %v658_v47 = vld [vmem:[#allocation2 + $0xc18] sm:$0xff]  ;;  %v655_v48 = vld [vmem:[#allocation2 + $0xc00] sm:$0xff] }
  0xd0   :  { %1174 = vmatpush1.bf16.msra.mxu0 %v431_v49  ;;  %1303 = vmatpush1.bf16.msra.mxu1 %v433_v50  ;;  %v657_v49 = vld [vmem:[#allocation2 + $0xc10] sm:$0xff]  ;;  %v672_v50 = vld [vmem:[#allocation2 + $0xc88] sm:$0xff] }
  0xd1   :  { %1175 = vmatprep.subr.bf16.mxu0 %v448_v51  ;;  %1304 = vmatprep.subr.bf16.mxu1 %v450_v52  ;;  %v674_v51 = vld [vmem:[#allocation2 + $0xc98] sm:$0xff]  ;;  %v671_v52 = vld [vmem:[#allocation2 + $0xc80] sm:$0xff] }
  0xd4   :  { %1176 = vmatpush1.bf16.msra.mxu0 %v447_v53  ;;  %1305 = vmatpush1.bf16.msra.mxu1 %v449_v54  ;;  %v673_v53 = vld [vmem:[#allocation2 + $0xc90] sm:$0xff]  ;;  %v688_v54 = vld [vmem:[#allocation2 + $0xd08] sm:$0xff] }
  0xd5   :  { %1177 = vmatprep.subr.bf16.mxu0 %v464_v55  ;;  %1306 = vmatprep.subr.bf16.mxu1 %v466_v56  ;;  %v690_v55 = vld [vmem:[#allocation2 + $0xd18] sm:$0xff]  ;;  %v687_v56 = vld [vmem:[#allocation2 + $0xd00] sm:$0xff] }
  0xd8   :  { %1178 = vmatpush1.bf16.msra.mxu0 %v463_v57  ;;  %1307 = vmatpush1.bf16.msra.mxu1 %v465_v58  ;;  %v689_v57 = vld [vmem:[#allocation2 + $0xd10] sm:$0xff]  ;;  %v704_v58 = vld [vmem:[#allocation2 + $0xd88] sm:$0xff] }
  0xd9   :  { %1179 = vmatprep.subr.bf16.mxu0 %v480_v59  ;;  %1308 = vmatprep.subr.bf16.mxu1 %v482_v60  ;;  %v706_v59 = vld [vmem:[#allocation2 + $0xd98] sm:$0xff]  ;;  %v703_v60 = vld [vmem:[#allocation2 + $0xd80] sm:$0xff] }
  0xdc   :  { %1180 = vmatpush1.bf16.msra.mxu0 %v479_v61  ;;  %1309 = vmatpush1.bf16.msra.mxu1 %v481_v62  ;;  %v705_v61 = vld [vmem:[#allocation2 + $0xd90] sm:$0xff]  ;;  %v720_v62 = vld [vmem:[#allocation2 + $0xe08] sm:$0xff] }
  0xdd   :  { %1181 = vmatprep.subr.bf16.mxu0 %v496_v63  ;;  %1310 = vmatprep.subr.bf16.mxu1 %v498_v7  ;;  %v722_v63 = vld [vmem:[#allocation2 + $0xe18] sm:$0xff]  ;;  %v719_v7 = vld [vmem:[#allocation2 + $0xe00] sm:$0xff] }
  0xe0   :  { %1182 = vmatpush1.bf16.msra.mxu0 %v495_v8  ;;  %1311 = vmatpush1.bf16.msra.mxu1 %v497_v9  ;;  %v721_v8 = vld [vmem:[#allocation2 + $0xe10] sm:$0xff]  ;;  %v736_v9 = vld [vmem:[#allocation2 + $0xe88] sm:$0xff] }
  0xe1   :  { %1183 = vmatprep.subr.bf16.mxu0 %v512_v10  ;;  %1312 = vmatprep.subr.bf16.mxu1 %v514_v11  ;;  %v738_v10 = vld [vmem:[#allocation2 + $0xe98] sm:$0xff]  ;;  %v735_v11 = vld [vmem:[#allocation2 + $0xe80] sm:$0xff] }
  0xe4   :  { %1184 = vmatpush1.bf16.msra.mxu0 %v511_v12  ;;  %1313 = vmatpush1.bf16.msra.mxu1 %v513_v13  ;;  %v737_v12 = vld [vmem:[#allocation2 + $0xe90] sm:$0xff]  ;;  %v752_v13 = vld [vmem:[#allocation2 + $0xf08] sm:$0xff] }
  0xe5   :  { %1196 = vmatprep.subr.bf16.mxu0 %v528_v14  ;;  %1325 = vmatprep.subr.bf16.mxu1 %v530_v15  ;;  %v754_v14 = vld [vmem:[#allocation2 + $0xf18] sm:$0xff]  ;;  %v751_v15 = vld [vmem:[#allocation2 + $0xf00] sm:$0xff] }
  0xe7   :  { %1186 = vmatmul.mubr.bf16.vlgmr.msra.gmra.mrb[0].mxu0 %v7660_v16  ;;  %1315 = vmatmul.mubr.bf16.vlgmr.msra.gmra.mrb[0].mxu1 %v7660_v16 }
  0xe8   :  { %1197 = vmatpush1.bf16.msra.mxu0 %v527_v17  ;;  %1326 = vmatpush1.bf16.msra.mxu1 %v529_v18  ;;  %v753_v17 = vld [vmem:[#allocation2 + $0xf10] sm:$0xff]  ;;  %v768_v18 = vld [vmem:[#allocation2 + $0xf88] sm:$0xff] }
  0xe9   :  { %1198 = vmatprep.subr.bf16.mxu0 %v544_v19  ;;  %1327 = vmatprep.subr.bf16.mxu1 %v546_v20  ;;  %v770_v19 = vld [vmem:[#allocation2 + $0xf98] sm:$0xff]  ;;  %v767_v20 = vld [vmem:[#allocation2 + $0xf80] sm:$0xff] }
  0xea   :  { %1228 = vmatprep.mubr.bf16.mxu0 %v7664_v21  ;;  %1357 = vmatprep.mubr.bf16.mxu1 %v7664_v21 }
  0xec   :  { %1199 = vmatpush1.bf16.msra.mxu0 %v543_v0  ;;  %1328 = vmatpush1.bf16.msra.mxu1 %v545_v3  ;;  %v769_v0 = vld [vmem:[#allocation2 + $0xf90] sm:$0xff]  ;;  %v784_v3 = vld [vmem:[#allocation2 + $0x1008] sm:$0xff] }
  0xed   :  { %1200 = vmatprep.subr.bf16.mxu0 %v560_v22  ;;  %1329 = vmatprep.subr.bf16.mxu1 %v562_v23  ;;  %v786_v22 = vld [vmem:[#allocation2 + $0x1018] sm:$0xff]  ;;  %v7672_v23 = vcombine.low %v7642_v1, %v7648_v4  ;;  %v799_v1 = vld [vmem:[#allocation2 + $0x1080] sm:$0xff]  ;;  %v801_v4 = vld [vmem:[#allocation2 + $0x1090] sm:$0xff] }
  0xf0   :  { %1201 = vmatpush1.bf16.msra.mxu0 %v559_v24  ;;  %1330 = vmatpush1.bf16.msra.mxu1 %v561_v25  ;;  %v783_v24 = vld [vmem:[#allocation2 + $0x1000] sm:$0xff]  ;;  %v785_v25 = vld [vmem:[#allocation2 + $0x1010] sm:$0xff] }
  0xf1   :  { %1202 = vmatprep.subr.bf16.mxu0 %v576_v26  ;;  %1331 = vmatprep.subr.bf16.mxu1 %v578_v27  ;;  %v800_v26 = vld [vmem:[#allocation2 + $0x1088] sm:$0xff]  ;;  %v802_v27 = vld [vmem:[#allocation2 + $0x1098] sm:$0xff] }
  0xf4   :  { %1203 = vmatpush1.bf16.msra.mxu0 %v575_v28  ;;  %1332 = vmatpush1.bf16.msra.mxu1 %v577_v29  ;;  %v7676_v28 = vcombine.high %v7644_v2, %v7650_v5  ;;  %v816_v29 = vld [vmem:[#allocation2 + $0x1108] sm:$0xff] }
  0xf5   :  { %1204 = vmatprep.subr.bf16.mxu0 %v592_v30  ;;  %1333 = vmatprep.subr.bf16.mxu1 %v594_v31  ;;  %v818_v30 = vld [vmem:[#allocation2 + $0x1118] sm:$0xff]  ;;  %v815_v31 = vld [vmem:[#allocation2 + $0x1100] sm:$0xff] }
  0xf8   :  { %1205 = vmatpush1.bf16.msra.mxu0 %v591_v32  ;;  %1334 = vmatpush1.bf16.msra.mxu1 %v593_v33  ;;  %v817_v32 = vld [vmem:[#allocation2 + $0x1110] sm:$0xff]  ;;  %v832_v33 = vld [vmem:[#allocation2 + $0x1188] sm:$0xff] }
  0xf9   :  { %1206 = vmatprep.subr.bf16.mxu0 %v608_v34  ;;  %1335 = vmatprep.subr.bf16.mxu1 %v610_v35  ;;  %v834_v34 = vld [vmem:[#allocation2 + $0x1198] sm:$0xff]  ;;  %v831_v35 = vld [vmem:[#allocation2 + $0x1180] sm:$0xff] }
  0xfc   :  { %1207 = vmatpush1.bf16.msra.mxu0 %v607_v36  ;;  %1336 = vmatpush1.bf16.msra.mxu1 %v609_v37  ;;  %v833_v36 = vld [vmem:[#allocation2 + $0x1190] sm:$0xff]  ;;  %v848_v37 = vld [vmem:[#allocation2 + $0x1208] sm:$0xff] }
  0xfd   :  { %1208 = vmatprep.subr.bf16.mxu0 %v624_v38  ;;  %1337 = vmatprep.subr.bf16.mxu1 %v626_v39  ;;  %v850_v38 = vld [vmem:[#allocation2 + $0x1218] sm:$0xff]  ;;  %v847_v39 = vld [vmem:[#allocation2 + $0x1200] sm:$0xff] }
 0x100   :  { %1209 = vmatpush1.bf16.msra.mxu0 %v623_v40  ;;  %1338 = vmatpush1.bf16.msra.mxu1 %v625_v41  ;;  %v849_v40 = vld [vmem:[#allocation2 + $0x1210] sm:$0xff]  ;;  %v864_v41 = vld [vmem:[#allocation2 + $0x1288] sm:$0xff] }
 0x101   :  { %1210 = vmatprep.subr.bf16.mxu0 %v640_v42  ;;  %1339 = vmatprep.subr.bf16.mxu1 %v642_v43  ;;  %v866_v42 = vld [vmem:[#allocation2 + $0x1298] sm:$0xff]  ;;  %v863_v43 = vld [vmem:[#allocation2 + $0x1280] sm:$0xff] }
 0x104   :  { %1211 = vmatpush1.bf16.msra.mxu0 %v639_v44  ;;  %1340 = vmatpush1.bf16.msra.mxu1 %v641_v45  ;;  %v865_v44 = vld [vmem:[#allocation2 + $0x1290] sm:$0xff]  ;;  %v880_v45 = vld [vmem:[#allocation2 + $0x1308] sm:$0xff] }
 0x105   :  { %1212 = vmatprep.subr.bf16.mxu0 %v656_v46  ;;  %1341 = vmatprep.subr.bf16.mxu1 %v658_v47  ;;  %v882_v46 = vld [vmem:[#allocation2 + $0x1318] sm:$0xff]  ;;  %v879_v47 = vld [vmem:[#allocation2 + $0x1300] sm:$0xff] }
 0x108   :  { %1213 = vmatpush1.bf16.msra.mxu0 %v655_v48  ;;  %1342 = vmatpush1.bf16.msra.mxu1 %v657_v49  ;;  %v881_v48 = vld [vmem:[#allocation2 + $0x1310] sm:$0xff]  ;;  %v896_v49 = vld [vmem:[#allocation2 + $0x1388] sm:$0xff] }
 0x109   :  { %1214 = vmatprep.subr.bf16.mxu0 %v672_v50  ;;  %1343 = vmatprep.subr.bf16.mxu1 %v674_v51  ;;  %v898_v50 = vld [vmem:[#allocation2 + $0x1398] sm:$0xff]  ;;  %v895_v51 = vld [vmem:[#allocation2 + $0x1380] sm:$0xff] }
 0x10c   :  { %1215 = vmatpush1.bf16.msra.mxu0 %v671_v52  ;;  %1344 = vmatpush1.bf16.msra.mxu1 %v673_v53  ;;  %v897_v52 = vld [vmem:[#allocation2 + $0x1390] sm:$0xff]  ;;  %v912_v53 = vld [vmem:[#allocation2 + $0x1408] sm:$0xff] }
 0x10d   :  { %1216 = vmatprep.subr.bf16.mxu0 %v688_v54  ;;  %1345 = vmatprep.subr.bf16.mxu1 %v690_v55  ;;  %v914_v54 = vld [vmem:[#allocation2 + $0x1418] sm:$0xff]  ;;  %v911_v55 = vld [vmem:[#allocation2 + $0x1400] sm:$0xff] }
 0x110   :  { %1217 = vmatpush1.bf16.msra.mxu0 %v687_v56  ;;  %1346 = vmatpush1.bf16.msra.mxu1 %v689_v57  ;;  %v913_v56 = vld [vmem:[#allocation2 + $0x1410] sm:$0xff]  ;;  %v928_v57 = vld [vmem:[#allocation2 + $0x1488] sm:$0xff] }
 0x111   :  { %1218 = vmatprep.subr.bf16.mxu0 %v704_v58  ;;  %1347 = vmatprep.subr.bf16.mxu1 %v706_v59  ;;  %v930_v58 = vld [vmem:[#allocation2 + $0x1498] sm:$0xff]  ;;  %v927_v59 = vld [vmem:[#allocation2 + $0x1480] sm:$0xff] }
 0x114   :  { %1219 = vmatpush1.bf16.msra.mxu0 %v703_v60  ;;  %1348 = vmatpush1.bf16.msra.mxu1 %v705_v61  ;;  %v929_v60 = vld [vmem:[#allocation2 + $0x1490] sm:$0xff]  ;;  %v944_v61 = vld [vmem:[#allocation2 + $0x1508] sm:$0xff] }
 0x115   :  { %1220 = vmatprep.subr.bf16.mxu0 %v720_v62  ;;  %1349 = vmatprep.subr.bf16.mxu1 %v722_v63  ;;  %v946_v62 = vld [vmem:[#allocation2 + $0x1518] sm:$0xff]  ;;  %v943_v63 = vld [vmem:[#allocation2 + $0x1500] sm:$0xff] }
 0x118   :  { %1221 = vmatpush1.bf16.msra.mxu0 %v719_v7  ;;  %1350 = vmatpush1.bf16.msra.mxu1 %v721_v8  ;;  %v945_v7 = vld [vmem:[#allocation2 + $0x1510] sm:$0xff]  ;;  %v960_v8 = vld [vmem:[#allocation2 + $0x1588] sm:$0xff] }
 0x119   :  { %1222 = vmatprep.subr.bf16.mxu0 %v736_v9  ;;  %1351 = vmatprep.subr.bf16.mxu1 %v738_v10  ;;  %v962_v9 = vld [vmem:[#allocation2 + $0x1598] sm:$0xff]  ;;  %v959_v10 = vld [vmem:[#allocation2 + $0x1580] sm:$0xff] }
 0x11c   :  { %1223 = vmatpush1.bf16.msra.mxu0 %v735_v11  ;;  %1352 = vmatpush1.bf16.msra.mxu1 %v737_v12  ;;  %v961_v11 = vld [vmem:[#allocation2 + $0x1590] sm:$0xff]  ;;  %v976_v12 = vld [vmem:[#allocation2 + $0x1608] sm:$0xff] }
 0x11d   :  { %1224 = vmatprep.subr.bf16.mxu0 %v752_v13  ;;  %1353 = vmatprep.subr.bf16.mxu1 %v754_v14  ;;  %v978_v13 = vld [vmem:[#allocation2 + $0x1618] sm:$0xff]  ;;  %v975_v14 = vld [vmem:[#allocation2 + $0x1600] sm:$0xff] }
 0x120   :  { %1225 = vmatpush1.bf16.msra.mxu0 %v751_v15  ;;  %1354 = vmatpush1.bf16.msra.mxu1 %v753_v17  ;;  %v977_v15 = vld [vmem:[#allocation2 + $0x1610] sm:$0xff]  ;;  %v992_v17 = vld [vmem:[#allocation2 + $0x1688] sm:$0xff] }
 0x121   :  { %1226 = vmatprep.subr.bf16.mxu0 %v768_v18  ;;  %1355 = vmatprep.subr.bf16.mxu1 %v770_v19  ;;  %v994_v18 = vld [vmem:[#allocation2 + $0x1698] sm:$0xff]  ;;  %v991_v19 = vld [vmem:[#allocation2 + $0x1680] sm:$0xff] }
 0x124   :  { %1227 = vmatpush1.bf16.msra.mxu0 %v767_v20  ;;  %1356 = vmatpush1.bf16.msra.mxu1 %v769_v0  ;;  %v993_v20 = vld [vmem:[#allocation2 + $0x1690] sm:$0xff]  ;;  %v1008_v0 = vld [vmem:[#allocation2 + $0x1708] sm:$0xff] }
 0x125   :  { %1239 = vmatprep.subr.bf16.mxu0 %v784_v3  ;;  %1368 = vmatprep.subr.bf16.mxu1 %v786_v22  ;;  %v1010_v3 = vld [vmem:[#allocation2 + $0x1718] sm:$0xff]  ;;  %v1007_v22 = vld [vmem:[#allocation2 + $0x1700] sm:$0xff] }
 0x127   :  { %1229 = vmatmul.mubr.bf16.vlgmr.msra.gmra.mrb[0].mxu0 %v7672_v23  ;;  %1358 = vmatmul.mubr.bf16.vlgmr.msra.gmra.mrb[0].mxu1 %v7672_v23 }
 0x128   :  { %1240 = vmatpush1.bf16.msra.mxu0 %v783_v24  ;;  %1369 = vmatpush1.bf16.msra.mxu1 %v785_v25  ;;  %v1009_v24 = vld [vmem:[#allocation2 + $0x1710] sm:$0xff]  ;;  %v1024_v25 = vld [vmem:[#allocation2 + $0x1788] sm:$0xff] }
 0x129   :  { %1241 = vmatprep.subr.bf16.mxu0 %v800_v26  ;;  %1370 = vmatprep.subr.bf16.mxu1 %v802_v27  ;;  %v1026_v26 = vld [vmem:[#allocation2 + $0x1798] sm:$0xff]  ;;  %v1023_v27 = vld [vmem:[#allocation2 + $0x1780] sm:$0xff] }
 0x12a   :  { %1271 = vmatprep.mubr.bf16.mxu0 %v7676_v28  ;;  %1400 = vmatprep.mubr.bf16.mxu1 %v7676_v28 }
 0x12c   :  { %1242 = vmatpush1.bf16.msra.mxu0 %v799_v1  ;;  %1371 = vmatpush1.bf16.msra.mxu1 %v801_v4  ;;  %v1025_v1 = vld [vmem:[#allocation2 + $0x1790] sm:$0xff]  ;;  %v276_v4 = vld [vmem:[#allocation2 + $0x28] sm:$0xff] }
 0x12d   :  { %1243 = vmatprep.subr.bf16.mxu0 %v816_v29  ;;  %1372 = vmatprep.subr.bf16.mxu1 %v818_v30  ;;  %v278_v29 = vld [vmem:[#allocation2 + $0x38] sm:$0xff]  ;;  %v7684_v30 = vcombine.low %v7644_v2, %v7650_v5  ;;  %v308_v2 = vld [vmem:[#allocation2 + $0x128] sm:$0xff] }
 0x12e   :  { %v310_v5 = vld [vmem:[#allocation2 + $0x138] sm:$0xff] }
 0x130   :  { %1244 = vmatpush1.bf16.msra.mxu0 %v815_v31  ;;  %1373 = vmatpush1.bf16.msra.mxu1 %v817_v32  ;;  %v275_v31 = vld [vmem:[#allocation2 + $0x20] sm:$0xff]  ;;  %v277_v32 = vld [vmem:[#allocation2 + $0x30] sm:$0xff] }
 0x131   :  { %1245 = vmatprep.subr.bf16.mxu0 %v832_v33  ;;  %1374 = vmatprep.subr.bf16.mxu1 %v834_v34  ;;  %v292_v33 = vld [vmem:[#allocation2 + $0xa8] sm:$0xff]  ;;  %v294_v34 = vld [vmem:[#allocation2 + $0xb8] sm:$0xff] }
 0x134   :  { %1246 = vmatpush1.bf16.msra.mxu0 %v831_v35  ;;  %1375 = vmatpush1.bf16.msra.mxu1 %v833_v36  ;;  %v291_v35 = vld [vmem:[#allocation2 + $0xa0] sm:$0xff]  ;;  %v293_v36 = vld [vmem:[#allocation2 + $0xb0] sm:$0xff] }
 0x135   :  { %1247 = vmatprep.subr.bf16.mxu0 %v848_v37  ;;  %1376 = vmatprep.subr.bf16.mxu1 %v850_v38  ;;  %v307_v37 = vld [vmem:[#allocation2 + $0x120] sm:$0xff]  ;;  %v309_v38 = vld [vmem:[#allocation2 + $0x130] sm:$0xff] }
 0x138   :  { %1248 = vmatpush1.bf16.msra.mxu0 %v847_v39  ;;  %1377 = vmatpush1.bf16.msra.mxu1 %v849_v40  ;;  %v324_v39 = vld [vmem:[#allocation2 + $0x1a8] sm:$0xff]  ;;  %v326_v40 = vld [vmem:[#allocation2 + $0x1b8] sm:$0xff] }
 0x139   :  { %1249 = vmatprep.subr.bf16.mxu0 %v864_v41  ;;  %1378 = vmatprep.subr.bf16.mxu1 %v866_v42  ;;  %v323_v41 = vld [vmem:[#allocation2 + $0x1a0] sm:$0xff]  ;;  %v325_v42 = vld [vmem:[#allocation2 + $0x1b0] sm:$0xff] }
 0x13c   :  { %1250 = vmatpush1.bf16.msra.mxu0 %v863_v43  ;;  %1379 = vmatpush1.bf16.msra.mxu1 %v865_v44  ;;  %v340_v43 = vld [vmem:[#allocation2 + $0x228] sm:$0xff]  ;;  %v342_v44 = vld [vmem:[#allocation2 + $0x238] sm:$0xff] }
 0x13d   :  { %1251 = vmatprep.subr.bf16.mxu0 %v880_v45  ;;  %1380 = vmatprep.subr.bf16.mxu1 %v882_v46  ;;  %v339_v45 = vld [vmem:[#allocation2 + $0x220] sm:$0xff]  ;;  %v341_v46 = vld [vmem:[#allocation2 + $0x230] sm:$0xff] }
 0x140   :  { %1252 = vmatpush1.bf16.msra.mxu0 %v879_v47  ;;  %1381 = vmatpush1.bf16.msra.mxu1 %v881_v48  ;;  %v356_v47 = vld [vmem:[#allocation2 + $0x2a8] sm:$0xff]  ;;  %v358_v48 = vld [vmem:[#allocation2 + $0x2b8] sm:$0xff] }
 0x141   :  { %1253 = vmatprep.subr.bf16.mxu0 %v896_v49  ;;  %1382 = vmatprep.subr.bf16.mxu1 %v898_v50  ;;  %v355_v49 = vld [vmem:[#allocation2 + $0x2a0] sm:$0xff]  ;;  %v357_v50 = vld [vmem:[#allocation2 + $0x2b0] sm:$0xff] }
 0x144   :  { %1254 = vmatpush1.bf16.msra.mxu0 %v895_v51  ;;  %1383 = vmatpush1.bf16.msra.mxu1 %v897_v52  ;;  %v372_v51 = vld [vmem:[#allocation2 + $0x328] sm:$0xff]  ;;  %v374_v52 = vld [vmem:[#allocation2 + $0x338] sm:$0xff] }
 0x145   :  { %1255 = vmatprep.subr.bf16.mxu0 %v912_v53  ;;  %1384 = vmatprep.subr.bf16.mxu1 %v914_v54  ;;  %v371_v53 = vld [vmem:[#allocation2 + $0x320] sm:$0xff]  ;;  %v373_v54 = vld [vmem:[#allocation2 + $0x330] sm:$0xff] }
 0x148   :  { %1256 = vmatpush1.bf16.msra.mxu0 %v911_v55  ;;  %1385 = vmatpush1.bf16.msra.mxu1 %v913_v56  ;;  %v388_v55 = vld [vmem:[#allocation2 + $0x3a8] sm:$0xff]  ;;  %v390_v56 = vld [vmem:[#allocation2 + $0x3b8] sm:$0xff] }
 0x149   :  { %1257 = vmatprep.subr.bf16.mxu0 %v928_v57  ;;  %1386 = vmatprep.subr.bf16.mxu1 %v930_v58  ;;  %v387_v57 = vld [vmem:[#allocation2 + $0x3a0] sm:$0xff]  ;;  %v389_v58 = vld [vmem:[#allocation2 + $0x3b0] sm:$0xff] }
 0x14c   :  { %1258 = vmatpush1.bf16.msra.mxu0 %v927_v59  ;;  %1387 = vmatpush1.bf16.msra.mxu1 %v929_v60  ;;  %v404_v59 = vld [vmem:[#allocation2 + $0x428] sm:$0xff]  ;;  %v406_v60 = vld [vmem:[#allocation2 + $0x438] sm:$0xff] }
 0x14d   :  { %1259 = vmatprep.subr.bf16.mxu0 %v944_v61  ;;  %1388 = vmatprep.subr.bf16.mxu1 %v946_v62  ;;  %v403_v61 = vld [vmem:[#allocation2 + $0x420] sm:$0xff]  ;;  %v405_v62 = vld [vmem:[#allocation2 + $0x430] sm:$0xff] }
 0x150   :  { %1260 = vmatpush1.bf16.msra.mxu0 %v943_v63  ;;  %1389 = vmatpush1.bf16.msra.mxu1 %v945_v7  ;;  %v420_v63 = vld [vmem:[#allocation2 + $0x4a8] sm:$0xff]  ;;  %v422_v7 = vld [vmem:[#allocation2 + $0x4b8] sm:$0xff] }
 0x151   :  { %1261 = vmatprep.subr.bf16.mxu0 %v960_v8  ;;  %1390 = vmatprep.subr.bf16.mxu1 %v962_v9  ;;  %v419_v8 = vld [vmem:[#allocation2 + $0x4a0] sm:$0xff]  ;;  %v421_v9 = vld [vmem:[#allocation2 + $0x4b0] sm:$0xff] }
 0x154   :  { %1262 = vmatpush1.bf16.msra.mxu0 %v959_v10  ;;  %1391 = vmatpush1.bf16.msra.mxu1 %v961_v11  ;;  %v436_v10 = vld [vmem:[#allocation2 + $0x528] sm:$0xff]  ;;  %v438_v11 = vld [vmem:[#allocation2 + $0x538] sm:$0xff] }
 0x155   :  { %1263 = vmatprep.subr.bf16.mxu0 %v976_v12  ;;  %1392 = vmatprep.subr.bf16.mxu1 %v978_v13  ;;  %v435_v12 = vld [vmem:[#allocation2 + $0x520] sm:$0xff]  ;;  %v437_v13 = vld [vmem:[#allocation2 + $0x530] sm:$0xff] }
 0x158   :  { %1264 = vmatpush1.bf16.msra.mxu0 %v975_v14  ;;  %1393 = vmatpush1.bf16.msra.mxu1 %v977_v15  ;;  %v452_v14 = vld [vmem:[#allocation2 + $0x5a8] sm:$0xff]  ;;  %v454_v15 = vld [vmem:[#allocation2 + $0x5b8] sm:$0xff] }
 0x159   :  { %1265 = vmatprep.subr.bf16.mxu0 %v992_v17  ;;  %1394 = vmatprep.subr.bf16.mxu1 %v994_v18  ;;  %v451_v17 = vld [vmem:[#allocation2 + $0x5a0] sm:$0xff]  ;;  %v453_v18 = vld [vmem:[#allocation2 + $0x5b0] sm:$0xff] }
 0x15c   :  { %1266 = vmatpush1.bf16.msra.mxu0 %v991_v19  ;;  %1395 = vmatpush1.bf16.msra.mxu1 %v993_v20  ;;  %v468_v19 = vld [vmem:[#allocation2 + $0x628] sm:$0xff]  ;;  %v470_v20 = vld [vmem:[#allocation2 + $0x638] sm:$0xff] }
 0x15d   :  { %1267 = vmatprep.subr.bf16.mxu0 %v1008_v0  ;;  %1396 = vmatprep.subr.bf16.mxu1 %v1010_v3  ;;  %v467_v0 = vld [vmem:[#allocation2 + $0x620] sm:$0xff]  ;;  %v469_v3 = vld [vmem:[#allocation2 + $0x630] sm:$0xff] }
 0x160   :  { %1268 = vmatpush1.bf16.msra.mxu0 %v1007_v22  ;;  %1397 = vmatpush1.bf16.msra.mxu1 %v1009_v24  ;;  %v484_v22 = vld [vmem:[#allocation2 + $0x6a8] sm:$0xff]  ;;  %v486_v24 = vld [vmem:[#allocation2 + $0x6b8] sm:$0xff] }
 0x161   :  { %1269 = vmatprep.subr.bf16.mxu0 %v1024_v25  ;;  %1398 = vmatprep.subr.bf16.mxu1 %v1026_v26  ;;  %v483_v25 = vld [vmem:[#allocation2 + $0x6a0] sm:$0xff]  ;;  %v485_v26 = vld [vmem:[#allocation2 + $0x6b0] sm:$0xff] }
 0x164   :  { %1270 = vmatpush1.bf16.msra.mxu0 %v1023_v27  ;;  %1399 = vmatpush1.bf16.msra.mxu1 %v1025_v1  ;;  %v500_v27 = vld [vmem:[#allocation2 + $0x728] sm:$0xff]  ;;  %v502_v1 = vld [vmem:[#allocation2 + $0x738] sm:$0xff] }
 0x165   :  { %1411 = vmatprep.subr.bf16.mxu0 %v276_v4  ;;  %1540 = vmatprep.subr.bf16.mxu1 %v278_v29  ;;  %v499_v4 = vld [vmem:[#allocation2 + $0x720] sm:$0xff]  ;;  %v501_v29 = vld [vmem:[#allocation2 + $0x730] sm:$0xff] }
 0x167   :  { %1272 = vmatmul.mubr.bf16.vlgmr.msra.gmra.mrb[0].mxu0 %v7684_v30  ;;  %1401 = vmatmul.mubr.bf16.vlgmr.msra.gmra.mrb[0].mxu1 %v7684_v30 }
 0x168   :  { %1412 = vmatpush1.bf16.msra.mxu0 %v275_v31  ;;  %1541 = vmatpush1.bf16.msra.mxu1 %v277_v32  ;;  %v516_v31 = vld [vmem:[#allocation2 + $0x7a8] sm:$0xff]  ;;  %v518_v32 = vld [vmem:[#allocation2 + $0x7b8] sm:$0xff] }
 0x169   :  { %1413 = vmatprep.subr.bf16.mxu0 %v292_v33  ;;  %1542 = vmatprep.subr.bf16.mxu1 %v294_v34  ;;  %v515_v33 = vld [vmem:[#allocation2 + $0x7a0] sm:$0xff]  ;;  %v517_v34 = vld [vmem:[#allocation2 + $0x7b0] sm:$0xff] }
 0x16a   :  { %1443 = vmatprep.mubr.bf16.mxu0 %v7654_v6  ;;  %1572 = vmatprep.mubr.bf16.mxu1 %v7654_v6 }
 0x16c   :  { %1414 = vmatpush1.bf16.msra.mxu0 %v291_v35  ;;  %1543 = vmatpush1.bf16.msra.mxu1 %v293_v36  ;;  %v532_v35 = vld [vmem:[#allocation2 + $0x828] sm:$0xff]  ;;  %v534_v36 = vld [vmem:[#allocation2 + $0x838] sm:$0xff] }
 0x16d   :  { %1415 = vmatprep.subr.bf16.mxu0 %v308_v2  ;;  %1544 = vmatprep.subr.bf16.mxu1 %v310_v5  ;;  %v531_v2 = vld [vmem:[#allocation2 + $0x820] sm:$0xff]  ;;  %v533_v5 = vld [vmem:[#allocation2 + $0x830] sm:$0xff] }
 0x170   :  { %1416 = vmatpush1.bf16.msra.mxu0 %v307_v37  ;;  %1545 = vmatpush1.bf16.msra.mxu1 %v309_v38  ;;  %v548_v37 = vld [vmem:[#allocation2 + $0x8a8] sm:$0xff]  ;;  %v550_v38 = vld [vmem:[#allocation2 + $0x8b8] sm:$0xff] }
 0x171   :  { %1417 = vmatprep.subr.bf16.mxu0 %v324_v39  ;;  %1546 = vmatprep.subr.bf16.mxu1 %v326_v40  ;;  %v547_v39 = vld [vmem:[#allocation2 + $0x8a0] sm:$0xff]  ;;  %v549_v40 = vld [vmem:[#allocation2 + $0x8b0] sm:$0xff] }
 0x174   :  { %1418 = vmatpush1.bf16.msra.mxu0 %v323_v41  ;;  %1547 = vmatpush1.bf16.msra.mxu1 %v325_v42  ;;  %v564_v41 = vld [vmem:[#allocation2 + $0x928] sm:$0xff]  ;;  %v566_v42 = vld [vmem:[#allocation2 + $0x938] sm:$0xff] }
 0x175   :  { %1419 = vmatprep.subr.bf16.mxu0 %v340_v43  ;;  %1548 = vmatprep.subr.bf16.mxu1 %v342_v44  ;;  %v563_v43 = vld [vmem:[#allocation2 + $0x920] sm:$0xff]  ;;  %v565_v44 = vld [vmem:[#allocation2 + $0x930] sm:$0xff] }
 0x178   :  { %1420 = vmatpush1.bf16.msra.mxu0 %v339_v45  ;;  %1549 = vmatpush1.bf16.msra.mxu1 %v341_v46  ;;  %v580_v45 = vld [vmem:[#allocation2 + $0x9a8] sm:$0xff]  ;;  %v582_v46 = vld [vmem:[#allocation2 + $0x9b8] sm:$0xff] }
 0x179   :  { %1421 = vmatprep.subr.bf16.mxu0 %v356_v47  ;;  %1550 = vmatprep.subr.bf16.mxu1 %v358_v48  ;;  %v579_v47 = vld [vmem:[#allocation2 + $0x9a0] sm:$0xff]  ;;  %v581_v48 = vld [vmem:[#allocation2 + $0x9b0] sm:$0xff] }
 0x17c   :  { %1422 = vmatpush1.bf16.msra.mxu0 %v355_v49  ;;  %1551 = vmatpush1.bf16.msra.mxu1 %v357_v50  ;;  %v596_v49 = vld [vmem:[#allocation2 + $0xa28] sm:$0xff]  ;;  %v598_v50 = vld [vmem:[#allocation2 + $0xa38] sm:$0xff] }
 0x17d   :  { %1423 = vmatprep.subr.bf16.mxu0 %v372_v51  ;;  %1552 = vmatprep.subr.bf16.mxu1 %v374_v52  ;;  %v595_v51 = vld [vmem:[#allocation2 + $0xa20] sm:$0xff]  ;;  %v597_v52 = vld [vmem:[#allocation2 + $0xa30] sm:$0xff] }
 0x180   :  { %1424 = vmatpush1.bf16.msra.mxu0 %v371_v53  ;;  %1553 = vmatpush1.bf16.msra.mxu1 %v373_v54  ;;  %v612_v53 = vld [vmem:[#allocation2 + $0xaa8] sm:$0xff]  ;;  %v614_v54 = vld [vmem:[#allocation2 + $0xab8] sm:$0xff] }
 0x181   :  { %1425 = vmatprep.subr.bf16.mxu0 %v388_v55  ;;  %1554 = vmatprep.subr.bf16.mxu1 %v390_v56  ;;  %v611_v55 = vld [vmem:[#allocation2 + $0xaa0] sm:$0xff]  ;;  %v613_v56 = vld [vmem:[#allocation2 + $0xab0] sm:$0xff] }
 0x184   :  { %1426 = vmatpush1.bf16.msra.mxu0 %v387_v57  ;;  %1555 = vmatpush1.bf16.msra.mxu1 %v389_v58  ;;  %v628_v57 = vld [vmem:[#allocation2 + $0xb28] sm:$0xff]  ;;  %v630_v58 = vld [vmem:[#allocation2 + $0xb38] sm:$0xff] }
 0x185   :  { %1427 = vmatprep.subr.bf16.mxu0 %v404_v59  ;;  %1556 = vmatprep.subr.bf16.mxu1 %v406_v60  ;;  %v627_v59 = vld [vmem:[#allocation2 + $0xb20] sm:$0xff]  ;;  %v629_v60 = vld [vmem:[#allocation2 + $0xb30] sm:$0xff] }
 0x188   :  { %1428 = vmatpush1.bf16.msra.mxu0 %v403_v61  ;;  %1557 = vmatpush1.bf16.msra.mxu1 %v405_v62  ;;  %v644_v61 = vld [vmem:[#allocation2 + $0xba8] sm:$0xff]  ;;  %v646_v62 = vld [vmem:[#allocation2 + $0xbb8] sm:$0xff] }
 0x189   :  { %1429 = vmatprep.subr.bf16.mxu0 %v420_v63  ;;  %1558 = vmatprep.subr.bf16.mxu1 %v422_v7  ;;  %v643_v63 = vld [vmem:[#allocation2 + $0xba0] sm:$0xff]  ;;  %v645_v7 = vld [vmem:[#allocation2 + $0xbb0] sm:$0xff] }
 0x18c   :  { %1430 = vmatpush1.bf16.msra.mxu0 %v419_v8  ;;  %1559 = vmatpush1.bf16.msra.mxu1 %v421_v9  ;;  %v660_v8 = vld [vmem:[#allocation2 + $0xc28] sm:$0xff]  ;;  %v662_v9 = vld [vmem:[#allocation2 + $0xc38] sm:$0xff] }
 0x18d   :  { %1431 = vmatprep.subr.bf16.mxu0 %v436_v10  ;;  %1560 = vmatprep.subr.bf16.mxu1 %v438_v11  ;;  %v659_v10 = vld [vmem:[#allocation2 + $0xc20] sm:$0xff]  ;;  %v661_v11 = vld [vmem:[#allocation2 + $0xc30] sm:$0xff] }
 0x190   :  { %1432 = vmatpush1.bf16.msra.mxu0 %v435_v12  ;;  %1561 = vmatpush1.bf16.msra.mxu1 %v437_v13  ;;  %v676_v12 = vld [vmem:[#allocation2 + $0xca8] sm:$0xff]  ;;  %v678_v13 = vld [vmem:[#allocation2 + $0xcb8] sm:$0xff] }
 0x191   :  { %1433 = vmatprep.subr.bf16.mxu0 %v452_v14  ;;  %1562 = vmatprep.subr.bf16.mxu1 %v454_v15  ;;  %v675_v14 = vld [vmem:[#allocation2 + $0xca0] sm:$0xff]  ;;  %v677_v15 = vld [vmem:[#allocation2 + $0xcb0] sm:$0xff] }
 0x194   :  { %1434 = vmatpush1.bf16.msra.mxu0 %v451_v17  ;;  %1563 = vmatpush1.bf16.msra.mxu1 %v453_v18  ;;  %v692_v17 = vld [vmem:[#allocation2 + $0xd28] sm:$0xff]  ;;  %v694_v18 = vld [vmem:[#allocation2 + $0xd38] sm:$0xff] }
 0x195   :  { %1435 = vmatprep.subr.bf16.mxu0 %v468_v19  ;;  %1564 = vmatprep.subr.bf16.mxu1 %v470_v20  ;;  %v691_v19 = vld [vmem:[#allocation2 + $0xd20] sm:$0xff]  ;;  %v693_v20 = vld [vmem:[#allocation2 + $0xd30] sm:$0xff] }
 0x198   :  { %1436 = vmatpush1.bf16.msra.mxu0 %v467_v0  ;;  %1565 = vmatpush1.bf16.msra.mxu1 %v469_v3  ;;  %v708_v0 = vld [vmem:[#allocation2 + $0xda8] sm:$0xff]  ;;  %v710_v3 = vld [vmem:[#allocation2 + $0xdb8] sm:$0xff] }
 0x199   :  { %1437 = vmatprep.subr.bf16.mxu0 %v484_v22  ;;  %1566 = vmatprep.subr.bf16.mxu1 %v486_v24  ;;  %v707_v22 = vld [vmem:[#allocation2 + $0xda0] sm:$0xff]  ;;  %v709_v24 = vld [vmem:[#allocation2 + $0xdb0] sm:$0xff] }
 0x19c   :  { %1438 = vmatpush1.bf16.msra.mxu0 %v483_v25  ;;  %1567 = vmatpush1.bf16.msra.mxu1 %v485_v26  ;;  %v724_v25 = vld [vmem:[#allocation2 + $0xe28] sm:$0xff]  ;;  %v726_v26 = vld [vmem:[#allocation2 + $0xe38] sm:$0xff] }
 0x19d   :  { %1439 = vmatprep.subr.bf16.mxu0 %v500_v27  ;;  %1568 = vmatprep.subr.bf16.mxu1 %v502_v1  ;;  %v723_v27 = vld [vmem:[#allocation2 + $0xe20] sm:$0xff]  ;;  %v725_v1 = vld [vmem:[#allocation2 + $0xe30] sm:$0xff] }
 0x1a0   :  { %1440 = vmatpush1.bf16.msra.mxu0 %v499_v4  ;;  %1569 = vmatpush1.bf16.msra.mxu1 %v501_v29  ;;  %v740_v4 = vld [vmem:[#allocation2 + $0xea8] sm:$0xff]  ;;  %v742_v29 = vld [vmem:[#allocation2 + $0xeb8] sm:$0xff] }
 0x1a1   :  { %1441 = vmatprep.subr.bf16.mxu0 %v516_v31  ;;  %1570 = vmatprep.subr.bf16.mxu1 %v518_v32  ;;  %v739_v31 = vld [vmem:[#allocation2 + $0xea0] sm:$0xff]  ;;  %v741_v32 = vld [vmem:[#allocation2 + $0xeb0] sm:$0xff] }
 0x1a4   :  { %1442 = vmatpush1.bf16.msra.mxu0 %v515_v33  ;;  %1571 = vmatpush1.bf16.msra.mxu1 %v517_v34  ;;  %v756_v33 = vld [vmem:[#allocation2 + $0xf28] sm:$0xff]  ;;  %v758_v34 = vld [vmem:[#allocation2 + $0xf38] sm:$0xff] }
 0x1a5   :  { %1454 = vmatprep.subr.bf16.mxu0 %v532_v35  ;;  %1583 = vmatprep.subr.bf16.mxu1 %v534_v36  ;;  %v755_v35 = vld [vmem:[#allocation2 + $0xf20] sm:$0xff]  ;;  %v757_v36 = vld [vmem:[#allocation2 + $0xf30] sm:$0xff] }
 0x1a7   :  { %1444 = vmatmul.mubr.bf16.vlgmr.msra.gmra.mrb[4].mxu0 %v7660_v16  ;;  %1573 = vmatmul.mubr.bf16.vlgmr.msra.gmra.mrb[4].mxu1 %v7660_v16 }
 0x1a8   :  { %1455 = vmatpush1.bf16.msra.mxu0 %v531_v2  ;;  %1584 = vmatpush1.bf16.msra.mxu1 %v533_v5  ;;  %v772_v2 = vld [vmem:[#allocation2 + $0xfa8] sm:$0xff]  ;;  %v774_v5 = vld [vmem:[#allocation2 + $0xfb8] sm:$0xff] }
 0x1a9   :  { %1456 = vmatprep.subr.bf16.mxu0 %v548_v37  ;;  %1585 = vmatprep.subr.bf16.mxu1 %v550_v38  ;;  %v771_v37 = vld [vmem:[#allocation2 + $0xfa0] sm:$0xff]  ;;  %v773_v38 = vld [vmem:[#allocation2 + $0xfb0] sm:$0xff] }
 0x1aa   :  { %1486 = vmatprep.mubr.bf16.mxu0 %v7664_v21  ;;  %1615 = vmatprep.mubr.bf16.mxu1 %v7664_v21 }
 0x1ac   :  { %1457 = vmatpush1.bf16.msra.mxu0 %v547_v39  ;;  %1586 = vmatpush1.bf16.msra.mxu1 %v549_v40  ;;  %v788_v39 = vld [vmem:[#allocation2 + $0x1028] sm:$0xff]  ;;  %v790_v40 = vld [vmem:[#allocation2 + $0x1038] sm:$0xff] }
 0x1ad   :  { %1458 = vmatprep.subr.bf16.mxu0 %v564_v41  ;;  %1587 = vmatprep.subr.bf16.mxu1 %v566_v42  ;;  %v787_v41 = vld [vmem:[#allocation2 + $0x1020] sm:$0xff]  ;;  %v789_v42 = vld [vmem:[#allocation2 + $0x1030] sm:$0xff] }
 0x1b0   :  { %1459 = vmatpush1.bf16.msra.mxu0 %v563_v43  ;;  %1588 = vmatpush1.bf16.msra.mxu1 %v565_v44  ;;  %v804_v43 = vld [vmem:[#allocation2 + $0x10a8] sm:$0xff]  ;;  %v806_v44 = vld [vmem:[#allocation2 + $0x10b8] sm:$0xff] }
 0x1b1   :  { %1460 = vmatprep.subr.bf16.mxu0 %v580_v45  ;;  %1589 = vmatprep.subr.bf16.mxu1 %v582_v46  ;;  %v803_v45 = vld [vmem:[#allocation2 + $0x10a0] sm:$0xff]  ;;  %v805_v46 = vld [vmem:[#allocation2 + $0x10b0] sm:$0xff] }
 0x1b4   :  { %1461 = vmatpush1.bf16.msra.mxu0 %v579_v47  ;;  %1590 = vmatpush1.bf16.msra.mxu1 %v581_v48  ;;  %v820_v47 = vld [vmem:[#allocation2 + $0x1128] sm:$0xff]  ;;  %v822_v48 = vld [vmem:[#allocation2 + $0x1138] sm:$0xff] }
 0x1b5   :  { %1462 = vmatprep.subr.bf16.mxu0 %v596_v49  ;;  %1591 = vmatprep.subr.bf16.mxu1 %v598_v50  ;;  %v819_v49 = vld [vmem:[#allocation2 + $0x1120] sm:$0xff]  ;;  %v821_v50 = vld [vmem:[#allocation2 + $0x1130] sm:$0xff] }
 0x1b8   :  { %1463 = vmatpush1.bf16.msra.mxu0 %v595_v51  ;;  %1592 = vmatpush1.bf16.msra.mxu1 %v597_v52  ;;  %v836_v51 = vld [vmem:[#allocation2 + $0x11a8] sm:$0xff]  ;;  %v838_v52 = vld [vmem:[#allocation2 + $0x11b8] sm:$0xff] }
 0x1b9   :  { %1464 = vmatprep.subr.bf16.mxu0 %v612_v53  ;;  %1593 = vmatprep.subr.bf16.mxu1 %v614_v54  ;;  %v835_v53 = vld [vmem:[#allocation2 + $0x11a0] sm:$0xff]  ;;  %v837_v54 = vld [vmem:[#allocation2 + $0x11b0] sm:$0xff] }
 0x1bc   :  { %1465 = vmatpush1.bf16.msra.mxu0 %v611_v55  ;;  %1594 = vmatpush1.bf16.msra.mxu1 %v613_v56  ;;  %v852_v55 = vld [vmem:[#allocation2 + $0x1228] sm:$0xff]  ;;  %v854_v56 = vld [vmem:[#allocation2 + $0x1238] sm:$0xff] }
 0x1bd   :  { %1466 = vmatprep.subr.bf16.mxu0 %v628_v57  ;;  %1595 = vmatprep.subr.bf16.mxu1 %v630_v58  ;;  %v851_v57 = vld [vmem:[#allocation2 + $0x1220] sm:$0xff]  ;;  %v853_v58 = vld [vmem:[#allocation2 + $0x1230] sm:$0xff] }
 0x1c0   :  { %1467 = vmatpush1.bf16.msra.mxu0 %v627_v59  ;;  %1596 = vmatpush1.bf16.msra.mxu1 %v629_v60  ;;  %v868_v59 = vld [vmem:[#allocation2 + $0x12a8] sm:$0xff]  ;;  %v870_v60 = vld [vmem:[#allocation2 + $0x12b8] sm:$0xff] }
 0x1c1   :  { %1468 = vmatprep.subr.bf16.mxu0 %v644_v61  ;;  %1597 = vmatprep.subr.bf16.mxu1 %v646_v62  ;;  %v867_v61 = vld [vmem:[#allocation2 + $0x12a0] sm:$0xff]  ;;  %v869_v62 = vld [vmem:[#allocation2 + $0x12b0] sm:$0xff] }
 0x1c4   :  { %1469 = vmatpush1.bf16.msra.mxu0 %v643_v63  ;;  %1598 = vmatpush1.bf16.msra.mxu1 %v645_v7  ;;  %v884_v63 = vld [vmem:[#allocation2 + $0x1328] sm:$0xff]  ;;  %v886_v7 = vld [vmem:[#allocation2 + $0x1338] sm:$0xff] }
 0x1c5   :  { %1470 = vmatprep.subr.bf16.mxu0 %v660_v8  ;;  %1599 = vmatprep.subr.bf16.mxu1 %v662_v9  ;;  %v883_v8 = vld [vmem:[#allocation2 + $0x1320] sm:$0xff]  ;;  %v885_v9 = vld [vmem:[#allocation2 + $0x1330] sm:$0xff] }
 0x1c8   :  { %1471 = vmatpush1.bf16.msra.mxu0 %v659_v10  ;;  %1600 = vmatpush1.bf16.msra.mxu1 %v661_v11  ;;  %v900_v10 = vld [vmem:[#allocation2 + $0x13a8] sm:$0xff]  ;;  %v902_v11 = vld [vmem:[#allocation2 + $0x13b8] sm:$0xff] }
 0x1c9   :  { %1472 = vmatprep.subr.bf16.mxu0 %v676_v12  ;;  %1601 = vmatprep.subr.bf16.mxu1 %v678_v13  ;;  %v899_v12 = vld [vmem:[#allocation2 + $0x13a0] sm:$0xff]  ;;  %v901_v13 = vld [vmem:[#allocation2 + $0x13b0] sm:$0xff] }
 0x1cc   :  { %1473 = vmatpush1.bf16.msra.mxu0 %v675_v14  ;;  %1602 = vmatpush1.bf16.msra.mxu1 %v677_v15  ;;  %v916_v14 = vld [vmem:[#allocation2 + $0x1428] sm:$0xff]  ;;  %v918_v15 = vld [vmem:[#allocation2 + $0x1438] sm:$0xff] }
 0x1cd   :  { %1474 = vmatprep.subr.bf16.mxu0 %v692_v17  ;;  %1603 = vmatprep.subr.bf16.mxu1 %v694_v18  ;;  %v915_v17 = vld [vmem:[#allocation2 + $0x1420] sm:$0xff]  ;;  %v917_v18 = vld [vmem:[#allocation2 + $0x1430] sm:$0xff] }
 0x1d0   :  { %1475 = vmatpush1.bf16.msra.mxu0 %v691_v19  ;;  %1604 = vmatpush1.bf16.msra.mxu1 %v693_v20  ;;  %v932_v19 = vld [vmem:[#allocation2 + $0x14a8] sm:$0xff]  ;;  %v934_v20 = vld [vmem:[#allocation2 + $0x14b8] sm:$0xff] }
 0x1d1   :  { %1476 = vmatprep.subr.bf16.mxu0 %v708_v0  ;;  %1605 = vmatprep.subr.bf16.mxu1 %v710_v3  ;;  %v931_v0 = vld [vmem:[#allocation2 + $0x14a0] sm:$0xff]  ;;  %v933_v3 = vld [vmem:[#allocation2 + $0x14b0] sm:$0xff] }
 0x1d4   :  { %1477 = vmatpush1.bf16.msra.mxu0 %v707_v22  ;;  %1606 = vmatpush1.bf16.msra.mxu1 %v709_v24  ;;  %v948_v22 = vld [vmem:[#allocation2 + $0x1528] sm:$0xff]  ;;  %v950_v24 = vld [vmem:[#allocation2 + $0x1538] sm:$0xff] }
 0x1d5   :  { %1478 = vmatprep.subr.bf16.mxu0 %v724_v25  ;;  %1607 = vmatprep.subr.bf16.mxu1 %v726_v26  ;;  %v947_v25 = vld [vmem:[#allocation2 + $0x1520] sm:$0xff]  ;;  %v949_v26 = vld [vmem:[#allocation2 + $0x1530] sm:$0xff] }
 0x1d8   :  { %1479 = vmatpush1.bf16.msra.mxu0 %v723_v27  ;;  %1608 = vmatpush1.bf16.msra.mxu1 %v725_v1  ;;  %v964_v27 = vld [vmem:[#allocation2 + $0x15a8] sm:$0xff]  ;;  %v966_v1 = vld [vmem:[#allocation2 + $0x15b8] sm:$0xff] }
 0x1d9   :  { %1480 = vmatprep.subr.bf16.mxu0 %v740_v4  ;;  %1609 = vmatprep.subr.bf16.mxu1 %v742_v29  ;;  %v963_v4 = vld [vmem:[#allocation2 + $0x15a0] sm:$0xff]  ;;  %v965_v29 = vld [vmem:[#allocation2 + $0x15b0] sm:$0xff] }
 0x1dc   :  { %1481 = vmatpush1.bf16.msra.mxu0 %v739_v31  ;;  %1610 = vmatpush1.bf16.msra.mxu1 %v741_v32  ;;  %v980_v31 = vld [vmem:[#allocation2 + $0x1628] sm:$0xff]  ;;  %v982_v32 = vld [vmem:[#allocation2 + $0x1638] sm:$0xff] }
 0x1dd   :  { %1482 = vmatprep.subr.bf16.mxu0 %v756_v33  ;;  %1611 = vmatprep.subr.bf16.mxu1 %v758_v34  ;;  %v979_v33 = vld [vmem:[#allocation2 + $0x1620] sm:$0xff]  ;;  %v981_v34 = vld [vmem:[#allocation2 + $0x1630] sm:$0xff] }
 0x1e0   :  { %1483 = vmatpush1.bf16.msra.mxu0 %v755_v35  ;;  %1612 = vmatpush1.bf16.msra.mxu1 %v757_v36  ;;  %v996_v35 = vld [vmem:[#allocation2 + $0x16a8] sm:$0xff]  ;;  %v998_v36 = vld [vmem:[#allocation2 + $0x16b8] sm:$0xff] }
 0x1e1   :  { %1484 = vmatprep.subr.bf16.mxu0 %v772_v2  ;;  %1613 = vmatprep.subr.bf16.mxu1 %v774_v5  ;;  %v995_v2 = vld [vmem:[#allocation2 + $0x16a0] sm:$0xff]  ;;  %v997_v5 = vld [vmem:[#allocation2 + $0x16b0] sm:$0xff] }
 0x1e4   :  { %1485 = vmatpush1.bf16.msra.mxu0 %v771_v37  ;;  %1614 = vmatpush1.bf16.msra.mxu1 %v773_v38  ;;  %v1012_v37 = vld [vmem:[#allocation2 + $0x1728] sm:$0xff]  ;;  %v1014_v38 = vld [vmem:[#allocation2 + $0x1738] sm:$0xff] }
 0x1e5   :  { %1497 = vmatprep.subr.bf16.mxu0 %v788_v39  ;;  %1626 = vmatprep.subr.bf16.mxu1 %v790_v40  ;;  %v1011_v39 = vld [vmem:[#allocation2 + $0x1720] sm:$0xff]  ;;  %v1013_v40 = vld [vmem:[#allocation2 + $0x1730] sm:$0xff] }
 0x1e7   :  { %1487 = vmatmul.mubr.bf16.vlgmr.msra.gmra.mrb[4].mxu0 %v7672_v23  ;;  %1616 = vmatmul.mubr.bf16.vlgmr.msra.gmra.mrb[4].mxu1 %v7672_v23 }
 0x1e8   :  { %1498 = vmatpush1.bf16.msra.mxu0 %v787_v41  ;;  %1627 = vmatpush1.bf16.msra.mxu1 %v789_v42  ;;  %v1028_v41 = vld [vmem:[#allocation2 + $0x17a8] sm:$0xff]  ;;  %v1030_v42 = vld [vmem:[#allocation2 + $0x17b8] sm:$0xff] }
 0x1e9   :  { %1499 = vmatprep.subr.bf16.mxu0 %v804_v43  ;;  %1628 = vmatprep.subr.bf16.mxu1 %v806_v44  ;;  %v1027_v43 = vld [vmem:[#allocation2 + $0x17a0] sm:$0xff]  ;;  %v1029_v44 = vld [vmem:[#allocation2 + $0x17b0] sm:$0xff] }
 0x1ea   :  { %1529 = vmatprep.mubr.bf16.mxu0 %v7676_v28  ;;  %1658 = vmatprep.mubr.bf16.mxu1 %v7676_v28 }
 0x1ec   :  { %1500 = vmatpush1.bf16.msra.mxu0 %v803_v45  ;;  %1629 = vmatpush1.bf16.msra.mxu1 %v805_v46  ;;  %v280_v45 = vld [vmem:[#allocation2 + $0x48] sm:$0xff]  ;;  %v282_v46 = vld [vmem:[#allocation2 + $0x58] sm:$0xff] }
 0x1ed   :  { %1501 = vmatprep.subr.bf16.mxu0 %v820_v47  ;;  %1630 = vmatprep.subr.bf16.mxu1 %v822_v48  ;;  %v279_v47 = vld [vmem:[#allocation2 + $0x40] sm:$0xff]  ;;  %v281_v48 = vld [vmem:[#allocation2 + $0x50] sm:$0xff] }
 0x1f0   :  { %1502 = vmatpush1.bf16.msra.mxu0 %v819_v49  ;;  %1631 = vmatpush1.bf16.msra.mxu1 %v821_v50  ;;  %v296_v49 = vld [vmem:[#allocation2 + $0xc8] sm:$0xff]  ;;  %v298_v50 = vld [vmem:[#allocation2 + $0xd8] sm:$0xff] }
 0x1f1   :  { %1503 = vmatprep.subr.bf16.mxu0 %v836_v51  ;;  %1632 = vmatprep.subr.bf16.mxu1 %v838_v52  ;;  %v295_v51 = vld [vmem:[#allocation2 + $0xc0] sm:$0xff]  ;;  %v297_v52 = vld [vmem:[#allocation2 + $0xd0] sm:$0xff] }
 0x1f4   :  { %1504 = vmatpush1.bf16.msra.mxu0 %v835_v53  ;;  %1633 = vmatpush1.bf16.msra.mxu1 %v837_v54  ;;  %v312_v53 = vld [vmem:[#allocation2 + $0x148] sm:$0xff]  ;;  %v314_v54 = vld [vmem:[#allocation2 + $0x158] sm:$0xff] }
 0x1f5   :  { %1505 = vmatprep.subr.bf16.mxu0 %v852_v55  ;;  %1634 = vmatprep.subr.bf16.mxu1 %v854_v56  ;;  %v1043_v55 = vlaneseq  ;;  %v311_v56 = vld [vmem:[#allocation2 + $0x140] sm:$0xff] }
 0x1f8   :  { %1506 = vmatpush1.bf16.msra.mxu0 %v851_v57  ;;  %1635 = vmatpush1.bf16.msra.mxu1 %v853_v58  ;;  %v313_v57 = vld [vmem:[#allocation2 + $0x150] sm:$0xff]  ;;  %v328_v58 = vld [vmem:[#allocation2 + $0x1c8] sm:$0xff] }
 0x1f9   :  { %1507 = vmatprep.subr.bf16.mxu0 %v868_v59  ;;  %1636 = vmatprep.subr.bf16.mxu1 %v870_v60  ;;  %v330_v59 = vld [vmem:[#allocation2 + $0x1d8] sm:$0xff]  ;;  %v7702_v60 = vshrl.u32 %v1043_v55, 7  ;;  %v393_v55 = vld [vmem:[#allocation2 + $0x3d0] sm:$0xff] }
 0x1fc   :  { %1508 = vmatpush1.bf16.msra.mxu0 %v867_v61  ;;  %1637 = vmatpush1.bf16.msra.mxu1 %v869_v62  ;;  %v327_v61 = vld [vmem:[#allocation2 + $0x1c0] sm:$0xff]  ;;  %v329_v62 = vld [vmem:[#allocation2 + $0x1d0] sm:$0xff] }
 0x1fd   :  { %1509 = vmatprep.subr.bf16.mxu0 %v884_v63  ;;  %1638 = vmatprep.subr.bf16.mxu1 %v886_v7  ;;  %v344_v63 = vld [vmem:[#allocation2 + $0x248] sm:$0xff]  ;;  %v346_v7 = vld [vmem:[#allocation2 + $0x258] sm:$0xff] }
 0x200   :  { %1510 = vmatpush1.bf16.msra.mxu0 %v883_v8  ;;  %1639 = vmatpush1.bf16.msra.mxu1 %v885_v9  ;;  %v7705_v8 = vsub.s32 0, %v7702_v60  ;;  %v7708_v9 = vsub.s32 2, %v7702_v60 }
 0x201   :  { %1511 = vmatprep.subr.bf16.mxu0 %v900_v10  ;;  %1640 = vmatprep.subr.bf16.mxu1 %v902_v11  ;;  %v7710_v10 = vld [vmem:[#allocation11] sm:$0xff]  ;;  %v7713_v11 = vsub.s32 1, %v7702_v60 }
 0x204   :  { %1512 = vmatpush1.bf16.msra.mxu0 %v899_v12  ;;  %1641 = vmatpush1.bf16.msra.mxu1 %v901_v13  ;;  %v7716_v12 = vsub.s32 3, %v7702_v60  ;;  %v343_v13 = vld [vmem:[#allocation2 + $0x240] sm:$0xff] }
 0x205   :  { %1513 = vmatprep.subr.bf16.mxu0 %v916_v14  ;;  %1642 = vmatprep.subr.bf16.mxu1 %v918_v15  ;;  %v345_v14 = vld [vmem:[#allocation2 + $0x250] sm:$0xff]  ;;  %v360_v15 = vld [vmem:[#allocation2 + $0x2c8] sm:$0xff] }
 0x208   :  { %1514 = vmatpush1.bf16.msra.mxu0 %v915_v17  ;;  %1643 = vmatpush1.bf16.msra.mxu1 %v917_v18  ;;  %v362_v17 = vld [vmem:[#allocation2 + $0x2d8] sm:$0xff]  ;;  %v1046_v18 = vrot.slane %v7710_v10, %v7705_v8 }
 0x209   :  { %1515 = vmatprep.subr.bf16.mxu0 %v932_v19  ;;  %1644 = vmatprep.subr.bf16.mxu1 %v934_v20  ;;  %v1054_v19 = vrot.slane %v7710_v10, %v7708_v9  ;;  %v1050_v20 = vrot.slane %v7710_v10, %v7713_v11 }
 0x20c   :  { %1516 = vmatpush1.bf16.msra.mxu0 %v931_v0  ;;  %1645 = vmatpush1.bf16.msra.mxu1 %v933_v3  ;;  %v1058_v0 = vrot.slane %v7710_v10, %v7716_v12  ;;  %v359_v3 = vld [vmem:[#allocation2 + $0x2c0] sm:$0xff] }
 0x20d   :  { %1517 = vmatprep.subr.bf16.mxu0 %v948_v22  ;;  %1646 = vmatprep.subr.bf16.mxu1 %v950_v24  ;;  %v361_v22 = vld [vmem:[#allocation2 + $0x2d0] sm:$0xff] }
 0x210   :  { %1518 = vmatpush1.bf16.msra.mxu0 %v947_v25  ;;  %1647 = vmatpush1.bf16.msra.mxu1 %v949_v26  ;;  %v376_v26 = vld [vmem:[#allocation2 + $0x348] sm:$0xff] }
 0x211   :  { %1519 = vmatprep.subr.bf16.mxu0 %v964_v27  ;;  %1648 = vmatprep.subr.bf16.mxu1 %v966_v1  ;;  %v378_v27 = vld [vmem:[#allocation2 + $0x358] sm:$0xff] }
 0x214   :  { %1520 = vmatpush1.bf16.msra.mxu0 %v963_v4  ;;  %1649 = vmatpush1.bf16.msra.mxu1 %v965_v29 }
 0x215   :  { %1521 = vmatprep.subr.bf16.mxu0 %v980_v31  ;;  %1650 = vmatprep.subr.bf16.mxu1 %v982_v32 }
 0x218   :  { %1522 = vmatpush1.bf16.msra.mxu0 %v979_v33  ;;  %1651 = vmatpush1.bf16.msra.mxu1 %v981_v34 }
 0x219   :  { %1523 = vmatprep.subr.bf16.mxu0 %v996_v35  ;;  %1652 = vmatprep.subr.bf16.mxu1 %v998_v36 }
 0x21c   :  { %1524 = vmatpush1.bf16.msra.mxu0 %v995_v2  ;;  %1653 = vmatpush1.bf16.msra.mxu1 %v997_v5 }
 0x21d   :  { %1525 = vmatprep.subr.bf16.mxu0 %v1012_v37  ;;  %1654 = vmatprep.subr.bf16.mxu1 %v1014_v38  ;;  %v375_v38 = vld [vmem:[#allocation2 + $0x340] sm:$0xff] }
 0x220   :  { %1526 = vmatpush1.bf16.msra.mxu0 %v1011_v39  ;;  %1655 = vmatpush1.bf16.msra.mxu1 %v1013_v40  ;;  %v377_v39 = vld [vmem:[#allocation2 + $0x350] sm:$0xff] }
 0x221   :  { %1527 = vmatprep.subr.bf16.mxu0 %v1028_v41  ;;  %1656 = vmatprep.subr.bf16.mxu1 %v1030_v42  ;;  %v392_v42 = vld [vmem:[#allocation2 + $0x3c8] sm:$0xff] }
 0x224   :  { %1528 = vmatpush1.bf16.msra.mxu0 %v1027_v43  ;;  %1657 = vmatpush1.bf16.msra.mxu1 %v1029_v44  ;;  %v394_v43 = vld [vmem:[#allocation2 + $0x3d8] sm:$0xff] }
 0x225   :  { %1669 = vmatprep.subr.bf16.mxu0 %v280_v45  ;;  %1798 = vmatprep.subr.bf16.mxu1 %v282_v46 }
 0x227   :  { %1530 = vmatmul.mubr.bf16.vlgmr.msra.gmra.mrb[4].mxu0 %v7684_v30  ;;  %1659 = vmatmul.mubr.bf16.vlgmr.msra.gmra.mrb[4].mxu1 %v7684_v30 }
 0x228   :  { %1670 = vmatpush1.bf16.msra.mxu0 %v279_v47  ;;  %1799 = vmatpush1.bf16.msra.mxu1 %v281_v48 }
 0x229   :  { %1671 = vmatprep.subr.bf16.mxu0 %v296_v49  ;;  %1800 = vmatprep.subr.bf16.mxu1 %v298_v50 }
 0x22a   :  { %1701 = vmatprep.mubr.bf16.mxu0 %v7654_v6  ;;  %1830 = vmatprep.mubr.bf16.mxu1 %v7654_v6 }
 0x22c   :  { %1672 = vmatpush1.bf16.msra.mxu0 %v295_v51  ;;  %1801 = vmatpush1.bf16.msra.mxu1 %v297_v52 }
 0x22d   :  { %1673 = vmatprep.subr.bf16.mxu0 %v312_v53  ;;  %1802 = vmatprep.subr.bf16.mxu1 %v314_v54  ;;  %v391_v54 = vld [vmem:[#allocation2 + $0x3c0] sm:$0xff] }
 0x230   :  { %1674 = vmatpush1.bf16.msra.mxu0 %v311_v56  ;;  %1803 = vmatpush1.bf16.msra.mxu1 %v313_v57 }
 0x231   :  { %1675 = vmatprep.subr.bf16.mxu0 %v328_v58  ;;  %1804 = vmatprep.subr.bf16.mxu1 %v330_v59  ;;  %v408_v58 = vld [vmem:[#allocation2 + $0x448] sm:$0xff]  ;;  %v410_v59 = vld [vmem:[#allocation2 + $0x458] sm:$0xff] }
 0x234   :  { %1676 = vmatpush1.bf16.msra.mxu0 %v327_v61  ;;  %1805 = vmatpush1.bf16.msra.mxu1 %v329_v62  ;;  %v407_v61 = vld [vmem:[#allocation2 + $0x440] sm:$0xff]  ;;  %v409_v62 = vld [vmem:[#allocation2 + $0x450] sm:$0xff] }
 0x235   :  { %1677 = vmatprep.subr.bf16.mxu0 %v344_v63  ;;  %1806 = vmatprep.subr.bf16.mxu1 %v346_v7  ;;  %v424_v63 = vld [vmem:[#allocation2 + $0x4c8] sm:$0xff]  ;;  %v426_v7 = vld [vmem:[#allocation2 + $0x4d8] sm:$0xff] }
 0x238   :  { %1678 = vmatpush1.bf16.msra.mxu0 %v343_v13  ;;  %1807 = vmatpush1.bf16.msra.mxu1 %v345_v14  ;;  %v423_v13 = vld [vmem:[#allocation2 + $0x4c0] sm:$0xff]  ;;  %v425_v14 = vld [vmem:[#allocation2 + $0x4d0] sm:$0xff] }
 0x239   :  { %1679 = vmatprep.subr.bf16.mxu0 %v360_v15  ;;  %1808 = vmatprep.subr.bf16.mxu1 %v362_v17  ;;  %v440_v15 = vld [vmem:[#allocation2 + $0x548] sm:$0xff]  ;;  %v442_v17 = vld [vmem:[#allocation2 + $0x558] sm:$0xff] }
 0x23a   :  { %v1273_v24 = vpop.f32.mrb[0].mxu0  ;;  %v1402_v25 = vpop.f32.mrb[0].mxu1 }
 0x23b   :  { %v6872_v1 = vadd.f32 %v1273_v24, %v1046_v18  ;;  %v6876_v4 = vadd.f32 %v1402_v25, %v1054_v19  ;;  %v1275_v29 = vpop.f32.mrb[1].mxu0  ;;  %v1404_v31 = vpop.f32.mrb[1].mxu1  ;;  %v472_v24 = vld [vmem:[#allocation2 + $0x648] sm:$0xff]  ;;  %v474_v25 = vld [vmem:[#allocation2 + $0x658] sm:$0xff] }
 0x23c   :  { %v6873_v32 = vadd.f32 %v1275_v29, %v1050_v20  ;;  %v6877_v33 = vadd.f32 %v1404_v31, %v1058_v0  ;;  %v1277_v34 = vpop.f32.mrb[2].mxu0  ;;  %v1406_v35 = vpop.f32.mrb[2].mxu1  ;;  %1680 = vmatpush1.bf16.msra.mxu0 %v359_v3  ;;  %1809 = vmatpush1.bf16.msra.mxu1 %v361_v22  ;;  %v455_v3 = vld [vmem:[#allocation2 + $0x5c0] sm:$0xff]  ;;  %v457_v22 = vld [vmem:[#allocation2 + $0x5d0] sm:$0xff] }
 0x23d   :  { %v6874_v36 = vadd.f32 %v1277_v34, %v1046_v18  ;;  %v6878_v2 = vadd.f32 %v1406_v35, %v1054_v19  ;;  %v1279_v5 = vpop.f32.mrb[3].mxu0  ;;  %v1408_v37 = vpop.f32.mrb[3].mxu1  ;;  %1681 = vmatprep.subr.bf16.mxu0 %v376_v26  ;;  %1810 = vmatprep.subr.bf16.mxu1 %v378_v27  ;;  %v2185_v44 = vmax.f32 %v6872_v1, 0.0  ;;  %v2187_v45 = vmax.f32 %v6876_v4, 0.0  ;;  %v439_v18 = vld [vmem:[#allocation2 + $0x540] sm:$0xff]  ;;  %v441_v19 = vld [vmem:[#allocation2 + $0x550] sm:$0xff] }
 0x23e   :  { %v6875_v40 = vadd.f32 %v1279_v5, %v1050_v20  ;;  %v6879_v41 = vadd.f32 %v1408_v37, %v1058_v0  ;;  %v2186_v48 = vmax.f32 %v6873_v32, 0.0  ;;  %v2188_v49 = vmax.f32 %v6877_v33, 0.0  ;;  %v456_v20 = vld [vmem:[#allocation2 + $0x5c8] sm:$0xff]  ;;  %v458_v0 = vld [vmem:[#allocation2 + $0x5d8] sm:$0xff]  ;;  %v471_v26 = vld [vmem:[#allocation2 + $0x640] sm:$0xff] }
 0x23f   :  { %v2201_v46 = vmax.f32 %v6874_v36, 0.0  ;;  %v2203_v47 = vmax.f32 %v6878_v2, 0.0  ;;  %v473_v27 = vld [vmem:[#allocation2 + $0x650] sm:$0xff]  ;;  %v488_v1 = vld [vmem:[#allocation2 + $0x6c8] sm:$0xff]  ;;  %v490_v4 = vld [vmem:[#allocation2 + $0x6d8] sm:$0xff] }
 0x240   :  { %v2202_v50 = vmax.f32 %v6875_v40, 0.0  ;;  %v2204_v51 = vmax.f32 %v6879_v41, 0.0  ;;  %1682 = vmatpush1.bf16.msra.mxu0 %v375_v38  ;;  %1811 = vmatpush1.bf16.msra.mxu1 %v377_v39  ;;  %v487_v29 = vld [vmem:[#allocation2 + $0x6c0] sm:$0xff]  ;;  %v489_v31 = vld [vmem:[#allocation2 + $0x6d0] sm:$0xff]  ;;  %v504_v32 = vld [vmem:[#allocation2 + $0x748] sm:$0xff] }
 0x241   :  { %v7726_v52 = vpack.c.bf16 %v2201_v46, %v2185_v44  ;;  %v7728_v53 = vpack.c.bf16 %v2203_v47, %v2187_v45  ;;  %1683 = vmatprep.subr.bf16.mxu0 %v392_v42  ;;  %1812 = vmatprep.subr.bf16.mxu1 %v394_v43  ;;  %v506_v33 = vld [vmem:[#allocation2 + $0x758] sm:$0xff]  ;;  %v503_v34 = vld [vmem:[#allocation2 + $0x740] sm:$0xff]  ;;  %v505_v35 = vld [vmem:[#allocation2 + $0x750] sm:$0xff] }
 0x242   :  { %v7730_v56 = vpack.c.bf16 %v2202_v50, %v2186_v48  ;;  %v7732_v57 = vpack.c.bf16 %v2204_v51, %v2188_v49  ;;  %v520_v36 = vld [vmem:[#allocation2 + $0x7c8] sm:$0xff]  ;;  %v522_v2 = vld [vmem:[#allocation2 + $0x7d8] sm:$0xff]  ;;  %v519_v5 = vld [vmem:[#allocation2 + $0x7c0] sm:$0xff] }
 0x243   :  { %v521_v37 = vld [vmem:[#allocation2 + $0x7d0] sm:$0xff]  ;;  %v536_v38 = vld [vmem:[#allocation2 + $0x848] sm:$0xff]  ;;  %v538_v39 = vld [vmem:[#allocation2 + $0x858] sm:$0xff] }
 0x244   :  { %1684 = vmatpush1.bf16.msra.mxu0 %v391_v54  ;;  %1813 = vmatpush1.bf16.msra.mxu1 %v393_v55  ;;  %v535_v40 = vld [vmem:[#allocation2 + $0x840] sm:$0xff]  ;;  %v537_v41 = vld [vmem:[#allocation2 + $0x850] sm:$0xff]  ;;  %v552_v42 = vld [vmem:[#allocation2 + $0x8c8] sm:$0xff] }
 0x245   :  { %1685 = vmatprep.subr.bf16.mxu0 %v408_v58  ;;  %1814 = vmatprep.subr.bf16.mxu1 %v410_v59  ;;  %v554_v43 = vld [vmem:[#allocation2 + $0x8d8] sm:$0xff]  ;;  %v551_v44 = vld [vmem:[#allocation2 + $0x8c0] sm:$0xff]  ;;  %v553_v45 = vld [vmem:[#allocation2 + $0x8d0] sm:$0xff] }
 0x246   :  { %v568_v46 = vld [vmem:[#allocation2 + $0x948] sm:$0xff]  ;;  %v570_v47 = vld [vmem:[#allocation2 + $0x958] sm:$0xff]  ;;  %v567_v48 = vld [vmem:[#allocation2 + $0x940] sm:$0xff] }
 0x247   :  { %v569_v49 = vld [vmem:[#allocation2 + $0x950] sm:$0xff]  ;;  %v584_v50 = vld [vmem:[#allocation2 + $0x9c8] sm:$0xff]  ;;  %v586_v51 = vld [vmem:[#allocation2 + $0x9d8] sm:$0xff] }
 0x248   :  { %1686 = vmatpush1.bf16.msra.mxu0 %v407_v61  ;;  %1815 = vmatpush1.bf16.msra.mxu1 %v409_v62  ;;  %v583_v54 = vld [vmem:[#allocation2 + $0x9c0] sm:$0xff]  ;;  %v585_v55 = vld [vmem:[#allocation2 + $0x9d0] sm:$0xff]  ;;  %v600_v58 = vld [vmem:[#allocation2 + $0xa48] sm:$0xff] }
 0x249   :  { %1687 = vmatprep.subr.bf16.mxu0 %v424_v63  ;;  %1816 = vmatprep.subr.bf16.mxu1 %v426_v7  ;;  %v602_v59 = vld [vmem:[#allocation2 + $0xa58] sm:$0xff]  ;;  %v599_v61 = vld [vmem:[#allocation2 + $0xa40] sm:$0xff]  ;;  %v601_v62 = vld [vmem:[#allocation2 + $0xa50] sm:$0xff] }
 0x24a   :  { %v616_v63 = vld [vmem:[#allocation2 + $0xac8] sm:$0xff]  ;;  %v618_v7 = vld [vmem:[#allocation2 + $0xad8] sm:$0xff] }
 0x24c   :  { %1688 = vmatpush1.bf16.msra.mxu0 %v423_v13  ;;  %1817 = vmatpush1.bf16.msra.mxu1 %v425_v14  ;;  %v615_v13 = vld [vmem:[#allocation2 + $0xac0] sm:$0xff]  ;;  %v617_v14 = vld [vmem:[#allocation2 + $0xad0] sm:$0xff] }
 0x24d   :  { %1689 = vmatprep.subr.bf16.mxu0 %v440_v15  ;;  %1818 = vmatprep.subr.bf16.mxu1 %v442_v17  ;;  %v632_v15 = vld [vmem:[#allocation2 + $0xb48] sm:$0xff]  ;;  %v634_v17 = vld [vmem:[#allocation2 + $0xb58] sm:$0xff] }
 0x250   :  { %1690 = vmatpush1.bf16.msra.mxu0 %v439_v18  ;;  %1819 = vmatpush1.bf16.msra.mxu1 %v441_v19  ;;  %v631_v18 = vld [vmem:[#allocation2 + $0xb40] sm:$0xff]  ;;  %v633_v19 = vld [vmem:[#allocation2 + $0xb50] sm:$0xff] }
 0x251   :  { %1691 = vmatprep.subr.bf16.mxu0 %v456_v20  ;;  %1820 = vmatprep.subr.bf16.mxu1 %v458_v0  ;;  %v648_v20 = vld [vmem:[#allocation2 + $0xbc8] sm:$0xff]  ;;  %v650_v0 = vld [vmem:[#allocation2 + $0xbd8] sm:$0xff] }
 0x254   :  { %1692 = vmatpush1.bf16.msra.mxu0 %v455_v3  ;;  %1821 = vmatpush1.bf16.msra.mxu1 %v457_v22  ;;  %v647_v3 = vld [vmem:[#allocation2 + $0xbc0] sm:$0xff]  ;;  %v649_v22 = vld [vmem:[#allocation2 + $0xbd0] sm:$0xff] }
 0x255   :  { %1693 = vmatprep.subr.bf16.mxu0 %v472_v24  ;;  %1822 = vmatprep.subr.bf16.mxu1 %v474_v25  ;;  %v664_v24 = vld [vmem:[#allocation2 + $0xc48] sm:$0xff]  ;;  %v666_v25 = vld [vmem:[#allocation2 + $0xc58] sm:$0xff] }
 0x258   :  { %1694 = vmatpush1.bf16.msra.mxu0 %v471_v26  ;;  %1823 = vmatpush1.bf16.msra.mxu1 %v473_v27  ;;  %v663_v26 = vld [vmem:[#allocation2 + $0xc40] sm:$0xff]  ;;  %v665_v27 = vld [vmem:[#allocation2 + $0xc50] sm:$0xff] }
 0x259   :  { %1695 = vmatprep.subr.bf16.mxu0 %v488_v1  ;;  %1824 = vmatprep.subr.bf16.mxu1 %v490_v4  ;;  %v680_v1 = vld [vmem:[#allocation2 + $0xcc8] sm:$0xff]  ;;  %v682_v4 = vld [vmem:[#allocation2 + $0xcd8] sm:$0xff] }
 0x25c   :  { %1696 = vmatpush1.bf16.msra.mxu0 %v487_v29  ;;  %1825 = vmatpush1.bf16.msra.mxu1 %v489_v31  ;;  %v679_v29 = vld [vmem:[#allocation2 + $0xcc0] sm:$0xff]  ;;  %v681_v31 = vld [vmem:[#allocation2 + $0xcd0] sm:$0xff] }
 0x25d   :  { %1697 = vmatprep.subr.bf16.mxu0 %v504_v32  ;;  %1826 = vmatprep.subr.bf16.mxu1 %v506_v33  ;;  %v696_v32 = vld [vmem:[#allocation2 + $0xd48] sm:$0xff]  ;;  %v698_v33 = vld [vmem:[#allocation2 + $0xd58] sm:$0xff] }
 0x260   :  { %1698 = vmatpush1.bf16.msra.mxu0 %v503_v34  ;;  %1827 = vmatpush1.bf16.msra.mxu1 %v505_v35  ;;  %v695_v34 = vld [vmem:[#allocation2 + $0xd40] sm:$0xff]  ;;  %v697_v35 = vld [vmem:[#allocation2 + $0xd50] sm:$0xff] }
 0x261   :  { %1699 = vmatprep.subr.bf16.mxu0 %v520_v36  ;;  %1828 = vmatprep.subr.bf16.mxu1 %v522_v2  ;;  %v712_v36 = vld [vmem:[#allocation2 + $0xdc8] sm:$0xff]  ;;  %v714_v2 = vld [vmem:[#allocation2 + $0xdd8] sm:$0xff] }
 0x264   :  { %1700 = vmatpush1.bf16.msra.mxu0 %v519_v5  ;;  %1829 = vmatpush1.bf16.msra.mxu1 %v521_v37  ;;  %v711_v5 = vld [vmem:[#allocation2 + $0xdc0] sm:$0xff]  ;;  %v713_v37 = vld [vmem:[#allocation2 + $0xdd0] sm:$0xff] }
 0x265   :  { %1712 = vmatprep.subr.bf16.mxu0 %v536_v38  ;;  %1841 = vmatprep.subr.bf16.mxu1 %v538_v39  ;;  %v728_v38 = vld [vmem:[#allocation2 + $0xe48] sm:$0xff]  ;;  %v730_v39 = vld [vmem:[#allocation2 + $0xe58] sm:$0xff] }
 0x267   :  { %1702 = vmatmul.mubr.bf16.vlgmr.msra.gmra.mrb[8].mxu0 %v7660_v16  ;;  %1831 = vmatmul.mubr.bf16.vlgmr.msra.gmra.mrb[8].mxu1 %v7660_v16 }
 0x268   :  { %1713 = vmatpush1.bf16.msra.mxu0 %v535_v40  ;;  %1842 = vmatpush1.bf16.msra.mxu1 %v537_v41  ;;  %v727_v40 = vld [vmem:[#allocation2 + $0xe40] sm:$0xff]  ;;  %v729_v41 = vld [vmem:[#allocation2 + $0xe50] sm:$0xff] }
 0x269   :  { %1714 = vmatprep.subr.bf16.mxu0 %v552_v42  ;;  %1843 = vmatprep.subr.bf16.mxu1 %v554_v43  ;;  %v744_v42 = vld [vmem:[#allocation2 + $0xec8] sm:$0xff]  ;;  %v746_v43 = vld [vmem:[#allocation2 + $0xed8] sm:$0xff] }
 0x26a   :  { %1744 = vmatprep.mubr.bf16.mxu0 %v7664_v21  ;;  %1873 = vmatprep.mubr.bf16.mxu1 %v7664_v21 }
 0x26c   :  { %1715 = vmatpush1.bf16.msra.mxu0 %v551_v44  ;;  %1844 = vmatpush1.bf16.msra.mxu1 %v553_v45  ;;  %v743_v44 = vld [vmem:[#allocation2 + $0xec0] sm:$0xff]  ;;  %v745_v45 = vld [vmem:[#allocation2 + $0xed0] sm:$0xff] }
 0x26d   :  { %1716 = vmatprep.subr.bf16.mxu0 %v568_v46  ;;  %1845 = vmatprep.subr.bf16.mxu1 %v570_v47  ;;  %v760_v46 = vld [vmem:[#allocation2 + $0xf48] sm:$0xff]  ;;  %v762_v47 = vld [vmem:[#allocation2 + $0xf58] sm:$0xff] }
 0x270   :  { %1717 = vmatpush1.bf16.msra.mxu0 %v567_v48  ;;  %1846 = vmatpush1.bf16.msra.mxu1 %v569_v49  ;;  %v759_v48 = vld [vmem:[#allocation2 + $0xf40] sm:$0xff]  ;;  %v761_v49 = vld [vmem:[#allocation2 + $0xf50] sm:$0xff] }
 0x271   :  { %1718 = vmatprep.subr.bf16.mxu0 %v584_v50  ;;  %1847 = vmatprep.subr.bf16.mxu1 %v586_v51  ;;  %v776_v50 = vld [vmem:[#allocation2 + $0xfc8] sm:$0xff]  ;;  %v778_v51 = vld [vmem:[#allocation2 + $0xfd8] sm:$0xff] }
 0x274   :  { %1719 = vmatpush1.bf16.msra.mxu0 %v583_v54  ;;  %1848 = vmatpush1.bf16.msra.mxu1 %v585_v55  ;;  %v775_v54 = vld [vmem:[#allocation2 + $0xfc0] sm:$0xff]  ;;  %v777_v55 = vld [vmem:[#allocation2 + $0xfd0] sm:$0xff] }
 0x275   :  { %1720 = vmatprep.subr.bf16.mxu0 %v600_v58  ;;  %1849 = vmatprep.subr.bf16.mxu1 %v602_v59  ;;  %v792_v58 = vld [vmem:[#allocation2 + $0x1048] sm:$0xff]  ;;  %v794_v59 = vld [vmem:[#allocation2 + $0x1058] sm:$0xff] }
 0x278   :  { %1721 = vmatpush1.bf16.msra.mxu0 %v599_v61  ;;  %1850 = vmatpush1.bf16.msra.mxu1 %v601_v62  ;;  %v791_v61 = vld [vmem:[#allocation2 + $0x1040] sm:$0xff]  ;;  %v793_v62 = vld [vmem:[#allocation2 + $0x1050] sm:$0xff] }
 0x279   :  { %1722 = vmatprep.subr.bf16.mxu0 %v616_v63  ;;  %1851 = vmatprep.subr.bf16.mxu1 %v618_v7  ;;  %v808_v63 = vld [vmem:[#allocation2 + $0x10c8] sm:$0xff]  ;;  %v810_v7 = vld [vmem:[#allocation2 + $0x10d8] sm:$0xff] }
 0x27c   :  { %1723 = vmatpush1.bf16.msra.mxu0 %v615_v13  ;;  %1852 = vmatpush1.bf16.msra.mxu1 %v617_v14  ;;  %v807_v13 = vld [vmem:[#allocation2 + $0x10c0] sm:$0xff]  ;;  %v809_v14 = vld [vmem:[#allocation2 + $0x10d0] sm:$0xff] }
 0x27d   :  { %1724 = vmatprep.subr.bf16.mxu0 %v632_v15  ;;  %1853 = vmatprep.subr.bf16.mxu1 %v634_v17  ;;  %v824_v15 = vld [vmem:[#allocation2 + $0x1148] sm:$0xff]  ;;  %v826_v17 = vld [vmem:[#allocation2 + $0x1158] sm:$0xff] }
 0x280   :  { %1725 = vmatpush1.bf16.msra.mxu0 %v631_v18  ;;  %1854 = vmatpush1.bf16.msra.mxu1 %v633_v19  ;;  %v823_v18 = vld [vmem:[#allocation2 + $0x1140] sm:$0xff]  ;;  %v825_v19 = vld [vmem:[#allocation2 + $0x1150] sm:$0xff] }
 0x281   :  { %1726 = vmatprep.subr.bf16.mxu0 %v648_v20  ;;  %1855 = vmatprep.subr.bf16.mxu1 %v650_v0  ;;  %v840_v20 = vld [vmem:[#allocation2 + $0x11c8] sm:$0xff]  ;;  %v842_v0 = vld [vmem:[#allocation2 + $0x11d8] sm:$0xff] }
 0x284   :  { %1727 = vmatpush1.bf16.msra.mxu0 %v647_v3  ;;  %1856 = vmatpush1.bf16.msra.mxu1 %v649_v22  ;;  %v839_v3 = vld [vmem:[#allocation2 + $0x11c0] sm:$0xff]  ;;  %v841_v22 = vld [vmem:[#allocation2 + $0x11d0] sm:$0xff] }
 0x285   :  { %1728 = vmatprep.subr.bf16.mxu0 %v664_v24  ;;  %1857 = vmatprep.subr.bf16.mxu1 %v666_v25  ;;  %v856_v24 = vld [vmem:[#allocation2 + $0x1248] sm:$0xff]  ;;  %v858_v25 = vld [vmem:[#allocation2 + $0x1258] sm:$0xff] }
 0x288   :  { %1729 = vmatpush1.bf16.msra.mxu0 %v663_v26  ;;  %1858 = vmatpush1.bf16.msra.mxu1 %v665_v27  ;;  %v855_v26 = vld [vmem:[#allocation2 + $0x1240] sm:$0xff]  ;;  %v857_v27 = vld [vmem:[#allocation2 + $0x1250] sm:$0xff] }
 0x289   :  { %1730 = vmatprep.subr.bf16.mxu0 %v680_v1  ;;  %1859 = vmatprep.subr.bf16.mxu1 %v682_v4  ;;  %v872_v1 = vld [vmem:[#allocation2 + $0x12c8] sm:$0xff]  ;;  %v874_v4 = vld [vmem:[#allocation2 + $0x12d8] sm:$0xff] }
 0x28c   :  { %1731 = vmatpush1.bf16.msra.mxu0 %v679_v29  ;;  %1860 = vmatpush1.bf16.msra.mxu1 %v681_v31  ;;  %v871_v29 = vld [vmem:[#allocation2 + $0x12c0] sm:$0xff]  ;;  %v873_v31 = vld [vmem:[#allocation2 + $0x12d0] sm:$0xff] }
 0x28d   :  { %1732 = vmatprep.subr.bf16.mxu0 %v696_v32  ;;  %1861 = vmatprep.subr.bf16.mxu1 %v698_v33  ;;  %v888_v32 = vld [vmem:[#allocation2 + $0x1348] sm:$0xff]  ;;  %v890_v33 = vld [vmem:[#allocation2 + $0x1358] sm:$0xff] }
 0x290   :  { %1733 = vmatpush1.bf16.msra.mxu0 %v695_v34  ;;  %1862 = vmatpush1.bf16.msra.mxu1 %v697_v35  ;;  %v887_v34 = vld [vmem:[#allocation2 + $0x1340] sm:$0xff]  ;;  %v889_v35 = vld [vmem:[#allocation2 + $0x1350] sm:$0xff] }
 0x291   :  { %1734 = vmatprep.subr.bf16.mxu0 %v712_v36  ;;  %1863 = vmatprep.subr.bf16.mxu1 %v714_v2  ;;  %v904_v36 = vld [vmem:[#allocation2 + $0x13c8] sm:$0xff]  ;;  %v906_v2 = vld [vmem:[#allocation2 + $0x13d8] sm:$0xff] }
 0x294   :  { %1735 = vmatpush1.bf16.msra.mxu0 %v711_v5  ;;  %1864 = vmatpush1.bf16.msra.mxu1 %v713_v37  ;;  %v903_v5 = vld [vmem:[#allocation2 + $0x13c0] sm:$0xff]  ;;  %v905_v37 = vld [vmem:[#allocation2 + $0x13d0] sm:$0xff] }
 0x295   :  { %1736 = vmatprep.subr.bf16.mxu0 %v728_v38  ;;  %1865 = vmatprep.subr.bf16.mxu1 %v730_v39  ;;  %v920_v38 = vld [vmem:[#allocation2 + $0x1448] sm:$0xff]  ;;  %v922_v39 = vld [vmem:[#allocation2 + $0x1458] sm:$0xff] }
 0x298   :  { %1737 = vmatpush1.bf16.msra.mxu0 %v727_v40  ;;  %1866 = vmatpush1.bf16.msra.mxu1 %v729_v41  ;;  %v919_v40 = vld [vmem:[#allocation2 + $0x1440] sm:$0xff]  ;;  %v921_v41 = vld [vmem:[#allocation2 + $0x1450] sm:$0xff] }
 0x299   :  { %1738 = vmatprep.subr.bf16.mxu0 %v744_v42  ;;  %1867 = vmatprep.subr.bf16.mxu1 %v746_v43  ;;  %v936_v42 = vld [vmem:[#allocation2 + $0x14c8] sm:$0xff]  ;;  %v938_v43 = vld [vmem:[#allocation2 + $0x14d8] sm:$0xff] }
 0x29c   :  { %1739 = vmatpush1.bf16.msra.mxu0 %v743_v44  ;;  %1868 = vmatpush1.bf16.msra.mxu1 %v745_v45  ;;  %v935_v44 = vld [vmem:[#allocation2 + $0x14c0] sm:$0xff]  ;;  %v937_v45 = vld [vmem:[#allocation2 + $0x14d0] sm:$0xff] }
 0x29d   :  { %1740 = vmatprep.subr.bf16.mxu0 %v760_v46  ;;  %1869 = vmatprep.subr.bf16.mxu1 %v762_v47  ;;  %v952_v46 = vld [vmem:[#allocation2 + $0x1548] sm:$0xff]  ;;  %v954_v47 = vld [vmem:[#allocation2 + $0x1558] sm:$0xff] }
 0x2a0   :  { %1741 = vmatpush1.bf16.msra.mxu0 %v759_v48  ;;  %1870 = vmatpush1.bf16.msra.mxu1 %v761_v49  ;;  %v951_v48 = vld [vmem:[#allocation2 + $0x1540] sm:$0xff]  ;;  %v953_v49 = vld [vmem:[#allocation2 + $0x1550] sm:$0xff] }
 0x2a1   :  { %1742 = vmatprep.subr.bf16.mxu0 %v776_v50  ;;  %1871 = vmatprep.subr.bf16.mxu1 %v778_v51  ;;  %v968_v50 = vld [vmem:[#allocation2 + $0x15c8] sm:$0xff]  ;;  %v970_v51 = vld [vmem:[#allocation2 + $0x15d8] sm:$0xff] }
 0x2a4   :  { %1743 = vmatpush1.bf16.msra.mxu0 %v775_v54  ;;  %1872 = vmatpush1.bf16.msra.mxu1 %v777_v55  ;;  %v967_v54 = vld [vmem:[#allocation2 + $0x15c0] sm:$0xff]  ;;  %v969_v55 = vld [vmem:[#allocation2 + $0x15d0] sm:$0xff] }
 0x2a5   :  { %1755 = vmatprep.subr.bf16.mxu0 %v792_v58  ;;  %1884 = vmatprep.subr.bf16.mxu1 %v794_v59  ;;  %v984_v58 = vld [vmem:[#allocation2 + $0x1648] sm:$0xff]  ;;  %v986_v59 = vld [vmem:[#allocation2 + $0x1658] sm:$0xff] }
 0x2a7   :  { %1745 = vmatmul.mubr.bf16.vlgmr.msra.gmra.mrb[8].mxu0 %v7672_v23  ;;  %1874 = vmatmul.mubr.bf16.vlgmr.msra.gmra.mrb[8].mxu1 %v7672_v23 }
 0x2a8   :  { %1756 = vmatpush1.bf16.msra.mxu0 %v791_v61  ;;  %1885 = vmatpush1.bf16.msra.mxu1 %v793_v62  ;;  %v983_v61 = vld [vmem:[#allocation2 + $0x1640] sm:$0xff]  ;;  %v985_v62 = vld [vmem:[#allocation2 + $0x1650] sm:$0xff] }
 0x2a9   :  { %1757 = vmatprep.subr.bf16.mxu0 %v808_v63  ;;  %1886 = vmatprep.subr.bf16.mxu1 %v810_v7  ;;  %v1000_v63 = vld [vmem:[#allocation2 + $0x16c8] sm:$0xff]  ;;  %v1002_v7 = vld [vmem:[#allocation2 + $0x16d8] sm:$0xff] }
 0x2aa   :  { %1787 = vmatprep.mubr.bf16.mxu0 %v7676_v28  ;;  %1916 = vmatprep.mubr.bf16.mxu1 %v7676_v28 }
 0x2ac   :  { %1758 = vmatpush1.bf16.msra.mxu0 %v807_v13  ;;  %1887 = vmatpush1.bf16.msra.mxu1 %v809_v14  ;;  %v999_v13 = vld [vmem:[#allocation2 + $0x16c0] sm:$0xff]  ;;  %v1001_v14 = vld [vmem:[#allocation2 + $0x16d0] sm:$0xff] }
 0x2ad   :  { %1759 = vmatprep.subr.bf16.mxu0 %v824_v15  ;;  %1888 = vmatprep.subr.bf16.mxu1 %v826_v17  ;;  %v1016_v15 = vld [vmem:[#allocation2 + $0x1748] sm:$0xff]  ;;  %v1018_v17 = vld [vmem:[#allocation2 + $0x1758] sm:$0xff] }
 0x2b0   :  { %1760 = vmatpush1.bf16.msra.mxu0 %v823_v18  ;;  %1889 = vmatpush1.bf16.msra.mxu1 %v825_v19  ;;  %v1015_v18 = vld [vmem:[#allocation2 + $0x1740] sm:$0xff]  ;;  %v1017_v19 = vld [vmem:[#allocation2 + $0x1750] sm:$0xff] }
 0x2b1   :  { %1761 = vmatprep.subr.bf16.mxu0 %v840_v20  ;;  %1890 = vmatprep.subr.bf16.mxu1 %v842_v0  ;;  %v1032_v20 = vld [vmem:[#allocation2 + $0x17c8] sm:$0xff]  ;;  %v1034_v0 = vld [vmem:[#allocation2 + $0x17d8] sm:$0xff] }
 0x2b4   :  { %1762 = vmatpush1.bf16.msra.mxu0 %v839_v3  ;;  %1891 = vmatpush1.bf16.msra.mxu1 %v841_v22  ;;  %v1031_v3 = vld [vmem:[#allocation2 + $0x17c0] sm:$0xff]  ;;  %v1033_v22 = vld [vmem:[#allocation2 + $0x17d0] sm:$0xff] }
 0x2b5   :  { %1763 = vmatprep.subr.bf16.mxu0 %v856_v24  ;;  %1892 = vmatprep.subr.bf16.mxu1 %v858_v25  ;;  %v284_v24 = vld [vmem:[#allocation2 + $0x68] sm:$0xff]  ;;  %v286_v25 = vld [vmem:[#allocation2 + $0x78] sm:$0xff] }
 0x2b8   :  { %1764 = vmatpush1.bf16.msra.mxu0 %v855_v26  ;;  %1893 = vmatpush1.bf16.msra.mxu1 %v857_v27  ;;  %v283_v26 = vld [vmem:[#allocation2 + $0x60] sm:$0xff]  ;;  %v285_v27 = vld [vmem:[#allocation2 + $0x70] sm:$0xff] }
 0x2b9   :  { %1765 = vmatprep.subr.bf16.mxu0 %v872_v1  ;;  %1894 = vmatprep.subr.bf16.mxu1 %v874_v4  ;;  %v300_v1 = vld [vmem:[#allocation2 + $0xe8] sm:$0xff]  ;;  %v302_v4 = vld [vmem:[#allocation2 + $0xf8] sm:$0xff] }
 0x2bc   :  { %1766 = vmatpush1.bf16.msra.mxu0 %v871_v29  ;;  %1895 = vmatpush1.bf16.msra.mxu1 %v873_v31  ;;  %v299_v29 = vld [vmem:[#allocation2 + $0xe0] sm:$0xff]  ;;  %v301_v31 = vld [vmem:[#allocation2 + $0xf0] sm:$0xff] }
 0x2bd   :  { %1767 = vmatprep.subr.bf16.mxu0 %v888_v32  ;;  %1896 = vmatprep.subr.bf16.mxu1 %v890_v33  ;;  %v316_v32 = vld [vmem:[#allocation2 + $0x168] sm:$0xff]  ;;  %v318_v33 = vld [vmem:[#allocation2 + $0x178] sm:$0xff] }
 0x2c0   :  { %1768 = vmatpush1.bf16.msra.mxu0 %v887_v34  ;;  %1897 = vmatpush1.bf16.msra.mxu1 %v889_v35  ;;  %v315_v34 = vld [vmem:[#allocation2 + $0x160] sm:$0xff]  ;;  %v317_v35 = vld [vmem:[#allocation2 + $0x170] sm:$0xff] }
 0x2c1   :  { %1769 = vmatprep.subr.bf16.mxu0 %v904_v36  ;;  %1898 = vmatprep.subr.bf16.mxu1 %v906_v2  ;;  %v332_v36 = vld [vmem:[#allocation2 + $0x1e8] sm:$0xff]  ;;  %v334_v2 = vld [vmem:[#allocation2 + $0x1f8] sm:$0xff] }
 0x2c4   :  { %1770 = vmatpush1.bf16.msra.mxu0 %v903_v5  ;;  %1899 = vmatpush1.bf16.msra.mxu1 %v905_v37  ;;  %v331_v5 = vld [vmem:[#allocation2 + $0x1e0] sm:$0xff]  ;;  %v333_v37 = vld [vmem:[#allocation2 + $0x1f0] sm:$0xff] }
 0x2c5   :  { %1771 = vmatprep.subr.bf16.mxu0 %v920_v38  ;;  %1900 = vmatprep.subr.bf16.mxu1 %v922_v39  ;;  %v348_v38 = vld [vmem:[#allocation2 + $0x268] sm:$0xff]  ;;  %v350_v39 = vld [vmem:[#allocation2 + $0x278] sm:$0xff] }
 0x2c8   :  { %1772 = vmatpush1.bf16.msra.mxu0 %v919_v40  ;;  %1901 = vmatpush1.bf16.msra.mxu1 %v921_v41  ;;  %v7747_v40 = vsub.s32 4, %v7702_v60  ;;  %v7753_v41 = vsub.s32 5, %v7702_v60 }
 0x2c9   :  { %1773 = vmatprep.subr.bf16.mxu0 %v936_v42  ;;  %1902 = vmatprep.subr.bf16.mxu1 %v938_v43  ;;  %v7756_v42 = vsub.s32 7, %v7702_v60  ;;  %v347_v43 = vld [vmem:[#allocation2 + $0x260] sm:$0xff] }
 0x2cc   :  { %1774 = vmatpush1.bf16.msra.mxu0 %v935_v44  ;;  %1903 = vmatpush1.bf16.msra.mxu1 %v937_v45  ;;  %v349_v44 = vld [vmem:[#allocation2 + $0x270] sm:$0xff]  ;;  %v364_v45 = vld [vmem:[#allocation2 + $0x2e8] sm:$0xff] }
 0x2cd   :  { %1775 = vmatprep.subr.bf16.mxu0 %v952_v46  ;;  %1904 = vmatprep.subr.bf16.mxu1 %v954_v47  ;;  %v366_v46 = vld [vmem:[#allocation2 + $0x2f8] sm:$0xff]  ;;  %v1062_v47 = vrot.slane %v7710_v10, %v7747_v40 }
 0x2d0   :  { %1776 = vmatpush1.bf16.msra.mxu0 %v951_v48  ;;  %1905 = vmatpush1.bf16.msra.mxu1 %v953_v49  ;;  %v1066_v49 = vrot.slane %v7710_v10, %v7753_v41 }
 0x2d1   :  { %1777 = vmatprep.subr.bf16.mxu0 %v968_v50  ;;  %1906 = vmatprep.subr.bf16.mxu1 %v970_v51  ;;  %v363_v50 = vld [vmem:[#allocation2 + $0x2e0] sm:$0xff]  ;;  %v365_v51 = vld [vmem:[#allocation2 + $0x2f0] sm:$0xff] }
 0x2d4   :  { %1778 = vmatpush1.bf16.msra.mxu0 %v967_v54  ;;  %1907 = vmatpush1.bf16.msra.mxu1 %v969_v55 }
 0x2d5   :  { %1779 = vmatprep.subr.bf16.mxu0 %v984_v58  ;;  %1908 = vmatprep.subr.bf16.mxu1 %v986_v59  ;;  %v380_v58 = vld [vmem:[#allocation2 + $0x368] sm:$0xff]  ;;  %v382_v59 = vld [vmem:[#allocation2 + $0x378] sm:$0xff] }
 0x2d8   :  { %1780 = vmatpush1.bf16.msra.mxu0 %v983_v61  ;;  %1909 = vmatpush1.bf16.msra.mxu1 %v985_v62 }
 0x2d9   :  { %1781 = vmatprep.subr.bf16.mxu0 %v1000_v63  ;;  %1910 = vmatprep.subr.bf16.mxu1 %v1002_v7 }
 0x2dc   :  { %1782 = vmatpush1.bf16.msra.mxu0 %v999_v13  ;;  %1911 = vmatpush1.bf16.msra.mxu1 %v1001_v14 }
 0x2dd   :  { %1783 = vmatprep.subr.bf16.mxu0 %v1016_v15  ;;  %1912 = vmatprep.subr.bf16.mxu1 %v1018_v17 }
 0x2e0   :  { %1784 = vmatpush1.bf16.msra.mxu0 %v1015_v18  ;;  %1913 = vmatpush1.bf16.msra.mxu1 %v1017_v19 }
 0x2e1   :  { %1785 = vmatprep.subr.bf16.mxu0 %v1032_v20  ;;  %1914 = vmatprep.subr.bf16.mxu1 %v1034_v0  ;;  %v379_v0 = vld [vmem:[#allocation2 + $0x360] sm:$0xff] }
 0x2e4   :  { %1786 = vmatpush1.bf16.msra.mxu0 %v1031_v3  ;;  %1915 = vmatpush1.bf16.msra.mxu1 %v1033_v22  ;;  %v381_v3 = vld [vmem:[#allocation2 + $0x370] sm:$0xff] }
 0x2e5   :  { %1927 = vmatprep.subr.bf16.mxu0 %v284_v24  ;;  %2056 = vmatprep.subr.bf16.mxu1 %v286_v25  ;;  %v396_v25 = vld [vmem:[#allocation2 + $0x3e8] sm:$0xff] }
 0x2e7   :  { %1788 = vmatmul.mubr.bf16.vlgmr.msra.gmra.mrb[8].mxu0 %v7684_v30  ;;  %1917 = vmatmul.mubr.bf16.vlgmr.msra.gmra.mrb[8].mxu1 %v7684_v30 }
 0x2e8   :  { %1928 = vmatpush1.bf16.msra.mxu0 %v283_v26  ;;  %2057 = vmatpush1.bf16.msra.mxu1 %v285_v27  ;;  %v398_v26 = vld [vmem:[#allocation2 + $0x3f8] sm:$0xff] }
 0x2e9   :  { %1929 = vmatprep.subr.bf16.mxu0 %v300_v1  ;;  %2058 = vmatprep.subr.bf16.mxu1 %v302_v4 }
 0x2ea   :  { %1959 = vmatprep.mubr.bf16.mxu0 %v7654_v6  ;;  %2088 = vmatprep.mubr.bf16.mxu1 %v7654_v6  ;;  %v7750_v6 = vsub.s32 6, %v7702_v60  ;;  %v1074_v60 = vrot.slane %v7710_v10, %v7756_v42 }
 0x2ec   :  { %1930 = vmatpush1.bf16.msra.mxu0 %v299_v29  ;;  %2059 = vmatpush1.bf16.msra.mxu1 %v301_v31  ;;  %v1070_v48 = vrot.slane %v7710_v10, %v7750_v6 }
 0x2ed   :  { %1931 = vmatprep.subr.bf16.mxu0 %v316_v32  ;;  %2060 = vmatprep.subr.bf16.mxu1 %v318_v33 }
 0x2f0   :  { %1932 = vmatpush1.bf16.msra.mxu0 %v315_v34  ;;  %2061 = vmatpush1.bf16.msra.mxu1 %v317_v35 }
 0x2f1   :  { %1933 = vmatprep.subr.bf16.mxu0 %v332_v36  ;;  %2062 = vmatprep.subr.bf16.mxu1 %v334_v2  ;;  %v395_v2 = vld [vmem:[#allocation2 + $0x3e0] sm:$0xff] }
 0x2f4   :  { %1934 = vmatpush1.bf16.msra.mxu0 %v331_v5  ;;  %2063 = vmatpush1.bf16.msra.mxu1 %v333_v37  ;;  %v397_v5 = vld [vmem:[#allocation2 + $0x3f0] sm:$0xff] }
 0x2f5   :  { %1935 = vmatprep.subr.bf16.mxu0 %v348_v38  ;;  %2064 = vmatprep.subr.bf16.mxu1 %v350_v39  ;;  %v412_v39 = vld [vmem:[#allocation2 + $0x468] sm:$0xff] }
 0x2f8   :  { %1936 = vmatpush1.bf16.msra.mxu0 %v347_v43  ;;  %2065 = vmatpush1.bf16.msra.mxu1 %v349_v44  ;;  %v414_v43 = vld [vmem:[#allocation2 + $0x478] sm:$0xff]  ;;  %v411_v44 = vld [vmem:[#allocation2 + $0x460] sm:$0xff] }
 0x2f9   :  { %1937 = vmatprep.subr.bf16.mxu0 %v364_v45  ;;  %2066 = vmatprep.subr.bf16.mxu1 %v366_v46  ;;  %v413_v45 = vld [vmem:[#allocation2 + $0x470] sm:$0xff]  ;;  %v428_v46 = vld [vmem:[#allocation2 + $0x4e8] sm:$0xff] }
 0x2fa   :  { %v1531_v54 = vpop.f32.mrb[4].mxu0  ;;  %v1660_v55 = vpop.f32.mrb[4].mxu1 }
 0x2fb   :  { %v6880_v61 = vadd.f32 %v1531_v54, %v1062_v47  ;;  %v6884_v62 = vadd.f32 %v1660_v55, %v1070_v48  ;;  %v1533_v63 = vpop.f32.mrb[5].mxu0  ;;  %v1662_v7 = vpop.f32.mrb[5].mxu1  ;;  %v445_v54 = vld [vmem:[#allocation2 + $0x570] sm:$0xff]  ;;  %v460_v55 = vld [vmem:[#allocation2 + $0x5e8] sm:$0xff] }
 0x2fc   :  { %v6881_v13 = vadd.f32 %v1533_v63, %v1066_v49  ;;  %v6885_v14 = vadd.f32 %v1662_v7, %v1074_v60  ;;  %v1535_v15 = vpop.f32.mrb[6].mxu0  ;;  %v1664_v17 = vpop.f32.mrb[6].mxu1  ;;  %1938 = vmatpush1.bf16.msra.mxu0 %v363_v50  ;;  %2067 = vmatpush1.bf16.msra.mxu1 %v365_v51  ;;  %v446_v50 = vld [vmem:[#allocation2 + $0x578] sm:$0xff]  ;;  %v443_v51 = vld [vmem:[#allocation2 + $0x560] sm:$0xff] }
 0x2fd   :  { %v6882_v18 = vadd.f32 %v1535_v15, %v1062_v47  ;;  %v6886_v10 = vadd.f32 %v1664_v17, %v1070_v48  ;;  %v1537_v19 = vpop.f32.mrb[7].mxu0  ;;  %v1666_v20 = vpop.f32.mrb[7].mxu1  ;;  %1939 = vmatprep.subr.bf16.mxu0 %v380_v58  ;;  %2068 = vmatprep.subr.bf16.mxu1 %v382_v59  ;;  %v2189_v27 = vmax.f32 %v6880_v61, 0.0  ;;  %v2191_v1 = vmax.f32 %v6884_v62, 0.0  ;;  %v430_v47 = vld [vmem:[#allocation2 + $0x4f8] sm:$0xff]  ;;  %v427_v48 = vld [vmem:[#allocation2 + $0x4e0] sm:$0xff] }
 0x2fe   :  { %v6883_v22 = vadd.f32 %v1537_v19, %v1066_v49  ;;  %v6887_v24 = vadd.f32 %v1666_v20, %v1074_v60  ;;  %v2190_v31 = vmax.f32 %v6881_v13, 0.0  ;;  %v2192_v32 = vmax.f32 %v6885_v14, 0.0  ;;  %v429_v49 = vld [vmem:[#allocation2 + $0x4f0] sm:$0xff]  ;;  %v444_v60 = vld [vmem:[#allocation2 + $0x568] sm:$0xff]  ;;  %v462_v58 = vld [vmem:[#allocation2 + $0x5f8] sm:$0xff] }
 0x2ff   :  { %v2205_v4 = vmax.f32 %v6882_v18, 0.0  ;;  %v2207_v29 = vmax.f32 %v6886_v10, 0.0  ;;  %v459_v59 = vld [vmem:[#allocation2 + $0x5e0] sm:$0xff]  ;;  %v461_v61 = vld [vmem:[#allocation2 + $0x5f0] sm:$0xff]  ;;  %v476_v62 = vld [vmem:[#allocation2 + $0x668] sm:$0xff] }
 0x300   :  { %v2206_v33 = vmax.f32 %v6883_v22, 0.0  ;;  %v2208_v34 = vmax.f32 %v6887_v24, 0.0  ;;  %1940 = vmatpush1.bf16.msra.mxu0 %v379_v0  ;;  %2069 = vmatpush1.bf16.msra.mxu1 %v381_v3  ;;  %v478_v63 = vld [vmem:[#allocation2 + $0x678] sm:$0xff]  ;;  %v475_v7 = vld [vmem:[#allocation2 + $0x660] sm:$0xff]  ;;  %v477_v13 = vld [vmem:[#allocation2 + $0x670] sm:$0xff] }
 0x301   :  { %v7766_v35 = vpack.c.bf16 %v2205_v4, %v2189_v27  ;;  %v7768_v36 = vpack.c.bf16 %v2207_v29, %v2191_v1  ;;  %1941 = vmatprep.subr.bf16.mxu0 %v396_v25  ;;  %2070 = vmatprep.subr.bf16.mxu1 %v398_v26  ;;  %v492_v14 = vld [vmem:[#allocation2 + $0x6e8] sm:$0xff]  ;;  %v494_v15 = vld [vmem:[#allocation2 + $0x6f8] sm:$0xff]  ;;  %v491_v17 = vld [vmem:[#allocation2 + $0x6e0] sm:$0xff] }
 0x302   :  { %v7770_v37 = vpack.c.bf16 %v2206_v33, %v2190_v31  ;;  %v7772_v38 = vpack.c.bf16 %v2208_v34, %v2192_v32  ;;  %v493_v18 = vld [vmem:[#allocation2 + $0x6f0] sm:$0xff]  ;;  %v508_v10 = vld [vmem:[#allocation2 + $0x768] sm:$0xff]  ;;  %v510_v19 = vld [vmem:[#allocation2 + $0x778] sm:$0xff] }
 0x303   :  { %v507_v20 = vld [vmem:[#allocation2 + $0x760] sm:$0xff]  ;;  %v509_v0 = vld [vmem:[#allocation2 + $0x770] sm:$0xff]  ;;  %v524_v3 = vld [vmem:[#allocation2 + $0x7e8] sm:$0xff] }
 0x304   :  { %1942 = vmatpush1.bf16.msra.mxu0 %v395_v2  ;;  %2071 = vmatpush1.bf16.msra.mxu1 %v397_v5  ;;  %v526_v22 = vld [vmem:[#allocation2 + $0x7f8] sm:$0xff]  ;;  %v523_v24 = vld [vmem:[#allocation2 + $0x7e0] sm:$0xff]  ;;  %v525_v25 = vld [vmem:[#allocation2 + $0x7f0] sm:$0xff] }
 0x305   :  { %1943 = vmatprep.subr.bf16.mxu0 %v412_v39  ;;  %2072 = vmatprep.subr.bf16.mxu1 %v414_v43  ;;  %v540_v26 = vld [vmem:[#allocation2 + $0x868] sm:$0xff]  ;;  %v542_v27 = vld [vmem:[#allocation2 + $0x878] sm:$0xff]  ;;  %v539_v1 = vld [vmem:[#allocation2 + $0x860] sm:$0xff] }
 0x306   :  { %v541_v4 = vld [vmem:[#allocation2 + $0x870] sm:$0xff]  ;;  %v556_v29 = vld [vmem:[#allocation2 + $0x8e8] sm:$0xff]  ;;  %v558_v31 = vld [vmem:[#allocation2 + $0x8f8] sm:$0xff] }
 0x307   :  { %v555_v32 = vld [vmem:[#allocation2 + $0x8e0] sm:$0xff]  ;;  %v557_v33 = vld [vmem:[#allocation2 + $0x8f0] sm:$0xff]  ;;  %v572_v34 = vld [vmem:[#allocation2 + $0x968] sm:$0xff] }
 0x308   :  { %1944 = vmatpush1.bf16.msra.mxu0 %v411_v44  ;;  %2073 = vmatpush1.bf16.msra.mxu1 %v413_v45  ;;  %v574_v2 = vld [vmem:[#allocation2 + $0x978] sm:$0xff]  ;;  %v571_v5 = vld [vmem:[#allocation2 + $0x960] sm:$0xff]  ;;  %v573_v39 = vld [vmem:[#allocation2 + $0x970] sm:$0xff] }
 0x309   :  { %1945 = vmatprep.subr.bf16.mxu0 %v428_v46  ;;  %2074 = vmatprep.subr.bf16.mxu1 %v430_v47  ;;  %v588_v43 = vld [vmem:[#allocation2 + $0x9e8] sm:$0xff]  ;;  %v587_v44 = vld [vmem:[#allocation2 + $0x9e0] sm:$0xff]  ;;  %v589_v45 = vld [vmem:[#allocation2 + $0x9f0] sm:$0xff] }
 0x30a   :  { %v604_v46 = vld [vmem:[#allocation2 + $0xa68] sm:$0xff]  ;;  %v606_v47 = vld [vmem:[#allocation2 + $0xa78] sm:$0xff] }
 0x30c   :  { %1946 = vmatpush1.bf16.msra.mxu0 %v427_v48  ;;  %2075 = vmatpush1.bf16.msra.mxu1 %v429_v49  ;;  %v605_v48 = vld [vmem:[#allocation2 + $0xa70] sm:$0xff]  ;;  %v620_v49 = vld [vmem:[#allocation2 + $0xae8] sm:$0xff] }
 0x30d   :  { %1947 = vmatprep.subr.bf16.mxu0 %v444_v60  ;;  %2076 = vmatprep.subr.bf16.mxu1 %v446_v50  ;;  %v622_v60 = vld [vmem:[#allocation2 + $0xaf8] sm:$0xff]  ;;  %v619_v50 = vld [vmem:[#allocation2 + $0xae0] sm:$0xff] }
 0x310   :  { %1948 = vmatpush1.bf16.msra.mxu0 %v443_v51  ;;  %2077 = vmatpush1.bf16.msra.mxu1 %v445_v54  ;;  %v621_v51 = vld [vmem:[#allocation2 + $0xaf0] sm:$0xff]  ;;  %v636_v54 = vld [vmem:[#allocation2 + $0xb68] sm:$0xff] }
 0x311   :  { %1949 = vmatprep.subr.bf16.mxu0 %v460_v55  ;;  %2078 = vmatprep.subr.bf16.mxu1 %v462_v58  ;;  %v638_v55 = vld [vmem:[#allocation2 + $0xb78] sm:$0xff]  ;;  %v635_v58 = vld [vmem:[#allocation2 + $0xb60] sm:$0xff] }
 0x314   :  { %1950 = vmatpush1.bf16.msra.mxu0 %v459_v59  ;;  %2079 = vmatpush1.bf16.msra.mxu1 %v461_v61  ;;  %v637_v59 = vld [vmem:[#allocation2 + $0xb70] sm:$0xff]  ;;  %v652_v61 = vld [vmem:[#allocation2 + $0xbe8] sm:$0xff] }
 0x315   :  { %1951 = vmatprep.subr.bf16.mxu0 %v476_v62  ;;  %2080 = vmatprep.subr.bf16.mxu1 %v478_v63  ;;  %v654_v62 = vld [vmem:[#allocation2 + $0xbf8] sm:$0xff]  ;;  %v651_v63 = vld [vmem:[#allocation2 + $0xbe0] sm:$0xff] }
 0x318   :  { %1952 = vmatpush1.bf16.msra.mxu0 %v475_v7  ;;  %2081 = vmatpush1.bf16.msra.mxu1 %v477_v13  ;;  %v653_v7 = vld [vmem:[#allocation2 + $0xbf0] sm:$0xff]  ;;  %v668_v13 = vld [vmem:[#allocation2 + $0xc68] sm:$0xff] }
 0x319   :  { %1953 = vmatprep.subr.bf16.mxu0 %v492_v14  ;;  %2082 = vmatprep.subr.bf16.mxu1 %v494_v15  ;;  %v670_v14 = vld [vmem:[#allocation2 + $0xc78] sm:$0xff]  ;;  %v667_v15 = vld [vmem:[#allocation2 + $0xc60] sm:$0xff] }
 0x31c   :  { %1954 = vmatpush1.bf16.msra.mxu0 %v491_v17  ;;  %2083 = vmatpush1.bf16.msra.mxu1 %v493_v18  ;;  %v669_v17 = vld [vmem:[#allocation2 + $0xc70] sm:$0xff]  ;;  %v684_v18 = vld [vmem:[#allocation2 + $0xce8] sm:$0xff] }
 0x31d   :  { %1955 = vmatprep.subr.bf16.mxu0 %v508_v10  ;;  %2084 = vmatprep.subr.bf16.mxu1 %v510_v19  ;;  %v686_v10 = vld [vmem:[#allocation2 + $0xcf8] sm:$0xff]  ;;  %v683_v19 = vld [vmem:[#allocation2 + $0xce0] sm:$0xff] }
 0x320   :  { %1956 = vmatpush1.bf16.msra.mxu0 %v507_v20  ;;  %2085 = vmatpush1.bf16.msra.mxu1 %v509_v0  ;;  %v685_v20 = vld [vmem:[#allocation2 + $0xcf0] sm:$0xff]  ;;  %v700_v0 = vld [vmem:[#allocation2 + $0xd68] sm:$0xff] }
 0x321   :  { %1957 = vmatprep.subr.bf16.mxu0 %v524_v3  ;;  %2086 = vmatprep.subr.bf16.mxu1 %v526_v22  ;;  %v702_v3 = vld [vmem:[#allocation2 + $0xd78] sm:$0xff]  ;;  %v699_v22 = vld [vmem:[#allocation2 + $0xd60] sm:$0xff] }
 0x324   :  { %1958 = vmatpush1.bf16.msra.mxu0 %v523_v24  ;;  %2087 = vmatpush1.bf16.msra.mxu1 %v525_v25  ;;  %v701_v24 = vld [vmem:[#allocation2 + $0xd70] sm:$0xff]  ;;  %v716_v25 = vld [vmem:[#allocation2 + $0xde8] sm:$0xff] }
 0x325   :  { %1970 = vmatprep.subr.bf16.mxu0 %v540_v26  ;;  %2099 = vmatprep.subr.bf16.mxu1 %v542_v27  ;;  %v718_v26 = vld [vmem:[#allocation2 + $0xdf8] sm:$0xff]  ;;  %v715_v27 = vld [vmem:[#allocation2 + $0xde0] sm:$0xff] }
 0x327   :  { %1960 = vmatmul.mubr.bf16.vlgmr.msra.gmra.mrb[12].mxu0 %v7660_v16  ;;  %2089 = vmatmul.mubr.bf16.vlgmr.msra.gmra.mrb[12].mxu1 %v7660_v16  ;;  %v590_v16 = vld [vmem:[#allocation2 + $0x9f8] sm:$0xff] }
 0x328   :  { %1971 = vmatpush1.bf16.msra.mxu0 %v539_v1  ;;  %2100 = vmatpush1.bf16.msra.mxu1 %v541_v4  ;;  %v717_v1 = vld [vmem:[#allocation2 + $0xdf0] sm:$0xff]  ;;  %v732_v4 = vld [vmem:[#allocation2 + $0xe68] sm:$0xff] }
 0x329   :  { %1972 = vmatprep.subr.bf16.mxu0 %v556_v29  ;;  %2101 = vmatprep.subr.bf16.mxu1 %v558_v31  ;;  %v734_v29 = vld [vmem:[#allocation2 + $0xe78] sm:$0xff]  ;;  %v731_v31 = vld [vmem:[#allocation2 + $0xe60] sm:$0xff] }
 0x32a   :  { %2002 = vmatprep.mubr.bf16.mxu0 %v7664_v21  ;;  %2131 = vmatprep.mubr.bf16.mxu1 %v7664_v21  ;;  %v603_v21 = vld [vmem:[#allocation2 + $0xa60] sm:$0xff] }
 0x32c   :  { %1973 = vmatpush1.bf16.msra.mxu0 %v555_v32  ;;  %2102 = vmatpush1.bf16.msra.mxu1 %v557_v33  ;;  %v733_v32 = vld [vmem:[#allocation2 + $0xe70] sm:$0xff]  ;;  %v748_v33 = vld [vmem:[#allocation2 + $0xee8] sm:$0xff] }
 0x32d   :  { %1974 = vmatprep.subr.bf16.mxu0 %v572_v34  ;;  %2103 = vmatprep.subr.bf16.mxu1 %v574_v2  ;;  %v750_v34 = vld [vmem:[#allocation2 + $0xef8] sm:$0xff]  ;;  %v747_v2 = vld [vmem:[#allocation2 + $0xee0] sm:$0xff] }
 0x330   :  { %1975 = vmatpush1.bf16.msra.mxu0 %v571_v5  ;;  %2104 = vmatpush1.bf16.msra.mxu1 %v573_v39  ;;  %v749_v5 = vld [vmem:[#allocation2 + $0xef0] sm:$0xff]  ;;  %v764_v39 = vld [vmem:[#allocation2 + $0xf68] sm:$0xff] }
 0x331   :  { %1976 = vmatprep.subr.bf16.mxu0 %v588_v43  ;;  %2105 = vmatprep.subr.bf16.mxu1 %v590_v16  ;;  %v766_v43 = vld [vmem:[#allocation2 + $0xf78] sm:$0xff]  ;;  %v763_v16 = vld [vmem:[#allocation2 + $0xf60] sm:$0xff] }
 0x334   :  { %1977 = vmatpush1.bf16.msra.mxu0 %v587_v44  ;;  %2106 = vmatpush1.bf16.msra.mxu1 %v589_v45  ;;  %v765_v44 = vld [vmem:[#allocation2 + $0xf70] sm:$0xff]  ;;  %v780_v45 = vld [vmem:[#allocation2 + $0xfe8] sm:$0xff] }
 0x335   :  { %1978 = vmatprep.subr.bf16.mxu0 %v604_v46  ;;  %2107 = vmatprep.subr.bf16.mxu1 %v606_v47  ;;  %v782_v46 = vld [vmem:[#allocation2 + $0xff8] sm:$0xff]  ;;  %v779_v47 = vld [vmem:[#allocation2 + $0xfe0] sm:$0xff] }
 0x338   :  { %1979 = vmatpush1.bf16.msra.mxu0 %v603_v21  ;;  %2108 = vmatpush1.bf16.msra.mxu1 %v605_v48  ;;  %v781_v21 = vld [vmem:[#allocation2 + $0xff0] sm:$0xff]  ;;  %v796_v48 = vld [vmem:[#allocation2 + $0x1068] sm:$0xff] }
 0x339   :  { %1980 = vmatprep.subr.bf16.mxu0 %v620_v49  ;;  %2109 = vmatprep.subr.bf16.mxu1 %v622_v60  ;;  %v798_v49 = vld [vmem:[#allocation2 + $0x1078] sm:$0xff]  ;;  %v795_v60 = vld [vmem:[#allocation2 + $0x1060] sm:$0xff] }
 0x33c   :  { %1981 = vmatpush1.bf16.msra.mxu0 %v619_v50  ;;  %2110 = vmatpush1.bf16.msra.mxu1 %v621_v51  ;;  %v797_v50 = vld [vmem:[#allocation2 + $0x1070] sm:$0xff]  ;;  %v812_v51 = vld [vmem:[#allocation2 + $0x10e8] sm:$0xff] }
 0x33d   :  { %1982 = vmatprep.subr.bf16.mxu0 %v636_v54  ;;  %2111 = vmatprep.subr.bf16.mxu1 %v638_v55  ;;  %v814_v54 = vld [vmem:[#allocation2 + $0x10f8] sm:$0xff]  ;;  %v811_v55 = vld [vmem:[#allocation2 + $0x10e0] sm:$0xff] }
 0x340   :  { %1983 = vmatpush1.bf16.msra.mxu0 %v635_v58  ;;  %2112 = vmatpush1.bf16.msra.mxu1 %v637_v59  ;;  %v813_v58 = vld [vmem:[#allocation2 + $0x10f0] sm:$0xff]  ;;  %v828_v59 = vld [vmem:[#allocation2 + $0x1168] sm:$0xff] }
 0x341   :  { %1984 = vmatprep.subr.bf16.mxu0 %v652_v61  ;;  %2113 = vmatprep.subr.bf16.mxu1 %v654_v62  ;;  %v830_v61 = vld [vmem:[#allocation2 + $0x1178] sm:$0xff]  ;;  %v827_v62 = vld [vmem:[#allocation2 + $0x1160] sm:$0xff] }
 0x344   :  { %1985 = vmatpush1.bf16.msra.mxu0 %v651_v63  ;;  %2114 = vmatpush1.bf16.msra.mxu1 %v653_v7  ;;  %v829_v63 = vld [vmem:[#allocation2 + $0x1170] sm:$0xff]  ;;  %v844_v7 = vld [vmem:[#allocation2 + $0x11e8] sm:$0xff] }
 0x345   :  { %1986 = vmatprep.subr.bf16.mxu0 %v668_v13  ;;  %2115 = vmatprep.subr.bf16.mxu1 %v670_v14  ;;  %v843_v13 = vld [vmem:[#allocation2 + $0x11e0] sm:$0xff]  ;;  %v845_v14 = vld [vmem:[#allocation2 + $0x11f0] sm:$0xff] }
 0x348   :  { %1987 = vmatpush1.bf16.msra.mxu0 %v667_v15  ;;  %2116 = vmatpush1.bf16.msra.mxu1 %v669_v17  ;;  %v860_v15 = vld [vmem:[#allocation2 + $0x1268] sm:$0xff]  ;;  %v862_v17 = vld [vmem:[#allocation2 + $0x1278] sm:$0xff] }
 0x349   :  { %1988 = vmatprep.subr.bf16.mxu0 %v684_v18  ;;  %2117 = vmatprep.subr.bf16.mxu1 %v686_v10  ;;  %v861_v18 = vld [vmem:[#allocation2 + $0x1270] sm:$0xff]  ;;  %v876_v10 = vld [vmem:[#allocation2 + $0x12e8] sm:$0xff] }
 0x34c   :  { %1989 = vmatpush1.bf16.msra.mxu0 %v683_v19  ;;  %2118 = vmatpush1.bf16.msra.mxu1 %v685_v20  ;;  %v878_v19 = vld [vmem:[#allocation2 + $0x12f8] sm:$0xff]  ;;  %v875_v20 = vld [vmem:[#allocation2 + $0x12e0] sm:$0xff] }
 0x34d   :  { %1990 = vmatprep.subr.bf16.mxu0 %v700_v0  ;;  %2119 = vmatprep.subr.bf16.mxu1 %v702_v3  ;;  %v877_v0 = vld [vmem:[#allocation2 + $0x12f0] sm:$0xff]  ;;  %v892_v3 = vld [vmem:[#allocation2 + $0x1368] sm:$0xff] }
 0x350   :  { %1991 = vmatpush1.bf16.msra.mxu0 %v699_v22  ;;  %2120 = vmatpush1.bf16.msra.mxu1 %v701_v24  ;;  %v894_v22 = vld [vmem:[#allocation2 + $0x1378] sm:$0xff]  ;;  %v891_v24 = vld [vmem:[#allocation2 + $0x1360] sm:$0xff] }
 0x351   :  { %1992 = vmatprep.subr.bf16.mxu0 %v716_v25  ;;  %2121 = vmatprep.subr.bf16.mxu1 %v718_v26  ;;  %v893_v25 = vld [vmem:[#allocation2 + $0x1370] sm:$0xff]  ;;  %v908_v26 = vld [vmem:[#allocation2 + $0x13e8] sm:$0xff] }
 0x354   :  { %1993 = vmatpush1.bf16.msra.mxu0 %v715_v27  ;;  %2122 = vmatpush1.bf16.msra.mxu1 %v717_v1  ;;  %v910_v27 = vld [vmem:[#allocation2 + $0x13f8] sm:$0xff]  ;;  %v907_v1 = vld [vmem:[#allocation2 + $0x13e0] sm:$0xff] }
 0x355   :  { %1994 = vmatprep.subr.bf16.mxu0 %v732_v4  ;;  %2123 = vmatprep.subr.bf16.mxu1 %v734_v29  ;;  %v909_v4 = vld [vmem:[#allocation2 + $0x13f0] sm:$0xff]  ;;  %v924_v29 = vld [vmem:[#allocation2 + $0x1468] sm:$0xff] }
 0x358   :  { %1995 = vmatpush1.bf16.msra.mxu0 %v731_v31  ;;  %2124 = vmatpush1.bf16.msra.mxu1 %v733_v32  ;;  %v926_v31 = vld [vmem:[#allocation2 + $0x1478] sm:$0xff]  ;;  %v923_v32 = vld [vmem:[#allocation2 + $0x1460] sm:$0xff] }
 0x359   :  { %1996 = vmatprep.subr.bf16.mxu0 %v748_v33  ;;  %2125 = vmatprep.subr.bf16.mxu1 %v750_v34  ;;  %v925_v33 = vld [vmem:[#allocation2 + $0x1470] sm:$0xff]  ;;  %v940_v34 = vld [vmem:[#allocation2 + $0x14e8] sm:$0xff] }
 0x35c   :  { %1997 = vmatpush1.bf16.msra.mxu0 %v747_v2  ;;  %2126 = vmatpush1.bf16.msra.mxu1 %v749_v5  ;;  %v942_v2 = vld [vmem:[#allocation2 + $0x14f8] sm:$0xff]  ;;  %v939_v5 = vld [vmem:[#allocation2 + $0x14e0] sm:$0xff] }
 0x35d   :  { %1998 = vmatprep.subr.bf16.mxu0 %v764_v39  ;;  %2127 = vmatprep.subr.bf16.mxu1 %v766_v43  ;;  %v941_v39 = vld [vmem:[#allocation2 + $0x14f0] sm:$0xff]  ;;  %v956_v43 = vld [vmem:[#allocation2 + $0x1568] sm:$0xff] }
 0x360   :  { %1999 = vmatpush1.bf16.msra.mxu0 %v763_v16  ;;  %2128 = vmatpush1.bf16.msra.mxu1 %v765_v44  ;;  %v958_v16 = vld [vmem:[#allocation2 + $0x1578] sm:$0xff]  ;;  %v955_v44 = vld [vmem:[#allocation2 + $0x1560] sm:$0xff] }
 0x361   :  { %2000 = vmatprep.subr.bf16.mxu0 %v780_v45  ;;  %2129 = vmatprep.subr.bf16.mxu1 %v782_v46  ;;  %v957_v45 = vld [vmem:[#allocation2 + $0x1570] sm:$0xff]  ;;  %v972_v46 = vld [vmem:[#allocation2 + $0x15e8] sm:$0xff] }
 0x364   :  { %2001 = vmatpush1.bf16.msra.mxu0 %v779_v47  ;;  %2130 = vmatpush1.bf16.msra.mxu1 %v781_v21  ;;  %v974_v47 = vld [vmem:[#allocation2 + $0x15f8] sm:$0xff]  ;;  %v971_v21 = vld [vmem:[#allocation2 + $0x15e0] sm:$0xff] }
 0x365   :  { %2013 = vmatprep.subr.bf16.mxu0 %v796_v48  ;;  %2142 = vmatprep.subr.bf16.mxu1 %v798_v49  ;;  %v973_v48 = vld [vmem:[#allocation2 + $0x15f0] sm:$0xff]  ;;  %v988_v49 = vld [vmem:[#allocation2 + $0x1668] sm:$0xff] }
 0x367   :  { %2003 = vmatmul.mubr.bf16.vlgmr.msra.gmra.mrb[12].mxu0 %v7672_v23  ;;  %2132 = vmatmul.mubr.bf16.vlgmr.msra.gmra.mrb[12].mxu1 %v7672_v23  ;;  %v846_v23 = vld [vmem:[#allocation2 + $0x11f8] sm:$0xff] }
 0x368   :  { %2014 = vmatpush1.bf16.msra.mxu0 %v795_v60  ;;  %2143 = vmatpush1.bf16.msra.mxu1 %v797_v50  ;;  %v990_v60 = vld [vmem:[#allocation2 + $0x1678] sm:$0xff]  ;;  %v987_v50 = vld [vmem:[#allocation2 + $0x1660] sm:$0xff] }
 0x369   :  { %2015 = vmatprep.subr.bf16.mxu0 %v812_v51  ;;  %2144 = vmatprep.subr.bf16.mxu1 %v814_v54  ;;  %v989_v51 = vld [vmem:[#allocation2 + $0x1670] sm:$0xff]  ;;  %v1004_v54 = vld [vmem:[#allocation2 + $0x16e8] sm:$0xff] }
 0x36a   :  { %2045 = vmatprep.mubr.bf16.mxu0 %v7676_v28  ;;  %2174 = vmatprep.mubr.bf16.mxu1 %v7676_v28  ;;  %v859_v28 = vld [vmem:[#allocation2 + $0x1260] sm:$0xff] }
 0x36c   :  { %2016 = vmatpush1.bf16.msra.mxu0 %v811_v55  ;;  %2145 = vmatpush1.bf16.msra.mxu1 %v813_v58  ;;  %v1006_v55 = vld [vmem:[#allocation2 + $0x16f8] sm:$0xff]  ;;  %v1003_v58 = vld [vmem:[#allocation2 + $0x16e0] sm:$0xff] }
 0x36d   :  { %2017 = vmatprep.subr.bf16.mxu0 %v828_v59  ;;  %2146 = vmatprep.subr.bf16.mxu1 %v830_v61  ;;  %v1005_v59 = vld [vmem:[#allocation2 + $0x16f0] sm:$0xff]  ;;  %v1020_v61 = vld [vmem:[#allocation2 + $0x1768] sm:$0xff] }
 0x370   :  { %2018 = vmatpush1.bf16.msra.mxu0 %v827_v62  ;;  %2147 = vmatpush1.bf16.msra.mxu1 %v829_v63  ;;  %v1022_v62 = vld [vmem:[#allocation2 + $0x1778] sm:$0xff]  ;;  %v1019_v63 = vld [vmem:[#allocation2 + $0x1760] sm:$0xff] }
 0x371   :  { %2019 = vmatprep.subr.bf16.mxu0 %v844_v7  ;;  %2148 = vmatprep.subr.bf16.mxu1 %v846_v23  ;;  %v1021_v7 = vld [vmem:[#allocation2 + $0x1770] sm:$0xff]  ;;  %v1036_v23 = vld [vmem:[#allocation2 + $0x17e8] sm:$0xff] }
 0x374   :  { %2020 = vmatpush1.bf16.msra.mxu0 %v843_v13  ;;  %2149 = vmatpush1.bf16.msra.mxu1 %v845_v14  ;;  %v1038_v13 = vld [vmem:[#allocation2 + $0x17f8] sm:$0xff]  ;;  %v1035_v14 = vld [vmem:[#allocation2 + $0x17e0] sm:$0xff] }
 0x375   :  { %2021 = vmatprep.subr.bf16.mxu0 %v860_v15  ;;  %2150 = vmatprep.subr.bf16.mxu1 %v862_v17  ;;  %v1037_v15 = vld [vmem:[#allocation2 + $0x17f0] sm:$0xff]  ;;  %v1040_v17 = vld [vmem:[#allocation11 + $0x8] sm:$0xff] }
 0x378   :  { %2022 = vmatpush1.bf16.msra.mxu0 %v859_v28  ;;  %2151 = vmatpush1.bf16.msra.mxu1 %v861_v18  ;;  %v1078_v28 = vrot.slane %v1040_v17, %v7705_v8  ;;  %v1086_v18 = vrot.slane %v1040_v17, %v7708_v9 }
 0x379   :  { %2023 = vmatprep.subr.bf16.mxu0 %v876_v10  ;;  %2152 = vmatprep.subr.bf16.mxu1 %v878_v19  ;;  %v1082_v10 = vrot.slane %v1040_v17, %v7713_v11  ;;  %v1090_v19 = vrot.slane %v1040_v17, %v7716_v12 }
 0x37c   :  { %2024 = vmatpush1.bf16.msra.mxu0 %v875_v20  ;;  %2153 = vmatpush1.bf16.msra.mxu1 %v877_v0 }
 0x37d   :  { %2025 = vmatprep.subr.bf16.mxu0 %v892_v3  ;;  %2154 = vmatprep.subr.bf16.mxu1 %v894_v22 }
 0x380   :  { %2026 = vmatpush1.bf16.msra.mxu0 %v891_v24  ;;  %2155 = vmatpush1.bf16.msra.mxu1 %v893_v25 }
 0x381   :  { %2027 = vmatprep.subr.bf16.mxu0 %v908_v26  ;;  %2156 = vmatprep.subr.bf16.mxu1 %v910_v27 }
 0x384   :  { %2028 = vmatpush1.bf16.msra.mxu0 %v907_v1  ;;  %2157 = vmatpush1.bf16.msra.mxu1 %v909_v4 }
 0x385   :  { %2029 = vmatprep.subr.bf16.mxu0 %v924_v29  ;;  %2158 = vmatprep.subr.bf16.mxu1 %v926_v31 }
 0x388   :  { %2030 = vmatpush1.bf16.msra.mxu0 %v923_v32  ;;  %2159 = vmatpush1.bf16.msra.mxu1 %v925_v33 }
 0x389   :  { %2031 = vmatprep.subr.bf16.mxu0 %v940_v34  ;;  %2160 = vmatprep.subr.bf16.mxu1 %v942_v2 }
 0x38c   :  { %2032 = vmatpush1.bf16.msra.mxu0 %v939_v5  ;;  %2161 = vmatpush1.bf16.msra.mxu1 %v941_v39 }
 0x38d   :  { %2033 = vmatprep.subr.bf16.mxu0 %v956_v43  ;;  %2162 = vmatprep.subr.bf16.mxu1 %v958_v16 }
 0x390   :  { %2034 = vmatpush1.bf16.msra.mxu0 %v955_v44  ;;  %2163 = vmatpush1.bf16.msra.mxu1 %v957_v45 }
 0x391   :  { %2035 = vmatprep.subr.bf16.mxu0 %v972_v46  ;;  %2164 = vmatprep.subr.bf16.mxu1 %v974_v47 }
 0x394   :  { %2036 = vmatpush1.bf16.msra.mxu0 %v971_v21  ;;  %2165 = vmatpush1.bf16.msra.mxu1 %v973_v48 }
 0x395   :  { %2037 = vmatprep.subr.bf16.mxu0 %v988_v49  ;;  %2166 = vmatprep.subr.bf16.mxu1 %v990_v60  ;;  %v1094_v60 = vrot.slane %v1040_v17, %v7747_v40 }
 0x398   :  { %2038 = vmatpush1.bf16.msra.mxu0 %v987_v50  ;;  %2167 = vmatpush1.bf16.msra.mxu1 %v989_v51  ;;  %v1102_v50 = vrot.slane %v1040_v17, %v7750_v6  ;;  %v1098_v51 = vrot.slane %v1040_v17, %v7753_v41 }
 0x399   :  { %2039 = vmatprep.subr.bf16.mxu0 %v1004_v54  ;;  %2168 = vmatprep.subr.bf16.mxu1 %v1006_v55  ;;  %v1106_v54 = vrot.slane %v1040_v17, %v7756_v42 }
 0x39c   :  { %2040 = vmatpush1.bf16.msra.mxu0 %v1003_v58  ;;  %2169 = vmatpush1.bf16.msra.mxu1 %v1005_v59 }
 0x39d   :  { %2041 = vmatprep.subr.bf16.mxu0 %v1020_v61  ;;  %2170 = vmatprep.subr.bf16.mxu1 %v1022_v62 }
 0x3a0   :  { %2042 = vmatpush1.bf16.msra.mxu0 %v1019_v63  ;;  %2171 = vmatpush1.bf16.msra.mxu1 %v1021_v7 }
 0x3a1   :  { %2043 = vmatprep.subr.bf16.mxu0 %v1036_v23  ;;  %2172 = vmatprep.subr.bf16.mxu1 %v1038_v13 }
 0x3a4   :  { %2044 = vmatpush1.bf16.msra.mxu0 %v1035_v14  ;;  %2173 = vmatpush1.bf16.msra.mxu1 %v1037_v15 }
 0x3a7   :  { %2046 = vmatmul.mubr.bf16.vlgmr.msra.gmra.mrb[12].mxu0 %v7684_v30  ;;  %2175 = vmatmul.mubr.bf16.vlgmr.msra.gmra.mrb[12].mxu1 %v7684_v30 }
 0x3ba   :  { %v1789_v20 = vpop.f32.mrb[8].mxu0  ;;  %v1918_v0 = vpop.f32.mrb[8].mxu1 }
 0x3bb   :  { %v6888_v3 = vadd.f32 %v1789_v20, %v1078_v28  ;;  %v6892_v22 = vadd.f32 %v1918_v0, %v1086_v18  ;;  %v1791_v24 = vpop.f32.mrb[9].mxu0  ;;  %v1920_v25 = vpop.f32.mrb[9].mxu1 }
 0x3bc   :  { %v6889_v26 = vadd.f32 %v1791_v24, %v1082_v10  ;;  %v6893_v27 = vadd.f32 %v1920_v25, %v1090_v19  ;;  %v1793_v1 = vpop.f32.mrb[10].mxu0  ;;  %v1922_v4 = vpop.f32.mrb[10].mxu1 }
 0x3bd   :  { %v6890_v30 = vadd.f32 %v1793_v1, %v1078_v28  ;;  %v6894_v29 = vadd.f32 %v1922_v4, %v1086_v18  ;;  %v1795_v31 = vpop.f32.mrb[11].mxu0  ;;  %v1924_v32 = vpop.f32.mrb[11].mxu1  ;;  %v2193_v2 = vmax.f32 %v6888_v3, 0.0  ;;  %v2195_v5 = vmax.f32 %v6892_v22, 0.0 }
 0x3be   :  { %v6891_v33 = vadd.f32 %v1795_v31, %v1082_v10  ;;  %v6895_v34 = vadd.f32 %v1924_v32, %v1090_v19  ;;  %v2194_v16 = vmax.f32 %v6889_v26, 0.0  ;;  %v2196_v44 = vmax.f32 %v6893_v27, 0.0 }
 0x3bf   :  { %v2209_v39 = vmax.f32 %v6890_v30, 0.0  ;;  %v2211_v43 = vmax.f32 %v6894_v29, 0.0 }
 0x3c0   :  { %v2210_v45 = vmax.f32 %v6891_v33, 0.0  ;;  %v2212_v46 = vmax.f32 %v6895_v34, 0.0 }
 0x3c1   :  { %v7788_v47 = vpack.c.bf16 %v2209_v39, %v2193_v2  ;;  %v7790_v21 = vpack.c.bf16 %v2211_v43, %v2195_v5 }
 0x3c2   :  { %v7792_v48 = vpack.c.bf16 %v2210_v45, %v2194_v16  ;;  %v7794_v49 = vpack.c.bf16 %v2212_v46, %v2196_v44 }
 0x47a   :  { %v2047_v55 = vpop.f32.mrb[12].mxu0  ;;  %v2176_v58 = vpop.f32.mrb[12].mxu1 }
 0x47b   :  { %v6896_v59 = vadd.f32 %v2047_v55, %v1094_v60  ;;  %v6900_v61 = vadd.f32 %v2176_v58, %v1102_v50  ;;  %v2049_v62 = vpop.f32.mrb[13].mxu0  ;;  %v2178_v63 = vpop.f32.mrb[13].mxu1 }
 0x47c   :  { %v6897_v7 = vadd.f32 %v2049_v62, %v1098_v51  ;;  %v6901_v23 = vadd.f32 %v2178_v63, %v1106_v54  ;;  %v2051_v13 = vpop.f32.mrb[14].mxu0  ;;  %v2180_v14 = vpop.f32.mrb[14].mxu1 }
 0x47d   :  { %v6898_v15 = vadd.f32 %v2051_v13, %v1094_v60  ;;  %v6902_v28 = vadd.f32 %v2180_v14, %v1102_v50  ;;  %v2053_v18 = vpop.f32.mrb[15].mxu0  ;;  %v2182_v10 = vpop.f32.mrb[15].mxu1  ;;  %v2197_v0 = vmax.f32 %v6896_v59, 0.0  ;;  %v2199_v3 = vmax.f32 %v6900_v61, 0.0 }
 0x47e   :  { %v6899_v19 = vadd.f32 %v2053_v18, %v1098_v51  ;;  %v6903_v20 = vadd.f32 %v2182_v10, %v1106_v54  ;;  %v2198_v24 = vmax.f32 %v6897_v7, 0.0  ;;  %v2200_v25 = vmax.f32 %v6901_v23, 0.0 }
 0x47f   :  { %v2213_v22 = vmax.f32 %v6898_v15, 0.0  ;;  %v2215_v17 = vmax.f32 %v6902_v28, 0.0 }
 0x480   :  { %v2214_v26 = vmax.f32 %v6899_v19, 0.0  ;;  %v2216_v27 = vmax.f32 %v6903_v20, 0.0 }
 0x481   :  { %v7800_v1 = vpack.c.bf16 %v2213_v22, %v2197_v0  ;;  %v7802_v4 = vpack.c.bf16 %v2215_v17, %v2199_v3 }
 0x482   :  { %v7804_v30 = vpack.c.bf16 %v2214_v26, %v2198_v24  ;;  %v7806_v29 = vpack.c.bf16 %v2216_v27, %v2200_v25 }
 0x483   :  { %7413 = dma.done.wait [#allocation7 + $0x1], 131072 }
 0x484   :  { %7414 = vsyncadd [#allocation7 + $0x1], 4294836224  ;;  %3339 = vmatprep.mubr.bf16.mxu0 %v7730_v56  ;;  %3683 = vmatprep.mubr.bf16.mxu1 %v7730_v56  ;;  %v2242_v31 = vld [vmem:[#allocation3 + $0x8] sm:$0xff]  ;;  %v2244_v32 = vld [vmem:[#allocation3 + $0x18] sm:$0xff] }
 0x485   :  { %v2241_v33 = vld [vmem:[#allocation3] sm:$0xff]  ;;  %3307 = vmatprep.subr.bf16.mxu0 %v2242_v31  ;;  %3651 = vmatprep.subr.bf16.mxu1 %v2244_v32  ;;  %v2243_v34 = vld [vmem:[#allocation3 + $0x10] sm:$0xff]  ;;  %v2250_v2 = vld [vmem:[#allocation3 + $0x48] sm:$0xff] }
 0x486   :  { %v2252_v5 = vld [vmem:[#allocation3 + $0x58] sm:$0xff]  ;;  %3308 = vmatpush1.bf16.msra.mxu0 %v2241_v33  ;;  %3652 = vmatpush1.bf16.msra.mxu1 %v2243_v34  ;;  %v2249_v39 = vld [vmem:[#allocation3 + $0x40] sm:$0xff]  ;;  %v2251_v43 = vld [vmem:[#allocation3 + $0x50] sm:$0xff] }
 0x487   :  { %3309 = vmatprep.subr.bf16.mxu0 %v2250_v2  ;;  %3653 = vmatprep.subr.bf16.mxu1 %v2252_v5  ;;  %v2258_v16 = vld [vmem:[#allocation3 + $0x88] sm:$0xff]  ;;  %v2260_v44 = vld [vmem:[#allocation3 + $0x98] sm:$0xff]  ;;  %v2257_v45 = vld [vmem:[#allocation3 + $0x80] sm:$0xff] }
 0x488   :  { %v2259_v46 = vld [vmem:[#allocation3 + $0x90] sm:$0xff]  ;;  %v2266_v60 = vld [vmem:[#allocation3 + $0xc8] sm:$0xff]  ;;  %v2268_v50 = vld [vmem:[#allocation3 + $0xd8] sm:$0xff] }
 0x489   :  { %v2265_v51 = vld [vmem:[#allocation3 + $0xc0] sm:$0xff]  ;;  %v2267_v54 = vld [vmem:[#allocation3 + $0xd0] sm:$0xff]  ;;  %v2274_v55 = vld [vmem:[#allocation3 + $0x108] sm:$0xff] }
 0x48a   :  { %3310 = vmatpush1.bf16.msra.mxu0 %v2249_v39  ;;  %3654 = vmatpush1.bf16.msra.mxu1 %v2251_v43  ;;  %v2276_v58 = vld [vmem:[#allocation3 + $0x118] sm:$0xff]  ;;  %v2273_v59 = vld [vmem:[#allocation3 + $0x100] sm:$0xff]  ;;  %v2275_v61 = vld [vmem:[#allocation3 + $0x110] sm:$0xff] }
 0x48b   :  { %3311 = vmatprep.subr.bf16.mxu0 %v2258_v16  ;;  %3655 = vmatprep.subr.bf16.mxu1 %v2260_v44  ;;  %v2282_v62 = vld [vmem:[#allocation3 + $0x148] sm:$0xff]  ;;  %v2284_v63 = vld [vmem:[#allocation3 + $0x158] sm:$0xff]  ;;  %v2281_v7 = vld [vmem:[#allocation3 + $0x140] sm:$0xff] }
 0x48c   :  { %v2283_v23 = vld [vmem:[#allocation3 + $0x150] sm:$0xff]  ;;  %v2290_v13 = vld [vmem:[#allocation3 + $0x188] sm:$0xff]  ;;  %v2292_v14 = vld [vmem:[#allocation3 + $0x198] sm:$0xff] }
 0x48d   :  { %v2289_v15 = vld [vmem:[#allocation3 + $0x180] sm:$0xff]  ;;  %v2291_v28 = vld [vmem:[#allocation3 + $0x190] sm:$0xff]  ;;  %v2298_v18 = vld [vmem:[#allocation3 + $0x1c8] sm:$0xff] }
 0x48e   :  { %3312 = vmatpush1.bf16.msra.mxu0 %v2257_v45  ;;  %3656 = vmatpush1.bf16.msra.mxu1 %v2259_v46  ;;  %v2300_v10 = vld [vmem:[#allocation3 + $0x1d8] sm:$0xff]  ;;  %v2297_v19 = vld [vmem:[#allocation3 + $0x1c0] sm:$0xff]  ;;  %v2299_v20 = vld [vmem:[#allocation3 + $0x1d0] sm:$0xff] }
 0x48f   :  { %3313 = vmatprep.subr.bf16.mxu0 %v2266_v60  ;;  %3657 = vmatprep.subr.bf16.mxu1 %v2268_v50  ;;  %v2306_v0 = vld [vmem:[#allocation3 + $0x208] sm:$0xff]  ;;  %v2308_v3 = vld [vmem:[#allocation3 + $0x218] sm:$0xff]  ;;  %v2305_v22 = vld [vmem:[#allocation3 + $0x200] sm:$0xff] }
 0x490   :  { %v2307_v17 = vld [vmem:[#allocation3 + $0x210] sm:$0xff]  ;;  %v2314_v24 = vld [vmem:[#allocation3 + $0x248] sm:$0xff]  ;;  %v2316_v25 = vld [vmem:[#allocation3 + $0x258] sm:$0xff] }
 0x491   :  { %v2313_v26 = vld [vmem:[#allocation3 + $0x240] sm:$0xff]  ;;  %v2315_v27 = vld [vmem:[#allocation3 + $0x250] sm:$0xff]  ;;  %v2322_v31 = vld [vmem:[#allocation3 + $0x288] sm:$0xff] }
 0x492   :  { %3314 = vmatpush1.bf16.msra.mxu0 %v2265_v51  ;;  %3658 = vmatpush1.bf16.msra.mxu1 %v2267_v54  ;;  %v2324_v32 = vld [vmem:[#allocation3 + $0x298] sm:$0xff]  ;;  %v2321_v33 = vld [vmem:[#allocation3 + $0x280] sm:$0xff]  ;;  %v2323_v34 = vld [vmem:[#allocation3 + $0x290] sm:$0xff] }
 0x493   :  { %3315 = vmatprep.subr.bf16.mxu0 %v2274_v55  ;;  %3659 = vmatprep.subr.bf16.mxu1 %v2276_v58  ;;  %v2330_v2 = vld [vmem:[#allocation3 + $0x2c8] sm:$0xff]  ;;  %v2332_v5 = vld [vmem:[#allocation3 + $0x2d8] sm:$0xff]  ;;  %v2329_v39 = vld [vmem:[#allocation3 + $0x2c0] sm:$0xff] }
 0x494   :  { %v2331_v43 = vld [vmem:[#allocation3 + $0x2d0] sm:$0xff]  ;;  %v2338_v16 = vld [vmem:[#allocation3 + $0x308] sm:$0xff]  ;;  %v2340_v44 = vld [vmem:[#allocation3 + $0x318] sm:$0xff] }
 0x495   :  { %v2337_v45 = vld [vmem:[#allocation3 + $0x300] sm:$0xff]  ;;  %v2339_v46 = vld [vmem:[#allocation3 + $0x310] sm:$0xff]  ;;  %v2346_v60 = vld [vmem:[#allocation3 + $0x348] sm:$0xff] }
 0x496   :  { %3316 = vmatpush1.bf16.msra.mxu0 %v2273_v59  ;;  %3660 = vmatpush1.bf16.msra.mxu1 %v2275_v61  ;;  %v2348_v50 = vld [vmem:[#allocation3 + $0x358] sm:$0xff]  ;;  %v2345_v51 = vld [vmem:[#allocation3 + $0x340] sm:$0xff]  ;;  %v2347_v54 = vld [vmem:[#allocation3 + $0x350] sm:$0xff] }
 0x497   :  { %3317 = vmatprep.subr.bf16.mxu0 %v2282_v62  ;;  %3661 = vmatprep.subr.bf16.mxu1 %v2284_v63  ;;  %v2354_v55 = vld [vmem:[#allocation3 + $0x388] sm:$0xff]  ;;  %v2356_v58 = vld [vmem:[#allocation3 + $0x398] sm:$0xff]  ;;  %v2353_v59 = vld [vmem:[#allocation3 + $0x380] sm:$0xff] }
 0x498   :  { %v2355_v61 = vld [vmem:[#allocation3 + $0x390] sm:$0xff]  ;;  %v2362_v62 = vld [vmem:[#allocation3 + $0x3c8] sm:$0xff]  ;;  %v2364_v63 = vld [vmem:[#allocation3 + $0x3d8] sm:$0xff] }
 0x49a   :  { %3318 = vmatpush1.bf16.msra.mxu0 %v2281_v7  ;;  %3662 = vmatpush1.bf16.msra.mxu1 %v2283_v23  ;;  %v2361_v7 = vld [vmem:[#allocation3 + $0x3c0] sm:$0xff]  ;;  %v2363_v23 = vld [vmem:[#allocation3 + $0x3d0] sm:$0xff] }
 0x49b   :  { %3319 = vmatprep.subr.bf16.mxu0 %v2290_v13  ;;  %3663 = vmatprep.subr.bf16.mxu1 %v2292_v14  ;;  %v2370_v13 = vld [vmem:[#allocation3 + $0x408] sm:$0xff]  ;;  %v2372_v14 = vld [vmem:[#allocation3 + $0x418] sm:$0xff] }
 0x49e   :  { %3320 = vmatpush1.bf16.msra.mxu0 %v2289_v15  ;;  %3664 = vmatpush1.bf16.msra.mxu1 %v2291_v28  ;;  %v2369_v15 = vld [vmem:[#allocation3 + $0x400] sm:$0xff]  ;;  %v2371_v28 = vld [vmem:[#allocation3 + $0x410] sm:$0xff] }
 0x49f   :  { %3321 = vmatprep.subr.bf16.mxu0 %v2298_v18  ;;  %3665 = vmatprep.subr.bf16.mxu1 %v2300_v10  ;;  %v2378_v18 = vld [vmem:[#allocation3 + $0x448] sm:$0xff]  ;;  %v2380_v10 = vld [vmem:[#allocation3 + $0x458] sm:$0xff] }
 0x4a2   :  { %3322 = vmatpush1.bf16.msra.mxu0 %v2297_v19  ;;  %3666 = vmatpush1.bf16.msra.mxu1 %v2299_v20  ;;  %v2377_v19 = vld [vmem:[#allocation3 + $0x440] sm:$0xff]  ;;  %v2379_v20 = vld [vmem:[#allocation3 + $0x450] sm:$0xff] }
 0x4a3   :  { %3323 = vmatprep.subr.bf16.mxu0 %v2306_v0  ;;  %3667 = vmatprep.subr.bf16.mxu1 %v2308_v3  ;;  %v2386_v0 = vld [vmem:[#allocation3 + $0x488] sm:$0xff]  ;;  %v2388_v3 = vld [vmem:[#allocation3 + $0x498] sm:$0xff] }
 0x4a6   :  { %3324 = vmatpush1.bf16.msra.mxu0 %v2305_v22  ;;  %3668 = vmatpush1.bf16.msra.mxu1 %v2307_v17  ;;  %v2385_v22 = vld [vmem:[#allocation3 + $0x480] sm:$0xff]  ;;  %v2387_v17 = vld [vmem:[#allocation3 + $0x490] sm:$0xff] }
 0x4a7   :  { %3325 = vmatprep.subr.bf16.mxu0 %v2314_v24  ;;  %3669 = vmatprep.subr.bf16.mxu1 %v2316_v25  ;;  %v2394_v24 = vld [vmem:[#allocation3 + $0x4c8] sm:$0xff]  ;;  %v2396_v25 = vld [vmem:[#allocation3 + $0x4d8] sm:$0xff] }
 0x4aa   :  { %3326 = vmatpush1.bf16.msra.mxu0 %v2313_v26  ;;  %3670 = vmatpush1.bf16.msra.mxu1 %v2315_v27  ;;  %v2393_v26 = vld [vmem:[#allocation3 + $0x4c0] sm:$0xff]  ;;  %v2395_v27 = vld [vmem:[#allocation3 + $0x4d0] sm:$0xff] }
 0x4ab   :  { %3327 = vmatprep.subr.bf16.mxu0 %v2322_v31  ;;  %3671 = vmatprep.subr.bf16.mxu1 %v2324_v32  ;;  %v2402_v31 = vld [vmem:[#allocation3 + $0x508] sm:$0xff]  ;;  %v2404_v32 = vld [vmem:[#allocation3 + $0x518] sm:$0xff] }
 0x4ae   :  { %3328 = vmatpush1.bf16.msra.mxu0 %v2321_v33  ;;  %3672 = vmatpush1.bf16.msra.mxu1 %v2323_v34  ;;  %v2401_v33 = vld [vmem:[#allocation3 + $0x500] sm:$0xff]  ;;  %v2403_v34 = vld [vmem:[#allocation3 + $0x510] sm:$0xff] }
 0x4af   :  { %3329 = vmatprep.subr.bf16.mxu0 %v2330_v2  ;;  %3673 = vmatprep.subr.bf16.mxu1 %v2332_v5  ;;  %v2410_v2 = vld [vmem:[#allocation3 + $0x548] sm:$0xff]  ;;  %v2412_v5 = vld [vmem:[#allocation3 + $0x558] sm:$0xff] }
 0x4b2   :  { %3330 = vmatpush1.bf16.msra.mxu0 %v2329_v39  ;;  %3674 = vmatpush1.bf16.msra.mxu1 %v2331_v43  ;;  %v2409_v39 = vld [vmem:[#allocation3 + $0x540] sm:$0xff]  ;;  %v2411_v43 = vld [vmem:[#allocation3 + $0x550] sm:$0xff] }
 0x4b3   :  { %3331 = vmatprep.subr.bf16.mxu0 %v2338_v16  ;;  %3675 = vmatprep.subr.bf16.mxu1 %v2340_v44  ;;  %v2418_v16 = vld [vmem:[#allocation3 + $0x588] sm:$0xff]  ;;  %v2420_v44 = vld [vmem:[#allocation3 + $0x598] sm:$0xff] }
 0x4b6   :  { %3332 = vmatpush1.bf16.msra.mxu0 %v2337_v45  ;;  %3676 = vmatpush1.bf16.msra.mxu1 %v2339_v46  ;;  %v2417_v45 = vld [vmem:[#allocation3 + $0x580] sm:$0xff]  ;;  %v2419_v46 = vld [vmem:[#allocation3 + $0x590] sm:$0xff] }
 0x4b7   :  { %3333 = vmatprep.subr.bf16.mxu0 %v2346_v60  ;;  %3677 = vmatprep.subr.bf16.mxu1 %v2348_v50  ;;  %v2426_v60 = vld [vmem:[#allocation3 + $0x5c8] sm:$0xff]  ;;  %v2428_v50 = vld [vmem:[#allocation3 + $0x5d8] sm:$0xff] }
 0x4ba   :  { %3334 = vmatpush1.bf16.msra.mxu0 %v2345_v51  ;;  %3678 = vmatpush1.bf16.msra.mxu1 %v2347_v54  ;;  %v2425_v51 = vld [vmem:[#allocation3 + $0x5c0] sm:$0xff]  ;;  %v2427_v54 = vld [vmem:[#allocation3 + $0x5d0] sm:$0xff] }
 0x4bb   :  { %3335 = vmatprep.subr.bf16.mxu0 %v2354_v55  ;;  %3679 = vmatprep.subr.bf16.mxu1 %v2356_v58  ;;  %v2434_v55 = vld [vmem:[#allocation3 + $0x608] sm:$0xff]  ;;  %v2436_v58 = vld [vmem:[#allocation3 + $0x618] sm:$0xff] }
 0x4be   :  { %3336 = vmatpush1.bf16.msra.mxu0 %v2353_v59  ;;  %3680 = vmatpush1.bf16.msra.mxu1 %v2355_v61  ;;  %v2433_v59 = vld [vmem:[#allocation3 + $0x600] sm:$0xff]  ;;  %v2435_v61 = vld [vmem:[#allocation3 + $0x610] sm:$0xff] }
 0x4bf   :  { %3337 = vmatprep.subr.bf16.mxu0 %v2362_v62  ;;  %3681 = vmatprep.subr.bf16.mxu1 %v2364_v63  ;;  %v2442_v62 = vld [vmem:[#allocation3 + $0x648] sm:$0xff]  ;;  %v2444_v63 = vld [vmem:[#allocation3 + $0x658] sm:$0xff] }
 0x4c2   :  { %3338 = vmatpush1.bf16.msra.mxu0 %v2361_v7  ;;  %3682 = vmatpush1.bf16.msra.mxu1 %v2363_v23  ;;  %v2441_v7 = vld [vmem:[#allocation3 + $0x640] sm:$0xff]  ;;  %v2443_v23 = vld [vmem:[#allocation3 + $0x650] sm:$0xff] }
 0x4c3   :  { %3350 = vmatprep.subr.bf16.mxu0 %v2370_v13  ;;  %3694 = vmatprep.subr.bf16.mxu1 %v2372_v14  ;;  %v2450_v13 = vld [vmem:[#allocation3 + $0x688] sm:$0xff]  ;;  %v2452_v14 = vld [vmem:[#allocation3 + $0x698] sm:$0xff] }
 0x4c5   :  { %3340 = vmatmul.mubr.bf16.vlgmr.msra.gmra.mrb[16].mxu0 %v7726_v52  ;;  %3684 = vmatmul.mubr.bf16.vlgmr.msra.gmra.mrb[16].mxu1 %v7726_v52 }
 0x4c6   :  { %3351 = vmatpush1.bf16.msra.mxu0 %v2369_v15  ;;  %3695 = vmatpush1.bf16.msra.mxu1 %v2371_v28  ;;  %v2449_v15 = vld [vmem:[#allocation3 + $0x680] sm:$0xff]  ;;  %v2451_v28 = vld [vmem:[#allocation3 + $0x690] sm:$0xff] }
 0x4c7   :  { %3352 = vmatprep.subr.bf16.mxu0 %v2378_v18  ;;  %3696 = vmatprep.subr.bf16.mxu1 %v2380_v10  ;;  %v2458_v18 = vld [vmem:[#allocation3 + $0x6c8] sm:$0xff]  ;;  %v2460_v10 = vld [vmem:[#allocation3 + $0x6d8] sm:$0xff] }
 0x4c8   :  { %3382 = vmatprep.mubr.bf16.mxu0 %v7732_v57  ;;  %3726 = vmatprep.mubr.bf16.mxu1 %v7732_v57 }
 0x4ca   :  { %3353 = vmatpush1.bf16.msra.mxu0 %v2377_v19  ;;  %3697 = vmatpush1.bf16.msra.mxu1 %v2379_v20  ;;  %v2457_v19 = vld [vmem:[#allocation3 + $0x6c0] sm:$0xff]  ;;  %v2459_v20 = vld [vmem:[#allocation3 + $0x6d0] sm:$0xff] }
 0x4cb   :  { %3354 = vmatprep.subr.bf16.mxu0 %v2386_v0  ;;  %3698 = vmatprep.subr.bf16.mxu1 %v2388_v3  ;;  %v2466_v0 = vld [vmem:[#allocation3 + $0x708] sm:$0xff]  ;;  %v2468_v3 = vld [vmem:[#allocation3 + $0x718] sm:$0xff] }
 0x4ce   :  { %3355 = vmatpush1.bf16.msra.mxu0 %v2385_v22  ;;  %3699 = vmatpush1.bf16.msra.mxu1 %v2387_v17  ;;  %v2465_v22 = vld [vmem:[#allocation3 + $0x700] sm:$0xff]  ;;  %v2467_v17 = vld [vmem:[#allocation3 + $0x710] sm:$0xff] }
 0x4cf   :  { %3356 = vmatprep.subr.bf16.mxu0 %v2394_v24  ;;  %3700 = vmatprep.subr.bf16.mxu1 %v2396_v25  ;;  %v2474_v24 = vld [vmem:[#allocation3 + $0x748] sm:$0xff]  ;;  %v2476_v25 = vld [vmem:[#allocation3 + $0x758] sm:$0xff] }
 0x4d2   :  { %3357 = vmatpush1.bf16.msra.mxu0 %v2393_v26  ;;  %3701 = vmatpush1.bf16.msra.mxu1 %v2395_v27  ;;  %v2473_v26 = vld [vmem:[#allocation3 + $0x740] sm:$0xff]  ;;  %v2475_v27 = vld [vmem:[#allocation3 + $0x750] sm:$0xff] }
 0x4d3   :  { %3358 = vmatprep.subr.bf16.mxu0 %v2402_v31  ;;  %3702 = vmatprep.subr.bf16.mxu1 %v2404_v32  ;;  %v2482_v31 = vld [vmem:[#allocation3 + $0x788] sm:$0xff]  ;;  %v2484_v32 = vld [vmem:[#allocation3 + $0x798] sm:$0xff] }
 0x4d6   :  { %3359 = vmatpush1.bf16.msra.mxu0 %v2401_v33  ;;  %3703 = vmatpush1.bf16.msra.mxu1 %v2403_v34  ;;  %v2481_v33 = vld [vmem:[#allocation3 + $0x780] sm:$0xff]  ;;  %v2483_v34 = vld [vmem:[#allocation3 + $0x790] sm:$0xff] }
 0x4d7   :  { %3360 = vmatprep.subr.bf16.mxu0 %v2410_v2  ;;  %3704 = vmatprep.subr.bf16.mxu1 %v2412_v5  ;;  %v2490_v2 = vld [vmem:[#allocation3 + $0x7c8] sm:$0xff]  ;;  %v2492_v5 = vld [vmem:[#allocation3 + $0x7d8] sm:$0xff] }
 0x4da   :  { %3361 = vmatpush1.bf16.msra.mxu0 %v2409_v39  ;;  %3705 = vmatpush1.bf16.msra.mxu1 %v2411_v43  ;;  %v2489_v39 = vld [vmem:[#allocation3 + $0x7c0] sm:$0xff]  ;;  %v2491_v43 = vld [vmem:[#allocation3 + $0x7d0] sm:$0xff] }
 0x4db   :  { %3362 = vmatprep.subr.bf16.mxu0 %v2418_v16  ;;  %3706 = vmatprep.subr.bf16.mxu1 %v2420_v44  ;;  %v2498_v16 = vld [vmem:[#allocation3 + $0x808] sm:$0xff]  ;;  %v2500_v44 = vld [vmem:[#allocation3 + $0x818] sm:$0xff] }
 0x4de   :  { %3363 = vmatpush1.bf16.msra.mxu0 %v2417_v45  ;;  %3707 = vmatpush1.bf16.msra.mxu1 %v2419_v46  ;;  %v2497_v45 = vld [vmem:[#allocation3 + $0x800] sm:$0xff]  ;;  %v2499_v46 = vld [vmem:[#allocation3 + $0x810] sm:$0xff] }
 0x4df   :  { %3364 = vmatprep.subr.bf16.mxu0 %v2426_v60  ;;  %3708 = vmatprep.subr.bf16.mxu1 %v2428_v50  ;;  %v2506_v60 = vld [vmem:[#allocation3 + $0x848] sm:$0xff]  ;;  %v2508_v50 = vld [vmem:[#allocation3 + $0x858] sm:$0xff] }
 0x4e2   :  { %3365 = vmatpush1.bf16.msra.mxu0 %v2425_v51  ;;  %3709 = vmatpush1.bf16.msra.mxu1 %v2427_v54  ;;  %v2505_v51 = vld [vmem:[#allocation3 + $0x840] sm:$0xff]  ;;  %v2507_v54 = vld [vmem:[#allocation3 + $0x850] sm:$0xff] }
 0x4e3   :  { %3366 = vmatprep.subr.bf16.mxu0 %v2434_v55  ;;  %3710 = vmatprep.subr.bf16.mxu1 %v2436_v58  ;;  %v2514_v55 = vld [vmem:[#allocation3 + $0x888] sm:$0xff]  ;;  %v2516_v58 = vld [vmem:[#allocation3 + $0x898] sm:$0xff] }
 0x4e6   :  { %3367 = vmatpush1.bf16.msra.mxu0 %v2433_v59  ;;  %3711 = vmatpush1.bf16.msra.mxu1 %v2435_v61  ;;  %v2513_v59 = vld [vmem:[#allocation3 + $0x880] sm:$0xff]  ;;  %v2515_v61 = vld [vmem:[#allocation3 + $0x890] sm:$0xff] }
 0x4e7   :  { %3368 = vmatprep.subr.bf16.mxu0 %v2442_v62  ;;  %3712 = vmatprep.subr.bf16.mxu1 %v2444_v63  ;;  %v2522_v62 = vld [vmem:[#allocation3 + $0x8c8] sm:$0xff]  ;;  %v2524_v63 = vld [vmem:[#allocation3 + $0x8d8] sm:$0xff] }
 0x4ea   :  { %3369 = vmatpush1.bf16.msra.mxu0 %v2441_v7  ;;  %3713 = vmatpush1.bf16.msra.mxu1 %v2443_v23  ;;  %v2521_v7 = vld [vmem:[#allocation3 + $0x8c0] sm:$0xff]  ;;  %v2523_v23 = vld [vmem:[#allocation3 + $0x8d0] sm:$0xff] }
 0x4eb   :  { %3370 = vmatprep.subr.bf16.mxu0 %v2450_v13  ;;  %3714 = vmatprep.subr.bf16.mxu1 %v2452_v14  ;;  %v2530_v13 = vld [vmem:[#allocation3 + $0x908] sm:$0xff]  ;;  %v2532_v14 = vld [vmem:[#allocation3 + $0x918] sm:$0xff] }
 0x4ee   :  { %3371 = vmatpush1.bf16.msra.mxu0 %v2449_v15  ;;  %3715 = vmatpush1.bf16.msra.mxu1 %v2451_v28  ;;  %v2529_v15 = vld [vmem:[#allocation3 + $0x900] sm:$0xff]  ;;  %v2531_v28 = vld [vmem:[#allocation3 + $0x910] sm:$0xff] }
 0x4ef   :  { %3372 = vmatprep.subr.bf16.mxu0 %v2458_v18  ;;  %3716 = vmatprep.subr.bf16.mxu1 %v2460_v10  ;;  %v2538_v18 = vld [vmem:[#allocation3 + $0x948] sm:$0xff]  ;;  %v2540_v10 = vld [vmem:[#allocation3 + $0x958] sm:$0xff] }
 0x4f2   :  { %3373 = vmatpush1.bf16.msra.mxu0 %v2457_v19  ;;  %3717 = vmatpush1.bf16.msra.mxu1 %v2459_v20  ;;  %v2537_v19 = vld [vmem:[#allocation3 + $0x940] sm:$0xff]  ;;  %v2539_v20 = vld [vmem:[#allocation3 + $0x950] sm:$0xff] }
 0x4f3   :  { %3374 = vmatprep.subr.bf16.mxu0 %v2466_v0  ;;  %3718 = vmatprep.subr.bf16.mxu1 %v2468_v3  ;;  %v2546_v0 = vld [vmem:[#allocation3 + $0x988] sm:$0xff]  ;;  %v2548_v3 = vld [vmem:[#allocation3 + $0x998] sm:$0xff] }
 0x4f6   :  { %3375 = vmatpush1.bf16.msra.mxu0 %v2465_v22  ;;  %3719 = vmatpush1.bf16.msra.mxu1 %v2467_v17  ;;  %v2545_v22 = vld [vmem:[#allocation3 + $0x980] sm:$0xff]  ;;  %v2547_v17 = vld [vmem:[#allocation3 + $0x990] sm:$0xff] }
 0x4f7   :  { %3376 = vmatprep.subr.bf16.mxu0 %v2474_v24  ;;  %3720 = vmatprep.subr.bf16.mxu1 %v2476_v25  ;;  %v2554_v24 = vld [vmem:[#allocation3 + $0x9c8] sm:$0xff]  ;;  %v2556_v25 = vld [vmem:[#allocation3 + $0x9d8] sm:$0xff] }
 0x4fa   :  { %3377 = vmatpush1.bf16.msra.mxu0 %v2473_v26  ;;  %3721 = vmatpush1.bf16.msra.mxu1 %v2475_v27  ;;  %v2553_v26 = vld [vmem:[#allocation3 + $0x9c0] sm:$0xff]  ;;  %v2555_v27 = vld [vmem:[#allocation3 + $0x9d0] sm:$0xff] }
 0x4fb   :  { %3378 = vmatprep.subr.bf16.mxu0 %v2482_v31  ;;  %3722 = vmatprep.subr.bf16.mxu1 %v2484_v32  ;;  %v2562_v31 = vld [vmem:[#allocation3 + $0xa08] sm:$0xff]  ;;  %v2564_v32 = vld [vmem:[#allocation3 + $0xa18] sm:$0xff] }
 0x4fe   :  { %3379 = vmatpush1.bf16.msra.mxu0 %v2481_v33  ;;  %3723 = vmatpush1.bf16.msra.mxu1 %v2483_v34  ;;  %v2561_v33 = vld [vmem:[#allocation3 + $0xa00] sm:$0xff]  ;;  %v2563_v34 = vld [vmem:[#allocation3 + $0xa10] sm:$0xff] }
 0x4ff   :  { %3380 = vmatprep.subr.bf16.mxu0 %v2490_v2  ;;  %3724 = vmatprep.subr.bf16.mxu1 %v2492_v5  ;;  %v2570_v2 = vld [vmem:[#allocation3 + $0xa48] sm:$0xff]  ;;  %v2572_v5 = vld [vmem:[#allocation3 + $0xa58] sm:$0xff] }
 0x502   :  { %3381 = vmatpush1.bf16.msra.mxu0 %v2489_v39  ;;  %3725 = vmatpush1.bf16.msra.mxu1 %v2491_v43  ;;  %v2569_v39 = vld [vmem:[#allocation3 + $0xa40] sm:$0xff]  ;;  %v2571_v43 = vld [vmem:[#allocation3 + $0xa50] sm:$0xff] }
 0x503   :  { %3393 = vmatprep.subr.bf16.mxu0 %v2498_v16  ;;  %3737 = vmatprep.subr.bf16.mxu1 %v2500_v44  ;;  %v2578_v16 = vld [vmem:[#allocation3 + $0xa88] sm:$0xff]  ;;  %v2580_v44 = vld [vmem:[#allocation3 + $0xa98] sm:$0xff] }
 0x505   :  { %3383 = vmatmul.mubr.bf16.vlgmr.msra.gmra.mrb[16].mxu0 %v7728_v53  ;;  %3727 = vmatmul.mubr.bf16.vlgmr.msra.gmra.mrb[16].mxu1 %v7728_v53 }
 0x506   :  { %3394 = vmatpush1.bf16.msra.mxu0 %v2497_v45  ;;  %3738 = vmatpush1.bf16.msra.mxu1 %v2499_v46  ;;  %v2577_v45 = vld [vmem:[#allocation3 + $0xa80] sm:$0xff]  ;;  %v2579_v46 = vld [vmem:[#allocation3 + $0xa90] sm:$0xff] }
 0x507   :  { %3395 = vmatprep.subr.bf16.mxu0 %v2506_v60  ;;  %3739 = vmatprep.subr.bf16.mxu1 %v2508_v50  ;;  %v2586_v60 = vld [vmem:[#allocation3 + $0xac8] sm:$0xff]  ;;  %v2588_v50 = vld [vmem:[#allocation3 + $0xad8] sm:$0xff] }
 0x508   :  { %3425 = vmatprep.mubr.bf16.mxu0 %v7770_v37  ;;  %3769 = vmatprep.mubr.bf16.mxu1 %v7770_v37 }
 0x50a   :  { %3396 = vmatpush1.bf16.msra.mxu0 %v2505_v51  ;;  %3740 = vmatpush1.bf16.msra.mxu1 %v2507_v54  ;;  %v2585_v51 = vld [vmem:[#allocation3 + $0xac0] sm:$0xff]  ;;  %v2587_v54 = vld [vmem:[#allocation3 + $0xad0] sm:$0xff] }
 0x50b   :  { %3397 = vmatprep.subr.bf16.mxu0 %v2514_v55  ;;  %3741 = vmatprep.subr.bf16.mxu1 %v2516_v58  ;;  %v2594_v55 = vld [vmem:[#allocation3 + $0xb08] sm:$0xff]  ;;  %v2596_v58 = vld [vmem:[#allocation3 + $0xb18] sm:$0xff] }
 0x50e   :  { %3398 = vmatpush1.bf16.msra.mxu0 %v2513_v59  ;;  %3742 = vmatpush1.bf16.msra.mxu1 %v2515_v61  ;;  %v2593_v59 = vld [vmem:[#allocation3 + $0xb00] sm:$0xff]  ;;  %v2595_v61 = vld [vmem:[#allocation3 + $0xb10] sm:$0xff] }
 0x50f   :  { %3399 = vmatprep.subr.bf16.mxu0 %v2522_v62  ;;  %3743 = vmatprep.subr.bf16.mxu1 %v2524_v63  ;;  %v2602_v62 = vld [vmem:[#allocation3 + $0xb48] sm:$0xff]  ;;  %v2604_v63 = vld [vmem:[#allocation3 + $0xb58] sm:$0xff] }
 0x512   :  { %3400 = vmatpush1.bf16.msra.mxu0 %v2521_v7  ;;  %3744 = vmatpush1.bf16.msra.mxu1 %v2523_v23  ;;  %v2601_v7 = vld [vmem:[#allocation3 + $0xb40] sm:$0xff]  ;;  %v2603_v23 = vld [vmem:[#allocation3 + $0xb50] sm:$0xff] }
 0x513   :  { %3401 = vmatprep.subr.bf16.mxu0 %v2530_v13  ;;  %3745 = vmatprep.subr.bf16.mxu1 %v2532_v14  ;;  %v2610_v13 = vld [vmem:[#allocation3 + $0xb88] sm:$0xff]  ;;  %v2612_v14 = vld [vmem:[#allocation3 + $0xb98] sm:$0xff] }
 0x516   :  { %3402 = vmatpush1.bf16.msra.mxu0 %v2529_v15  ;;  %3746 = vmatpush1.bf16.msra.mxu1 %v2531_v28  ;;  %v2609_v15 = vld [vmem:[#allocation3 + $0xb80] sm:$0xff]  ;;  %v2611_v28 = vld [vmem:[#allocation3 + $0xb90] sm:$0xff] }
 0x517   :  { %3403 = vmatprep.subr.bf16.mxu0 %v2538_v18  ;;  %3747 = vmatprep.subr.bf16.mxu1 %v2540_v10  ;;  %v2618_v18 = vld [vmem:[#allocation3 + $0xbc8] sm:$0xff]  ;;  %v2620_v10 = vld [vmem:[#allocation3 + $0xbd8] sm:$0xff] }
 0x51a   :  { %3404 = vmatpush1.bf16.msra.mxu0 %v2537_v19  ;;  %3748 = vmatpush1.bf16.msra.mxu1 %v2539_v20  ;;  %v2617_v19 = vld [vmem:[#allocation3 + $0xbc0] sm:$0xff]  ;;  %v2619_v20 = vld [vmem:[#allocation3 + $0xbd0] sm:$0xff] }
 0x51b   :  { %3405 = vmatprep.subr.bf16.mxu0 %v2546_v0  ;;  %3749 = vmatprep.subr.bf16.mxu1 %v2548_v3  ;;  %v2626_v0 = vld [vmem:[#allocation3 + $0xc08] sm:$0xff]  ;;  %v2628_v3 = vld [vmem:[#allocation3 + $0xc18] sm:$0xff] }
 0x51e   :  { %3406 = vmatpush1.bf16.msra.mxu0 %v2545_v22  ;;  %3750 = vmatpush1.bf16.msra.mxu1 %v2547_v17  ;;  %v2625_v22 = vld [vmem:[#allocation3 + $0xc00] sm:$0xff]  ;;  %v2627_v17 = vld [vmem:[#allocation3 + $0xc10] sm:$0xff] }
 0x51f   :  { %3407 = vmatprep.subr.bf16.mxu0 %v2554_v24  ;;  %3751 = vmatprep.subr.bf16.mxu1 %v2556_v25  ;;  %v2634_v24 = vld [vmem:[#allocation3 + $0xc48] sm:$0xff]  ;;  %v2636_v25 = vld [vmem:[#allocation3 + $0xc58] sm:$0xff] }
 0x522   :  { %3408 = vmatpush1.bf16.msra.mxu0 %v2553_v26  ;;  %3752 = vmatpush1.bf16.msra.mxu1 %v2555_v27  ;;  %v2633_v26 = vld [vmem:[#allocation3 + $0xc40] sm:$0xff]  ;;  %v2635_v27 = vld [vmem:[#allocation3 + $0xc50] sm:$0xff] }
 0x523   :  { %3409 = vmatprep.subr.bf16.mxu0 %v2562_v31  ;;  %3753 = vmatprep.subr.bf16.mxu1 %v2564_v32  ;;  %v2642_v31 = vld [vmem:[#allocation3 + $0xc88] sm:$0xff]  ;;  %v2644_v32 = vld [vmem:[#allocation3 + $0xc98] sm:$0xff] }
 0x526   :  { %3410 = vmatpush1.bf16.msra.mxu0 %v2561_v33  ;;  %3754 = vmatpush1.bf16.msra.mxu1 %v2563_v34  ;;  %v2641_v33 = vld [vmem:[#allocation3 + $0xc80] sm:$0xff]  ;;  %v2643_v34 = vld [vmem:[#allocation3 + $0xc90] sm:$0xff] }
 0x527   :  { %3411 = vmatprep.subr.bf16.mxu0 %v2570_v2  ;;  %3755 = vmatprep.subr.bf16.mxu1 %v2572_v5  ;;  %v2650_v2 = vld [vmem:[#allocation3 + $0xcc8] sm:$0xff]  ;;  %v2652_v5 = vld [vmem:[#allocation3 + $0xcd8] sm:$0xff] }
 0x52a   :  { %3412 = vmatpush1.bf16.msra.mxu0 %v2569_v39  ;;  %3756 = vmatpush1.bf16.msra.mxu1 %v2571_v43  ;;  %v2649_v39 = vld [vmem:[#allocation3 + $0xcc0] sm:$0xff]  ;;  %v2651_v43 = vld [vmem:[#allocation3 + $0xcd0] sm:$0xff] }
 0x52b   :  { %3413 = vmatprep.subr.bf16.mxu0 %v2578_v16  ;;  %3757 = vmatprep.subr.bf16.mxu1 %v2580_v44  ;;  %v2658_v16 = vld [vmem:[#allocation3 + $0xd08] sm:$0xff]  ;;  %v2660_v44 = vld [vmem:[#allocation3 + $0xd18] sm:$0xff] }
 0x52e   :  { %3414 = vmatpush1.bf16.msra.mxu0 %v2577_v45  ;;  %3758 = vmatpush1.bf16.msra.mxu1 %v2579_v46  ;;  %v2657_v45 = vld [vmem:[#allocation3 + $0xd00] sm:$0xff]  ;;  %v2659_v46 = vld [vmem:[#allocation3 + $0xd10] sm:$0xff] }
 0x52f   :  { %3415 = vmatprep.subr.bf16.mxu0 %v2586_v60  ;;  %3759 = vmatprep.subr.bf16.mxu1 %v2588_v50  ;;  %v2666_v60 = vld [vmem:[#allocation3 + $0xd48] sm:$0xff]  ;;  %v2668_v50 = vld [vmem:[#allocation3 + $0xd58] sm:$0xff] }
 0x532   :  { %3416 = vmatpush1.bf16.msra.mxu0 %v2585_v51  ;;  %3760 = vmatpush1.bf16.msra.mxu1 %v2587_v54  ;;  %v2665_v51 = vld [vmem:[#allocation3 + $0xd40] sm:$0xff]  ;;  %v2667_v54 = vld [vmem:[#allocation3 + $0xd50] sm:$0xff] }
 0x533   :  { %3417 = vmatprep.subr.bf16.mxu0 %v2594_v55  ;;  %3761 = vmatprep.subr.bf16.mxu1 %v2596_v58  ;;  %v2674_v55 = vld [vmem:[#allocation3 + $0xd88] sm:$0xff]  ;;  %v2676_v58 = vld [vmem:[#allocation3 + $0xd98] sm:$0xff] }
 0x536   :  { %3418 = vmatpush1.bf16.msra.mxu0 %v2593_v59  ;;  %3762 = vmatpush1.bf16.msra.mxu1 %v2595_v61  ;;  %v2673_v59 = vld [vmem:[#allocation3 + $0xd80] sm:$0xff]  ;;  %v2675_v61 = vld [vmem:[#allocation3 + $0xd90] sm:$0xff] }
 0x537   :  { %3419 = vmatprep.subr.bf16.mxu0 %v2602_v62  ;;  %3763 = vmatprep.subr.bf16.mxu1 %v2604_v63  ;;  %v2682_v62 = vld [vmem:[#allocation3 + $0xdc8] sm:$0xff]  ;;  %v2684_v63 = vld [vmem:[#allocation3 + $0xdd8] sm:$0xff] }
 0x53a   :  { %3420 = vmatpush1.bf16.msra.mxu0 %v2601_v7  ;;  %3764 = vmatpush1.bf16.msra.mxu1 %v2603_v23  ;;  %v2681_v7 = vld [vmem:[#allocation3 + $0xdc0] sm:$0xff]  ;;  %v2683_v23 = vld [vmem:[#allocation3 + $0xdd0] sm:$0xff] }
 0x53b   :  { %3421 = vmatprep.subr.bf16.mxu0 %v2610_v13  ;;  %3765 = vmatprep.subr.bf16.mxu1 %v2612_v14  ;;  %v2690_v13 = vld [vmem:[#allocation3 + $0xe08] sm:$0xff]  ;;  %v2692_v14 = vld [vmem:[#allocation3 + $0xe18] sm:$0xff] }
 0x53e   :  { %3422 = vmatpush1.bf16.msra.mxu0 %v2609_v15  ;;  %3766 = vmatpush1.bf16.msra.mxu1 %v2611_v28  ;;  %v2689_v15 = vld [vmem:[#allocation3 + $0xe00] sm:$0xff]  ;;  %v2691_v28 = vld [vmem:[#allocation3 + $0xe10] sm:$0xff] }
 0x53f   :  { %3423 = vmatprep.subr.bf16.mxu0 %v2618_v18  ;;  %3767 = vmatprep.subr.bf16.mxu1 %v2620_v10  ;;  %v2698_v18 = vld [vmem:[#allocation3 + $0xe48] sm:$0xff]  ;;  %v2700_v10 = vld [vmem:[#allocation3 + $0xe58] sm:$0xff] }
 0x542   :  { %3424 = vmatpush1.bf16.msra.mxu0 %v2617_v19  ;;  %3768 = vmatpush1.bf16.msra.mxu1 %v2619_v20  ;;  %v2697_v19 = vld [vmem:[#allocation3 + $0xe40] sm:$0xff]  ;;  %v2699_v20 = vld [vmem:[#allocation3 + $0xe50] sm:$0xff] }
 0x543   :  { %3436 = vmatprep.subr.bf16.mxu0 %v2626_v0  ;;  %3780 = vmatprep.subr.bf16.mxu1 %v2628_v3  ;;  %v2706_v0 = vld [vmem:[#allocation3 + $0xe88] sm:$0xff]  ;;  %v2708_v3 = vld [vmem:[#allocation3 + $0xe98] sm:$0xff] }
 0x545   :  { %3426 = vmatmul.mubr.bf16.vlgmr.msra.gmra.mrb[16].mxu0 %v7766_v35  ;;  %3770 = vmatmul.mubr.bf16.vlgmr.msra.gmra.mrb[16].mxu1 %v7766_v35 }
 0x546   :  { %3437 = vmatpush1.bf16.msra.mxu0 %v2625_v22  ;;  %3781 = vmatpush1.bf16.msra.mxu1 %v2627_v17  ;;  %v2705_v22 = vld [vmem:[#allocation3 + $0xe80] sm:$0xff]  ;;  %v2707_v17 = vld [vmem:[#allocation3 + $0xe90] sm:$0xff] }
 0x547   :  { %3438 = vmatprep.subr.bf16.mxu0 %v2634_v24  ;;  %3782 = vmatprep.subr.bf16.mxu1 %v2636_v25  ;;  %v2714_v24 = vld [vmem:[#allocation3 + $0xec8] sm:$0xff]  ;;  %v2716_v25 = vld [vmem:[#allocation3 + $0xed8] sm:$0xff] }
 0x548   :  { %3468 = vmatprep.mubr.bf16.mxu0 %v7772_v38  ;;  %3812 = vmatprep.mubr.bf16.mxu1 %v7772_v38 }
 0x54a   :  { %3439 = vmatpush1.bf16.msra.mxu0 %v2633_v26  ;;  %3783 = vmatpush1.bf16.msra.mxu1 %v2635_v27  ;;  %v2713_v26 = vld [vmem:[#allocation3 + $0xec0] sm:$0xff]  ;;  %v2715_v27 = vld [vmem:[#allocation3 + $0xed0] sm:$0xff] }
 0x54b   :  { %3440 = vmatprep.subr.bf16.mxu0 %v2642_v31  ;;  %3784 = vmatprep.subr.bf16.mxu1 %v2644_v32  ;;  %v2722_v31 = vld [vmem:[#allocation3 + $0xf08] sm:$0xff]  ;;  %v2724_v32 = vld [vmem:[#allocation3 + $0xf18] sm:$0xff] }
 0x54e   :  { %3441 = vmatpush1.bf16.msra.mxu0 %v2641_v33  ;;  %3785 = vmatpush1.bf16.msra.mxu1 %v2643_v34  ;;  %v2721_v33 = vld [vmem:[#allocation3 + $0xf00] sm:$0xff]  ;;  %v2723_v34 = vld [vmem:[#allocation3 + $0xf10] sm:$0xff] }
 0x54f   :  { %3442 = vmatprep.subr.bf16.mxu0 %v2650_v2  ;;  %3786 = vmatprep.subr.bf16.mxu1 %v2652_v5  ;;  %v2730_v2 = vld [vmem:[#allocation3 + $0xf48] sm:$0xff]  ;;  %v2732_v5 = vld [vmem:[#allocation3 + $0xf58] sm:$0xff] }
 0x552   :  { %3443 = vmatpush1.bf16.msra.mxu0 %v2649_v39  ;;  %3787 = vmatpush1.bf16.msra.mxu1 %v2651_v43  ;;  %v2729_v39 = vld [vmem:[#allocation3 + $0xf40] sm:$0xff]  ;;  %v2731_v43 = vld [vmem:[#allocation3 + $0xf50] sm:$0xff] }
 0x553   :  { %3444 = vmatprep.subr.bf16.mxu0 %v2658_v16  ;;  %3788 = vmatprep.subr.bf16.mxu1 %v2660_v44  ;;  %v2738_v16 = vld [vmem:[#allocation3 + $0xf88] sm:$0xff]  ;;  %v2740_v44 = vld [vmem:[#allocation3 + $0xf98] sm:$0xff] }
 0x556   :  { %3445 = vmatpush1.bf16.msra.mxu0 %v2657_v45  ;;  %3789 = vmatpush1.bf16.msra.mxu1 %v2659_v46  ;;  %v2737_v45 = vld [vmem:[#allocation3 + $0xf80] sm:$0xff]  ;;  %v2739_v46 = vld [vmem:[#allocation3 + $0xf90] sm:$0xff] }
 0x557   :  { %3446 = vmatprep.subr.bf16.mxu0 %v2666_v60  ;;  %3790 = vmatprep.subr.bf16.mxu1 %v2668_v50  ;;  %v2746_v60 = vld [vmem:[#allocation3 + $0xfc8] sm:$0xff]  ;;  %v2748_v50 = vld [vmem:[#allocation3 + $0xfd8] sm:$0xff] }
 0x55a   :  { %3447 = vmatpush1.bf16.msra.mxu0 %v2665_v51  ;;  %3791 = vmatpush1.bf16.msra.mxu1 %v2667_v54  ;;  %v2745_v51 = vld [vmem:[#allocation3 + $0xfc0] sm:$0xff]  ;;  %v2747_v54 = vld [vmem:[#allocation3 + $0xfd0] sm:$0xff] }
 0x55b   :  { %3448 = vmatprep.subr.bf16.mxu0 %v2674_v55  ;;  %3792 = vmatprep.subr.bf16.mxu1 %v2676_v58  ;;  %v2754_v55 = vld [vmem:[#allocation3 + $0x1008] sm:$0xff]  ;;  %v2756_v58 = vld [vmem:[#allocation3 + $0x1018] sm:$0xff] }
 0x55e   :  { %3449 = vmatpush1.bf16.msra.mxu0 %v2673_v59  ;;  %3793 = vmatpush1.bf16.msra.mxu1 %v2675_v61  ;;  %v2753_v59 = vld [vmem:[#allocation3 + $0x1000] sm:$0xff]  ;;  %v2755_v61 = vld [vmem:[#allocation3 + $0x1010] sm:$0xff] }
 0x55f   :  { %3450 = vmatprep.subr.bf16.mxu0 %v2682_v62  ;;  %3794 = vmatprep.subr.bf16.mxu1 %v2684_v63  ;;  %v2762_v62 = vld [vmem:[#allocation3 + $0x1048] sm:$0xff]  ;;  %v2764_v63 = vld [vmem:[#allocation3 + $0x1058] sm:$0xff] }
 0x562   :  { %3451 = vmatpush1.bf16.msra.mxu0 %v2681_v7  ;;  %3795 = vmatpush1.bf16.msra.mxu1 %v2683_v23  ;;  %v2761_v7 = vld [vmem:[#allocation3 + $0x1040] sm:$0xff]  ;;  %v2763_v23 = vld [vmem:[#allocation3 + $0x1050] sm:$0xff] }
 0x563   :  { %3452 = vmatprep.subr.bf16.mxu0 %v2690_v13  ;;  %3796 = vmatprep.subr.bf16.mxu1 %v2692_v14  ;;  %v2770_v13 = vld [vmem:[#allocation3 + $0x1088] sm:$0xff]  ;;  %v2772_v14 = vld [vmem:[#allocation3 + $0x1098] sm:$0xff] }
 0x566   :  { %3453 = vmatpush1.bf16.msra.mxu0 %v2689_v15  ;;  %3797 = vmatpush1.bf16.msra.mxu1 %v2691_v28  ;;  %v2769_v15 = vld [vmem:[#allocation3 + $0x1080] sm:$0xff]  ;;  %v2771_v28 = vld [vmem:[#allocation3 + $0x1090] sm:$0xff] }
 0x567   :  { %3454 = vmatprep.subr.bf16.mxu0 %v2698_v18  ;;  %3798 = vmatprep.subr.bf16.mxu1 %v2700_v10  ;;  %v2778_v18 = vld [vmem:[#allocation3 + $0x10c8] sm:$0xff]  ;;  %v2780_v10 = vld [vmem:[#allocation3 + $0x10d8] sm:$0xff] }
 0x56a   :  { %3455 = vmatpush1.bf16.msra.mxu0 %v2697_v19  ;;  %3799 = vmatpush1.bf16.msra.mxu1 %v2699_v20  ;;  %v2777_v19 = vld [vmem:[#allocation3 + $0x10c0] sm:$0xff]  ;;  %v2779_v20 = vld [vmem:[#allocation3 + $0x10d0] sm:$0xff] }
 0x56b   :  { %3456 = vmatprep.subr.bf16.mxu0 %v2706_v0  ;;  %3800 = vmatprep.subr.bf16.mxu1 %v2708_v3  ;;  %v2786_v0 = vld [vmem:[#allocation3 + $0x1108] sm:$0xff]  ;;  %v2788_v3 = vld [vmem:[#allocation3 + $0x1118] sm:$0xff] }
 0x56e   :  { %3457 = vmatpush1.bf16.msra.mxu0 %v2705_v22  ;;  %3801 = vmatpush1.bf16.msra.mxu1 %v2707_v17  ;;  %v2785_v22 = vld [vmem:[#allocation3 + $0x1100] sm:$0xff]  ;;  %v2787_v17 = vld [vmem:[#allocation3 + $0x1110] sm:$0xff] }
 0x56f   :  { %3458 = vmatprep.subr.bf16.mxu0 %v2714_v24  ;;  %3802 = vmatprep.subr.bf16.mxu1 %v2716_v25  ;;  %v2794_v24 = vld [vmem:[#allocation3 + $0x1148] sm:$0xff]  ;;  %v2796_v25 = vld [vmem:[#allocation3 + $0x1158] sm:$0xff] }
 0x572   :  { %3459 = vmatpush1.bf16.msra.mxu0 %v2713_v26  ;;  %3803 = vmatpush1.bf16.msra.mxu1 %v2715_v27  ;;  %v2793_v26 = vld [vmem:[#allocation3 + $0x1140] sm:$0xff]  ;;  %v2795_v27 = vld [vmem:[#allocation3 + $0x1150] sm:$0xff] }
 0x573   :  { %3460 = vmatprep.subr.bf16.mxu0 %v2722_v31  ;;  %3804 = vmatprep.subr.bf16.mxu1 %v2724_v32  ;;  %v2802_v31 = vld [vmem:[#allocation3 + $0x1188] sm:$0xff]  ;;  %v2804_v32 = vld [vmem:[#allocation3 + $0x1198] sm:$0xff] }
 0x576   :  { %3461 = vmatpush1.bf16.msra.mxu0 %v2721_v33  ;;  %3805 = vmatpush1.bf16.msra.mxu1 %v2723_v34  ;;  %v2801_v33 = vld [vmem:[#allocation3 + $0x1180] sm:$0xff]  ;;  %v2803_v34 = vld [vmem:[#allocation3 + $0x1190] sm:$0xff] }
 0x577   :  { %3462 = vmatprep.subr.bf16.mxu0 %v2730_v2  ;;  %3806 = vmatprep.subr.bf16.mxu1 %v2732_v5  ;;  %v2810_v2 = vld [vmem:[#allocation3 + $0x11c8] sm:$0xff]  ;;  %v2812_v5 = vld [vmem:[#allocation3 + $0x11d8] sm:$0xff] }
 0x57a   :  { %3463 = vmatpush1.bf16.msra.mxu0 %v2729_v39  ;;  %3807 = vmatpush1.bf16.msra.mxu1 %v2731_v43  ;;  %v2809_v39 = vld [vmem:[#allocation3 + $0x11c0] sm:$0xff]  ;;  %v2811_v43 = vld [vmem:[#allocation3 + $0x11d0] sm:$0xff] }
 0x57b   :  { %3464 = vmatprep.subr.bf16.mxu0 %v2738_v16  ;;  %3808 = vmatprep.subr.bf16.mxu1 %v2740_v44  ;;  %v2818_v16 = vld [vmem:[#allocation3 + $0x1208] sm:$0xff]  ;;  %v2820_v44 = vld [vmem:[#allocation3 + $0x1218] sm:$0xff] }
 0x57e   :  { %3465 = vmatpush1.bf16.msra.mxu0 %v2737_v45  ;;  %3809 = vmatpush1.bf16.msra.mxu1 %v2739_v46  ;;  %v2817_v45 = vld [vmem:[#allocation3 + $0x1200] sm:$0xff]  ;;  %v2819_v46 = vld [vmem:[#allocation3 + $0x1210] sm:$0xff] }
 0x57f   :  { %3466 = vmatprep.subr.bf16.mxu0 %v2746_v60  ;;  %3810 = vmatprep.subr.bf16.mxu1 %v2748_v50  ;;  %v2826_v60 = vld [vmem:[#allocation3 + $0x1248] sm:$0xff]  ;;  %v2828_v50 = vld [vmem:[#allocation3 + $0x1258] sm:$0xff] }
 0x582   :  { %3467 = vmatpush1.bf16.msra.mxu0 %v2745_v51  ;;  %3811 = vmatpush1.bf16.msra.mxu1 %v2747_v54  ;;  %v2825_v51 = vld [vmem:[#allocation3 + $0x1240] sm:$0xff]  ;;  %v2827_v54 = vld [vmem:[#allocation3 + $0x1250] sm:$0xff] }
 0x583   :  { %3479 = vmatprep.subr.bf16.mxu0 %v2754_v55  ;;  %3823 = vmatprep.subr.bf16.mxu1 %v2756_v58  ;;  %v2834_v55 = vld [vmem:[#allocation3 + $0x1288] sm:$0xff]  ;;  %v2836_v58 = vld [vmem:[#allocation3 + $0x1298] sm:$0xff] }
 0x585   :  { %3469 = vmatmul.mubr.bf16.vlgmr.msra.gmra.mrb[16].mxu0 %v7768_v36  ;;  %3813 = vmatmul.mubr.bf16.vlgmr.msra.gmra.mrb[16].mxu1 %v7768_v36 }
 0x586   :  { %3480 = vmatpush1.bf16.msra.mxu0 %v2753_v59  ;;  %3824 = vmatpush1.bf16.msra.mxu1 %v2755_v61  ;;  %v2833_v59 = vld [vmem:[#allocation3 + $0x1280] sm:$0xff]  ;;  %v2835_v61 = vld [vmem:[#allocation3 + $0x1290] sm:$0xff] }
 0x587   :  { %3481 = vmatprep.subr.bf16.mxu0 %v2762_v62  ;;  %3825 = vmatprep.subr.bf16.mxu1 %v2764_v63  ;;  %v2842_v62 = vld [vmem:[#allocation3 + $0x12c8] sm:$0xff]  ;;  %v2844_v63 = vld [vmem:[#allocation3 + $0x12d8] sm:$0xff] }
 0x588   :  { %3511 = vmatprep.mubr.bf16.mxu0 %v7792_v48  ;;  %3855 = vmatprep.mubr.bf16.mxu1 %v7792_v48 }
 0x58a   :  { %3482 = vmatpush1.bf16.msra.mxu0 %v2761_v7  ;;  %3826 = vmatpush1.bf16.msra.mxu1 %v2763_v23  ;;  %v2841_v7 = vld [vmem:[#allocation3 + $0x12c0] sm:$0xff]  ;;  %v2843_v23 = vld [vmem:[#allocation3 + $0x12d0] sm:$0xff] }
 0x58b   :  { %3483 = vmatprep.subr.bf16.mxu0 %v2770_v13  ;;  %3827 = vmatprep.subr.bf16.mxu1 %v2772_v14  ;;  %v2850_v13 = vld [vmem:[#allocation3 + $0x1308] sm:$0xff]  ;;  %v2852_v14 = vld [vmem:[#allocation3 + $0x1318] sm:$0xff] }
 0x58e   :  { %3484 = vmatpush1.bf16.msra.mxu0 %v2769_v15  ;;  %3828 = vmatpush1.bf16.msra.mxu1 %v2771_v28  ;;  %v2849_v15 = vld [vmem:[#allocation3 + $0x1300] sm:$0xff]  ;;  %v2851_v28 = vld [vmem:[#allocation3 + $0x1310] sm:$0xff] }
 0x58f   :  { %3485 = vmatprep.subr.bf16.mxu0 %v2778_v18  ;;  %3829 = vmatprep.subr.bf16.mxu1 %v2780_v10  ;;  %v2858_v18 = vld [vmem:[#allocation3 + $0x1348] sm:$0xff]  ;;  %v2860_v10 = vld [vmem:[#allocation3 + $0x1358] sm:$0xff] }
 0x592   :  { %3486 = vmatpush1.bf16.msra.mxu0 %v2777_v19  ;;  %3830 = vmatpush1.bf16.msra.mxu1 %v2779_v20  ;;  %v2857_v19 = vld [vmem:[#allocation3 + $0x1340] sm:$0xff]  ;;  %v2859_v20 = vld [vmem:[#allocation3 + $0x1350] sm:$0xff] }
 0x593   :  { %3487 = vmatprep.subr.bf16.mxu0 %v2786_v0  ;;  %3831 = vmatprep.subr.bf16.mxu1 %v2788_v3  ;;  %v2866_v0 = vld [vmem:[#allocation3 + $0x1388] sm:$0xff]  ;;  %v2868_v3 = vld [vmem:[#allocation3 + $0x1398] sm:$0xff] }
 0x596   :  { %3488 = vmatpush1.bf16.msra.mxu0 %v2785_v22  ;;  %3832 = vmatpush1.bf16.msra.mxu1 %v2787_v17  ;;  %v2865_v22 = vld [vmem:[#allocation3 + $0x1380] sm:$0xff]  ;;  %v2867_v17 = vld [vmem:[#allocation3 + $0x1390] sm:$0xff] }
 0x597   :  { %3489 = vmatprep.subr.bf16.mxu0 %v2794_v24  ;;  %3833 = vmatprep.subr.bf16.mxu1 %v2796_v25  ;;  %v2874_v24 = vld [vmem:[#allocation3 + $0x13c8] sm:$0xff]  ;;  %v2876_v25 = vld [vmem:[#allocation3 + $0x13d8] sm:$0xff] }
 0x59a   :  { %3490 = vmatpush1.bf16.msra.mxu0 %v2793_v26  ;;  %3834 = vmatpush1.bf16.msra.mxu1 %v2795_v27  ;;  %v2873_v26 = vld [vmem:[#allocation3 + $0x13c0] sm:$0xff]  ;;  %v2875_v27 = vld [vmem:[#allocation3 + $0x13d0] sm:$0xff] }
 0x59b   :  { %3491 = vmatprep.subr.bf16.mxu0 %v2802_v31  ;;  %3835 = vmatprep.subr.bf16.mxu1 %v2804_v32  ;;  %v2882_v31 = vld [vmem:[#allocation3 + $0x1408] sm:$0xff]  ;;  %v2884_v32 = vld [vmem:[#allocation3 + $0x1418] sm:$0xff] }
 0x59e   :  { %3492 = vmatpush1.bf16.msra.mxu0 %v2801_v33  ;;  %3836 = vmatpush1.bf16.msra.mxu1 %v2803_v34  ;;  %v2881_v33 = vld [vmem:[#allocation3 + $0x1400] sm:$0xff]  ;;  %v2883_v34 = vld [vmem:[#allocation3 + $0x1410] sm:$0xff] }
 0x59f   :  { %3493 = vmatprep.subr.bf16.mxu0 %v2810_v2  ;;  %3837 = vmatprep.subr.bf16.mxu1 %v2812_v5  ;;  %v2890_v2 = vld [vmem:[#allocation3 + $0x1448] sm:$0xff]  ;;  %v2892_v5 = vld [vmem:[#allocation3 + $0x1458] sm:$0xff] }
 0x5a2   :  { %3494 = vmatpush1.bf16.msra.mxu0 %v2809_v39  ;;  %3838 = vmatpush1.bf16.msra.mxu1 %v2811_v43  ;;  %v2889_v39 = vld [vmem:[#allocation3 + $0x1440] sm:$0xff]  ;;  %v2891_v43 = vld [vmem:[#allocation3 + $0x1450] sm:$0xff] }
 0x5a3   :  { %3495 = vmatprep.subr.bf16.mxu0 %v2818_v16  ;;  %3839 = vmatprep.subr.bf16.mxu1 %v2820_v44  ;;  %v2898_v16 = vld [vmem:[#allocation3 + $0x1488] sm:$0xff]  ;;  %v2900_v44 = vld [vmem:[#allocation3 + $0x1498] sm:$0xff] }
 0x5a6   :  { %3496 = vmatpush1.bf16.msra.mxu0 %v2817_v45  ;;  %3840 = vmatpush1.bf16.msra.mxu1 %v2819_v46  ;;  %v2897_v45 = vld [vmem:[#allocation3 + $0x1480] sm:$0xff]  ;;  %v2899_v46 = vld [vmem:[#allocation3 + $0x1490] sm:$0xff] }
 0x5a7   :  { %3497 = vmatprep.subr.bf16.mxu0 %v2826_v60  ;;  %3841 = vmatprep.subr.bf16.mxu1 %v2828_v50  ;;  %v2906_v60 = vld [vmem:[#allocation3 + $0x14c8] sm:$0xff]  ;;  %v2908_v50 = vld [vmem:[#allocation3 + $0x14d8] sm:$0xff] }
 0x5aa   :  { %3498 = vmatpush1.bf16.msra.mxu0 %v2825_v51  ;;  %3842 = vmatpush1.bf16.msra.mxu1 %v2827_v54  ;;  %v2905_v51 = vld [vmem:[#allocation3 + $0x14c0] sm:$0xff]  ;;  %v2907_v54 = vld [vmem:[#allocation3 + $0x14d0] sm:$0xff] }
 0x5ab   :  { %3499 = vmatprep.subr.bf16.mxu0 %v2834_v55  ;;  %3843 = vmatprep.subr.bf16.mxu1 %v2836_v58  ;;  %v2914_v55 = vld [vmem:[#allocation3 + $0x1508] sm:$0xff]  ;;  %v2916_v58 = vld [vmem:[#allocation3 + $0x1518] sm:$0xff] }
 0x5ae   :  { %3500 = vmatpush1.bf16.msra.mxu0 %v2833_v59  ;;  %3844 = vmatpush1.bf16.msra.mxu1 %v2835_v61  ;;  %v2913_v59 = vld [vmem:[#allocation3 + $0x1500] sm:$0xff]  ;;  %v2915_v61 = vld [vmem:[#allocation3 + $0x1510] sm:$0xff] }
 0x5af   :  { %3501 = vmatprep.subr.bf16.mxu0 %v2842_v62  ;;  %3845 = vmatprep.subr.bf16.mxu1 %v2844_v63  ;;  %v2922_v62 = vld [vmem:[#allocation3 + $0x1548] sm:$0xff]  ;;  %v2924_v63 = vld [vmem:[#allocation3 + $0x1558] sm:$0xff] }
 0x5b2   :  { %3502 = vmatpush1.bf16.msra.mxu0 %v2841_v7  ;;  %3846 = vmatpush1.bf16.msra.mxu1 %v2843_v23  ;;  %v2921_v7 = vld [vmem:[#allocation3 + $0x1540] sm:$0xff]  ;;  %v2923_v23 = vld [vmem:[#allocation3 + $0x1550] sm:$0xff] }
 0x5b3   :  { %3503 = vmatprep.subr.bf16.mxu0 %v2850_v13  ;;  %3847 = vmatprep.subr.bf16.mxu1 %v2852_v14  ;;  %v2930_v13 = vld [vmem:[#allocation3 + $0x1588] sm:$0xff]  ;;  %v2932_v14 = vld [vmem:[#allocation3 + $0x1598] sm:$0xff] }
 0x5b6   :  { %3504 = vmatpush1.bf16.msra.mxu0 %v2849_v15  ;;  %3848 = vmatpush1.bf16.msra.mxu1 %v2851_v28  ;;  %v2929_v15 = vld [vmem:[#allocation3 + $0x1580] sm:$0xff]  ;;  %v2931_v28 = vld [vmem:[#allocation3 + $0x1590] sm:$0xff] }
 0x5b7   :  { %3505 = vmatprep.subr.bf16.mxu0 %v2858_v18  ;;  %3849 = vmatprep.subr.bf16.mxu1 %v2860_v10  ;;  %v2938_v18 = vld [vmem:[#allocation3 + $0x15c8] sm:$0xff]  ;;  %v2940_v10 = vld [vmem:[#allocation3 + $0x15d8] sm:$0xff] }
 0x5ba   :  { %3506 = vmatpush1.bf16.msra.mxu0 %v2857_v19  ;;  %3850 = vmatpush1.bf16.msra.mxu1 %v2859_v20  ;;  %v2937_v19 = vld [vmem:[#allocation3 + $0x15c0] sm:$0xff]  ;;  %v2939_v20 = vld [vmem:[#allocation3 + $0x15d0] sm:$0xff] }
 0x5bb   :  { %3507 = vmatprep.subr.bf16.mxu0 %v2866_v0  ;;  %3851 = vmatprep.subr.bf16.mxu1 %v2868_v3  ;;  %v2946_v0 = vld [vmem:[#allocation3 + $0x1608] sm:$0xff]  ;;  %v2948_v3 = vld [vmem:[#allocation3 + $0x1618] sm:$0xff] }
 0x5be   :  { %3508 = vmatpush1.bf16.msra.mxu0 %v2865_v22  ;;  %3852 = vmatpush1.bf16.msra.mxu1 %v2867_v17  ;;  %v2945_v22 = vld [vmem:[#allocation3 + $0x1600] sm:$0xff]  ;;  %v2947_v17 = vld [vmem:[#allocation3 + $0x1610] sm:$0xff] }
 0x5bf   :  { %3509 = vmatprep.subr.bf16.mxu0 %v2874_v24  ;;  %3853 = vmatprep.subr.bf16.mxu1 %v2876_v25  ;;  %v2954_v24 = vld [vmem:[#allocation3 + $0x1648] sm:$0xff]  ;;  %v2956_v25 = vld [vmem:[#allocation3 + $0x1658] sm:$0xff] }
 0x5c2   :  { %3510 = vmatpush1.bf16.msra.mxu0 %v2873_v26  ;;  %3854 = vmatpush1.bf16.msra.mxu1 %v2875_v27  ;;  %v2953_v26 = vld [vmem:[#allocation3 + $0x1640] sm:$0xff]  ;;  %v2955_v27 = vld [vmem:[#allocation3 + $0x1650] sm:$0xff] }
 0x5c3   :  { %3522 = vmatprep.subr.bf16.mxu0 %v2882_v31  ;;  %3866 = vmatprep.subr.bf16.mxu1 %v2884_v32  ;;  %v2962_v31 = vld [vmem:[#allocation3 + $0x1688] sm:$0xff]  ;;  %v2964_v32 = vld [vmem:[#allocation3 + $0x1698] sm:$0xff] }
 0x5c5   :  { %3512 = vmatmul.mubr.bf16.vlgmr.msra.gmra.mrb[16].mxu0 %v7788_v47  ;;  %3856 = vmatmul.mubr.bf16.vlgmr.msra.gmra.mrb[16].mxu1 %v7788_v47 }
 0x5c6   :  { %3523 = vmatpush1.bf16.msra.mxu0 %v2881_v33  ;;  %3867 = vmatpush1.bf16.msra.mxu1 %v2883_v34  ;;  %v2961_v33 = vld [vmem:[#allocation3 + $0x1680] sm:$0xff]  ;;  %v2963_v34 = vld [vmem:[#allocation3 + $0x1690] sm:$0xff] }
 0x5c7   :  { %3524 = vmatprep.subr.bf16.mxu0 %v2890_v2  ;;  %3868 = vmatprep.subr.bf16.mxu1 %v2892_v5  ;;  %v2970_v2 = vld [vmem:[#allocation3 + $0x16c8] sm:$0xff]  ;;  %v2972_v5 = vld [vmem:[#allocation3 + $0x16d8] sm:$0xff] }
 0x5c8   :  { %3554 = vmatprep.mubr.bf16.mxu0 %v7794_v49  ;;  %3898 = vmatprep.mubr.bf16.mxu1 %v7794_v49 }
 0x5ca   :  { %3525 = vmatpush1.bf16.msra.mxu0 %v2889_v39  ;;  %3869 = vmatpush1.bf16.msra.mxu1 %v2891_v43  ;;  %v2969_v39 = vld [vmem:[#allocation3 + $0x16c0] sm:$0xff]  ;;  %v2971_v43 = vld [vmem:[#allocation3 + $0x16d0] sm:$0xff] }
 0x5cb   :  { %3526 = vmatprep.subr.bf16.mxu0 %v2898_v16  ;;  %3870 = vmatprep.subr.bf16.mxu1 %v2900_v44  ;;  %v2978_v16 = vld [vmem:[#allocation3 + $0x1708] sm:$0xff]  ;;  %v2980_v44 = vld [vmem:[#allocation3 + $0x1718] sm:$0xff] }
 0x5ce   :  { %3527 = vmatpush1.bf16.msra.mxu0 %v2897_v45  ;;  %3871 = vmatpush1.bf16.msra.mxu1 %v2899_v46  ;;  %v2977_v45 = vld [vmem:[#allocation3 + $0x1700] sm:$0xff]  ;;  %v2979_v46 = vld [vmem:[#allocation3 + $0x1710] sm:$0xff] }
 0x5cf   :  { %3528 = vmatprep.subr.bf16.mxu0 %v2906_v60  ;;  %3872 = vmatprep.subr.bf16.mxu1 %v2908_v50  ;;  %v2986_v60 = vld [vmem:[#allocation3 + $0x1748] sm:$0xff]  ;;  %v2988_v50 = vld [vmem:[#allocation3 + $0x1758] sm:$0xff] }
 0x5d2   :  { %3529 = vmatpush1.bf16.msra.mxu0 %v2905_v51  ;;  %3873 = vmatpush1.bf16.msra.mxu1 %v2907_v54  ;;  %v2985_v51 = vld [vmem:[#allocation3 + $0x1740] sm:$0xff]  ;;  %v2987_v54 = vld [vmem:[#allocation3 + $0x1750] sm:$0xff] }
 0x5d3   :  { %3530 = vmatprep.subr.bf16.mxu0 %v2914_v55  ;;  %3874 = vmatprep.subr.bf16.mxu1 %v2916_v58  ;;  %v2994_v55 = vld [vmem:[#allocation3 + $0x1788] sm:$0xff]  ;;  %v2996_v58 = vld [vmem:[#allocation3 + $0x1798] sm:$0xff] }
 0x5d6   :  { %3531 = vmatpush1.bf16.msra.mxu0 %v2913_v59  ;;  %3875 = vmatpush1.bf16.msra.mxu1 %v2915_v61  ;;  %v2993_v59 = vld [vmem:[#allocation3 + $0x1780] sm:$0xff]  ;;  %v2995_v61 = vld [vmem:[#allocation3 + $0x1790] sm:$0xff] }
 0x5d7   :  { %3532 = vmatprep.subr.bf16.mxu0 %v2922_v62  ;;  %3876 = vmatprep.subr.bf16.mxu1 %v2924_v63  ;;  %v3002_v62 = vld [vmem:[#allocation3 + $0x17c8] sm:$0xff]  ;;  %v3004_v63 = vld [vmem:[#allocation3 + $0x17d8] sm:$0xff] }
 0x5da   :  { %3533 = vmatpush1.bf16.msra.mxu0 %v2921_v7  ;;  %3877 = vmatpush1.bf16.msra.mxu1 %v2923_v23  ;;  %v3001_v7 = vld [vmem:[#allocation3 + $0x17c0] sm:$0xff]  ;;  %v3003_v23 = vld [vmem:[#allocation3 + $0x17d0] sm:$0xff] }
 0x5db   :  { %3534 = vmatprep.subr.bf16.mxu0 %v2930_v13  ;;  %3878 = vmatprep.subr.bf16.mxu1 %v2932_v14  ;;  %v3010_v13 = vld [vmem:[#allocation3 + $0x1808] sm:$0xff]  ;;  %v3012_v14 = vld [vmem:[#allocation3 + $0x1818] sm:$0xff] }
 0x5de   :  { %3535 = vmatpush1.bf16.msra.mxu0 %v2929_v15  ;;  %3879 = vmatpush1.bf16.msra.mxu1 %v2931_v28  ;;  %v3009_v15 = vld [vmem:[#allocation3 + $0x1800] sm:$0xff]  ;;  %v3011_v28 = vld [vmem:[#allocation3 + $0x1810] sm:$0xff] }
 0x5df   :  { %3536 = vmatprep.subr.bf16.mxu0 %v2938_v18  ;;  %3880 = vmatprep.subr.bf16.mxu1 %v2940_v10  ;;  %v3018_v18 = vld [vmem:[#allocation3 + $0x1848] sm:$0xff]  ;;  %v3020_v10 = vld [vmem:[#allocation3 + $0x1858] sm:$0xff] }
 0x5e2   :  { %3537 = vmatpush1.bf16.msra.mxu0 %v2937_v19  ;;  %3881 = vmatpush1.bf16.msra.mxu1 %v2939_v20  ;;  %v3017_v19 = vld [vmem:[#allocation3 + $0x1840] sm:$0xff]  ;;  %v3019_v20 = vld [vmem:[#allocation3 + $0x1850] sm:$0xff] }
 0x5e3   :  { %3538 = vmatprep.subr.bf16.mxu0 %v2946_v0  ;;  %3882 = vmatprep.subr.bf16.mxu1 %v2948_v3  ;;  %v3026_v0 = vld [vmem:[#allocation3 + $0x1888] sm:$0xff]  ;;  %v3028_v3 = vld [vmem:[#allocation3 + $0x1898] sm:$0xff] }
 0x5e6   :  { %3539 = vmatpush1.bf16.msra.mxu0 %v2945_v22  ;;  %3883 = vmatpush1.bf16.msra.mxu1 %v2947_v17  ;;  %v3025_v22 = vld [vmem:[#allocation3 + $0x1880] sm:$0xff]  ;;  %v3027_v17 = vld [vmem:[#allocation3 + $0x1890] sm:$0xff] }
 0x5e7   :  { %3540 = vmatprep.subr.bf16.mxu0 %v2954_v24  ;;  %3884 = vmatprep.subr.bf16.mxu1 %v2956_v25  ;;  %v3034_v24 = vld [vmem:[#allocation3 + $0x18c8] sm:$0xff]  ;;  %v3036_v25 = vld [vmem:[#allocation3 + $0x18d8] sm:$0xff] }
 0x5ea   :  { %3541 = vmatpush1.bf16.msra.mxu0 %v2953_v26  ;;  %3885 = vmatpush1.bf16.msra.mxu1 %v2955_v27  ;;  %v3033_v26 = vld [vmem:[#allocation3 + $0x18c0] sm:$0xff]  ;;  %v3035_v27 = vld [vmem:[#allocation3 + $0x18d0] sm:$0xff] }
 0x5eb   :  { %3542 = vmatprep.subr.bf16.mxu0 %v2962_v31  ;;  %3886 = vmatprep.subr.bf16.mxu1 %v2964_v32  ;;  %v3042_v31 = vld [vmem:[#allocation3 + $0x1908] sm:$0xff]  ;;  %v3044_v32 = vld [vmem:[#allocation3 + $0x1918] sm:$0xff] }
 0x5ee   :  { %3543 = vmatpush1.bf16.msra.mxu0 %v2961_v33  ;;  %3887 = vmatpush1.bf16.msra.mxu1 %v2963_v34  ;;  %v3041_v33 = vld [vmem:[#allocation3 + $0x1900] sm:$0xff]  ;;  %v3043_v34 = vld [vmem:[#allocation3 + $0x1910] sm:$0xff] }
 0x5ef   :  { %3544 = vmatprep.subr.bf16.mxu0 %v2970_v2  ;;  %3888 = vmatprep.subr.bf16.mxu1 %v2972_v5  ;;  %v3050_v2 = vld [vmem:[#allocation3 + $0x1948] sm:$0xff]  ;;  %v3052_v5 = vld [vmem:[#allocation3 + $0x1958] sm:$0xff] }
 0x5f2   :  { %3545 = vmatpush1.bf16.msra.mxu0 %v2969_v39  ;;  %3889 = vmatpush1.bf16.msra.mxu1 %v2971_v43  ;;  %v3049_v39 = vld [vmem:[#allocation3 + $0x1940] sm:$0xff]  ;;  %v3051_v43 = vld [vmem:[#allocation3 + $0x1950] sm:$0xff] }
 0x5f3   :  { %3546 = vmatprep.subr.bf16.mxu0 %v2978_v16  ;;  %3890 = vmatprep.subr.bf16.mxu1 %v2980_v44  ;;  %v3058_v16 = vld [vmem:[#allocation3 + $0x1988] sm:$0xff]  ;;  %v3060_v44 = vld [vmem:[#allocation3 + $0x1998] sm:$0xff] }
 0x5f6   :  { %3547 = vmatpush1.bf16.msra.mxu0 %v2977_v45  ;;  %3891 = vmatpush1.bf16.msra.mxu1 %v2979_v46  ;;  %v3057_v45 = vld [vmem:[#allocation3 + $0x1980] sm:$0xff]  ;;  %v3059_v46 = vld [vmem:[#allocation3 + $0x1990] sm:$0xff] }
 0x5f7   :  { %3548 = vmatprep.subr.bf16.mxu0 %v2986_v60  ;;  %3892 = vmatprep.subr.bf16.mxu1 %v2988_v50  ;;  %v3066_v60 = vld [vmem:[#allocation3 + $0x19c8] sm:$0xff]  ;;  %v3068_v50 = vld [vmem:[#allocation3 + $0x19d8] sm:$0xff] }
 0x5fa   :  { %3549 = vmatpush1.bf16.msra.mxu0 %v2985_v51  ;;  %3893 = vmatpush1.bf16.msra.mxu1 %v2987_v54  ;;  %v3065_v51 = vld [vmem:[#allocation3 + $0x19c0] sm:$0xff]  ;;  %v3067_v54 = vld [vmem:[#allocation3 + $0x19d0] sm:$0xff] }
 0x5fb   :  { %3550 = vmatprep.subr.bf16.mxu0 %v2994_v55  ;;  %3894 = vmatprep.subr.bf16.mxu1 %v2996_v58  ;;  %v3074_v55 = vld [vmem:[#allocation3 + $0x1a08] sm:$0xff]  ;;  %v3076_v58 = vld [vmem:[#allocation3 + $0x1a18] sm:$0xff] }
 0x5fe   :  { %3551 = vmatpush1.bf16.msra.mxu0 %v2993_v59  ;;  %3895 = vmatpush1.bf16.msra.mxu1 %v2995_v61  ;;  %v3073_v59 = vld [vmem:[#allocation3 + $0x1a00] sm:$0xff]  ;;  %v3075_v61 = vld [vmem:[#allocation3 + $0x1a10] sm:$0xff] }
 0x5ff   :  { %3552 = vmatprep.subr.bf16.mxu0 %v3002_v62  ;;  %3896 = vmatprep.subr.bf16.mxu1 %v3004_v63  ;;  %v3082_v62 = vld [vmem:[#allocation3 + $0x1a48] sm:$0xff]  ;;  %v3084_v63 = vld [vmem:[#allocation3 + $0x1a58] sm:$0xff] }
 0x602   :  { %3553 = vmatpush1.bf16.msra.mxu0 %v3001_v7  ;;  %3897 = vmatpush1.bf16.msra.mxu1 %v3003_v23  ;;  %v3081_v7 = vld [vmem:[#allocation3 + $0x1a40] sm:$0xff]  ;;  %v3083_v23 = vld [vmem:[#allocation3 + $0x1a50] sm:$0xff] }
 0x603   :  { %3565 = vmatprep.subr.bf16.mxu0 %v3010_v13  ;;  %3909 = vmatprep.subr.bf16.mxu1 %v3012_v14  ;;  %v3090_v13 = vld [vmem:[#allocation3 + $0x1a88] sm:$0xff]  ;;  %v3092_v14 = vld [vmem:[#allocation3 + $0x1a98] sm:$0xff] }
 0x605   :  { %3555 = vmatmul.mubr.bf16.vlgmr.msra.gmra.mrb[16].mxu0 %v7790_v21  ;;  %3899 = vmatmul.mubr.bf16.vlgmr.msra.gmra.mrb[16].mxu1 %v7790_v21 }
 0x606   :  { %3566 = vmatpush1.bf16.msra.mxu0 %v3009_v15  ;;  %3910 = vmatpush1.bf16.msra.mxu1 %v3011_v28  ;;  %v3089_v15 = vld [vmem:[#allocation3 + $0x1a80] sm:$0xff]  ;;  %v3091_v28 = vld [vmem:[#allocation3 + $0x1a90] sm:$0xff] }
 0x607   :  { %3567 = vmatprep.subr.bf16.mxu0 %v3018_v18  ;;  %3911 = vmatprep.subr.bf16.mxu1 %v3020_v10  ;;  %v3098_v18 = vld [vmem:[#allocation3 + $0x1ac8] sm:$0xff]  ;;  %v3100_v10 = vld [vmem:[#allocation3 + $0x1ad8] sm:$0xff] }
 0x608   :  { %3597 = vmatprep.mubr.bf16.mxu0 %v7804_v30  ;;  %3941 = vmatprep.mubr.bf16.mxu1 %v7804_v30 }
 0x60a   :  { %3568 = vmatpush1.bf16.msra.mxu0 %v3017_v19  ;;  %3912 = vmatpush1.bf16.msra.mxu1 %v3019_v20  ;;  %v3097_v19 = vld [vmem:[#allocation3 + $0x1ac0] sm:$0xff]  ;;  %v3099_v20 = vld [vmem:[#allocation3 + $0x1ad0] sm:$0xff] }
 0x60b   :  { %3569 = vmatprep.subr.bf16.mxu0 %v3026_v0  ;;  %3913 = vmatprep.subr.bf16.mxu1 %v3028_v3  ;;  %v3106_v0 = vld [vmem:[#allocation3 + $0x1b08] sm:$0xff]  ;;  %v3108_v3 = vld [vmem:[#allocation3 + $0x1b18] sm:$0xff] }
 0x60e   :  { %3570 = vmatpush1.bf16.msra.mxu0 %v3025_v22  ;;  %3914 = vmatpush1.bf16.msra.mxu1 %v3027_v17  ;;  %v3105_v22 = vld [vmem:[#allocation3 + $0x1b00] sm:$0xff]  ;;  %v3107_v17 = vld [vmem:[#allocation3 + $0x1b10] sm:$0xff] }
 0x60f   :  { %3571 = vmatprep.subr.bf16.mxu0 %v3034_v24  ;;  %3915 = vmatprep.subr.bf16.mxu1 %v3036_v25  ;;  %v3114_v24 = vld [vmem:[#allocation3 + $0x1b48] sm:$0xff]  ;;  %v3116_v25 = vld [vmem:[#allocation3 + $0x1b58] sm:$0xff] }
 0x612   :  { %3572 = vmatpush1.bf16.msra.mxu0 %v3033_v26  ;;  %3916 = vmatpush1.bf16.msra.mxu1 %v3035_v27  ;;  %v3113_v26 = vld [vmem:[#allocation3 + $0x1b40] sm:$0xff]  ;;  %v3115_v27 = vld [vmem:[#allocation3 + $0x1b50] sm:$0xff] }
 0x613   :  { %3573 = vmatprep.subr.bf16.mxu0 %v3042_v31  ;;  %3917 = vmatprep.subr.bf16.mxu1 %v3044_v32  ;;  %v3122_v31 = vld [vmem:[#allocation3 + $0x1b88] sm:$0xff]  ;;  %v3124_v32 = vld [vmem:[#allocation3 + $0x1b98] sm:$0xff] }
 0x616   :  { %3574 = vmatpush1.bf16.msra.mxu0 %v3041_v33  ;;  %3918 = vmatpush1.bf16.msra.mxu1 %v3043_v34  ;;  %v3121_v33 = vld [vmem:[#allocation3 + $0x1b80] sm:$0xff]  ;;  %v3123_v34 = vld [vmem:[#allocation3 + $0x1b90] sm:$0xff] }
 0x617   :  { %3575 = vmatprep.subr.bf16.mxu0 %v3050_v2  ;;  %3919 = vmatprep.subr.bf16.mxu1 %v3052_v5  ;;  %v3130_v2 = vld [vmem:[#allocation3 + $0x1bc8] sm:$0xff]  ;;  %v3132_v5 = vld [vmem:[#allocation3 + $0x1bd8] sm:$0xff] }
 0x61a   :  { %3576 = vmatpush1.bf16.msra.mxu0 %v3049_v39  ;;  %3920 = vmatpush1.bf16.msra.mxu1 %v3051_v43  ;;  %v3129_v39 = vld [vmem:[#allocation3 + $0x1bc0] sm:$0xff]  ;;  %v3131_v43 = vld [vmem:[#allocation3 + $0x1bd0] sm:$0xff] }
 0x61b   :  { %3577 = vmatprep.subr.bf16.mxu0 %v3058_v16  ;;  %3921 = vmatprep.subr.bf16.mxu1 %v3060_v44  ;;  %v3138_v16 = vld [vmem:[#allocation3 + $0x1c08] sm:$0xff]  ;;  %v3140_v44 = vld [vmem:[#allocation3 + $0x1c18] sm:$0xff] }
 0x61e   :  { %3578 = vmatpush1.bf16.msra.mxu0 %v3057_v45  ;;  %3922 = vmatpush1.bf16.msra.mxu1 %v3059_v46  ;;  %v3137_v45 = vld [vmem:[#allocation3 + $0x1c00] sm:$0xff]  ;;  %v3139_v46 = vld [vmem:[#allocation3 + $0x1c10] sm:$0xff] }
 0x61f   :  { %3579 = vmatprep.subr.bf16.mxu0 %v3066_v60  ;;  %3923 = vmatprep.subr.bf16.mxu1 %v3068_v50  ;;  %v3146_v60 = vld [vmem:[#allocation3 + $0x1c48] sm:$0xff]  ;;  %v3148_v50 = vld [vmem:[#allocation3 + $0x1c58] sm:$0xff] }
 0x622   :  { %3580 = vmatpush1.bf16.msra.mxu0 %v3065_v51  ;;  %3924 = vmatpush1.bf16.msra.mxu1 %v3067_v54  ;;  %v3145_v51 = vld [vmem:[#allocation3 + $0x1c40] sm:$0xff]  ;;  %v3147_v54 = vld [vmem:[#allocation3 + $0x1c50] sm:$0xff] }
 0x623   :  { %3581 = vmatprep.subr.bf16.mxu0 %v3074_v55  ;;  %3925 = vmatprep.subr.bf16.mxu1 %v3076_v58  ;;  %v3154_v55 = vld [vmem:[#allocation3 + $0x1c88] sm:$0xff]  ;;  %v3156_v58 = vld [vmem:[#allocation3 + $0x1c98] sm:$0xff] }
 0x626   :  { %3582 = vmatpush1.bf16.msra.mxu0 %v3073_v59  ;;  %3926 = vmatpush1.bf16.msra.mxu1 %v3075_v61  ;;  %v3153_v59 = vld [vmem:[#allocation3 + $0x1c80] sm:$0xff]  ;;  %v3155_v61 = vld [vmem:[#allocation3 + $0x1c90] sm:$0xff] }
 0x627   :  { %3583 = vmatprep.subr.bf16.mxu0 %v3082_v62  ;;  %3927 = vmatprep.subr.bf16.mxu1 %v3084_v63  ;;  %v3162_v62 = vld [vmem:[#allocation3 + $0x1cc8] sm:$0xff]  ;;  %v3164_v63 = vld [vmem:[#allocation3 + $0x1cd8] sm:$0xff] }
 0x62a   :  { %3584 = vmatpush1.bf16.msra.mxu0 %v3081_v7  ;;  %3928 = vmatpush1.bf16.msra.mxu1 %v3083_v23  ;;  %v3161_v7 = vld [vmem:[#allocation3 + $0x1cc0] sm:$0xff]  ;;  %v3163_v23 = vld [vmem:[#allocation3 + $0x1cd0] sm:$0xff] }
 0x62b   :  { %3585 = vmatprep.subr.bf16.mxu0 %v3090_v13  ;;  %3929 = vmatprep.subr.bf16.mxu1 %v3092_v14  ;;  %v3170_v13 = vld [vmem:[#allocation3 + $0x1d08] sm:$0xff]  ;;  %v3172_v14 = vld [vmem:[#allocation3 + $0x1d18] sm:$0xff] }
 0x62e   :  { %3586 = vmatpush1.bf16.msra.mxu0 %v3089_v15  ;;  %3930 = vmatpush1.bf16.msra.mxu1 %v3091_v28  ;;  %v3169_v15 = vld [vmem:[#allocation3 + $0x1d00] sm:$0xff]  ;;  %v3171_v28 = vld [vmem:[#allocation3 + $0x1d10] sm:$0xff] }
 0x62f   :  { %3587 = vmatprep.subr.bf16.mxu0 %v3098_v18  ;;  %3931 = vmatprep.subr.bf16.mxu1 %v3100_v10  ;;  %v3178_v18 = vld [vmem:[#allocation3 + $0x1d48] sm:$0xff]  ;;  %v3180_v10 = vld [vmem:[#allocation3 + $0x1d58] sm:$0xff] }
 0x632   :  { %3588 = vmatpush1.bf16.msra.mxu0 %v3097_v19  ;;  %3932 = vmatpush1.bf16.msra.mxu1 %v3099_v20  ;;  %v3177_v19 = vld [vmem:[#allocation3 + $0x1d40] sm:$0xff]  ;;  %v3179_v20 = vld [vmem:[#allocation3 + $0x1d50] sm:$0xff] }
 0x633   :  { %3589 = vmatprep.subr.bf16.mxu0 %v3106_v0  ;;  %3933 = vmatprep.subr.bf16.mxu1 %v3108_v3  ;;  %v3186_v0 = vld [vmem:[#allocation3 + $0x1d88] sm:$0xff]  ;;  %v3188_v3 = vld [vmem:[#allocation3 + $0x1d98] sm:$0xff] }
 0x636   :  { %3590 = vmatpush1.bf16.msra.mxu0 %v3105_v22  ;;  %3934 = vmatpush1.bf16.msra.mxu1 %v3107_v17  ;;  %v3185_v22 = vld [vmem:[#allocation3 + $0x1d80] sm:$0xff]  ;;  %v3187_v17 = vld [vmem:[#allocation3 + $0x1d90] sm:$0xff] }
 0x637   :  { %3591 = vmatprep.subr.bf16.mxu0 %v3114_v24  ;;  %3935 = vmatprep.subr.bf16.mxu1 %v3116_v25  ;;  %v3194_v24 = vld [vmem:[#allocation3 + $0x1dc8] sm:$0xff]  ;;  %v3196_v25 = vld [vmem:[#allocation3 + $0x1dd8] sm:$0xff] }
 0x63a   :  { %3592 = vmatpush1.bf16.msra.mxu0 %v3113_v26  ;;  %3936 = vmatpush1.bf16.msra.mxu1 %v3115_v27  ;;  %v3193_v26 = vld [vmem:[#allocation3 + $0x1dc0] sm:$0xff]  ;;  %v3195_v27 = vld [vmem:[#allocation3 + $0x1dd0] sm:$0xff] }
 0x63b   :  { %3593 = vmatprep.subr.bf16.mxu0 %v3122_v31  ;;  %3937 = vmatprep.subr.bf16.mxu1 %v3124_v32  ;;  %v3202_v31 = vld [vmem:[#allocation3 + $0x1e08] sm:$0xff]  ;;  %v3204_v32 = vld [vmem:[#allocation3 + $0x1e18] sm:$0xff] }
 0x63e   :  { %3594 = vmatpush1.bf16.msra.mxu0 %v3121_v33  ;;  %3938 = vmatpush1.bf16.msra.mxu1 %v3123_v34  ;;  %v3201_v33 = vld [vmem:[#allocation3 + $0x1e00] sm:$0xff]  ;;  %v3203_v34 = vld [vmem:[#allocation3 + $0x1e10] sm:$0xff] }
 0x63f   :  { %3595 = vmatprep.subr.bf16.mxu0 %v3130_v2  ;;  %3939 = vmatprep.subr.bf16.mxu1 %v3132_v5  ;;  %v3210_v2 = vld [vmem:[#allocation3 + $0x1e48] sm:$0xff]  ;;  %v3212_v5 = vld [vmem:[#allocation3 + $0x1e58] sm:$0xff] }
 0x642   :  { %3596 = vmatpush1.bf16.msra.mxu0 %v3129_v39  ;;  %3940 = vmatpush1.bf16.msra.mxu1 %v3131_v43  ;;  %v3209_v39 = vld [vmem:[#allocation3 + $0x1e40] sm:$0xff]  ;;  %v3211_v43 = vld [vmem:[#allocation3 + $0x1e50] sm:$0xff] }
 0x643   :  { %3608 = vmatprep.subr.bf16.mxu0 %v3138_v16  ;;  %3952 = vmatprep.subr.bf16.mxu1 %v3140_v44  ;;  %v3218_v16 = vld [vmem:[#allocation3 + $0x1e88] sm:$0xff]  ;;  %v3220_v44 = vld [vmem:[#allocation3 + $0x1e98] sm:$0xff] }
 0x645   :  { %3598 = vmatmul.mubr.bf16.vlgmr.msra.gmra.mrb[16].mxu0 %v7800_v1  ;;  %3942 = vmatmul.mubr.bf16.vlgmr.msra.gmra.mrb[16].mxu1 %v7800_v1 }
 0x646   :  { %3609 = vmatpush1.bf16.msra.mxu0 %v3137_v45  ;;  %3953 = vmatpush1.bf16.msra.mxu1 %v3139_v46  ;;  %v3217_v45 = vld [vmem:[#allocation3 + $0x1e80] sm:$0xff]  ;;  %v3219_v46 = vld [vmem:[#allocation3 + $0x1e90] sm:$0xff] }
 0x647   :  { %3610 = vmatprep.subr.bf16.mxu0 %v3146_v60  ;;  %3954 = vmatprep.subr.bf16.mxu1 %v3148_v50  ;;  %v3226_v60 = vld [vmem:[#allocation3 + $0x1ec8] sm:$0xff]  ;;  %v3228_v50 = vld [vmem:[#allocation3 + $0x1ed8] sm:$0xff] }
 0x648   :  { %3640 = vmatprep.mubr.bf16.mxu0 %v7806_v29  ;;  %3984 = vmatprep.mubr.bf16.mxu1 %v7806_v29 }
 0x64a   :  { %3611 = vmatpush1.bf16.msra.mxu0 %v3145_v51  ;;  %3955 = vmatpush1.bf16.msra.mxu1 %v3147_v54  ;;  %v3225_v51 = vld [vmem:[#allocation3 + $0x1ec0] sm:$0xff]  ;;  %v3227_v54 = vld [vmem:[#allocation3 + $0x1ed0] sm:$0xff] }
 0x64b   :  { %3612 = vmatprep.subr.bf16.mxu0 %v3154_v55  ;;  %3956 = vmatprep.subr.bf16.mxu1 %v3156_v58  ;;  %v3234_v55 = vld [vmem:[#allocation3 + $0x1f08] sm:$0xff]  ;;  %v3236_v58 = vld [vmem:[#allocation3 + $0x1f18] sm:$0xff] }
 0x64e   :  { %3613 = vmatpush1.bf16.msra.mxu0 %v3153_v59  ;;  %3957 = vmatpush1.bf16.msra.mxu1 %v3155_v61  ;;  %v3233_v59 = vld [vmem:[#allocation3 + $0x1f00] sm:$0xff]  ;;  %v3235_v61 = vld [vmem:[#allocation3 + $0x1f10] sm:$0xff] }
 0x64f   :  { %3614 = vmatprep.subr.bf16.mxu0 %v3162_v62  ;;  %3958 = vmatprep.subr.bf16.mxu1 %v3164_v63  ;;  %v3242_v62 = vld [vmem:[#allocation3 + $0x1f48] sm:$0xff]  ;;  %v3244_v63 = vld [vmem:[#allocation3 + $0x1f58] sm:$0xff] }
 0x652   :  { %3615 = vmatpush1.bf16.msra.mxu0 %v3161_v7  ;;  %3959 = vmatpush1.bf16.msra.mxu1 %v3163_v23  ;;  %v3241_v7 = vld [vmem:[#allocation3 + $0x1f40] sm:$0xff]  ;;  %v3243_v23 = vld [vmem:[#allocation3 + $0x1f50] sm:$0xff] }
 0x653   :  { %3616 = vmatprep.subr.bf16.mxu0 %v3170_v13  ;;  %3960 = vmatprep.subr.bf16.mxu1 %v3172_v14  ;;  %v3250_v13 = vld [vmem:[#allocation3 + $0x1f88] sm:$0xff]  ;;  %v3252_v14 = vld [vmem:[#allocation3 + $0x1f98] sm:$0xff] }
 0x656   :  { %3617 = vmatpush1.bf16.msra.mxu0 %v3169_v15  ;;  %3961 = vmatpush1.bf16.msra.mxu1 %v3171_v28  ;;  %v3249_v15 = vld [vmem:[#allocation3 + $0x1f80] sm:$0xff]  ;;  %v3251_v28 = vld [vmem:[#allocation3 + $0x1f90] sm:$0xff] }
 0x657   :  { %3618 = vmatprep.subr.bf16.mxu0 %v3178_v18  ;;  %3962 = vmatprep.subr.bf16.mxu1 %v3180_v10  ;;  %v3258_v18 = vld [vmem:[#allocation3 + $0x1fc8] sm:$0xff]  ;;  %v3260_v10 = vld [vmem:[#allocation3 + $0x1fd8] sm:$0xff] }
 0x65a   :  { %3619 = vmatpush1.bf16.msra.mxu0 %v3177_v19  ;;  %3963 = vmatpush1.bf16.msra.mxu1 %v3179_v20  ;;  %v3257_v19 = vld [vmem:[#allocation3 + $0x1fc0] sm:$0xff]  ;;  %v3259_v20 = vld [vmem:[#allocation3 + $0x1fd0] sm:$0xff] }
 0x65b   :  { %3620 = vmatprep.subr.bf16.mxu0 %v3186_v0  ;;  %3964 = vmatprep.subr.bf16.mxu1 %v3188_v3  ;;  %v2246_v0 = vld [vmem:[#allocation3 + $0x28] sm:$0xff]  ;;  %v2248_v3 = vld [vmem:[#allocation3 + $0x38] sm:$0xff] }
 0x65e   :  { %3621 = vmatpush1.bf16.msra.mxu0 %v3185_v22  ;;  %3965 = vmatpush1.bf16.msra.mxu1 %v3187_v17  ;;  %v2245_v22 = vld [vmem:[#allocation3 + $0x20] sm:$0xff]  ;;  %v2247_v17 = vld [vmem:[#allocation3 + $0x30] sm:$0xff] }
 0x65f   :  { %3622 = vmatprep.subr.bf16.mxu0 %v3194_v24  ;;  %3966 = vmatprep.subr.bf16.mxu1 %v3196_v25  ;;  %v2254_v24 = vld [vmem:[#allocation3 + $0x68] sm:$0xff]  ;;  %v2256_v25 = vld [vmem:[#allocation3 + $0x78] sm:$0xff] }
 0x662   :  { %3623 = vmatpush1.bf16.msra.mxu0 %v3193_v26  ;;  %3967 = vmatpush1.bf16.msra.mxu1 %v3195_v27  ;;  %v2253_v26 = vld [vmem:[#allocation3 + $0x60] sm:$0xff]  ;;  %v2255_v27 = vld [vmem:[#allocation3 + $0x70] sm:$0xff] }
 0x663   :  { %3624 = vmatprep.subr.bf16.mxu0 %v3202_v31  ;;  %3968 = vmatprep.subr.bf16.mxu1 %v3204_v32  ;;  %v2262_v31 = vld [vmem:[#allocation3 + $0xa8] sm:$0xff]  ;;  %v2264_v32 = vld [vmem:[#allocation3 + $0xb8] sm:$0xff] }
 0x666   :  { %3625 = vmatpush1.bf16.msra.mxu0 %v3201_v33  ;;  %3969 = vmatpush1.bf16.msra.mxu1 %v3203_v34  ;;  %v2261_v33 = vld [vmem:[#allocation3 + $0xa0] sm:$0xff]  ;;  %v2263_v34 = vld [vmem:[#allocation3 + $0xb0] sm:$0xff] }
 0x667   :  { %3626 = vmatprep.subr.bf16.mxu0 %v3210_v2  ;;  %3970 = vmatprep.subr.bf16.mxu1 %v3212_v5  ;;  %v2270_v2 = vld [vmem:[#allocation3 + $0xe8] sm:$0xff]  ;;  %v2272_v5 = vld [vmem:[#allocation3 + $0xf8] sm:$0xff] }
 0x66a   :  { %3627 = vmatpush1.bf16.msra.mxu0 %v3209_v39  ;;  %3971 = vmatpush1.bf16.msra.mxu1 %v3211_v43  ;;  %v2269_v39 = vld [vmem:[#allocation3 + $0xe0] sm:$0xff]  ;;  %v2271_v43 = vld [vmem:[#allocation3 + $0xf0] sm:$0xff] }
 0x66b   :  { %3628 = vmatprep.subr.bf16.mxu0 %v3218_v16  ;;  %3972 = vmatprep.subr.bf16.mxu1 %v3220_v44  ;;  %v2278_v16 = vld [vmem:[#allocation3 + $0x128] sm:$0xff]  ;;  %v2280_v44 = vld [vmem:[#allocation3 + $0x138] sm:$0xff] }
 0x66e   :  { %3629 = vmatpush1.bf16.msra.mxu0 %v3217_v45  ;;  %3973 = vmatpush1.bf16.msra.mxu1 %v3219_v46  ;;  %v2279_v45 = vld [vmem:[#allocation3 + $0x130] sm:$0xff]  ;;  %v2286_v46 = vld [vmem:[#allocation3 + $0x168] sm:$0xff] }
 0x66f   :  { %3630 = vmatprep.subr.bf16.mxu0 %v3226_v60  ;;  %3974 = vmatprep.subr.bf16.mxu1 %v3228_v50  ;;  %v2288_v60 = vld [vmem:[#allocation3 + $0x178] sm:$0xff]  ;;  %v2285_v50 = vld [vmem:[#allocation3 + $0x160] sm:$0xff] }
 0x672   :  { %3631 = vmatpush1.bf16.msra.mxu0 %v3225_v51  ;;  %3975 = vmatpush1.bf16.msra.mxu1 %v3227_v54  ;;  %v2287_v51 = vld [vmem:[#allocation3 + $0x170] sm:$0xff]  ;;  %v2294_v54 = vld [vmem:[#allocation3 + $0x1a8] sm:$0xff] }
 0x673   :  { %3632 = vmatprep.subr.bf16.mxu0 %v3234_v55  ;;  %3976 = vmatprep.subr.bf16.mxu1 %v3236_v58  ;;  %v2296_v55 = vld [vmem:[#allocation3 + $0x1b8] sm:$0xff]  ;;  %v2293_v58 = vld [vmem:[#allocation3 + $0x1a0] sm:$0xff] }
 0x676   :  { %3633 = vmatpush1.bf16.msra.mxu0 %v3233_v59  ;;  %3977 = vmatpush1.bf16.msra.mxu1 %v3235_v61  ;;  %v2295_v59 = vld [vmem:[#allocation3 + $0x1b0] sm:$0xff]  ;;  %v2302_v61 = vld [vmem:[#allocation3 + $0x1e8] sm:$0xff] }
 0x677   :  { %3634 = vmatprep.subr.bf16.mxu0 %v3242_v62  ;;  %3978 = vmatprep.subr.bf16.mxu1 %v3244_v63  ;;  %v2304_v62 = vld [vmem:[#allocation3 + $0x1f8] sm:$0xff]  ;;  %v2301_v63 = vld [vmem:[#allocation3 + $0x1e0] sm:$0xff] }
 0x67a   :  { %3635 = vmatpush1.bf16.msra.mxu0 %v3241_v7  ;;  %3979 = vmatpush1.bf16.msra.mxu1 %v3243_v23  ;;  %v2303_v7 = vld [vmem:[#allocation3 + $0x1f0] sm:$0xff]  ;;  %v2310_v23 = vld [vmem:[#allocation3 + $0x228] sm:$0xff] }
 0x67b   :  { %3636 = vmatprep.subr.bf16.mxu0 %v3250_v13  ;;  %3980 = vmatprep.subr.bf16.mxu1 %v3252_v14  ;;  %v2312_v13 = vld [vmem:[#allocation3 + $0x238] sm:$0xff]  ;;  %v2309_v14 = vld [vmem:[#allocation3 + $0x220] sm:$0xff] }
 0x67e   :  { %3637 = vmatpush1.bf16.msra.mxu0 %v3249_v15  ;;  %3981 = vmatpush1.bf16.msra.mxu1 %v3251_v28  ;;  %v2311_v15 = vld [vmem:[#allocation3 + $0x230] sm:$0xff]  ;;  %v2318_v28 = vld [vmem:[#allocation3 + $0x268] sm:$0xff] }
 0x67f   :  { %3638 = vmatprep.subr.bf16.mxu0 %v3258_v18  ;;  %3982 = vmatprep.subr.bf16.mxu1 %v3260_v10  ;;  %v2320_v18 = vld [vmem:[#allocation3 + $0x278] sm:$0xff]  ;;  %v2317_v10 = vld [vmem:[#allocation3 + $0x260] sm:$0xff] }
 0x682   :  { %3639 = vmatpush1.bf16.msra.mxu0 %v3257_v19  ;;  %3983 = vmatpush1.bf16.msra.mxu1 %v3259_v20  ;;  %v2319_v19 = vld [vmem:[#allocation3 + $0x270] sm:$0xff]  ;;  %v2326_v20 = vld [vmem:[#allocation3 + $0x2a8] sm:$0xff] }
 0x683   :  { %3995 = vmatprep.subr.bf16.mxu0 %v2246_v0  ;;  %4339 = vmatprep.subr.bf16.mxu1 %v2248_v3  ;;  %v2328_v0 = vld [vmem:[#allocation3 + $0x2b8] sm:$0xff]  ;;  %v2325_v3 = vld [vmem:[#allocation3 + $0x2a0] sm:$0xff] }
 0x685   :  { %3641 = vmatmul.mubr.bf16.vlgmr.msra.gmra.mrb[16].mxu0 %v7802_v4  ;;  %3985 = vmatmul.mubr.bf16.vlgmr.msra.gmra.mrb[16].mxu1 %v7802_v4 }
 0x686   :  { %3996 = vmatpush1.bf16.msra.mxu0 %v2245_v22  ;;  %4340 = vmatpush1.bf16.msra.mxu1 %v2247_v17  ;;  %v2327_v22 = vld [vmem:[#allocation3 + $0x2b0] sm:$0xff]  ;;  %v2334_v17 = vld [vmem:[#allocation3 + $0x2e8] sm:$0xff] }
 0x687   :  { %3997 = vmatprep.subr.bf16.mxu0 %v2254_v24  ;;  %4341 = vmatprep.subr.bf16.mxu1 %v2256_v25  ;;  %v2336_v24 = vld [vmem:[#allocation3 + $0x2f8] sm:$0xff]  ;;  %v2333_v25 = vld [vmem:[#allocation3 + $0x2e0] sm:$0xff] }
 0x688   :  { %4027 = vmatprep.mubr.bf16.mxu0 %v7730_v56  ;;  %4371 = vmatprep.mubr.bf16.mxu1 %v7730_v56  ;;  %v2277_v56 = vld [vmem:[#allocation3 + $0x120] sm:$0xff] }
 0x68a   :  { %3998 = vmatpush1.bf16.msra.mxu0 %v2253_v26  ;;  %4342 = vmatpush1.bf16.msra.mxu1 %v2255_v27  ;;  %v2335_v26 = vld [vmem:[#allocation3 + $0x2f0] sm:$0xff]  ;;  %v2342_v27 = vld [vmem:[#allocation3 + $0x328] sm:$0xff] }
 0x68b   :  { %3999 = vmatprep.subr.bf16.mxu0 %v2262_v31  ;;  %4343 = vmatprep.subr.bf16.mxu1 %v2264_v32  ;;  %v2344_v31 = vld [vmem:[#allocation3 + $0x338] sm:$0xff]  ;;  %v2341_v32 = vld [vmem:[#allocation3 + $0x320] sm:$0xff] }
 0x68e   :  { %4000 = vmatpush1.bf16.msra.mxu0 %v2261_v33  ;;  %4344 = vmatpush1.bf16.msra.mxu1 %v2263_v34  ;;  %v2343_v33 = vld [vmem:[#allocation3 + $0x330] sm:$0xff]  ;;  %v2350_v34 = vld [vmem:[#allocation3 + $0x368] sm:$0xff] }
 0x68f   :  { %4001 = vmatprep.subr.bf16.mxu0 %v2270_v2  ;;  %4345 = vmatprep.subr.bf16.mxu1 %v2272_v5  ;;  %v2352_v2 = vld [vmem:[#allocation3 + $0x378] sm:$0xff]  ;;  %v2349_v5 = vld [vmem:[#allocation3 + $0x360] sm:$0xff] }
 0x692   :  { %4002 = vmatpush1.bf16.msra.mxu0 %v2269_v39  ;;  %4346 = vmatpush1.bf16.msra.mxu1 %v2271_v43  ;;  %v2351_v39 = vld [vmem:[#allocation3 + $0x370] sm:$0xff]  ;;  %v2358_v43 = vld [vmem:[#allocation3 + $0x3a8] sm:$0xff] }
 0x693   :  { %4003 = vmatprep.subr.bf16.mxu0 %v2278_v16  ;;  %4347 = vmatprep.subr.bf16.mxu1 %v2280_v44  ;;  %v2360_v16 = vld [vmem:[#allocation3 + $0x3b8] sm:$0xff]  ;;  %v2357_v44 = vld [vmem:[#allocation3 + $0x3a0] sm:$0xff] }
 0x696   :  { %4004 = vmatpush1.bf16.msra.mxu0 %v2277_v56  ;;  %4348 = vmatpush1.bf16.msra.mxu1 %v2279_v45  ;;  %v2359_v56 = vld [vmem:[#allocation3 + $0x3b0] sm:$0xff]  ;;  %v2366_v45 = vld [vmem:[#allocation3 + $0x3e8] sm:$0xff] }
 0x697   :  { %4005 = vmatprep.subr.bf16.mxu0 %v2286_v46  ;;  %4349 = vmatprep.subr.bf16.mxu1 %v2288_v60  ;;  %v2368_v46 = vld [vmem:[#allocation3 + $0x3f8] sm:$0xff]  ;;  %v2365_v60 = vld [vmem:[#allocation3 + $0x3e0] sm:$0xff] }
 0x69a   :  { %4006 = vmatpush1.bf16.msra.mxu0 %v2285_v50  ;;  %4350 = vmatpush1.bf16.msra.mxu1 %v2287_v51  ;;  %v2367_v50 = vld [vmem:[#allocation3 + $0x3f0] sm:$0xff]  ;;  %v2374_v51 = vld [vmem:[#allocation3 + $0x428] sm:$0xff] }
 0x69b   :  { %4007 = vmatprep.subr.bf16.mxu0 %v2294_v54  ;;  %4351 = vmatprep.subr.bf16.mxu1 %v2296_v55  ;;  %v2376_v54 = vld [vmem:[#allocation3 + $0x438] sm:$0xff]  ;;  %v2373_v55 = vld [vmem:[#allocation3 + $0x420] sm:$0xff] }
 0x69e   :  { %4008 = vmatpush1.bf16.msra.mxu0 %v2293_v58  ;;  %4352 = vmatpush1.bf16.msra.mxu1 %v2295_v59  ;;  %v2375_v58 = vld [vmem:[#allocation3 + $0x430] sm:$0xff]  ;;  %v2382_v59 = vld [vmem:[#allocation3 + $0x468] sm:$0xff] }
 0x69f   :  { %4009 = vmatprep.subr.bf16.mxu0 %v2302_v61  ;;  %4353 = vmatprep.subr.bf16.mxu1 %v2304_v62  ;;  %v2384_v61 = vld [vmem:[#allocation3 + $0x478] sm:$0xff]  ;;  %v2381_v62 = vld [vmem:[#allocation3 + $0x460] sm:$0xff] }
 0x6a2   :  { %4010 = vmatpush1.bf16.msra.mxu0 %v2301_v63  ;;  %4354 = vmatpush1.bf16.msra.mxu1 %v2303_v7  ;;  %v2383_v63 = vld [vmem:[#allocation3 + $0x470] sm:$0xff]  ;;  %v2390_v7 = vld [vmem:[#allocation3 + $0x4a8] sm:$0xff] }
 0x6a3   :  { %4011 = vmatprep.subr.bf16.mxu0 %v2310_v23  ;;  %4355 = vmatprep.subr.bf16.mxu1 %v2312_v13  ;;  %v2392_v23 = vld [vmem:[#allocation3 + $0x4b8] sm:$0xff]  ;;  %v2389_v13 = vld [vmem:[#allocation3 + $0x4a0] sm:$0xff] }
 0x6a6   :  { %4012 = vmatpush1.bf16.msra.mxu0 %v2309_v14  ;;  %4356 = vmatpush1.bf16.msra.mxu1 %v2311_v15  ;;  %v2391_v14 = vld [vmem:[#allocation3 + $0x4b0] sm:$0xff]  ;;  %v2398_v15 = vld [vmem:[#allocation3 + $0x4e8] sm:$0xff] }
 0x6a7   :  { %4013 = vmatprep.subr.bf16.mxu0 %v2318_v28  ;;  %4357 = vmatprep.subr.bf16.mxu1 %v2320_v18  ;;  %v2397_v28 = vld [vmem:[#allocation3 + $0x4e0] sm:$0xff]  ;;  %v2399_v18 = vld [vmem:[#allocation3 + $0x4f0] sm:$0xff] }
 0x6aa   :  { %4014 = vmatpush1.bf16.msra.mxu0 %v2317_v10  ;;  %4358 = vmatpush1.bf16.msra.mxu1 %v2319_v19  ;;  %v2406_v10 = vld [vmem:[#allocation3 + $0x528] sm:$0xff]  ;;  %v2408_v19 = vld [vmem:[#allocation3 + $0x538] sm:$0xff] }
 0x6ab   :  { %4015 = vmatprep.subr.bf16.mxu0 %v2326_v20  ;;  %4359 = vmatprep.subr.bf16.mxu1 %v2328_v0  ;;  %v2407_v20 = vld [vmem:[#allocation3 + $0x530] sm:$0xff]  ;;  %v2414_v0 = vld [vmem:[#allocation3 + $0x568] sm:$0xff] }
 0x6ae   :  { %4016 = vmatpush1.bf16.msra.mxu0 %v2325_v3  ;;  %4360 = vmatpush1.bf16.msra.mxu1 %v2327_v22  ;;  %v2416_v3 = vld [vmem:[#allocation3 + $0x578] sm:$0xff]  ;;  %v2413_v22 = vld [vmem:[#allocation3 + $0x560] sm:$0xff] }
 0x6af   :  { %4017 = vmatprep.subr.bf16.mxu0 %v2334_v17  ;;  %4361 = vmatprep.subr.bf16.mxu1 %v2336_v24  ;;  %v2415_v17 = vld [vmem:[#allocation3 + $0x570] sm:$0xff]  ;;  %v2422_v24 = vld [vmem:[#allocation3 + $0x5a8] sm:$0xff] }
 0x6b2   :  { %4018 = vmatpush1.bf16.msra.mxu0 %v2333_v25  ;;  %4362 = vmatpush1.bf16.msra.mxu1 %v2335_v26  ;;  %v2424_v25 = vld [vmem:[#allocation3 + $0x5b8] sm:$0xff]  ;;  %v2421_v26 = vld [vmem:[#allocation3 + $0x5a0] sm:$0xff] }
 0x6b3   :  { %4019 = vmatprep.subr.bf16.mxu0 %v2342_v27  ;;  %4363 = vmatprep.subr.bf16.mxu1 %v2344_v31  ;;  %v2423_v27 = vld [vmem:[#allocation3 + $0x5b0] sm:$0xff]  ;;  %v2430_v31 = vld [vmem:[#allocation3 + $0x5e8] sm:$0xff] }
 0x6b6   :  { %4020 = vmatpush1.bf16.msra.mxu0 %v2341_v32  ;;  %4364 = vmatpush1.bf16.msra.mxu1 %v2343_v33  ;;  %v2432_v32 = vld [vmem:[#allocation3 + $0x5f8] sm:$0xff]  ;;  %v2429_v33 = vld [vmem:[#allocation3 + $0x5e0] sm:$0xff] }
 0x6b7   :  { %4021 = vmatprep.subr.bf16.mxu0 %v2350_v34  ;;  %4365 = vmatprep.subr.bf16.mxu1 %v2352_v2  ;;  %v2431_v34 = vld [vmem:[#allocation3 + $0x5f0] sm:$0xff]  ;;  %v2438_v2 = vld [vmem:[#allocation3 + $0x628] sm:$0xff] }
 0x6ba   :  { %4022 = vmatpush1.bf16.msra.mxu0 %v2349_v5  ;;  %4366 = vmatpush1.bf16.msra.mxu1 %v2351_v39  ;;  %v2440_v5 = vld [vmem:[#allocation3 + $0x638] sm:$0xff]  ;;  %v2437_v39 = vld [vmem:[#allocation3 + $0x620] sm:$0xff] }
 0x6bb   :  { %4023 = vmatprep.subr.bf16.mxu0 %v2358_v43  ;;  %4367 = vmatprep.subr.bf16.mxu1 %v2360_v16  ;;  %v2439_v43 = vld [vmem:[#allocation3 + $0x630] sm:$0xff]  ;;  %v2446_v16 = vld [vmem:[#allocation3 + $0x668] sm:$0xff] }
 0x6be   :  { %4024 = vmatpush1.bf16.msra.mxu0 %v2357_v44  ;;  %4368 = vmatpush1.bf16.msra.mxu1 %v2359_v56  ;;  %v2448_v44 = vld [vmem:[#allocation3 + $0x678] sm:$0xff]  ;;  %v2445_v56 = vld [vmem:[#allocation3 + $0x660] sm:$0xff] }
 0x6bf   :  { %4025 = vmatprep.subr.bf16.mxu0 %v2366_v45  ;;  %4369 = vmatprep.subr.bf16.mxu1 %v2368_v46  ;;  %v2447_v45 = vld [vmem:[#allocation3 + $0x670] sm:$0xff]  ;;  %v2454_v46 = vld [vmem:[#allocation3 + $0x6a8] sm:$0xff] }
 0x6c2   :  { %4026 = vmatpush1.bf16.msra.mxu0 %v2365_v60  ;;  %4370 = vmatpush1.bf16.msra.mxu1 %v2367_v50  ;;  %v2456_v60 = vld [vmem:[#allocation3 + $0x6b8] sm:$0xff]  ;;  %v2453_v50 = vld [vmem:[#allocation3 + $0x6a0] sm:$0xff] }
 0x6c3   :  { %4038 = vmatprep.subr.bf16.mxu0 %v2374_v51  ;;  %4382 = vmatprep.subr.bf16.mxu1 %v2376_v54  ;;  %v2455_v51 = vld [vmem:[#allocation3 + $0x6b0] sm:$0xff]  ;;  %v2462_v54 = vld [vmem:[#allocation3 + $0x6e8] sm:$0xff] }
 0x6c5   :  { %4028 = vmatmul.mubr.bf16.vlgmr.msra.gmra.mrb[20].mxu0 %v7726_v52  ;;  %4372 = vmatmul.mubr.bf16.vlgmr.msra.gmra.mrb[20].mxu1 %v7726_v52  ;;  %v2400_v52 = vld [vmem:[#allocation3 + $0x4f8] sm:$0xff] }
 0x6c6   :  { %4039 = vmatpush1.bf16.msra.mxu0 %v2373_v55  ;;  %4383 = vmatpush1.bf16.msra.mxu1 %v2375_v58  ;;  %v2464_v55 = vld [vmem:[#allocation3 + $0x6f8] sm:$0xff]  ;;  %v2461_v58 = vld [vmem:[#allocation3 + $0x6e0] sm:$0xff] }
 0x6c7   :  { %4040 = vmatprep.subr.bf16.mxu0 %v2382_v59  ;;  %4384 = vmatprep.subr.bf16.mxu1 %v2384_v61  ;;  %v2463_v59 = vld [vmem:[#allocation3 + $0x6f0] sm:$0xff]  ;;  %v2470_v61 = vld [vmem:[#allocation3 + $0x728] sm:$0xff] }
 0x6c8   :  { %4070 = vmatprep.mubr.bf16.mxu0 %v7732_v57  ;;  %4414 = vmatprep.mubr.bf16.mxu1 %v7732_v57  ;;  %v2405_v57 = vld [vmem:[#allocation3 + $0x520] sm:$0xff] }
 0x6ca   :  { %4041 = vmatpush1.bf16.msra.mxu0 %v2381_v62  ;;  %4385 = vmatpush1.bf16.msra.mxu1 %v2383_v63  ;;  %v2472_v62 = vld [vmem:[#allocation3 + $0x738] sm:$0xff]  ;;  %v2469_v63 = vld [vmem:[#allocation3 + $0x720] sm:$0xff] }
 0x6cb   :  { %4042 = vmatprep.subr.bf16.mxu0 %v2390_v7  ;;  %4386 = vmatprep.subr.bf16.mxu1 %v2392_v23  ;;  %v2471_v7 = vld [vmem:[#allocation3 + $0x730] sm:$0xff]  ;;  %v2478_v23 = vld [vmem:[#allocation3 + $0x768] sm:$0xff] }
 0x6ce   :  { %4043 = vmatpush1.bf16.msra.mxu0 %v2389_v13  ;;  %4387 = vmatpush1.bf16.msra.mxu1 %v2391_v14  ;;  %v2480_v13 = vld [vmem:[#allocation3 + $0x778] sm:$0xff]  ;;  %v2477_v14 = vld [vmem:[#allocation3 + $0x760] sm:$0xff] }
 0x6cf   :  { %4044 = vmatprep.subr.bf16.mxu0 %v2398_v15  ;;  %4388 = vmatprep.subr.bf16.mxu1 %v2400_v52  ;;  %v2479_v15 = vld [vmem:[#allocation3 + $0x770] sm:$0xff]  ;;  %v2486_v52 = vld [vmem:[#allocation3 + $0x7a8] sm:$0xff] }
 0x6d2   :  { %4045 = vmatpush1.bf16.msra.mxu0 %v2397_v28  ;;  %4389 = vmatpush1.bf16.msra.mxu1 %v2399_v18  ;;  %v2488_v28 = vld [vmem:[#allocation3 + $0x7b8] sm:$0xff]  ;;  %v2485_v18 = vld [vmem:[#allocation3 + $0x7a0] sm:$0xff] }
 0x6d3   :  { %4046 = vmatprep.subr.bf16.mxu0 %v2406_v10  ;;  %4390 = vmatprep.subr.bf16.mxu1 %v2408_v19  ;;  %v2487_v10 = vld [vmem:[#allocation3 + $0x7b0] sm:$0xff]  ;;  %v2494_v19 = vld [vmem:[#allocation3 + $0x7e8] sm:$0xff] }
 0x6d6   :  { %4047 = vmatpush1.bf16.msra.mxu0 %v2405_v57  ;;  %4391 = vmatpush1.bf16.msra.mxu1 %v2407_v20  ;;  %v2496_v57 = vld [vmem:[#allocation3 + $0x7f8] sm:$0xff]  ;;  %v2493_v20 = vld [vmem:[#allocation3 + $0x7e0] sm:$0xff] }
 0x6d7   :  { %4048 = vmatprep.subr.bf16.mxu0 %v2414_v0  ;;  %4392 = vmatprep.subr.bf16.mxu1 %v2416_v3  ;;  %v2495_v0 = vld [vmem:[#allocation3 + $0x7f0] sm:$0xff]  ;;  %v2502_v3 = vld [vmem:[#allocation3 + $0x828] sm:$0xff] }
 0x6da   :  { %4049 = vmatpush1.bf16.msra.mxu0 %v2413_v22  ;;  %4393 = vmatpush1.bf16.msra.mxu1 %v2415_v17  ;;  %v2504_v22 = vld [vmem:[#allocation3 + $0x838] sm:$0xff]  ;;  %v2501_v17 = vld [vmem:[#allocation3 + $0x820] sm:$0xff] }
 0x6db   :  { %4050 = vmatprep.subr.bf16.mxu0 %v2422_v24  ;;  %4394 = vmatprep.subr.bf16.mxu1 %v2424_v25  ;;  %v2503_v24 = vld [vmem:[#allocation3 + $0x830] sm:$0xff]  ;;  %v2510_v25 = vld [vmem:[#allocation3 + $0x868] sm:$0xff] }
 0x6de   :  { %4051 = vmatpush1.bf16.msra.mxu0 %v2421_v26  ;;  %4395 = vmatpush1.bf16.msra.mxu1 %v2423_v27  ;;  %v2512_v26 = vld [vmem:[#allocation3 + $0x878] sm:$0xff]  ;;  %v2509_v27 = vld [vmem:[#allocation3 + $0x860] sm:$0xff] }
 0x6df   :  { %4052 = vmatprep.subr.bf16.mxu0 %v2430_v31  ;;  %4396 = vmatprep.subr.bf16.mxu1 %v2432_v32  ;;  %v2511_v31 = vld [vmem:[#allocation3 + $0x870] sm:$0xff]  ;;  %v2518_v32 = vld [vmem:[#allocation3 + $0x8a8] sm:$0xff] }
 0x6e2   :  { %4053 = vmatpush1.bf16.msra.mxu0 %v2429_v33  ;;  %4397 = vmatpush1.bf16.msra.mxu1 %v2431_v34  ;;  %v2520_v33 = vld [vmem:[#allocation3 + $0x8b8] sm:$0xff]  ;;  %v2517_v34 = vld [vmem:[#allocation3 + $0x8a0] sm:$0xff] }
 0x6e3   :  { %4054 = vmatprep.subr.bf16.mxu0 %v2438_v2  ;;  %4398 = vmatprep.subr.bf16.mxu1 %v2440_v5  ;;  %v2519_v2 = vld [vmem:[#allocation3 + $0x8b0] sm:$0xff]  ;;  %v2526_v5 = vld [vmem:[#allocation3 + $0x8e8] sm:$0xff] }
 0x6e6   :  { %4055 = vmatpush1.bf16.msra.mxu0 %v2437_v39  ;;  %4399 = vmatpush1.bf16.msra.mxu1 %v2439_v43  ;;  %v2525_v39 = vld [vmem:[#allocation3 + $0x8e0] sm:$0xff]  ;;  %v2527_v43 = vld [vmem:[#allocation3 + $0x8f0] sm:$0xff] }
 0x6e7   :  { %4056 = vmatprep.subr.bf16.mxu0 %v2446_v16  ;;  %4400 = vmatprep.subr.bf16.mxu1 %v2448_v44  ;;  %v2534_v16 = vld [vmem:[#allocation3 + $0x928] sm:$0xff]  ;;  %v2536_v44 = vld [vmem:[#allocation3 + $0x938] sm:$0xff] }
 0x6ea   :  { %4057 = vmatpush1.bf16.msra.mxu0 %v2445_v56  ;;  %4401 = vmatpush1.bf16.msra.mxu1 %v2447_v45  ;;  %v2535_v56 = vld [vmem:[#allocation3 + $0x930] sm:$0xff]  ;;  %v2542_v45 = vld [vmem:[#allocation3 + $0x968] sm:$0xff] }
 0x6eb   :  { %4058 = vmatprep.subr.bf16.mxu0 %v2454_v46  ;;  %4402 = vmatprep.subr.bf16.mxu1 %v2456_v60  ;;  %v2544_v46 = vld [vmem:[#allocation3 + $0x978] sm:$0xff]  ;;  %v2541_v60 = vld [vmem:[#allocation3 + $0x960] sm:$0xff] }
 0x6ee   :  { %4059 = vmatpush1.bf16.msra.mxu0 %v2453_v50  ;;  %4403 = vmatpush1.bf16.msra.mxu1 %v2455_v51  ;;  %v2543_v50 = vld [vmem:[#allocation3 + $0x970] sm:$0xff]  ;;  %v2550_v51 = vld [vmem:[#allocation3 + $0x9a8] sm:$0xff] }
 0x6ef   :  { %4060 = vmatprep.subr.bf16.mxu0 %v2462_v54  ;;  %4404 = vmatprep.subr.bf16.mxu1 %v2464_v55  ;;  %v2552_v54 = vld [vmem:[#allocation3 + $0x9b8] sm:$0xff]  ;;  %v2549_v55 = vld [vmem:[#allocation3 + $0x9a0] sm:$0xff] }
 0x6f2   :  { %4061 = vmatpush1.bf16.msra.mxu0 %v2461_v58  ;;  %4405 = vmatpush1.bf16.msra.mxu1 %v2463_v59  ;;  %v2551_v58 = vld [vmem:[#allocation3 + $0x9b0] sm:$0xff]  ;;  %v2558_v59 = vld [vmem:[#allocation3 + $0x9e8] sm:$0xff] }
 0x6f3   :  { %4062 = vmatprep.subr.bf16.mxu0 %v2470_v61  ;;  %4406 = vmatprep.subr.bf16.mxu1 %v2472_v62  ;;  %v2560_v61 = vld [vmem:[#allocation3 + $0x9f8] sm:$0xff]  ;;  %v2557_v62 = vld [vmem:[#allocation3 + $0x9e0] sm:$0xff] }
 0x6f6   :  { %4063 = vmatpush1.bf16.msra.mxu0 %v2469_v63  ;;  %4407 = vmatpush1.bf16.msra.mxu1 %v2471_v7  ;;  %v2559_v63 = vld [vmem:[#allocation3 + $0x9f0] sm:$0xff]  ;;  %v2566_v7 = vld [vmem:[#allocation3 + $0xa28] sm:$0xff] }
 0x6f7   :  { %4064 = vmatprep.subr.bf16.mxu0 %v2478_v23  ;;  %4408 = vmatprep.subr.bf16.mxu1 %v2480_v13  ;;  %v2568_v23 = vld [vmem:[#allocation3 + $0xa38] sm:$0xff]  ;;  %v2565_v13 = vld [vmem:[#allocation3 + $0xa20] sm:$0xff] }
 0x6fa   :  { %4065 = vmatpush1.bf16.msra.mxu0 %v2477_v14  ;;  %4409 = vmatpush1.bf16.msra.mxu1 %v2479_v15  ;;  %v2567_v14 = vld [vmem:[#allocation3 + $0xa30] sm:$0xff]  ;;  %v2574_v15 = vld [vmem:[#allocation3 + $0xa68] sm:$0xff] }
 0x6fb   :  { %4066 = vmatprep.subr.bf16.mxu0 %v2486_v52  ;;  %4410 = vmatprep.subr.bf16.mxu1 %v2488_v28  ;;  %v2576_v52 = vld [vmem:[#allocation3 + $0xa78] sm:$0xff]  ;;  %v2573_v28 = vld [vmem:[#allocation3 + $0xa60] sm:$0xff] }
 0x6fe   :  { %4067 = vmatpush1.bf16.msra.mxu0 %v2485_v18  ;;  %4411 = vmatpush1.bf16.msra.mxu1 %v2487_v10  ;;  %v2575_v18 = vld [vmem:[#allocation3 + $0xa70] sm:$0xff]  ;;  %v2582_v10 = vld [vmem:[#allocation3 + $0xaa8] sm:$0xff] }
 0x6ff   :  { %4068 = vmatprep.subr.bf16.mxu0 %v2494_v19  ;;  %4412 = vmatprep.subr.bf16.mxu1 %v2496_v57  ;;  %v2584_v19 = vld [vmem:[#allocation3 + $0xab8] sm:$0xff]  ;;  %v2581_v57 = vld [vmem:[#allocation3 + $0xaa0] sm:$0xff] }
 0x702   :  { %4069 = vmatpush1.bf16.msra.mxu0 %v2493_v20  ;;  %4413 = vmatpush1.bf16.msra.mxu1 %v2495_v0  ;;  %v2583_v20 = vld [vmem:[#allocation3 + $0xab0] sm:$0xff]  ;;  %v2590_v0 = vld [vmem:[#allocation3 + $0xae8] sm:$0xff] }
 0x703   :  { %4081 = vmatprep.subr.bf16.mxu0 %v2502_v3  ;;  %4425 = vmatprep.subr.bf16.mxu1 %v2504_v22  ;;  %v2592_v3 = vld [vmem:[#allocation3 + $0xaf8] sm:$0xff]  ;;  %v2589_v22 = vld [vmem:[#allocation3 + $0xae0] sm:$0xff] }
 0x705   :  { %4071 = vmatmul.mubr.bf16.vlgmr.msra.gmra.mrb[20].mxu0 %v7728_v53  ;;  %4415 = vmatmul.mubr.bf16.vlgmr.msra.gmra.mrb[20].mxu1 %v7728_v53  ;;  %v2528_v53 = vld [vmem:[#allocation3 + $0x8f8] sm:$0xff] }
 0x706   :  { %4082 = vmatpush1.bf16.msra.mxu0 %v2501_v17  ;;  %4426 = vmatpush1.bf16.msra.mxu1 %v2503_v24  ;;  %v2591_v17 = vld [vmem:[#allocation3 + $0xaf0] sm:$0xff]  ;;  %v2598_v24 = vld [vmem:[#allocation3 + $0xb28] sm:$0xff] }
 0x707   :  { %4083 = vmatprep.subr.bf16.mxu0 %v2510_v25  ;;  %4427 = vmatprep.subr.bf16.mxu1 %v2512_v26  ;;  %v2600_v25 = vld [vmem:[#allocation3 + $0xb38] sm:$0xff]  ;;  %v2597_v26 = vld [vmem:[#allocation3 + $0xb20] sm:$0xff] }
 0x708   :  { %4113 = vmatprep.mubr.bf16.mxu0 %v7770_v37  ;;  %4457 = vmatprep.mubr.bf16.mxu1 %v7770_v37  ;;  %v2533_v37 = vld [vmem:[#allocation3 + $0x920] sm:$0xff] }
 0x70a   :  { %4084 = vmatpush1.bf16.msra.mxu0 %v2509_v27  ;;  %4428 = vmatpush1.bf16.msra.mxu1 %v2511_v31  ;;  %v2599_v27 = vld [vmem:[#allocation3 + $0xb30] sm:$0xff]  ;;  %v2606_v31 = vld [vmem:[#allocation3 + $0xb68] sm:$0xff] }
 0x70b   :  { %4085 = vmatprep.subr.bf16.mxu0 %v2518_v32  ;;  %4429 = vmatprep.subr.bf16.mxu1 %v2520_v33  ;;  %v2608_v32 = vld [vmem:[#allocation3 + $0xb78] sm:$0xff]  ;;  %v2605_v33 = vld [vmem:[#allocation3 + $0xb60] sm:$0xff] }
 0x70e   :  { %4086 = vmatpush1.bf16.msra.mxu0 %v2517_v34  ;;  %4430 = vmatpush1.bf16.msra.mxu1 %v2519_v2  ;;  %v2607_v34 = vld [vmem:[#allocation3 + $0xb70] sm:$0xff]  ;;  %v2614_v2 = vld [vmem:[#allocation3 + $0xba8] sm:$0xff] }
 0x70f   :  { %4087 = vmatprep.subr.bf16.mxu0 %v2526_v5  ;;  %4431 = vmatprep.subr.bf16.mxu1 %v2528_v53  ;;  %v2616_v5 = vld [vmem:[#allocation3 + $0xbb8] sm:$0xff]  ;;  %v2613_v53 = vld [vmem:[#allocation3 + $0xba0] sm:$0xff] }
 0x712   :  { %4088 = vmatpush1.bf16.msra.mxu0 %v2525_v39  ;;  %4432 = vmatpush1.bf16.msra.mxu1 %v2527_v43  ;;  %v2615_v39 = vld [vmem:[#allocation3 + $0xbb0] sm:$0xff]  ;;  %v2622_v43 = vld [vmem:[#allocation3 + $0xbe8] sm:$0xff] }
 0x713   :  { %4089 = vmatprep.subr.bf16.mxu0 %v2534_v16  ;;  %4433 = vmatprep.subr.bf16.mxu1 %v2536_v44  ;;  %v2624_v16 = vld [vmem:[#allocation3 + $0xbf8] sm:$0xff]  ;;  %v2621_v44 = vld [vmem:[#allocation3 + $0xbe0] sm:$0xff] }
 0x716   :  { %4090 = vmatpush1.bf16.msra.mxu0 %v2533_v37  ;;  %4434 = vmatpush1.bf16.msra.mxu1 %v2535_v56  ;;  %v2623_v37 = vld [vmem:[#allocation3 + $0xbf0] sm:$0xff]  ;;  %v2630_v56 = vld [vmem:[#allocation3 + $0xc28] sm:$0xff] }
 0x717   :  { %4091 = vmatprep.subr.bf16.mxu0 %v2542_v45  ;;  %4435 = vmatprep.subr.bf16.mxu1 %v2544_v46  ;;  %v2632_v45 = vld [vmem:[#allocation3 + $0xc38] sm:$0xff]  ;;  %v2629_v46 = vld [vmem:[#allocation3 + $0xc20] sm:$0xff] }
 0x71a   :  { %4092 = vmatpush1.bf16.msra.mxu0 %v2541_v60  ;;  %4436 = vmatpush1.bf16.msra.mxu1 %v2543_v50  ;;  %v2631_v60 = vld [vmem:[#allocation3 + $0xc30] sm:$0xff]  ;;  %v2638_v50 = vld [vmem:[#allocation3 + $0xc68] sm:$0xff] }
 0x71b   :  { %4093 = vmatprep.subr.bf16.mxu0 %v2550_v51  ;;  %4437 = vmatprep.subr.bf16.mxu1 %v2552_v54  ;;  %v2640_v51 = vld [vmem:[#allocation3 + $0xc78] sm:$0xff]  ;;  %v2637_v54 = vld [vmem:[#allocation3 + $0xc60] sm:$0xff] }
 0x71e   :  { %4094 = vmatpush1.bf16.msra.mxu0 %v2549_v55  ;;  %4438 = vmatpush1.bf16.msra.mxu1 %v2551_v58  ;;  %v2639_v55 = vld [vmem:[#allocation3 + $0xc70] sm:$0xff]  ;;  %v2646_v58 = vld [vmem:[#allocation3 + $0xca8] sm:$0xff] }
 0x71f   :  { %4095 = vmatprep.subr.bf16.mxu0 %v2558_v59  ;;  %4439 = vmatprep.subr.bf16.mxu1 %v2560_v61  ;;  %v2648_v59 = vld [vmem:[#allocation3 + $0xcb8] sm:$0xff]  ;;  %v2645_v61 = vld [vmem:[#allocation3 + $0xca0] sm:$0xff] }
 0x722   :  { %4096 = vmatpush1.bf16.msra.mxu0 %v2557_v62  ;;  %4440 = vmatpush1.bf16.msra.mxu1 %v2559_v63  ;;  %v2647_v62 = vld [vmem:[#allocation3 + $0xcb0] sm:$0xff]  ;;  %v2654_v63 = vld [vmem:[#allocation3 + $0xce8] sm:$0xff] }
 0x723   :  { %4097 = vmatprep.subr.bf16.mxu0 %v2566_v7  ;;  %4441 = vmatprep.subr.bf16.mxu1 %v2568_v23  ;;  %v2653_v7 = vld [vmem:[#allocation3 + $0xce0] sm:$0xff]  ;;  %v2655_v23 = vld [vmem:[#allocation3 + $0xcf0] sm:$0xff] }
 0x726   :  { %4098 = vmatpush1.bf16.msra.mxu0 %v2565_v13  ;;  %4442 = vmatpush1.bf16.msra.mxu1 %v2567_v14  ;;  %v2662_v13 = vld [vmem:[#allocation3 + $0xd28] sm:$0xff]  ;;  %v2664_v14 = vld [vmem:[#allocation3 + $0xd38] sm:$0xff] }
 0x727   :  { %4099 = vmatprep.subr.bf16.mxu0 %v2574_v15  ;;  %4443 = vmatprep.subr.bf16.mxu1 %v2576_v52  ;;  %v3265_v15 = vld [vmem:[#allocation13] sm:$0xff]  ;;  %v2663_v52 = vld [vmem:[#allocation3 + $0xd30] sm:$0xff] }
 0x72a   :  { %4100 = vmatpush1.bf16.msra.mxu0 %v2573_v28  ;;  %4444 = vmatpush1.bf16.msra.mxu1 %v2575_v18  ;;  %v2670_v28 = vld [vmem:[#allocation3 + $0xd68] sm:$0xff]  ;;  %v2672_v18 = vld [vmem:[#allocation3 + $0xd78] sm:$0xff] }
 0x72b   :  { %4101 = vmatprep.subr.bf16.mxu0 %v2582_v10  ;;  %4445 = vmatprep.subr.bf16.mxu1 %v2584_v19  ;;  %v3270_v10 = vrot.slane %v3265_v15, %v7705_v8  ;;  %v3278_v19 = vrot.slane %v3265_v15, %v7708_v9 }
 0x72e   :  { %4102 = vmatpush1.bf16.msra.mxu0 %v2581_v57  ;;  %4446 = vmatpush1.bf16.msra.mxu1 %v2583_v20  ;;  %v3274_v57 = vrot.slane %v3265_v15, %v7713_v11  ;;  %v3282_v20 = vrot.slane %v3265_v15, %v7716_v12  ;;  %v2694_v15 = vld [vmem:[#allocation3 + $0xe28] sm:$0xff] }
 0x72f   :  { %4103 = vmatprep.subr.bf16.mxu0 %v2590_v0  ;;  %4447 = vmatprep.subr.bf16.mxu1 %v2592_v3  ;;  %v2669_v0 = vld [vmem:[#allocation3 + $0xd60] sm:$0xff]  ;;  %v2671_v3 = vld [vmem:[#allocation3 + $0xd70] sm:$0xff] }
 0x732   :  { %4104 = vmatpush1.bf16.msra.mxu0 %v2589_v22  ;;  %4448 = vmatpush1.bf16.msra.mxu1 %v2591_v17 }
 0x733   :  { %4105 = vmatprep.subr.bf16.mxu0 %v2598_v24  ;;  %4449 = vmatprep.subr.bf16.mxu1 %v2600_v25  ;;  %v2678_v24 = vld [vmem:[#allocation3 + $0xda8] sm:$0xff]  ;;  %v2680_v25 = vld [vmem:[#allocation3 + $0xdb8] sm:$0xff] }
 0x736   :  { %4106 = vmatpush1.bf16.msra.mxu0 %v2597_v26  ;;  %4450 = vmatpush1.bf16.msra.mxu1 %v2599_v27 }
 0x737   :  { %4107 = vmatprep.subr.bf16.mxu0 %v2606_v31  ;;  %4451 = vmatprep.subr.bf16.mxu1 %v2608_v32 }
 0x73a   :  { %4108 = vmatpush1.bf16.msra.mxu0 %v2605_v33  ;;  %4452 = vmatpush1.bf16.msra.mxu1 %v2607_v34 }
 0x73b   :  { %4109 = vmatprep.subr.bf16.mxu0 %v2614_v2  ;;  %4453 = vmatprep.subr.bf16.mxu1 %v2616_v5 }
 0x73e   :  { %4110 = vmatpush1.bf16.msra.mxu0 %v2613_v53  ;;  %4454 = vmatpush1.bf16.msra.mxu1 %v2615_v39 }
 0x73f   :  { %4111 = vmatprep.subr.bf16.mxu0 %v2622_v43  ;;  %4455 = vmatprep.subr.bf16.mxu1 %v2624_v16 }
 0x742   :  { %4112 = vmatpush1.bf16.msra.mxu0 %v2621_v44  ;;  %4456 = vmatpush1.bf16.msra.mxu1 %v2623_v37  ;;  %v2677_v44 = vld [vmem:[#allocation3 + $0xda0] sm:$0xff]  ;;  %v2679_v37 = vld [vmem:[#allocation3 + $0xdb0] sm:$0xff] }
 0x743   :  { %4124 = vmatprep.subr.bf16.mxu0 %v2630_v56  ;;  %4468 = vmatprep.subr.bf16.mxu1 %v2632_v45 }
 0x745   :  { %4114 = vmatmul.mubr.bf16.vlgmr.msra.gmra.mrb[20].mxu0 %v7766_v35  ;;  %4458 = vmatmul.mubr.bf16.vlgmr.msra.gmra.mrb[20].mxu1 %v7766_v35  ;;  %v2656_v35 = vld [vmem:[#allocation3 + $0xcf8] sm:$0xff] }
 0x746   :  { %4125 = vmatpush1.bf16.msra.mxu0 %v2629_v46  ;;  %4469 = vmatpush1.bf16.msra.mxu1 %v2631_v60  ;;  %v2686_v46 = vld [vmem:[#allocation3 + $0xde8] sm:$0xff]  ;;  %v2688_v60 = vld [vmem:[#allocation3 + $0xdf8] sm:$0xff] }
 0x747   :  { %4126 = vmatprep.subr.bf16.mxu0 %v2638_v50  ;;  %4470 = vmatprep.subr.bf16.mxu1 %v2640_v51 }
 0x748   :  { %4156 = vmatprep.mubr.bf16.mxu0 %v7772_v38  ;;  %4500 = vmatprep.mubr.bf16.mxu1 %v7772_v38  ;;  %v2661_v38 = vld [vmem:[#allocation3 + $0xd20] sm:$0xff] }
 0x74a   :  { %4127 = vmatpush1.bf16.msra.mxu0 %v2637_v54  ;;  %4471 = vmatpush1.bf16.msra.mxu1 %v2639_v55 }
 0x74b   :  { %4128 = vmatprep.subr.bf16.mxu0 %v2646_v58  ;;  %4472 = vmatprep.subr.bf16.mxu1 %v2648_v59 }
 0x74e   :  { %4129 = vmatpush1.bf16.msra.mxu0 %v2645_v61  ;;  %4473 = vmatpush1.bf16.msra.mxu1 %v2647_v62 }
 0x74f   :  { %4130 = vmatprep.subr.bf16.mxu0 %v2654_v63  ;;  %4474 = vmatprep.subr.bf16.mxu1 %v2656_v35 }
 0x752   :  { %4131 = vmatpush1.bf16.msra.mxu0 %v2653_v7  ;;  %4475 = vmatpush1.bf16.msra.mxu1 %v2655_v23  ;;  %v2685_v7 = vld [vmem:[#allocation3 + $0xde0] sm:$0xff]  ;;  %v2687_v23 = vld [vmem:[#allocation3 + $0xdf0] sm:$0xff] }
 0x753   :  { %4132 = vmatprep.subr.bf16.mxu0 %v2662_v13  ;;  %4476 = vmatprep.subr.bf16.mxu1 %v2664_v14 }
 0x756   :  { %4133 = vmatpush1.bf16.msra.mxu0 %v2661_v38  ;;  %4477 = vmatpush1.bf16.msra.mxu1 %v2663_v52  ;;  %v2696_v38 = vld [vmem:[#allocation3 + $0xe38] sm:$0xff]  ;;  %v2693_v52 = vld [vmem:[#allocation3 + $0xe20] sm:$0xff] }
 0x757   :  { %4134 = vmatprep.subr.bf16.mxu0 %v2670_v28  ;;  %4478 = vmatprep.subr.bf16.mxu1 %v2672_v18  ;;  %v2695_v28 = vld [vmem:[#allocation3 + $0xe30] sm:$0xff]  ;;  %v2702_v18 = vld [vmem:[#allocation3 + $0xe68] sm:$0xff] }
 0x758   :  { %v3642_v22 = vpop.f32.mrb[16].mxu0  ;;  %v3986_v17 = vpop.f32.mrb[16].mxu1 }
 0x759   :  { %v6904_v26 = vadd.f32 %v3642_v22, %v3270_v10  ;;  %v6908_v27 = vadd.f32 %v3986_v17, %v3278_v19  ;;  %v3644_v31 = vpop.f32.mrb[17].mxu0  ;;  %v3988_v32 = vpop.f32.mrb[17].mxu1  ;;  %v2711_v22 = vld [vmem:[#allocation3 + $0xeb0] sm:$0xff]  ;;  %v2718_v17 = vld [vmem:[#allocation3 + $0xee8] sm:$0xff] }
 0x75a   :  { %v6905_v33 = vadd.f32 %v3644_v31, %v3274_v57  ;;  %v6909_v34 = vadd.f32 %v3988_v32, %v3282_v20  ;;  %v3646_v2 = vpop.f32.mrb[18].mxu0  ;;  %v3990_v5 = vpop.f32.mrb[18].mxu1  ;;  %4135 = vmatpush1.bf16.msra.mxu0 %v2669_v0  ;;  %4479 = vmatpush1.bf16.msra.mxu1 %v2671_v3  ;;  %v2712_v0 = vld [vmem:[#allocation3 + $0xeb8] sm:$0xff]  ;;  %v2709_v3 = vld [vmem:[#allocation3 + $0xea0] sm:$0xff] }
 0x75b   :  { %v6906_v53 = vadd.f32 %v3646_v2, %v3270_v10  ;;  %v6910_v39 = vadd.f32 %v3990_v5, %v3278_v19  ;;  %v3648_v43 = vpop.f32.mrb[19].mxu0  ;;  %v3992_v16 = vpop.f32.mrb[19].mxu1  ;;  %4136 = vmatprep.subr.bf16.mxu0 %v2678_v24  ;;  %4480 = vmatprep.subr.bf16.mxu1 %v2680_v25  ;;  %v4683_v50 = vmax.f32 %v6904_v26, 0.0  ;;  %v4685_v51 = vmax.f32 %v6908_v27, 0.0  ;;  %v2704_v10 = vld [vmem:[#allocation3 + $0xe78] sm:$0xff]  ;;  %v2701_v19 = vld [vmem:[#allocation3 + $0xe60] sm:$0xff] }
 0x75c   :  { %v6907_v56 = vadd.f32 %v3648_v43, %v3274_v57  ;;  %v6911_v45 = vadd.f32 %v3992_v16, %v3282_v20  ;;  %v4684_v58 = vmax.f32 %v6905_v33, 0.0  ;;  %v4686_v59 = vmax.f32 %v6909_v34, 0.0  ;;  %v2703_v57 = vld [vmem:[#allocation3 + $0xe70] sm:$0xff]  ;;  %v2710_v20 = vld [vmem:[#allocation3 + $0xea8] sm:$0xff]  ;;  %v2720_v24 = vld [vmem:[#allocation3 + $0xef8] sm:$0xff] }
 0x75d   :  { %v4691_v54 = vmax.f32 %v6906_v53, 0.0  ;;  %v4693_v55 = vmax.f32 %v6910_v39, 0.0  ;;  %v2717_v25 = vld [vmem:[#allocation3 + $0xee0] sm:$0xff]  ;;  %v2719_v26 = vld [vmem:[#allocation3 + $0xef0] sm:$0xff]  ;;  %v2726_v27 = vld [vmem:[#allocation3 + $0xf28] sm:$0xff] }
 0x75e   :  { %v4692_v61 = vmax.f32 %v6907_v56, 0.0  ;;  %v4694_v62 = vmax.f32 %v6911_v45, 0.0  ;;  %4137 = vmatpush1.bf16.msra.mxu0 %v2677_v44  ;;  %4481 = vmatpush1.bf16.msra.mxu1 %v2679_v37  ;;  %v2728_v31 = vld [vmem:[#allocation3 + $0xf38] sm:$0xff]  ;;  %v2725_v32 = vld [vmem:[#allocation3 + $0xf20] sm:$0xff]  ;;  %v2727_v33 = vld [vmem:[#allocation3 + $0xf30] sm:$0xff] }
 0x75f   :  { %v7858_v63 = vpack.c.bf16 %v4691_v54, %v4683_v50  ;;  %v7860_v35 = vpack.c.bf16 %v4693_v55, %v4685_v51  ;;  %4138 = vmatprep.subr.bf16.mxu0 %v2686_v46  ;;  %4482 = vmatprep.subr.bf16.mxu1 %v2688_v60  ;;  %v2734_v34 = vld [vmem:[#allocation3 + $0xf68] sm:$0xff]  ;;  %v2736_v2 = vld [vmem:[#allocation3 + $0xf78] sm:$0xff]  ;;  %v2733_v5 = vld [vmem:[#allocation3 + $0xf60] sm:$0xff] }
 0x760   :  { %v7862_v13 = vpack.c.bf16 %v4692_v61, %v4684_v58  ;;  %v7864_v14 = vpack.c.bf16 %v4694_v62, %v4686_v59  ;;  %v2735_v53 = vld [vmem:[#allocation3 + $0xf70] sm:$0xff]  ;;  %v2742_v39 = vld [vmem:[#allocation3 + $0xfa8] sm:$0xff]  ;;  %v2744_v43 = vld [vmem:[#allocation3 + $0xfb8] sm:$0xff] }
 0x761   :  { %v2741_v16 = vld [vmem:[#allocation3 + $0xfa0] sm:$0xff]  ;;  %v2743_v44 = vld [vmem:[#allocation3 + $0xfb0] sm:$0xff]  ;;  %v2750_v37 = vld [vmem:[#allocation3 + $0xfe8] sm:$0xff] }
 0x762   :  { %4139 = vmatpush1.bf16.msra.mxu0 %v2685_v7  ;;  %4483 = vmatpush1.bf16.msra.mxu1 %v2687_v23  ;;  %v2752_v56 = vld [vmem:[#allocation3 + $0xff8] sm:$0xff]  ;;  %v2749_v45 = vld [vmem:[#allocation3 + $0xfe0] sm:$0xff]  ;;  %v2751_v46 = vld [vmem:[#allocation3 + $0xff0] sm:$0xff] }
 0x763   :  { %4140 = vmatprep.subr.bf16.mxu0 %v2694_v15  ;;  %4484 = vmatprep.subr.bf16.mxu1 %v2696_v38  ;;  %v2758_v60 = vld [vmem:[#allocation3 + $0x1028] sm:$0xff]  ;;  %v2760_v50 = vld [vmem:[#allocation3 + $0x1038] sm:$0xff]  ;;  %v2757_v51 = vld [vmem:[#allocation3 + $0x1020] sm:$0xff] }
 0x764   :  { %v2759_v54 = vld [vmem:[#allocation3 + $0x1030] sm:$0xff]  ;;  %v2766_v55 = vld [vmem:[#allocation3 + $0x1068] sm:$0xff]  ;;  %v2768_v58 = vld [vmem:[#allocation3 + $0x1078] sm:$0xff] }
 0x765   :  { %v2765_v59 = vld [vmem:[#allocation3 + $0x1060] sm:$0xff]  ;;  %v2767_v61 = vld [vmem:[#allocation3 + $0x1070] sm:$0xff]  ;;  %v2774_v62 = vld [vmem:[#allocation3 + $0x10a8] sm:$0xff] }
 0x766   :  { %4141 = vmatpush1.bf16.msra.mxu0 %v2693_v52  ;;  %4485 = vmatpush1.bf16.msra.mxu1 %v2695_v28  ;;  %v2776_v7 = vld [vmem:[#allocation3 + $0x10b8] sm:$0xff]  ;;  %v2773_v23 = vld [vmem:[#allocation3 + $0x10a0] sm:$0xff]  ;;  %v2775_v15 = vld [vmem:[#allocation3 + $0x10b0] sm:$0xff] }
 0x767   :  { %4142 = vmatprep.subr.bf16.mxu0 %v2702_v18  ;;  %4486 = vmatprep.subr.bf16.mxu1 %v2704_v10  ;;  %v2782_v38 = vld [vmem:[#allocation3 + $0x10e8] sm:$0xff]  ;;  %v2781_v52 = vld [vmem:[#allocation3 + $0x10e0] sm:$0xff]  ;;  %v2783_v28 = vld [vmem:[#allocation3 + $0x10f0] sm:$0xff] }
 0x768   :  { %v2790_v18 = vld [vmem:[#allocation3 + $0x1128] sm:$0xff]  ;;  %v2792_v10 = vld [vmem:[#allocation3 + $0x1138] sm:$0xff] }
 0x76a   :  { %4143 = vmatpush1.bf16.msra.mxu0 %v2701_v19  ;;  %4487 = vmatpush1.bf16.msra.mxu1 %v2703_v57  ;;  %v2791_v19 = vld [vmem:[#allocation3 + $0x1130] sm:$0xff]  ;;  %v2798_v57 = vld [vmem:[#allocation3 + $0x1168] sm:$0xff] }
 0x76b   :  { %4144 = vmatprep.subr.bf16.mxu0 %v2710_v20  ;;  %4488 = vmatprep.subr.bf16.mxu1 %v2712_v0  ;;  %v2800_v20 = vld [vmem:[#allocation3 + $0x1178] sm:$0xff]  ;;  %v2797_v0 = vld [vmem:[#allocation3 + $0x1160] sm:$0xff] }
 0x76e   :  { %4145 = vmatpush1.bf16.msra.mxu0 %v2709_v3  ;;  %4489 = vmatpush1.bf16.msra.mxu1 %v2711_v22  ;;  %v2799_v3 = vld [vmem:[#allocation3 + $0x1170] sm:$0xff]  ;;  %v2806_v22 = vld [vmem:[#allocation3 + $0x11a8] sm:$0xff] }
 0x76f   :  { %4146 = vmatprep.subr.bf16.mxu0 %v2718_v17  ;;  %4490 = vmatprep.subr.bf16.mxu1 %v2720_v24  ;;  %v2808_v17 = vld [vmem:[#allocation3 + $0x11b8] sm:$0xff]  ;;  %v2805_v24 = vld [vmem:[#allocation3 + $0x11a0] sm:$0xff] }
 0x772   :  { %4147 = vmatpush1.bf16.msra.mxu0 %v2717_v25  ;;  %4491 = vmatpush1.bf16.msra.mxu1 %v2719_v26  ;;  %v2807_v25 = vld [vmem:[#allocation3 + $0x11b0] sm:$0xff]  ;;  %v2814_v26 = vld [vmem:[#allocation3 + $0x11e8] sm:$0xff] }
 0x773   :  { %4148 = vmatprep.subr.bf16.mxu0 %v2726_v27  ;;  %4492 = vmatprep.subr.bf16.mxu1 %v2728_v31  ;;  %v2816_v27 = vld [vmem:[#allocation3 + $0x11f8] sm:$0xff]  ;;  %v2813_v31 = vld [vmem:[#allocation3 + $0x11e0] sm:$0xff] }
 0x776   :  { %4149 = vmatpush1.bf16.msra.mxu0 %v2725_v32  ;;  %4493 = vmatpush1.bf16.msra.mxu1 %v2727_v33  ;;  %v2815_v32 = vld [vmem:[#allocation3 + $0x11f0] sm:$0xff]  ;;  %v2822_v33 = vld [vmem:[#allocation3 + $0x1228] sm:$0xff] }
 0x777   :  { %4150 = vmatprep.subr.bf16.mxu0 %v2734_v34  ;;  %4494 = vmatprep.subr.bf16.mxu1 %v2736_v2  ;;  %v2824_v34 = vld [vmem:[#allocation3 + $0x1238] sm:$0xff]  ;;  %v2821_v2 = vld [vmem:[#allocation3 + $0x1220] sm:$0xff] }
 0x77a   :  { %4151 = vmatpush1.bf16.msra.mxu0 %v2733_v5  ;;  %4495 = vmatpush1.bf16.msra.mxu1 %v2735_v53  ;;  %v2823_v5 = vld [vmem:[#allocation3 + $0x1230] sm:$0xff]  ;;  %v2830_v53 = vld [vmem:[#allocation3 + $0x1268] sm:$0xff] }
 0x77b   :  { %4152 = vmatprep.subr.bf16.mxu0 %v2742_v39  ;;  %4496 = vmatprep.subr.bf16.mxu1 %v2744_v43  ;;  %v2832_v39 = vld [vmem:[#allocation3 + $0x1278] sm:$0xff]  ;;  %v2829_v43 = vld [vmem:[#allocation3 + $0x1260] sm:$0xff] }
 0x77e   :  { %4153 = vmatpush1.bf16.msra.mxu0 %v2741_v16  ;;  %4497 = vmatpush1.bf16.msra.mxu1 %v2743_v44  ;;  %v2831_v16 = vld [vmem:[#allocation3 + $0x1270] sm:$0xff]  ;;  %v2838_v44 = vld [vmem:[#allocation3 + $0x12a8] sm:$0xff] }
 0x77f   :  { %4154 = vmatprep.subr.bf16.mxu0 %v2750_v37  ;;  %4498 = vmatprep.subr.bf16.mxu1 %v2752_v56  ;;  %v2840_v37 = vld [vmem:[#allocation3 + $0x12b8] sm:$0xff]  ;;  %v2837_v56 = vld [vmem:[#allocation3 + $0x12a0] sm:$0xff] }
 0x782   :  { %4155 = vmatpush1.bf16.msra.mxu0 %v2749_v45  ;;  %4499 = vmatpush1.bf16.msra.mxu1 %v2751_v46  ;;  %v2839_v45 = vld [vmem:[#allocation3 + $0x12b0] sm:$0xff]  ;;  %v2846_v46 = vld [vmem:[#allocation3 + $0x12e8] sm:$0xff] }
 0x783   :  { %4167 = vmatprep.subr.bf16.mxu0 %v2758_v60  ;;  %4511 = vmatprep.subr.bf16.mxu1 %v2760_v50  ;;  %v2848_v60 = vld [vmem:[#allocation3 + $0x12f8] sm:$0xff]  ;;  %v2845_v50 = vld [vmem:[#allocation3 + $0x12e0] sm:$0xff] }
 0x785   :  { %4157 = vmatmul.mubr.bf16.vlgmr.msra.gmra.mrb[20].mxu0 %v7768_v36  ;;  %4501 = vmatmul.mubr.bf16.vlgmr.msra.gmra.mrb[20].mxu1 %v7768_v36  ;;  %v2784_v36 = vld [vmem:[#allocation3 + $0x10f8] sm:$0xff] }
 0x786   :  { %4168 = vmatpush1.bf16.msra.mxu0 %v2757_v51  ;;  %4512 = vmatpush1.bf16.msra.mxu1 %v2759_v54  ;;  %v2847_v51 = vld [vmem:[#allocation3 + $0x12f0] sm:$0xff]  ;;  %v2854_v54 = vld [vmem:[#allocation3 + $0x1328] sm:$0xff] }
 0x787   :  { %4169 = vmatprep.subr.bf16.mxu0 %v2766_v55  ;;  %4513 = vmatprep.subr.bf16.mxu1 %v2768_v58  ;;  %v2856_v55 = vld [vmem:[#allocation3 + $0x1338] sm:$0xff]  ;;  %v2853_v58 = vld [vmem:[#allocation3 + $0x1320] sm:$0xff] }
 0x788   :  { %4199 = vmatprep.mubr.bf16.mxu0 %v7792_v48  ;;  %4543 = vmatprep.mubr.bf16.mxu1 %v7792_v48  ;;  %v2789_v48 = vld [vmem:[#allocation3 + $0x1120] sm:$0xff] }
 0x78a   :  { %4170 = vmatpush1.bf16.msra.mxu0 %v2765_v59  ;;  %4514 = vmatpush1.bf16.msra.mxu1 %v2767_v61  ;;  %v2855_v59 = vld [vmem:[#allocation3 + $0x1330] sm:$0xff]  ;;  %v2862_v61 = vld [vmem:[#allocation3 + $0x1368] sm:$0xff] }
 0x78b   :  { %4171 = vmatprep.subr.bf16.mxu0 %v2774_v62  ;;  %4515 = vmatprep.subr.bf16.mxu1 %v2776_v7  ;;  %v2864_v62 = vld [vmem:[#allocation3 + $0x1378] sm:$0xff]  ;;  %v2861_v7 = vld [vmem:[#allocation3 + $0x1360] sm:$0xff] }
 0x78e   :  { %4172 = vmatpush1.bf16.msra.mxu0 %v2773_v23  ;;  %4516 = vmatpush1.bf16.msra.mxu1 %v2775_v15  ;;  %v2863_v23 = vld [vmem:[#allocation3 + $0x1370] sm:$0xff]  ;;  %v2870_v15 = vld [vmem:[#allocation3 + $0x13a8] sm:$0xff] }
 0x78f   :  { %4173 = vmatprep.subr.bf16.mxu0 %v2782_v38  ;;  %4517 = vmatprep.subr.bf16.mxu1 %v2784_v36  ;;  %v2872_v38 = vld [vmem:[#allocation3 + $0x13b8] sm:$0xff]  ;;  %v2869_v36 = vld [vmem:[#allocation3 + $0x13a0] sm:$0xff] }
 0x792   :  { %4174 = vmatpush1.bf16.msra.mxu0 %v2781_v52  ;;  %4518 = vmatpush1.bf16.msra.mxu1 %v2783_v28  ;;  %v2871_v52 = vld [vmem:[#allocation3 + $0x13b0] sm:$0xff]  ;;  %v2878_v28 = vld [vmem:[#allocation3 + $0x13e8] sm:$0xff] }
 0x793   :  { %4175 = vmatprep.subr.bf16.mxu0 %v2790_v18  ;;  %4519 = vmatprep.subr.bf16.mxu1 %v2792_v10  ;;  %v2880_v18 = vld [vmem:[#allocation3 + $0x13f8] sm:$0xff]  ;;  %v2877_v10 = vld [vmem:[#allocation3 + $0x13e0] sm:$0xff] }
 0x796   :  { %4176 = vmatpush1.bf16.msra.mxu0 %v2789_v48  ;;  %4520 = vmatpush1.bf16.msra.mxu1 %v2791_v19  ;;  %v2879_v48 = vld [vmem:[#allocation3 + $0x13f0] sm:$0xff]  ;;  %v2886_v19 = vld [vmem:[#allocation3 + $0x1428] sm:$0xff] }
 0x797   :  { %4177 = vmatprep.subr.bf16.mxu0 %v2798_v57  ;;  %4521 = vmatprep.subr.bf16.mxu1 %v2800_v20  ;;  %v2888_v57 = vld [vmem:[#allocation3 + $0x1438] sm:$0xff]  ;;  %v2885_v20 = vld [vmem:[#allocation3 + $0x1420] sm:$0xff] }
 0x79a   :  { %4178 = vmatpush1.bf16.msra.mxu0 %v2797_v0  ;;  %4522 = vmatpush1.bf16.msra.mxu1 %v2799_v3  ;;  %v2887_v0 = vld [vmem:[#allocation3 + $0x1430] sm:$0xff]  ;;  %v2894_v3 = vld [vmem:[#allocation3 + $0x1468] sm:$0xff] }
 0x79b   :  { %4179 = vmatprep.subr.bf16.mxu0 %v2806_v22  ;;  %4523 = vmatprep.subr.bf16.mxu1 %v2808_v17  ;;  %v2896_v22 = vld [vmem:[#allocation3 + $0x1478] sm:$0xff]  ;;  %v2893_v17 = vld [vmem:[#allocation3 + $0x1460] sm:$0xff] }
 0x79e   :  { %4180 = vmatpush1.bf16.msra.mxu0 %v2805_v24  ;;  %4524 = vmatpush1.bf16.msra.mxu1 %v2807_v25  ;;  %v2895_v24 = vld [vmem:[#allocation3 + $0x1470] sm:$0xff]  ;;  %v2902_v25 = vld [vmem:[#allocation3 + $0x14a8] sm:$0xff] }
 0x79f   :  { %4181 = vmatprep.subr.bf16.mxu0 %v2814_v26  ;;  %4525 = vmatprep.subr.bf16.mxu1 %v2816_v27  ;;  %v2904_v26 = vld [vmem:[#allocation3 + $0x14b8] sm:$0xff]  ;;  %v2901_v27 = vld [vmem:[#allocation3 + $0x14a0] sm:$0xff] }
 0x7a2   :  { %4182 = vmatpush1.bf16.msra.mxu0 %v2813_v31  ;;  %4526 = vmatpush1.bf16.msra.mxu1 %v2815_v32  ;;  %v2903_v31 = vld [vmem:[#allocation3 + $0x14b0] sm:$0xff]  ;;  %v2910_v32 = vld [vmem:[#allocation3 + $0x14e8] sm:$0xff] }
 0x7a3   :  { %4183 = vmatprep.subr.bf16.mxu0 %v2822_v33  ;;  %4527 = vmatprep.subr.bf16.mxu1 %v2824_v34  ;;  %v2909_v33 = vld [vmem:[#allocation3 + $0x14e0] sm:$0xff]  ;;  %v2911_v34 = vld [vmem:[#allocation3 + $0x14f0] sm:$0xff] }
 0x7a6   :  { %4184 = vmatpush1.bf16.msra.mxu0 %v2821_v2  ;;  %4528 = vmatpush1.bf16.msra.mxu1 %v2823_v5  ;;  %v2918_v2 = vld [vmem:[#allocation3 + $0x1528] sm:$0xff]  ;;  %v2920_v5 = vld [vmem:[#allocation3 + $0x1538] sm:$0xff] }
 0x7a7   :  { %4185 = vmatprep.subr.bf16.mxu0 %v2830_v53  ;;  %4529 = vmatprep.subr.bf16.mxu1 %v2832_v39  ;;  %v2919_v53 = vld [vmem:[#allocation3 + $0x1530] sm:$0xff]  ;;  %v2926_v39 = vld [vmem:[#allocation3 + $0x1568] sm:$0xff] }
 0x7aa   :  { %4186 = vmatpush1.bf16.msra.mxu0 %v2829_v43  ;;  %4530 = vmatpush1.bf16.msra.mxu1 %v2831_v16  ;;  %v2928_v43 = vld [vmem:[#allocation3 + $0x1578] sm:$0xff]  ;;  %v2925_v16 = vld [vmem:[#allocation3 + $0x1560] sm:$0xff] }
 0x7ab   :  { %4187 = vmatprep.subr.bf16.mxu0 %v2838_v44  ;;  %4531 = vmatprep.subr.bf16.mxu1 %v2840_v37  ;;  %v2927_v44 = vld [vmem:[#allocation3 + $0x1570] sm:$0xff]  ;;  %v2934_v37 = vld [vmem:[#allocation3 + $0x15a8] sm:$0xff] }
 0x7ae   :  { %4188 = vmatpush1.bf16.msra.mxu0 %v2837_v56  ;;  %4532 = vmatpush1.bf16.msra.mxu1 %v2839_v45  ;;  %v2936_v56 = vld [vmem:[#allocation3 + $0x15b8] sm:$0xff]  ;;  %v2933_v45 = vld [vmem:[#allocation3 + $0x15a0] sm:$0xff] }
 0x7af   :  { %4189 = vmatprep.subr.bf16.mxu0 %v2846_v46  ;;  %4533 = vmatprep.subr.bf16.mxu1 %v2848_v60  ;;  %v2935_v46 = vld [vmem:[#allocation3 + $0x15b0] sm:$0xff]  ;;  %v2942_v60 = vld [vmem:[#allocation3 + $0x15e8] sm:$0xff] }
 0x7b2   :  { %4190 = vmatpush1.bf16.msra.mxu0 %v2845_v50  ;;  %4534 = vmatpush1.bf16.msra.mxu1 %v2847_v51  ;;  %v2944_v50 = vld [vmem:[#allocation3 + $0x15f8] sm:$0xff]  ;;  %v2941_v51 = vld [vmem:[#allocation3 + $0x15e0] sm:$0xff] }
 0x7b3   :  { %4191 = vmatprep.subr.bf16.mxu0 %v2854_v54  ;;  %4535 = vmatprep.subr.bf16.mxu1 %v2856_v55  ;;  %v2943_v54 = vld [vmem:[#allocation3 + $0x15f0] sm:$0xff]  ;;  %v2950_v55 = vld [vmem:[#allocation3 + $0x1628] sm:$0xff] }
 0x7b6   :  { %4192 = vmatpush1.bf16.msra.mxu0 %v2853_v58  ;;  %4536 = vmatpush1.bf16.msra.mxu1 %v2855_v59  ;;  %v2952_v58 = vld [vmem:[#allocation3 + $0x1638] sm:$0xff]  ;;  %v2949_v59 = vld [vmem:[#allocation3 + $0x1620] sm:$0xff] }
 0x7b7   :  { %4193 = vmatprep.subr.bf16.mxu0 %v2862_v61  ;;  %4537 = vmatprep.subr.bf16.mxu1 %v2864_v62  ;;  %v2951_v61 = vld [vmem:[#allocation3 + $0x1630] sm:$0xff]  ;;  %v2958_v62 = vld [vmem:[#allocation3 + $0x1668] sm:$0xff] }
 0x7ba   :  { %4194 = vmatpush1.bf16.msra.mxu0 %v2861_v7  ;;  %4538 = vmatpush1.bf16.msra.mxu1 %v2863_v23  ;;  %v2960_v7 = vld [vmem:[#allocation3 + $0x1678] sm:$0xff]  ;;  %v2957_v23 = vld [vmem:[#allocation3 + $0x1660] sm:$0xff] }
 0x7bb   :  { %4195 = vmatprep.subr.bf16.mxu0 %v2870_v15  ;;  %4539 = vmatprep.subr.bf16.mxu1 %v2872_v38  ;;  %v2959_v15 = vld [vmem:[#allocation3 + $0x1670] sm:$0xff]  ;;  %v2966_v38 = vld [vmem:[#allocation3 + $0x16a8] sm:$0xff] }
 0x7be   :  { %4196 = vmatpush1.bf16.msra.mxu0 %v2869_v36  ;;  %4540 = vmatpush1.bf16.msra.mxu1 %v2871_v52  ;;  %v2968_v36 = vld [vmem:[#allocation3 + $0x16b8] sm:$0xff]  ;;  %v2965_v52 = vld [vmem:[#allocation3 + $0x16a0] sm:$0xff] }
 0x7bf   :  { %4197 = vmatprep.subr.bf16.mxu0 %v2878_v28  ;;  %4541 = vmatprep.subr.bf16.mxu1 %v2880_v18  ;;  %v2967_v28 = vld [vmem:[#allocation3 + $0x16b0] sm:$0xff]  ;;  %v2974_v18 = vld [vmem:[#allocation3 + $0x16e8] sm:$0xff] }
 0x7c2   :  { %4198 = vmatpush1.bf16.msra.mxu0 %v2877_v10  ;;  %4542 = vmatpush1.bf16.msra.mxu1 %v2879_v48  ;;  %v2976_v10 = vld [vmem:[#allocation3 + $0x16f8] sm:$0xff]  ;;  %v2973_v48 = vld [vmem:[#allocation3 + $0x16e0] sm:$0xff] }
 0x7c3   :  { %4210 = vmatprep.subr.bf16.mxu0 %v2886_v19  ;;  %4554 = vmatprep.subr.bf16.mxu1 %v2888_v57  ;;  %v2975_v19 = vld [vmem:[#allocation3 + $0x16f0] sm:$0xff]  ;;  %v2982_v57 = vld [vmem:[#allocation3 + $0x1728] sm:$0xff] }
 0x7c5   :  { %4200 = vmatmul.mubr.bf16.vlgmr.msra.gmra.mrb[20].mxu0 %v7788_v47  ;;  %4544 = vmatmul.mubr.bf16.vlgmr.msra.gmra.mrb[20].mxu1 %v7788_v47  ;;  %v2912_v47 = vld [vmem:[#allocation3 + $0x14f8] sm:$0xff] }
 0x7c6   :  { %4211 = vmatpush1.bf16.msra.mxu0 %v2885_v20  ;;  %4555 = vmatpush1.bf16.msra.mxu1 %v2887_v0  ;;  %v2984_v20 = vld [vmem:[#allocation3 + $0x1738] sm:$0xff]  ;;  %v2981_v0 = vld [vmem:[#allocation3 + $0x1720] sm:$0xff] }
 0x7c7   :  { %4212 = vmatprep.subr.bf16.mxu0 %v2894_v3  ;;  %4556 = vmatprep.subr.bf16.mxu1 %v2896_v22  ;;  %v2983_v3 = vld [vmem:[#allocation3 + $0x1730] sm:$0xff]  ;;  %v2990_v22 = vld [vmem:[#allocation3 + $0x1768] sm:$0xff] }
 0x7c8   :  { %4242 = vmatprep.mubr.bf16.mxu0 %v7794_v49  ;;  %4586 = vmatprep.mubr.bf16.mxu1 %v7794_v49  ;;  %v2917_v49 = vld [vmem:[#allocation3 + $0x1520] sm:$0xff] }
 0x7ca   :  { %4213 = vmatpush1.bf16.msra.mxu0 %v2893_v17  ;;  %4557 = vmatpush1.bf16.msra.mxu1 %v2895_v24  ;;  %v2992_v17 = vld [vmem:[#allocation3 + $0x1778] sm:$0xff]  ;;  %v2989_v24 = vld [vmem:[#allocation3 + $0x1760] sm:$0xff] }
 0x7cb   :  { %4214 = vmatprep.subr.bf16.mxu0 %v2902_v25  ;;  %4558 = vmatprep.subr.bf16.mxu1 %v2904_v26  ;;  %v2991_v25 = vld [vmem:[#allocation3 + $0x1770] sm:$0xff]  ;;  %v2998_v26 = vld [vmem:[#allocation3 + $0x17a8] sm:$0xff] }
 0x7ce   :  { %4215 = vmatpush1.bf16.msra.mxu0 %v2901_v27  ;;  %4559 = vmatpush1.bf16.msra.mxu1 %v2903_v31  ;;  %v3000_v27 = vld [vmem:[#allocation3 + $0x17b8] sm:$0xff]  ;;  %v2997_v31 = vld [vmem:[#allocation3 + $0x17a0] sm:$0xff] }
 0x7cf   :  { %4216 = vmatprep.subr.bf16.mxu0 %v2910_v32  ;;  %4560 = vmatprep.subr.bf16.mxu1 %v2912_v47  ;;  %v2999_v32 = vld [vmem:[#allocation3 + $0x17b0] sm:$0xff]  ;;  %v3006_v47 = vld [vmem:[#allocation3 + $0x17e8] sm:$0xff] }
 0x7d2   :  { %4217 = vmatpush1.bf16.msra.mxu0 %v2909_v33  ;;  %4561 = vmatpush1.bf16.msra.mxu1 %v2911_v34  ;;  %v3008_v33 = vld [vmem:[#allocation3 + $0x17f8] sm:$0xff]  ;;  %v3005_v34 = vld [vmem:[#allocation3 + $0x17e0] sm:$0xff] }
 0x7d3   :  { %4218 = vmatprep.subr.bf16.mxu0 %v2918_v2  ;;  %4562 = vmatprep.subr.bf16.mxu1 %v2920_v5  ;;  %v3007_v2 = vld [vmem:[#allocation3 + $0x17f0] sm:$0xff]  ;;  %v3014_v5 = vld [vmem:[#allocation3 + $0x1828] sm:$0xff] }
 0x7d6   :  { %4219 = vmatpush1.bf16.msra.mxu0 %v2917_v49  ;;  %4563 = vmatpush1.bf16.msra.mxu1 %v2919_v53  ;;  %v3016_v49 = vld [vmem:[#allocation3 + $0x1838] sm:$0xff]  ;;  %v3013_v53 = vld [vmem:[#allocation3 + $0x1820] sm:$0xff] }
 0x7d7   :  { %4220 = vmatprep.subr.bf16.mxu0 %v2926_v39  ;;  %4564 = vmatprep.subr.bf16.mxu1 %v2928_v43  ;;  %v3015_v39 = vld [vmem:[#allocation3 + $0x1830] sm:$0xff]  ;;  %v3022_v43 = vld [vmem:[#allocation3 + $0x1868] sm:$0xff] }
 0x7da   :  { %4221 = vmatpush1.bf16.msra.mxu0 %v2925_v16  ;;  %4565 = vmatpush1.bf16.msra.mxu1 %v2927_v44  ;;  %v3024_v16 = vld [vmem:[#allocation3 + $0x1878] sm:$0xff]  ;;  %v3021_v44 = vld [vmem:[#allocation3 + $0x1860] sm:$0xff] }
 0x7db   :  { %4222 = vmatprep.subr.bf16.mxu0 %v2934_v37  ;;  %4566 = vmatprep.subr.bf16.mxu1 %v2936_v56  ;;  %v3023_v37 = vld [vmem:[#allocation3 + $0x1870] sm:$0xff]  ;;  %v3030_v56 = vld [vmem:[#allocation3 + $0x18a8] sm:$0xff] }
 0x7de   :  { %4223 = vmatpush1.bf16.msra.mxu0 %v2933_v45  ;;  %4567 = vmatpush1.bf16.msra.mxu1 %v2935_v46  ;;  %v3032_v45 = vld [vmem:[#allocation3 + $0x18b8] sm:$0xff]  ;;  %v3029_v46 = vld [vmem:[#allocation3 + $0x18a0] sm:$0xff] }
 0x7df   :  { %4224 = vmatprep.subr.bf16.mxu0 %v2942_v60  ;;  %4568 = vmatprep.subr.bf16.mxu1 %v2944_v50  ;;  %v3031_v60 = vld [vmem:[#allocation3 + $0x18b0] sm:$0xff]  ;;  %v3038_v50 = vld [vmem:[#allocation3 + $0x18e8] sm:$0xff] }
 0x7e2   :  { %4225 = vmatpush1.bf16.msra.mxu0 %v2941_v51  ;;  %4569 = vmatpush1.bf16.msra.mxu1 %v2943_v54  ;;  %v3037_v51 = vld [vmem:[#allocation3 + $0x18e0] sm:$0xff]  ;;  %v3039_v54 = vld [vmem:[#allocation3 + $0x18f0] sm:$0xff] }
 0x7e3   :  { %4226 = vmatprep.subr.bf16.mxu0 %v2950_v55  ;;  %4570 = vmatprep.subr.bf16.mxu1 %v2952_v58  ;;  %v3046_v55 = vld [vmem:[#allocation3 + $0x1928] sm:$0xff]  ;;  %v3048_v58 = vld [vmem:[#allocation3 + $0x1938] sm:$0xff] }
 0x7e6   :  { %4227 = vmatpush1.bf16.msra.mxu0 %v2949_v59  ;;  %4571 = vmatpush1.bf16.msra.mxu1 %v2951_v61  ;;  %v3047_v59 = vld [vmem:[#allocation3 + $0x1930] sm:$0xff]  ;;  %v3054_v61 = vld [vmem:[#allocation3 + $0x1968] sm:$0xff] }
 0x7e7   :  { %4228 = vmatprep.subr.bf16.mxu0 %v2958_v62  ;;  %4572 = vmatprep.subr.bf16.mxu1 %v2960_v7  ;;  %v3056_v62 = vld [vmem:[#allocation3 + $0x1978] sm:$0xff]  ;;  %v3053_v7 = vld [vmem:[#allocation3 + $0x1960] sm:$0xff] }
 0x7ea   :  { %4229 = vmatpush1.bf16.msra.mxu0 %v2957_v23  ;;  %4573 = vmatpush1.bf16.msra.mxu1 %v2959_v15  ;;  %v3055_v23 = vld [vmem:[#allocation3 + $0x1970] sm:$0xff]  ;;  %v3062_v15 = vld [vmem:[#allocation3 + $0x19a8] sm:$0xff] }
 0x7eb   :  { %4230 = vmatprep.subr.bf16.mxu0 %v2966_v38  ;;  %4574 = vmatprep.subr.bf16.mxu1 %v2968_v36  ;;  %v3064_v38 = vld [vmem:[#allocation3 + $0x19b8] sm:$0xff]  ;;  %v3061_v36 = vld [vmem:[#allocation3 + $0x19a0] sm:$0xff] }
 0x7ee   :  { %4231 = vmatpush1.bf16.msra.mxu0 %v2965_v52  ;;  %4575 = vmatpush1.bf16.msra.mxu1 %v2967_v28  ;;  %v3063_v52 = vld [vmem:[#allocation3 + $0x19b0] sm:$0xff]  ;;  %v3070_v28 = vld [vmem:[#allocation3 + $0x19e8] sm:$0xff] }
 0x7ef   :  { %4232 = vmatprep.subr.bf16.mxu0 %v2974_v18  ;;  %4576 = vmatprep.subr.bf16.mxu1 %v2976_v10  ;;  %v3072_v18 = vld [vmem:[#allocation3 + $0x19f8] sm:$0xff]  ;;  %v3069_v10 = vld [vmem:[#allocation3 + $0x19e0] sm:$0xff] }
 0x7f2   :  { %4233 = vmatpush1.bf16.msra.mxu0 %v2973_v48  ;;  %4577 = vmatpush1.bf16.msra.mxu1 %v2975_v19  ;;  %v3071_v48 = vld [vmem:[#allocation3 + $0x19f0] sm:$0xff]  ;;  %v3078_v19 = vld [vmem:[#allocation3 + $0x1a28] sm:$0xff] }
 0x7f3   :  { %4234 = vmatprep.subr.bf16.mxu0 %v2982_v57  ;;  %4578 = vmatprep.subr.bf16.mxu1 %v2984_v20  ;;  %v3080_v57 = vld [vmem:[#allocation3 + $0x1a38] sm:$0xff]  ;;  %v3077_v20 = vld [vmem:[#allocation3 + $0x1a20] sm:$0xff] }
 0x7f6   :  { %4235 = vmatpush1.bf16.msra.mxu0 %v2981_v0  ;;  %4579 = vmatpush1.bf16.msra.mxu1 %v2983_v3  ;;  %v3079_v0 = vld [vmem:[#allocation3 + $0x1a30] sm:$0xff]  ;;  %v3086_v3 = vld [vmem:[#allocation3 + $0x1a68] sm:$0xff] }
 0x7f7   :  { %4236 = vmatprep.subr.bf16.mxu0 %v2990_v22  ;;  %4580 = vmatprep.subr.bf16.mxu1 %v2992_v17  ;;  %v3088_v22 = vld [vmem:[#allocation3 + $0x1a78] sm:$0xff]  ;;  %v3085_v17 = vld [vmem:[#allocation3 + $0x1a60] sm:$0xff] }
 0x7fa   :  { %4237 = vmatpush1.bf16.msra.mxu0 %v2989_v24  ;;  %4581 = vmatpush1.bf16.msra.mxu1 %v2991_v25  ;;  %v3087_v24 = vld [vmem:[#allocation3 + $0x1a70] sm:$0xff]  ;;  %v3094_v25 = vld [vmem:[#allocation3 + $0x1aa8] sm:$0xff] }
 0x7fb   :  { %4238 = vmatprep.subr.bf16.mxu0 %v2998_v26  ;;  %4582 = vmatprep.subr.bf16.mxu1 %v3000_v27  ;;  %v3096_v26 = vld [vmem:[#allocation3 + $0x1ab8] sm:$0xff]  ;;  %v3093_v27 = vld [vmem:[#allocation3 + $0x1aa0] sm:$0xff] }
 0x7fe   :  { %4239 = vmatpush1.bf16.msra.mxu0 %v2997_v31  ;;  %4583 = vmatpush1.bf16.msra.mxu1 %v2999_v32  ;;  %v3095_v31 = vld [vmem:[#allocation3 + $0x1ab0] sm:$0xff]  ;;  %v3102_v32 = vld [vmem:[#allocation3 + $0x1ae8] sm:$0xff] }
 0x7ff   :  { %4240 = vmatprep.subr.bf16.mxu0 %v3006_v47  ;;  %4584 = vmatprep.subr.bf16.mxu1 %v3008_v33  ;;  %v3104_v47 = vld [vmem:[#allocation3 + $0x1af8] sm:$0xff]  ;;  %v3101_v33 = vld [vmem:[#allocation3 + $0x1ae0] sm:$0xff] }
 0x802   :  { %4241 = vmatpush1.bf16.msra.mxu0 %v3005_v34  ;;  %4585 = vmatpush1.bf16.msra.mxu1 %v3007_v2  ;;  %v3103_v34 = vld [vmem:[#allocation3 + $0x1af0] sm:$0xff]  ;;  %v3110_v2 = vld [vmem:[#allocation3 + $0x1b28] sm:$0xff] }
 0x803   :  { %4253 = vmatprep.subr.bf16.mxu0 %v3014_v5  ;;  %4597 = vmatprep.subr.bf16.mxu1 %v3016_v49  ;;  %v3112_v5 = vld [vmem:[#allocation3 + $0x1b38] sm:$0xff]  ;;  %v3109_v49 = vld [vmem:[#allocation3 + $0x1b20] sm:$0xff] }
 0x805   :  { %4243 = vmatmul.mubr.bf16.vlgmr.msra.gmra.mrb[20].mxu0 %v7790_v21  ;;  %4587 = vmatmul.mubr.bf16.vlgmr.msra.gmra.mrb[20].mxu1 %v7790_v21  ;;  %v3040_v21 = vld [vmem:[#allocation3 + $0x18f8] sm:$0xff] }
 0x806   :  { %4254 = vmatpush1.bf16.msra.mxu0 %v3013_v53  ;;  %4598 = vmatpush1.bf16.msra.mxu1 %v3015_v39  ;;  %v3111_v53 = vld [vmem:[#allocation3 + $0x1b30] sm:$0xff]  ;;  %v3118_v39 = vld [vmem:[#allocation3 + $0x1b68] sm:$0xff] }
 0x807   :  { %4255 = vmatprep.subr.bf16.mxu0 %v3022_v43  ;;  %4599 = vmatprep.subr.bf16.mxu1 %v3024_v16  ;;  %v3120_v43 = vld [vmem:[#allocation3 + $0x1b78] sm:$0xff]  ;;  %v3117_v16 = vld [vmem:[#allocation3 + $0x1b60] sm:$0xff] }
 0x808   :  { %4285 = vmatprep.mubr.bf16.mxu0 %v7804_v30  ;;  %4629 = vmatprep.mubr.bf16.mxu1 %v7804_v30  ;;  %v3045_v30 = vld [vmem:[#allocation3 + $0x1920] sm:$0xff] }
 0x80a   :  { %4256 = vmatpush1.bf16.msra.mxu0 %v3021_v44  ;;  %4600 = vmatpush1.bf16.msra.mxu1 %v3023_v37  ;;  %v3119_v44 = vld [vmem:[#allocation3 + $0x1b70] sm:$0xff]  ;;  %v3126_v37 = vld [vmem:[#allocation3 + $0x1ba8] sm:$0xff] }
 0x80b   :  { %4257 = vmatprep.subr.bf16.mxu0 %v3030_v56  ;;  %4601 = vmatprep.subr.bf16.mxu1 %v3032_v45  ;;  %v3128_v56 = vld [vmem:[#allocation3 + $0x1bb8] sm:$0xff]  ;;  %v3125_v45 = vld [vmem:[#allocation3 + $0x1ba0] sm:$0xff] }
 0x80e   :  { %4258 = vmatpush1.bf16.msra.mxu0 %v3029_v46  ;;  %4602 = vmatpush1.bf16.msra.mxu1 %v3031_v60  ;;  %v3127_v46 = vld [vmem:[#allocation3 + $0x1bb0] sm:$0xff]  ;;  %v3134_v60 = vld [vmem:[#allocation3 + $0x1be8] sm:$0xff] }
 0x80f   :  { %4259 = vmatprep.subr.bf16.mxu0 %v3038_v50  ;;  %4603 = vmatprep.subr.bf16.mxu1 %v3040_v21  ;;  %v3136_v50 = vld [vmem:[#allocation3 + $0x1bf8] sm:$0xff]  ;;  %v3133_v21 = vld [vmem:[#allocation3 + $0x1be0] sm:$0xff] }
 0x812   :  { %4260 = vmatpush1.bf16.msra.mxu0 %v3037_v51  ;;  %4604 = vmatpush1.bf16.msra.mxu1 %v3039_v54  ;;  %v3135_v51 = vld [vmem:[#allocation3 + $0x1bf0] sm:$0xff]  ;;  %v3142_v54 = vld [vmem:[#allocation3 + $0x1c28] sm:$0xff] }
 0x813   :  { %4261 = vmatprep.subr.bf16.mxu0 %v3046_v55  ;;  %4605 = vmatprep.subr.bf16.mxu1 %v3048_v58  ;;  %v3144_v55 = vld [vmem:[#allocation3 + $0x1c38] sm:$0xff]  ;;  %v3141_v58 = vld [vmem:[#allocation3 + $0x1c20] sm:$0xff] }
 0x816   :  { %4262 = vmatpush1.bf16.msra.mxu0 %v3045_v30  ;;  %4606 = vmatpush1.bf16.msra.mxu1 %v3047_v59  ;;  %v3143_v30 = vld [vmem:[#allocation3 + $0x1c30] sm:$0xff]  ;;  %v3150_v59 = vld [vmem:[#allocation3 + $0x1c68] sm:$0xff] }
 0x817   :  { %4263 = vmatprep.subr.bf16.mxu0 %v3054_v61  ;;  %4607 = vmatprep.subr.bf16.mxu1 %v3056_v62  ;;  %v3152_v61 = vld [vmem:[#allocation3 + $0x1c78] sm:$0xff]  ;;  %v3149_v62 = vld [vmem:[#allocation3 + $0x1c60] sm:$0xff] }
 0x81a   :  { %4264 = vmatpush1.bf16.msra.mxu0 %v3053_v7  ;;  %4608 = vmatpush1.bf16.msra.mxu1 %v3055_v23  ;;  %v3151_v7 = vld [vmem:[#allocation3 + $0x1c70] sm:$0xff]  ;;  %v3158_v23 = vld [vmem:[#allocation3 + $0x1ca8] sm:$0xff] }
 0x81b   :  { %4265 = vmatprep.subr.bf16.mxu0 %v3062_v15  ;;  %4609 = vmatprep.subr.bf16.mxu1 %v3064_v38  ;;  %v3160_v15 = vld [vmem:[#allocation3 + $0x1cb8] sm:$0xff]  ;;  %v3157_v38 = vld [vmem:[#allocation3 + $0x1ca0] sm:$0xff] }
 0x81e   :  { %4266 = vmatpush1.bf16.msra.mxu0 %v3061_v36  ;;  %4610 = vmatpush1.bf16.msra.mxu1 %v3063_v52  ;;  %v3159_v36 = vld [vmem:[#allocation3 + $0x1cb0] sm:$0xff]  ;;  %v3166_v52 = vld [vmem:[#allocation3 + $0x1ce8] sm:$0xff] }
 0x81f   :  { %4267 = vmatprep.subr.bf16.mxu0 %v3070_v28  ;;  %4611 = vmatprep.subr.bf16.mxu1 %v3072_v18  ;;  %v3165_v28 = vld [vmem:[#allocation3 + $0x1ce0] sm:$0xff]  ;;  %v3167_v18 = vld [vmem:[#allocation3 + $0x1cf0] sm:$0xff] }
 0x822   :  { %4268 = vmatpush1.bf16.msra.mxu0 %v3069_v10  ;;  %4612 = vmatpush1.bf16.msra.mxu1 %v3071_v48  ;;  %v3174_v10 = vld [vmem:[#allocation3 + $0x1d28] sm:$0xff]  ;;  %v3176_v48 = vld [vmem:[#allocation3 + $0x1d38] sm:$0xff] }
 0x823   :  { %4269 = vmatprep.subr.bf16.mxu0 %v3078_v19  ;;  %4613 = vmatprep.subr.bf16.mxu1 %v3080_v57  ;;  %v3175_v19 = vld [vmem:[#allocation3 + $0x1d30] sm:$0xff]  ;;  %v3182_v57 = vld [vmem:[#allocation3 + $0x1d68] sm:$0xff] }
 0x826   :  { %4270 = vmatpush1.bf16.msra.mxu0 %v3077_v20  ;;  %4614 = vmatpush1.bf16.msra.mxu1 %v3079_v0  ;;  %v3184_v20 = vld [vmem:[#allocation3 + $0x1d78] sm:$0xff]  ;;  %v3181_v0 = vld [vmem:[#allocation3 + $0x1d60] sm:$0xff] }
 0x827   :  { %4271 = vmatprep.subr.bf16.mxu0 %v3086_v3  ;;  %4615 = vmatprep.subr.bf16.mxu1 %v3088_v22  ;;  %v3183_v3 = vld [vmem:[#allocation3 + $0x1d70] sm:$0xff]  ;;  %v3190_v22 = vld [vmem:[#allocation3 + $0x1da8] sm:$0xff] }
 0x82a   :  { %4272 = vmatpush1.bf16.msra.mxu0 %v3085_v17  ;;  %4616 = vmatpush1.bf16.msra.mxu1 %v3087_v24  ;;  %v3192_v17 = vld [vmem:[#allocation3 + $0x1db8] sm:$0xff]  ;;  %v3189_v24 = vld [vmem:[#allocation3 + $0x1da0] sm:$0xff] }
 0x82b   :  { %4273 = vmatprep.subr.bf16.mxu0 %v3094_v25  ;;  %4617 = vmatprep.subr.bf16.mxu1 %v3096_v26  ;;  %v3191_v25 = vld [vmem:[#allocation3 + $0x1db0] sm:$0xff]  ;;  %v3198_v26 = vld [vmem:[#allocation3 + $0x1de8] sm:$0xff] }
 0x82e   :  { %4274 = vmatpush1.bf16.msra.mxu0 %v3093_v27  ;;  %4618 = vmatpush1.bf16.msra.mxu1 %v3095_v31  ;;  %v3200_v27 = vld [vmem:[#allocation3 + $0x1df8] sm:$0xff]  ;;  %v3197_v31 = vld [vmem:[#allocation3 + $0x1de0] sm:$0xff] }
 0x82f   :  { %4275 = vmatprep.subr.bf16.mxu0 %v3102_v32  ;;  %4619 = vmatprep.subr.bf16.mxu1 %v3104_v47  ;;  %v3199_v32 = vld [vmem:[#allocation3 + $0x1df0] sm:$0xff]  ;;  %v3206_v47 = vld [vmem:[#allocation3 + $0x1e28] sm:$0xff] }
 0x832   :  { %4276 = vmatpush1.bf16.msra.mxu0 %v3101_v33  ;;  %4620 = vmatpush1.bf16.msra.mxu1 %v3103_v34  ;;  %v3208_v33 = vld [vmem:[#allocation3 + $0x1e38] sm:$0xff]  ;;  %v3205_v34 = vld [vmem:[#allocation3 + $0x1e20] sm:$0xff] }
 0x833   :  { %4277 = vmatprep.subr.bf16.mxu0 %v3110_v2  ;;  %4621 = vmatprep.subr.bf16.mxu1 %v3112_v5  ;;  %v3207_v2 = vld [vmem:[#allocation3 + $0x1e30] sm:$0xff]  ;;  %v3214_v5 = vld [vmem:[#allocation3 + $0x1e68] sm:$0xff] }
 0x836   :  { %4278 = vmatpush1.bf16.msra.mxu0 %v3109_v49  ;;  %4622 = vmatpush1.bf16.msra.mxu1 %v3111_v53  ;;  %v3216_v49 = vld [vmem:[#allocation3 + $0x1e78] sm:$0xff]  ;;  %v3213_v53 = vld [vmem:[#allocation3 + $0x1e60] sm:$0xff] }
 0x837   :  { %4279 = vmatprep.subr.bf16.mxu0 %v3118_v39  ;;  %4623 = vmatprep.subr.bf16.mxu1 %v3120_v43  ;;  %v3215_v39 = vld [vmem:[#allocation3 + $0x1e70] sm:$0xff]  ;;  %v3222_v43 = vld [vmem:[#allocation3 + $0x1ea8] sm:$0xff] }
 0x83a   :  { %4280 = vmatpush1.bf16.msra.mxu0 %v3117_v16  ;;  %4624 = vmatpush1.bf16.msra.mxu1 %v3119_v44  ;;  %v3224_v16 = vld [vmem:[#allocation3 + $0x1eb8] sm:$0xff]  ;;  %v3221_v44 = vld [vmem:[#allocation3 + $0x1ea0] sm:$0xff] }
 0x83b   :  { %4281 = vmatprep.subr.bf16.mxu0 %v3126_v37  ;;  %4625 = vmatprep.subr.bf16.mxu1 %v3128_v56  ;;  %v3223_v37 = vld [vmem:[#allocation3 + $0x1eb0] sm:$0xff]  ;;  %v3230_v56 = vld [vmem:[#allocation3 + $0x1ee8] sm:$0xff] }
 0x83e   :  { %4282 = vmatpush1.bf16.msra.mxu0 %v3125_v45  ;;  %4626 = vmatpush1.bf16.msra.mxu1 %v3127_v46  ;;  %v3232_v45 = vld [vmem:[#allocation3 + $0x1ef8] sm:$0xff]  ;;  %v3229_v46 = vld [vmem:[#allocation3 + $0x1ee0] sm:$0xff] }
 0x83f   :  { %4283 = vmatprep.subr.bf16.mxu0 %v3134_v60  ;;  %4627 = vmatprep.subr.bf16.mxu1 %v3136_v50  ;;  %v3231_v60 = vld [vmem:[#allocation3 + $0x1ef0] sm:$0xff]  ;;  %v3238_v50 = vld [vmem:[#allocation3 + $0x1f28] sm:$0xff] }
 0x842   :  { %4284 = vmatpush1.bf16.msra.mxu0 %v3133_v21  ;;  %4628 = vmatpush1.bf16.msra.mxu1 %v3135_v51  ;;  %v3240_v21 = vld [vmem:[#allocation3 + $0x1f38] sm:$0xff]  ;;  %v3237_v51 = vld [vmem:[#allocation3 + $0x1f20] sm:$0xff] }
 0x843   :  { %4296 = vmatprep.subr.bf16.mxu0 %v3142_v54  ;;  %4640 = vmatprep.subr.bf16.mxu1 %v3144_v55  ;;  %v3239_v54 = vld [vmem:[#allocation3 + $0x1f30] sm:$0xff]  ;;  %v3246_v55 = vld [vmem:[#allocation3 + $0x1f68] sm:$0xff] }
 0x845   :  { %4286 = vmatmul.mubr.bf16.vlgmr.msra.gmra.mrb[20].mxu0 %v7800_v1  ;;  %4630 = vmatmul.mubr.bf16.vlgmr.msra.gmra.mrb[20].mxu1 %v7800_v1  ;;  %v3168_v1 = vld [vmem:[#allocation3 + $0x1cf8] sm:$0xff] }
 0x846   :  { %4297 = vmatpush1.bf16.msra.mxu0 %v3141_v58  ;;  %4641 = vmatpush1.bf16.msra.mxu1 %v3143_v30  ;;  %v3248_v58 = vld [vmem:[#allocation3 + $0x1f78] sm:$0xff]  ;;  %v3245_v30 = vld [vmem:[#allocation3 + $0x1f60] sm:$0xff] }
 0x847   :  { %4298 = vmatprep.subr.bf16.mxu0 %v3150_v59  ;;  %4642 = vmatprep.subr.bf16.mxu1 %v3152_v61  ;;  %v3247_v59 = vld [vmem:[#allocation3 + $0x1f70] sm:$0xff]  ;;  %v3254_v61 = vld [vmem:[#allocation3 + $0x1fa8] sm:$0xff] }
 0x848   :  { %4328 = vmatprep.mubr.bf16.mxu0 %v7806_v29  ;;  %4672 = vmatprep.mubr.bf16.mxu1 %v7806_v29  ;;  %v3173_v29 = vld [vmem:[#allocation3 + $0x1d20] sm:$0xff] }
 0x84a   :  { %4299 = vmatpush1.bf16.msra.mxu0 %v3149_v62  ;;  %4643 = vmatpush1.bf16.msra.mxu1 %v3151_v7  ;;  %v3256_v62 = vld [vmem:[#allocation3 + $0x1fb8] sm:$0xff]  ;;  %v3253_v7 = vld [vmem:[#allocation3 + $0x1fa0] sm:$0xff] }
 0x84b   :  { %4300 = vmatprep.subr.bf16.mxu0 %v3158_v23  ;;  %4644 = vmatprep.subr.bf16.mxu1 %v3160_v15  ;;  %v3255_v23 = vld [vmem:[#allocation3 + $0x1fb0] sm:$0xff]  ;;  %v3262_v15 = vld [vmem:[#allocation3 + $0x1fe8] sm:$0xff] }
 0x84e   :  { %4301 = vmatpush1.bf16.msra.mxu0 %v3157_v38  ;;  %4645 = vmatpush1.bf16.msra.mxu1 %v3159_v36  ;;  %v3264_v38 = vld [vmem:[#allocation3 + $0x1ff8] sm:$0xff]  ;;  %v3261_v36 = vld [vmem:[#allocation3 + $0x1fe0] sm:$0xff] }
 0x84f   :  { %4302 = vmatprep.subr.bf16.mxu0 %v3166_v52  ;;  %4646 = vmatprep.subr.bf16.mxu1 %v3168_v1  ;;  %v3263_v52 = vld [vmem:[#allocation3 + $0x1ff0] sm:$0xff]  ;;  %v7226_v1 = vld [vmem:[#allocation13] sm:$0xff] }
 0x852   :  { %4303 = vmatpush1.bf16.msra.mxu0 %v3165_v28  ;;  %4647 = vmatpush1.bf16.msra.mxu1 %v3167_v18  ;;  %v3286_v28 = vrot.slane %v7226_v1, %v7747_v40  ;;  %v3294_v18 = vrot.slane %v7226_v1, %v7750_v6 }
 0x853   :  { %4304 = vmatprep.subr.bf16.mxu0 %v3174_v10  ;;  %4648 = vmatprep.subr.bf16.mxu1 %v3176_v48  ;;  %v3290_v10 = vrot.slane %v7226_v1, %v7753_v41  ;;  %v3298_v48 = vrot.slane %v7226_v1, %v7756_v42 }
 0x856   :  { %4305 = vmatpush1.bf16.msra.mxu0 %v3173_v29  ;;  %4649 = vmatpush1.bf16.msra.mxu1 %v3175_v19 }
 0x857   :  { %4306 = vmatprep.subr.bf16.mxu0 %v3182_v57  ;;  %4650 = vmatprep.subr.bf16.mxu1 %v3184_v20 }
 0x85a   :  { %4307 = vmatpush1.bf16.msra.mxu0 %v3181_v0  ;;  %4651 = vmatpush1.bf16.msra.mxu1 %v3183_v3 }
 0x85b   :  { %4308 = vmatprep.subr.bf16.mxu0 %v3190_v22  ;;  %4652 = vmatprep.subr.bf16.mxu1 %v3192_v17 }
 0x85e   :  { %4309 = vmatpush1.bf16.msra.mxu0 %v3189_v24  ;;  %4653 = vmatpush1.bf16.msra.mxu1 %v3191_v25 }
 0x85f   :  { %4310 = vmatprep.subr.bf16.mxu0 %v3198_v26  ;;  %4654 = vmatprep.subr.bf16.mxu1 %v3200_v27 }
 0x862   :  { %4311 = vmatpush1.bf16.msra.mxu0 %v3197_v31  ;;  %4655 = vmatpush1.bf16.msra.mxu1 %v3199_v32 }
 0x863   :  { %4312 = vmatprep.subr.bf16.mxu0 %v3206_v47  ;;  %4656 = vmatprep.subr.bf16.mxu1 %v3208_v33 }
 0x866   :  { %4313 = vmatpush1.bf16.msra.mxu0 %v3205_v34  ;;  %4657 = vmatpush1.bf16.msra.mxu1 %v3207_v2 }
 0x867   :  { %4314 = vmatprep.subr.bf16.mxu0 %v3214_v5  ;;  %4658 = vmatprep.subr.bf16.mxu1 %v3216_v49 }
 0x86a   :  { %4315 = vmatpush1.bf16.msra.mxu0 %v3213_v53  ;;  %4659 = vmatpush1.bf16.msra.mxu1 %v3215_v39 }
 0x86b   :  { %4316 = vmatprep.subr.bf16.mxu0 %v3222_v43  ;;  %4660 = vmatprep.subr.bf16.mxu1 %v3224_v16 }
 0x86e   :  { %4317 = vmatpush1.bf16.msra.mxu0 %v3221_v44  ;;  %4661 = vmatpush1.bf16.msra.mxu1 %v3223_v37 }
 0x86f   :  { %4318 = vmatprep.subr.bf16.mxu0 %v3230_v56  ;;  %4662 = vmatprep.subr.bf16.mxu1 %v3232_v45 }
 0x872   :  { %4319 = vmatpush1.bf16.msra.mxu0 %v3229_v46  ;;  %4663 = vmatpush1.bf16.msra.mxu1 %v3231_v60 }
 0x873   :  { %4320 = vmatprep.subr.bf16.mxu0 %v3238_v50  ;;  %4664 = vmatprep.subr.bf16.mxu1 %v3240_v21 }
 0x876   :  { %4321 = vmatpush1.bf16.msra.mxu0 %v3237_v51  ;;  %4665 = vmatpush1.bf16.msra.mxu1 %v3239_v54 }
 0x877   :  { %4322 = vmatprep.subr.bf16.mxu0 %v3246_v55  ;;  %4666 = vmatprep.subr.bf16.mxu1 %v3248_v58 }
 0x87a   :  { %4323 = vmatpush1.bf16.msra.mxu0 %v3245_v30  ;;  %4667 = vmatpush1.bf16.msra.mxu1 %v3247_v59 }
 0x87b   :  { %4324 = vmatprep.subr.bf16.mxu0 %v3254_v61  ;;  %4668 = vmatprep.subr.bf16.mxu1 %v3256_v62 }
 0x87e   :  { %4325 = vmatpush1.bf16.msra.mxu0 %v3253_v7  ;;  %4669 = vmatpush1.bf16.msra.mxu1 %v3255_v23 }
 0x87f   :  { %4326 = vmatprep.subr.bf16.mxu0 %v3262_v15  ;;  %4670 = vmatprep.subr.bf16.mxu1 %v3264_v38 }
 0x882   :  { %4327 = vmatpush1.bf16.msra.mxu0 %v3261_v36  ;;  %4671 = vmatpush1.bf16.msra.mxu1 %v3263_v52 }
 0x885   :  { %4329 = vmatmul.mubr.bf16.vlgmr.msra.gmra.mrb[20].mxu0 %v7802_v4  ;;  %4673 = vmatmul.mubr.bf16.vlgmr.msra.gmra.mrb[20].mxu1 %v7802_v4 }
 0x958   :  { %v4330_v29 = vpop.f32.mrb[20].mxu0  ;;  %v4674_v19 = vpop.f32.mrb[20].mxu1 }
 0x959   :  { %v6912_v57 = vadd.f32 %v4330_v29, %v3286_v28  ;;  %v6916_v20 = vadd.f32 %v4674_v19, %v3294_v18  ;;  %v4332_v0 = vpop.f32.mrb[21].mxu0  ;;  %v4676_v3 = vpop.f32.mrb[21].mxu1 }
 0x95a   :  { %v6913_v22 = vadd.f32 %v4332_v0, %v3290_v10  ;;  %v6917_v17 = vadd.f32 %v4676_v3, %v3298_v48  ;;  %v4334_v24 = vpop.f32.mrb[22].mxu0  ;;  %v4678_v25 = vpop.f32.mrb[22].mxu1 }
 0x95b   :  { %v6914_v4 = vadd.f32 %v4334_v24, %v3286_v28  ;;  %v6918_v26 = vadd.f32 %v4678_v25, %v3294_v18  ;;  %v4336_v27 = vpop.f32.mrb[23].mxu0  ;;  %v4680_v31 = vpop.f32.mrb[23].mxu1  ;;  %v4687_v33 = vmax.f32 %v6912_v57, 0.0  ;;  %v4689_v34 = vmax.f32 %v6916_v20, 0.0 }
 0x95c   :  { %v6915_v32 = vadd.f32 %v4336_v27, %v3290_v10  ;;  %v6919_v47 = vadd.f32 %v4680_v31, %v3298_v48  ;;  %v4688_v49 = vmax.f32 %v6913_v22, 0.0  ;;  %v4690_v53 = vmax.f32 %v6917_v17, 0.0 }
 0x95d   :  { %v4695_v2 = vmax.f32 %v6914_v4, 0.0  ;;  %v4697_v5 = vmax.f32 %v6918_v26, 0.0 }
 0x95e   :  { %v4696_v39 = vmax.f32 %v6915_v32, 0.0  ;;  %v4698_v43 = vmax.f32 %v6919_v47, 0.0 }
 0x95f   :  { %v7888_v16 = vpack.c.bf16 %v4695_v2, %v4687_v33  ;;  %v7890_v44 = vpack.c.bf16 %v4697_v5, %v4689_v34 }
 0x960   :  { %v7892_v37 = vpack.c.bf16 %v4696_v39, %v4688_v49  ;;  %v7894_v56 = vpack.c.bf16 %v4698_v43, %v4690_v53 }
 0x961   :  { %7415 = dma.done.wait [#allocation7 + $0x2], 65536 }
 0x962   :  { %7416 = vsyncadd [#allocation7 + $0x2], 4294901760  ;;  %5301 = vmatprep.mubr.bf16.mxu0 %v7862_v13  ;;  %5473 = vmatprep.mubr.bf16.mxu1 %v7862_v13  ;;  %v4716_v45 = vld [vmem:[#allocation4 + $0x8] sm:$0xff]  ;;  %v4718_v46 = vld [vmem:[#allocation4 + $0x18] sm:$0xff] }
 0x963   :  { %v4715_v60 = vld [vmem:[#allocation4] sm:$0xff]  ;;  %5269 = vmatprep.subr.bf16.mxu0 %v4716_v45  ;;  %5441 = vmatprep.subr.bf16.mxu1 %v4718_v46  ;;  %v4717_v50 = vld [vmem:[#allocation4 + $0x10] sm:$0xff]  ;;  %v4724_v21 = vld [vmem:[#allocation4 + $0x48] sm:$0xff] }
 0x964   :  { %v4726_v51 = vld [vmem:[#allocation4 + $0x58] sm:$0xff]  ;;  %5270 = vmatpush1.bf16.msra.mxu0 %v4715_v60  ;;  %5442 = vmatpush1.bf16.msra.mxu1 %v4717_v50  ;;  %v4723_v54 = vld [vmem:[#allocation4 + $0x40] sm:$0xff]  ;;  %v4725_v55 = vld [vmem:[#allocation4 + $0x50] sm:$0xff] }
 0x965   :  { %5271 = vmatprep.subr.bf16.mxu0 %v4724_v21  ;;  %5443 = vmatprep.subr.bf16.mxu1 %v4726_v51  ;;  %v4732_v58 = vld [vmem:[#allocation4 + $0x88] sm:$0xff]  ;;  %v4734_v30 = vld [vmem:[#allocation4 + $0x98] sm:$0xff]  ;;  %v4731_v59 = vld [vmem:[#allocation4 + $0x80] sm:$0xff] }
 0x966   :  { %v4733_v61 = vld [vmem:[#allocation4 + $0x90] sm:$0xff]  ;;  %v4740_v62 = vld [vmem:[#allocation4 + $0xc8] sm:$0xff]  ;;  %v4742_v7 = vld [vmem:[#allocation4 + $0xd8] sm:$0xff] }
 0x967   :  { %v4739_v23 = vld [vmem:[#allocation4 + $0xc0] sm:$0xff]  ;;  %v4741_v15 = vld [vmem:[#allocation4 + $0xd0] sm:$0xff]  ;;  %v4748_v38 = vld [vmem:[#allocation4 + $0x108] sm:$0xff] }
 0x968   :  { %5272 = vmatpush1.bf16.msra.mxu0 %v4723_v54  ;;  %5444 = vmatpush1.bf16.msra.mxu1 %v4725_v55  ;;  %v4750_v36 = vld [vmem:[#allocation4 + $0x118] sm:$0xff]  ;;  %v4747_v52 = vld [vmem:[#allocation4 + $0x100] sm:$0xff]  ;;  %v4749_v1 = vld [vmem:[#allocation4 + $0x110] sm:$0xff] }
 0x969   :  { %5273 = vmatprep.subr.bf16.mxu0 %v4732_v58  ;;  %5445 = vmatprep.subr.bf16.mxu1 %v4734_v30  ;;  %v4756_v28 = vld [vmem:[#allocation4 + $0x148] sm:$0xff]  ;;  %v4758_v18 = vld [vmem:[#allocation4 + $0x158] sm:$0xff]  ;;  %v4755_v10 = vld [vmem:[#allocation4 + $0x140] sm:$0xff] }
 0x96a   :  { %v4757_v48 = vld [vmem:[#allocation4 + $0x150] sm:$0xff]  ;;  %v4764_v29 = vld [vmem:[#allocation4 + $0x188] sm:$0xff]  ;;  %v4766_v19 = vld [vmem:[#allocation4 + $0x198] sm:$0xff] }
 0x96b   :  { %v4763_v57 = vld [vmem:[#allocation4 + $0x180] sm:$0xff]  ;;  %v4765_v20 = vld [vmem:[#allocation4 + $0x190] sm:$0xff]  ;;  %v4772_v0 = vld [vmem:[#allocation4 + $0x1c8] sm:$0xff] }
 0x96c   :  { %5274 = vmatpush1.bf16.msra.mxu0 %v4731_v59  ;;  %5446 = vmatpush1.bf16.msra.mxu1 %v4733_v61  ;;  %v4774_v3 = vld [vmem:[#allocation4 + $0x1d8] sm:$0xff]  ;;  %v4771_v22 = vld [vmem:[#allocation4 + $0x1c0] sm:$0xff]  ;;  %v4773_v17 = vld [vmem:[#allocation4 + $0x1d0] sm:$0xff] }
 0x96d   :  { %5275 = vmatprep.subr.bf16.mxu0 %v4740_v62  ;;  %5447 = vmatprep.subr.bf16.mxu1 %v4742_v7  ;;  %v4780_v24 = vld [vmem:[#allocation4 + $0x208] sm:$0xff]  ;;  %v4782_v25 = vld [vmem:[#allocation4 + $0x218] sm:$0xff]  ;;  %v4779_v4 = vld [vmem:[#allocation4 + $0x200] sm:$0xff] }
 0x96e   :  { %v4781_v26 = vld [vmem:[#allocation4 + $0x210] sm:$0xff]  ;;  %v4788_v27 = vld [vmem:[#allocation4 + $0x248] sm:$0xff]  ;;  %v4790_v31 = vld [vmem:[#allocation4 + $0x258] sm:$0xff] }
 0x96f   :  { %v4787_v32 = vld [vmem:[#allocation4 + $0x240] sm:$0xff]  ;;  %v4789_v47 = vld [vmem:[#allocation4 + $0x250] sm:$0xff]  ;;  %v4796_v33 = vld [vmem:[#allocation4 + $0x288] sm:$0xff] }
 0x970   :  { %5276 = vmatpush1.bf16.msra.mxu0 %v4739_v23  ;;  %5448 = vmatpush1.bf16.msra.mxu1 %v4741_v15  ;;  %v4798_v34 = vld [vmem:[#allocation4 + $0x298] sm:$0xff]  ;;  %v4795_v2 = vld [vmem:[#allocation4 + $0x280] sm:$0xff]  ;;  %v4797_v5 = vld [vmem:[#allocation4 + $0x290] sm:$0xff] }
 0x971   :  { %5277 = vmatprep.subr.bf16.mxu0 %v4748_v38  ;;  %5449 = vmatprep.subr.bf16.mxu1 %v4750_v36  ;;  %v4804_v49 = vld [vmem:[#allocation4 + $0x2c8] sm:$0xff]  ;;  %v4806_v53 = vld [vmem:[#allocation4 + $0x2d8] sm:$0xff]  ;;  %v4803_v39 = vld [vmem:[#allocation4 + $0x2c0] sm:$0xff] }
 0x972   :  { %v4805_v43 = vld [vmem:[#allocation4 + $0x2d0] sm:$0xff]  ;;  %v4812_v45 = vld [vmem:[#allocation4 + $0x308] sm:$0xff]  ;;  %v4814_v46 = vld [vmem:[#allocation4 + $0x318] sm:$0xff] }
 0x973   :  { %v4811_v60 = vld [vmem:[#allocation4 + $0x300] sm:$0xff]  ;;  %v4813_v50 = vld [vmem:[#allocation4 + $0x310] sm:$0xff]  ;;  %v4820_v21 = vld [vmem:[#allocation4 + $0x348] sm:$0xff] }
 0x974   :  { %5278 = vmatpush1.bf16.msra.mxu0 %v4747_v52  ;;  %5450 = vmatpush1.bf16.msra.mxu1 %v4749_v1  ;;  %v4822_v51 = vld [vmem:[#allocation4 + $0x358] sm:$0xff]  ;;  %v4819_v54 = vld [vmem:[#allocation4 + $0x340] sm:$0xff]  ;;  %v4821_v55 = vld [vmem:[#allocation4 + $0x350] sm:$0xff] }
 0x975   :  { %5279 = vmatprep.subr.bf16.mxu0 %v4756_v28  ;;  %5451 = vmatprep.subr.bf16.mxu1 %v4758_v18  ;;  %v4828_v58 = vld [vmem:[#allocation4 + $0x388] sm:$0xff]  ;;  %v4830_v30 = vld [vmem:[#allocation4 + $0x398] sm:$0xff]  ;;  %v4827_v59 = vld [vmem:[#allocation4 + $0x380] sm:$0xff] }
 0x976   :  { %v4829_v61 = vld [vmem:[#allocation4 + $0x390] sm:$0xff]  ;;  %v4836_v62 = vld [vmem:[#allocation4 + $0x3c8] sm:$0xff]  ;;  %v4838_v7 = vld [vmem:[#allocation4 + $0x3d8] sm:$0xff] }
 0x977   :  { %v4835_v23 = vld [vmem:[#allocation4 + $0x3c0] sm:$0xff]  ;;  %v4837_v15 = vld [vmem:[#allocation4 + $0x3d0] sm:$0xff]  ;;  %v4844_v38 = vld [vmem:[#allocation4 + $0x408] sm:$0xff] }
 0x978   :  { %5280 = vmatpush1.bf16.msra.mxu0 %v4755_v10  ;;  %5452 = vmatpush1.bf16.msra.mxu1 %v4757_v48  ;;  %v4846_v36 = vld [vmem:[#allocation4 + $0x418] sm:$0xff]  ;;  %v4843_v52 = vld [vmem:[#allocation4 + $0x400] sm:$0xff]  ;;  %v4845_v1 = vld [vmem:[#allocation4 + $0x410] sm:$0xff] }
 0x979   :  { %5281 = vmatprep.subr.bf16.mxu0 %v4764_v29  ;;  %5453 = vmatprep.subr.bf16.mxu1 %v4766_v19  ;;  %v4852_v28 = vld [vmem:[#allocation4 + $0x448] sm:$0xff]  ;;  %v4854_v18 = vld [vmem:[#allocation4 + $0x458] sm:$0xff]  ;;  %v4851_v10 = vld [vmem:[#allocation4 + $0x440] sm:$0xff] }
 0x97a   :  { %v4853_v48 = vld [vmem:[#allocation4 + $0x450] sm:$0xff]  ;;  %v4860_v29 = vld [vmem:[#allocation4 + $0x488] sm:$0xff]  ;;  %v4862_v19 = vld [vmem:[#allocation4 + $0x498] sm:$0xff] }
 0x97c   :  { %5282 = vmatpush1.bf16.msra.mxu0 %v4763_v57  ;;  %5454 = vmatpush1.bf16.msra.mxu1 %v4765_v20  ;;  %v4859_v57 = vld [vmem:[#allocation4 + $0x480] sm:$0xff]  ;;  %v4861_v20 = vld [vmem:[#allocation4 + $0x490] sm:$0xff] }
 0x97d   :  { %5283 = vmatprep.subr.bf16.mxu0 %v4772_v0  ;;  %5455 = vmatprep.subr.bf16.mxu1 %v4774_v3  ;;  %v4868_v0 = vld [vmem:[#allocation4 + $0x4c8] sm:$0xff]  ;;  %v4870_v3 = vld [vmem:[#allocation4 + $0x4d8] sm:$0xff] }
 0x980   :  { %5284 = vmatpush1.bf16.msra.mxu0 %v4771_v22  ;;  %5456 = vmatpush1.bf16.msra.mxu1 %v4773_v17  ;;  %v4867_v22 = vld [vmem:[#allocation4 + $0x4c0] sm:$0xff]  ;;  %v4869_v17 = vld [vmem:[#allocation4 + $0x4d0] sm:$0xff] }
 0x981   :  { %5285 = vmatprep.subr.bf16.mxu0 %v4780_v24  ;;  %5457 = vmatprep.subr.bf16.mxu1 %v4782_v25  ;;  %v4876_v24 = vld [vmem:[#allocation4 + $0x508] sm:$0xff]  ;;  %v4878_v25 = vld [vmem:[#allocation4 + $0x518] sm:$0xff] }
 0x984   :  { %5286 = vmatpush1.bf16.msra.mxu0 %v4779_v4  ;;  %5458 = vmatpush1.bf16.msra.mxu1 %v4781_v26  ;;  %v4875_v4 = vld [vmem:[#allocation4 + $0x500] sm:$0xff]  ;;  %v4877_v26 = vld [vmem:[#allocation4 + $0x510] sm:$0xff] }
 0x985   :  { %5287 = vmatprep.subr.bf16.mxu0 %v4788_v27  ;;  %5459 = vmatprep.subr.bf16.mxu1 %v4790_v31  ;;  %v4884_v27 = vld [vmem:[#allocation4 + $0x548] sm:$0xff]  ;;  %v4886_v31 = vld [vmem:[#allocation4 + $0x558] sm:$0xff] }
 0x988   :  { %5288 = vmatpush1.bf16.msra.mxu0 %v4787_v32  ;;  %5460 = vmatpush1.bf16.msra.mxu1 %v4789_v47  ;;  %v4883_v32 = vld [vmem:[#allocation4 + $0x540] sm:$0xff]  ;;  %v4885_v47 = vld [vmem:[#allocation4 + $0x550] sm:$0xff] }
 0x989   :  { %5289 = vmatprep.subr.bf16.mxu0 %v4796_v33  ;;  %5461 = vmatprep.subr.bf16.mxu1 %v4798_v34  ;;  %v4892_v33 = vld [vmem:[#allocation4 + $0x588] sm:$0xff]  ;;  %v4894_v34 = vld [vmem:[#allocation4 + $0x598] sm:$0xff] }
 0x98c   :  { %5290 = vmatpush1.bf16.msra.mxu0 %v4795_v2  ;;  %5462 = vmatpush1.bf16.msra.mxu1 %v4797_v5  ;;  %v4891_v2 = vld [vmem:[#allocation4 + $0x580] sm:$0xff]  ;;  %v4893_v5 = vld [vmem:[#allocation4 + $0x590] sm:$0xff] }
 0x98d   :  { %5291 = vmatprep.subr.bf16.mxu0 %v4804_v49  ;;  %5463 = vmatprep.subr.bf16.mxu1 %v4806_v53  ;;  %v4900_v49 = vld [vmem:[#allocation4 + $0x5c8] sm:$0xff]  ;;  %v4902_v53 = vld [vmem:[#allocation4 + $0x5d8] sm:$0xff] }
 0x990   :  { %5292 = vmatpush1.bf16.msra.mxu0 %v4803_v39  ;;  %5464 = vmatpush1.bf16.msra.mxu1 %v4805_v43  ;;  %v4899_v39 = vld [vmem:[#allocation4 + $0x5c0] sm:$0xff]  ;;  %v4901_v43 = vld [vmem:[#allocation4 + $0x5d0] sm:$0xff] }
 0x991   :  { %5293 = vmatprep.subr.bf16.mxu0 %v4812_v45  ;;  %5465 = vmatprep.subr.bf16.mxu1 %v4814_v46  ;;  %v4908_v45 = vld [vmem:[#allocation4 + $0x608] sm:$0xff]  ;;  %v4910_v46 = vld [vmem:[#allocation4 + $0x618] sm:$0xff] }
 0x994   :  { %5294 = vmatpush1.bf16.msra.mxu0 %v4811_v60  ;;  %5466 = vmatpush1.bf16.msra.mxu1 %v4813_v50  ;;  %v4907_v60 = vld [vmem:[#allocation4 + $0x600] sm:$0xff]  ;;  %v4909_v50 = vld [vmem:[#allocation4 + $0x610] sm:$0xff] }
 0x995   :  { %5295 = vmatprep.subr.bf16.mxu0 %v4820_v21  ;;  %5467 = vmatprep.subr.bf16.mxu1 %v4822_v51  ;;  %v4916_v21 = vld [vmem:[#allocation4 + $0x648] sm:$0xff]  ;;  %v4918_v51 = vld [vmem:[#allocation4 + $0x658] sm:$0xff] }
 0x998   :  { %5296 = vmatpush1.bf16.msra.mxu0 %v4819_v54  ;;  %5468 = vmatpush1.bf16.msra.mxu1 %v4821_v55  ;;  %v4915_v54 = vld [vmem:[#allocation4 + $0x640] sm:$0xff]  ;;  %v4917_v55 = vld [vmem:[#allocation4 + $0x650] sm:$0xff] }
 0x999   :  { %5297 = vmatprep.subr.bf16.mxu0 %v4828_v58  ;;  %5469 = vmatprep.subr.bf16.mxu1 %v4830_v30  ;;  %v4924_v58 = vld [vmem:[#allocation4 + $0x688] sm:$0xff]  ;;  %v4926_v30 = vld [vmem:[#allocation4 + $0x698] sm:$0xff] }
 0x99c   :  { %5298 = vmatpush1.bf16.msra.mxu0 %v4827_v59  ;;  %5470 = vmatpush1.bf16.msra.mxu1 %v4829_v61  ;;  %v4923_v59 = vld [vmem:[#allocation4 + $0x680] sm:$0xff]  ;;  %v4925_v61 = vld [vmem:[#allocation4 + $0x690] sm:$0xff] }
 0x99d   :  { %5299 = vmatprep.subr.bf16.mxu0 %v4836_v62  ;;  %5471 = vmatprep.subr.bf16.mxu1 %v4838_v7  ;;  %v4932_v62 = vld [vmem:[#allocation4 + $0x6c8] sm:$0xff]  ;;  %v4934_v7 = vld [vmem:[#allocation4 + $0x6d8] sm:$0xff] }
 0x9a0   :  { %5300 = vmatpush1.bf16.msra.mxu0 %v4835_v23  ;;  %5472 = vmatpush1.bf16.msra.mxu1 %v4837_v15  ;;  %v4931_v23 = vld [vmem:[#allocation4 + $0x6c0] sm:$0xff]  ;;  %v4933_v15 = vld [vmem:[#allocation4 + $0x6d0] sm:$0xff] }
 0x9a1   :  { %5312 = vmatprep.subr.bf16.mxu0 %v4844_v38  ;;  %5484 = vmatprep.subr.bf16.mxu1 %v4846_v36  ;;  %v4940_v38 = vld [vmem:[#allocation4 + $0x708] sm:$0xff]  ;;  %v4942_v36 = vld [vmem:[#allocation4 + $0x718] sm:$0xff] }
 0x9a3   :  { %5302 = vmatmul.mubr.bf16.vlgmr.msra.gmra.mrb[24].mxu0 %v7858_v63  ;;  %5474 = vmatmul.mubr.bf16.vlgmr.msra.gmra.mrb[24].mxu1 %v7858_v63 }
 0x9a4   :  { %5313 = vmatpush1.bf16.msra.mxu0 %v4843_v52  ;;  %5485 = vmatpush1.bf16.msra.mxu1 %v4845_v1  ;;  %v4939_v52 = vld [vmem:[#allocation4 + $0x700] sm:$0xff]  ;;  %v4941_v1 = vld [vmem:[#allocation4 + $0x710] sm:$0xff] }
 0x9a5   :  { %5314 = vmatprep.subr.bf16.mxu0 %v4852_v28  ;;  %5486 = vmatprep.subr.bf16.mxu1 %v4854_v18  ;;  %v4948_v28 = vld [vmem:[#allocation4 + $0x748] sm:$0xff]  ;;  %v4950_v18 = vld [vmem:[#allocation4 + $0x758] sm:$0xff] }
 0x9a6   :  { %5344 = vmatprep.mubr.bf16.mxu0 %v7864_v14  ;;  %5516 = vmatprep.mubr.bf16.mxu1 %v7864_v14 }
 0x9a8   :  { %5315 = vmatpush1.bf16.msra.mxu0 %v4851_v10  ;;  %5487 = vmatpush1.bf16.msra.mxu1 %v4853_v48  ;;  %v4947_v10 = vld [vmem:[#allocation4 + $0x740] sm:$0xff]  ;;  %v4949_v48 = vld [vmem:[#allocation4 + $0x750] sm:$0xff] }
 0x9a9   :  { %5316 = vmatprep.subr.bf16.mxu0 %v4860_v29  ;;  %5488 = vmatprep.subr.bf16.mxu1 %v4862_v19  ;;  %v4956_v29 = vld [vmem:[#allocation4 + $0x788] sm:$0xff]  ;;  %v4958_v19 = vld [vmem:[#allocation4 + $0x798] sm:$0xff] }
 0x9ac   :  { %5317 = vmatpush1.bf16.msra.mxu0 %v4859_v57  ;;  %5489 = vmatpush1.bf16.msra.mxu1 %v4861_v20  ;;  %v4955_v57 = vld [vmem:[#allocation4 + $0x780] sm:$0xff]  ;;  %v4957_v20 = vld [vmem:[#allocation4 + $0x790] sm:$0xff] }
 0x9ad   :  { %5318 = vmatprep.subr.bf16.mxu0 %v4868_v0  ;;  %5490 = vmatprep.subr.bf16.mxu1 %v4870_v3  ;;  %v4964_v0 = vld [vmem:[#allocation4 + $0x7c8] sm:$0xff]  ;;  %v4966_v3 = vld [vmem:[#allocation4 + $0x7d8] sm:$0xff] }
 0x9b0   :  { %5319 = vmatpush1.bf16.msra.mxu0 %v4867_v22  ;;  %5491 = vmatpush1.bf16.msra.mxu1 %v4869_v17  ;;  %v4963_v22 = vld [vmem:[#allocation4 + $0x7c0] sm:$0xff]  ;;  %v4965_v17 = vld [vmem:[#allocation4 + $0x7d0] sm:$0xff] }
 0x9b1   :  { %5320 = vmatprep.subr.bf16.mxu0 %v4876_v24  ;;  %5492 = vmatprep.subr.bf16.mxu1 %v4878_v25  ;;  %v4972_v24 = vld [vmem:[#allocation4 + $0x808] sm:$0xff]  ;;  %v4974_v25 = vld [vmem:[#allocation4 + $0x818] sm:$0xff] }
 0x9b4   :  { %5321 = vmatpush1.bf16.msra.mxu0 %v4875_v4  ;;  %5493 = vmatpush1.bf16.msra.mxu1 %v4877_v26  ;;  %v4971_v4 = vld [vmem:[#allocation4 + $0x800] sm:$0xff]  ;;  %v4973_v26 = vld [vmem:[#allocation4 + $0x810] sm:$0xff] }
 0x9b5   :  { %5322 = vmatprep.subr.bf16.mxu0 %v4884_v27  ;;  %5494 = vmatprep.subr.bf16.mxu1 %v4886_v31  ;;  %v4980_v27 = vld [vmem:[#allocation4 + $0x848] sm:$0xff]  ;;  %v4982_v31 = vld [vmem:[#allocation4 + $0x858] sm:$0xff] }
 0x9b8   :  { %5323 = vmatpush1.bf16.msra.mxu0 %v4883_v32  ;;  %5495 = vmatpush1.bf16.msra.mxu1 %v4885_v47  ;;  %v4979_v32 = vld [vmem:[#allocation4 + $0x840] sm:$0xff]  ;;  %v4981_v47 = vld [vmem:[#allocation4 + $0x850] sm:$0xff] }
 0x9b9   :  { %5324 = vmatprep.subr.bf16.mxu0 %v4892_v33  ;;  %5496 = vmatprep.subr.bf16.mxu1 %v4894_v34  ;;  %v4988_v33 = vld [vmem:[#allocation4 + $0x888] sm:$0xff]  ;;  %v4990_v34 = vld [vmem:[#allocation4 + $0x898] sm:$0xff] }
 0x9bc   :  { %5325 = vmatpush1.bf16.msra.mxu0 %v4891_v2  ;;  %5497 = vmatpush1.bf16.msra.mxu1 %v4893_v5  ;;  %v4987_v2 = vld [vmem:[#allocation4 + $0x880] sm:$0xff]  ;;  %v4989_v5 = vld [vmem:[#allocation4 + $0x890] sm:$0xff] }
 0x9bd   :  { %5326 = vmatprep.subr.bf16.mxu0 %v4900_v49  ;;  %5498 = vmatprep.subr.bf16.mxu1 %v4902_v53  ;;  %v4996_v49 = vld [vmem:[#allocation4 + $0x8c8] sm:$0xff]  ;;  %v4998_v53 = vld [vmem:[#allocation4 + $0x8d8] sm:$0xff] }
 0x9c0   :  { %5327 = vmatpush1.bf16.msra.mxu0 %v4899_v39  ;;  %5499 = vmatpush1.bf16.msra.mxu1 %v4901_v43  ;;  %v4995_v39 = vld [vmem:[#allocation4 + $0x8c0] sm:$0xff]  ;;  %v4997_v43 = vld [vmem:[#allocation4 + $0x8d0] sm:$0xff] }
 0x9c1   :  { %5328 = vmatprep.subr.bf16.mxu0 %v4908_v45  ;;  %5500 = vmatprep.subr.bf16.mxu1 %v4910_v46  ;;  %v5004_v45 = vld [vmem:[#allocation4 + $0x908] sm:$0xff]  ;;  %v5006_v46 = vld [vmem:[#allocation4 + $0x918] sm:$0xff] }
 0x9c4   :  { %5329 = vmatpush1.bf16.msra.mxu0 %v4907_v60  ;;  %5501 = vmatpush1.bf16.msra.mxu1 %v4909_v50  ;;  %v5003_v60 = vld [vmem:[#allocation4 + $0x900] sm:$0xff]  ;;  %v5005_v50 = vld [vmem:[#allocation4 + $0x910] sm:$0xff] }
 0x9c5   :  { %5330 = vmatprep.subr.bf16.mxu0 %v4916_v21  ;;  %5502 = vmatprep.subr.bf16.mxu1 %v4918_v51  ;;  %v5012_v21 = vld [vmem:[#allocation4 + $0x948] sm:$0xff]  ;;  %v5014_v51 = vld [vmem:[#allocation4 + $0x958] sm:$0xff] }
 0x9c8   :  { %5331 = vmatpush1.bf16.msra.mxu0 %v4915_v54  ;;  %5503 = vmatpush1.bf16.msra.mxu1 %v4917_v55  ;;  %v5011_v54 = vld [vmem:[#allocation4 + $0x940] sm:$0xff]  ;;  %v5013_v55 = vld [vmem:[#allocation4 + $0x950] sm:$0xff] }
 0x9c9   :  { %5332 = vmatprep.subr.bf16.mxu0 %v4924_v58  ;;  %5504 = vmatprep.subr.bf16.mxu1 %v4926_v30  ;;  %v5020_v58 = vld [vmem:[#allocation4 + $0x988] sm:$0xff]  ;;  %v5022_v30 = vld [vmem:[#allocation4 + $0x998] sm:$0xff] }
 0x9cc   :  { %5333 = vmatpush1.bf16.msra.mxu0 %v4923_v59  ;;  %5505 = vmatpush1.bf16.msra.mxu1 %v4925_v61  ;;  %v5019_v59 = vld [vmem:[#allocation4 + $0x980] sm:$0xff]  ;;  %v5021_v61 = vld [vmem:[#allocation4 + $0x990] sm:$0xff] }
 0x9cd   :  { %5334 = vmatprep.subr.bf16.mxu0 %v4932_v62  ;;  %5506 = vmatprep.subr.bf16.mxu1 %v4934_v7  ;;  %v5028_v62 = vld [vmem:[#allocation4 + $0x9c8] sm:$0xff]  ;;  %v5030_v7 = vld [vmem:[#allocation4 + $0x9d8] sm:$0xff] }
 0x9d0   :  { %5335 = vmatpush1.bf16.msra.mxu0 %v4931_v23  ;;  %5507 = vmatpush1.bf16.msra.mxu1 %v4933_v15  ;;  %v5027_v23 = vld [vmem:[#allocation4 + $0x9c0] sm:$0xff]  ;;  %v5029_v15 = vld [vmem:[#allocation4 + $0x9d0] sm:$0xff] }
 0x9d1   :  { %5336 = vmatprep.subr.bf16.mxu0 %v4940_v38  ;;  %5508 = vmatprep.subr.bf16.mxu1 %v4942_v36  ;;  %v5036_v38 = vld [vmem:[#allocation4 + $0xa08] sm:$0xff]  ;;  %v5038_v36 = vld [vmem:[#allocation4 + $0xa18] sm:$0xff] }
 0x9d4   :  { %5337 = vmatpush1.bf16.msra.mxu0 %v4939_v52  ;;  %5509 = vmatpush1.bf16.msra.mxu1 %v4941_v1  ;;  %v5035_v52 = vld [vmem:[#allocation4 + $0xa00] sm:$0xff]  ;;  %v5037_v1 = vld [vmem:[#allocation4 + $0xa10] sm:$0xff] }
 0x9d5   :  { %5338 = vmatprep.subr.bf16.mxu0 %v4948_v28  ;;  %5510 = vmatprep.subr.bf16.mxu1 %v4950_v18  ;;  %v5044_v28 = vld [vmem:[#allocation4 + $0xa48] sm:$0xff]  ;;  %v5046_v18 = vld [vmem:[#allocation4 + $0xa58] sm:$0xff] }
 0x9d8   :  { %5339 = vmatpush1.bf16.msra.mxu0 %v4947_v10  ;;  %5511 = vmatpush1.bf16.msra.mxu1 %v4949_v48  ;;  %v5043_v10 = vld [vmem:[#allocation4 + $0xa40] sm:$0xff]  ;;  %v5045_v48 = vld [vmem:[#allocation4 + $0xa50] sm:$0xff] }
 0x9d9   :  { %5340 = vmatprep.subr.bf16.mxu0 %v4956_v29  ;;  %5512 = vmatprep.subr.bf16.mxu1 %v4958_v19  ;;  %v5052_v29 = vld [vmem:[#allocation4 + $0xa88] sm:$0xff]  ;;  %v5054_v19 = vld [vmem:[#allocation4 + $0xa98] sm:$0xff] }
 0x9dc   :  { %5341 = vmatpush1.bf16.msra.mxu0 %v4955_v57  ;;  %5513 = vmatpush1.bf16.msra.mxu1 %v4957_v20  ;;  %v5051_v57 = vld [vmem:[#allocation4 + $0xa80] sm:$0xff]  ;;  %v5053_v20 = vld [vmem:[#allocation4 + $0xa90] sm:$0xff] }
 0x9dd   :  { %5342 = vmatprep.subr.bf16.mxu0 %v4964_v0  ;;  %5514 = vmatprep.subr.bf16.mxu1 %v4966_v3  ;;  %v5060_v0 = vld [vmem:[#allocation4 + $0xac8] sm:$0xff]  ;;  %v5062_v3 = vld [vmem:[#allocation4 + $0xad8] sm:$0xff] }
 0x9e0   :  { %5343 = vmatpush1.bf16.msra.mxu0 %v4963_v22  ;;  %5515 = vmatpush1.bf16.msra.mxu1 %v4965_v17  ;;  %v5059_v22 = vld [vmem:[#allocation4 + $0xac0] sm:$0xff]  ;;  %v5061_v17 = vld [vmem:[#allocation4 + $0xad0] sm:$0xff] }
 0x9e1   :  { %5355 = vmatprep.subr.bf16.mxu0 %v4972_v24  ;;  %5527 = vmatprep.subr.bf16.mxu1 %v4974_v25  ;;  %v5068_v24 = vld [vmem:[#allocation4 + $0xb08] sm:$0xff]  ;;  %v5070_v25 = vld [vmem:[#allocation4 + $0xb18] sm:$0xff] }
 0x9e3   :  { %5345 = vmatmul.mubr.bf16.vlgmr.msra.gmra.mrb[24].mxu0 %v7860_v35  ;;  %5517 = vmatmul.mubr.bf16.vlgmr.msra.gmra.mrb[24].mxu1 %v7860_v35 }
 0x9e4   :  { %5356 = vmatpush1.bf16.msra.mxu0 %v4971_v4  ;;  %5528 = vmatpush1.bf16.msra.mxu1 %v4973_v26  ;;  %v5067_v4 = vld [vmem:[#allocation4 + $0xb00] sm:$0xff]  ;;  %v5069_v26 = vld [vmem:[#allocation4 + $0xb10] sm:$0xff] }
 0x9e5   :  { %5357 = vmatprep.subr.bf16.mxu0 %v4980_v27  ;;  %5529 = vmatprep.subr.bf16.mxu1 %v4982_v31  ;;  %v5076_v27 = vld [vmem:[#allocation4 + $0xb48] sm:$0xff]  ;;  %v5078_v31 = vld [vmem:[#allocation4 + $0xb58] sm:$0xff] }
 0x9e6   :  { %5387 = vmatprep.mubr.bf16.mxu0 %v7892_v37  ;;  %5559 = vmatprep.mubr.bf16.mxu1 %v7892_v37 }
 0x9e8   :  { %5358 = vmatpush1.bf16.msra.mxu0 %v4979_v32  ;;  %5530 = vmatpush1.bf16.msra.mxu1 %v4981_v47  ;;  %v5075_v32 = vld [vmem:[#allocation4 + $0xb40] sm:$0xff]  ;;  %v5077_v47 = vld [vmem:[#allocation4 + $0xb50] sm:$0xff] }
 0x9e9   :  { %5359 = vmatprep.subr.bf16.mxu0 %v4988_v33  ;;  %5531 = vmatprep.subr.bf16.mxu1 %v4990_v34  ;;  %v5084_v33 = vld [vmem:[#allocation4 + $0xb88] sm:$0xff]  ;;  %v5086_v34 = vld [vmem:[#allocation4 + $0xb98] sm:$0xff] }
 0x9ec   :  { %5360 = vmatpush1.bf16.msra.mxu0 %v4987_v2  ;;  %5532 = vmatpush1.bf16.msra.mxu1 %v4989_v5  ;;  %v5083_v2 = vld [vmem:[#allocation4 + $0xb80] sm:$0xff]  ;;  %v5085_v5 = vld [vmem:[#allocation4 + $0xb90] sm:$0xff] }
 0x9ed   :  { %5361 = vmatprep.subr.bf16.mxu0 %v4996_v49  ;;  %5533 = vmatprep.subr.bf16.mxu1 %v4998_v53  ;;  %v5092_v49 = vld [vmem:[#allocation4 + $0xbc8] sm:$0xff]  ;;  %v5094_v53 = vld [vmem:[#allocation4 + $0xbd8] sm:$0xff] }
 0x9f0   :  { %5362 = vmatpush1.bf16.msra.mxu0 %v4995_v39  ;;  %5534 = vmatpush1.bf16.msra.mxu1 %v4997_v43  ;;  %v5091_v39 = vld [vmem:[#allocation4 + $0xbc0] sm:$0xff]  ;;  %v5093_v43 = vld [vmem:[#allocation4 + $0xbd0] sm:$0xff] }
 0x9f1   :  { %5363 = vmatprep.subr.bf16.mxu0 %v5004_v45  ;;  %5535 = vmatprep.subr.bf16.mxu1 %v5006_v46  ;;  %v5100_v45 = vld [vmem:[#allocation4 + $0xc08] sm:$0xff]  ;;  %v5102_v46 = vld [vmem:[#allocation4 + $0xc18] sm:$0xff] }
 0x9f4   :  { %5364 = vmatpush1.bf16.msra.mxu0 %v5003_v60  ;;  %5536 = vmatpush1.bf16.msra.mxu1 %v5005_v50  ;;  %v5099_v60 = vld [vmem:[#allocation4 + $0xc00] sm:$0xff]  ;;  %v5101_v50 = vld [vmem:[#allocation4 + $0xc10] sm:$0xff] }
 0x9f5   :  { %5365 = vmatprep.subr.bf16.mxu0 %v5012_v21  ;;  %5537 = vmatprep.subr.bf16.mxu1 %v5014_v51  ;;  %v5108_v21 = vld [vmem:[#allocation4 + $0xc48] sm:$0xff]  ;;  %v5110_v51 = vld [vmem:[#allocation4 + $0xc58] sm:$0xff] }
 0x9f8   :  { %5366 = vmatpush1.bf16.msra.mxu0 %v5011_v54  ;;  %5538 = vmatpush1.bf16.msra.mxu1 %v5013_v55  ;;  %v5107_v54 = vld [vmem:[#allocation4 + $0xc40] sm:$0xff]  ;;  %v5109_v55 = vld [vmem:[#allocation4 + $0xc50] sm:$0xff] }
 0x9f9   :  { %5367 = vmatprep.subr.bf16.mxu0 %v5020_v58  ;;  %5539 = vmatprep.subr.bf16.mxu1 %v5022_v30  ;;  %v5116_v58 = vld [vmem:[#allocation4 + $0xc88] sm:$0xff]  ;;  %v5118_v30 = vld [vmem:[#allocation4 + $0xc98] sm:$0xff] }
 0x9fc   :  { %5368 = vmatpush1.bf16.msra.mxu0 %v5019_v59  ;;  %5540 = vmatpush1.bf16.msra.mxu1 %v5021_v61  ;;  %v5115_v59 = vld [vmem:[#allocation4 + $0xc80] sm:$0xff]  ;;  %v5117_v61 = vld [vmem:[#allocation4 + $0xc90] sm:$0xff] }
 0x9fd   :  { %5369 = vmatprep.subr.bf16.mxu0 %v5028_v62  ;;  %5541 = vmatprep.subr.bf16.mxu1 %v5030_v7  ;;  %v5124_v62 = vld [vmem:[#allocation4 + $0xcc8] sm:$0xff]  ;;  %v5126_v7 = vld [vmem:[#allocation4 + $0xcd8] sm:$0xff] }
 0xa00   :  { %5370 = vmatpush1.bf16.msra.mxu0 %v5027_v23  ;;  %5542 = vmatpush1.bf16.msra.mxu1 %v5029_v15  ;;  %v5123_v23 = vld [vmem:[#allocation4 + $0xcc0] sm:$0xff]  ;;  %v5125_v15 = vld [vmem:[#allocation4 + $0xcd0] sm:$0xff] }
 0xa01   :  { %5371 = vmatprep.subr.bf16.mxu0 %v5036_v38  ;;  %5543 = vmatprep.subr.bf16.mxu1 %v5038_v36  ;;  %v5132_v38 = vld [vmem:[#allocation4 + $0xd08] sm:$0xff]  ;;  %v5134_v36 = vld [vmem:[#allocation4 + $0xd18] sm:$0xff] }
 0xa04   :  { %5372 = vmatpush1.bf16.msra.mxu0 %v5035_v52  ;;  %5544 = vmatpush1.bf16.msra.mxu1 %v5037_v1  ;;  %v5131_v52 = vld [vmem:[#allocation4 + $0xd00] sm:$0xff]  ;;  %v5133_v1 = vld [vmem:[#allocation4 + $0xd10] sm:$0xff] }
 0xa05   :  { %5373 = vmatprep.subr.bf16.mxu0 %v5044_v28  ;;  %5545 = vmatprep.subr.bf16.mxu1 %v5046_v18  ;;  %v5140_v28 = vld [vmem:[#allocation4 + $0xd48] sm:$0xff]  ;;  %v5142_v18 = vld [vmem:[#allocation4 + $0xd58] sm:$0xff] }
 0xa08   :  { %5374 = vmatpush1.bf16.msra.mxu0 %v5043_v10  ;;  %5546 = vmatpush1.bf16.msra.mxu1 %v5045_v48  ;;  %v5139_v10 = vld [vmem:[#allocation4 + $0xd40] sm:$0xff]  ;;  %v5141_v48 = vld [vmem:[#allocation4 + $0xd50] sm:$0xff] }
 0xa09   :  { %5375 = vmatprep.subr.bf16.mxu0 %v5052_v29  ;;  %5547 = vmatprep.subr.bf16.mxu1 %v5054_v19  ;;  %v5148_v29 = vld [vmem:[#allocation4 + $0xd88] sm:$0xff]  ;;  %v5150_v19 = vld [vmem:[#allocation4 + $0xd98] sm:$0xff] }
 0xa0c   :  { %5376 = vmatpush1.bf16.msra.mxu0 %v5051_v57  ;;  %5548 = vmatpush1.bf16.msra.mxu1 %v5053_v20  ;;  %v5147_v57 = vld [vmem:[#allocation4 + $0xd80] sm:$0xff]  ;;  %v5149_v20 = vld [vmem:[#allocation4 + $0xd90] sm:$0xff] }
 0xa0d   :  { %5377 = vmatprep.subr.bf16.mxu0 %v5060_v0  ;;  %5549 = vmatprep.subr.bf16.mxu1 %v5062_v3  ;;  %v5156_v0 = vld [vmem:[#allocation4 + $0xdc8] sm:$0xff]  ;;  %v5158_v3 = vld [vmem:[#allocation4 + $0xdd8] sm:$0xff] }
 0xa10   :  { %5378 = vmatpush1.bf16.msra.mxu0 %v5059_v22  ;;  %5550 = vmatpush1.bf16.msra.mxu1 %v5061_v17  ;;  %v5155_v22 = vld [vmem:[#allocation4 + $0xdc0] sm:$0xff]  ;;  %v5157_v17 = vld [vmem:[#allocation4 + $0xdd0] sm:$0xff] }
 0xa11   :  { %5379 = vmatprep.subr.bf16.mxu0 %v5068_v24  ;;  %5551 = vmatprep.subr.bf16.mxu1 %v5070_v25  ;;  %v5164_v24 = vld [vmem:[#allocation4 + $0xe08] sm:$0xff]  ;;  %v5166_v25 = vld [vmem:[#allocation4 + $0xe18] sm:$0xff] }
 0xa14   :  { %5380 = vmatpush1.bf16.msra.mxu0 %v5067_v4  ;;  %5552 = vmatpush1.bf16.msra.mxu1 %v5069_v26  ;;  %v5163_v4 = vld [vmem:[#allocation4 + $0xe00] sm:$0xff]  ;;  %v5165_v26 = vld [vmem:[#allocation4 + $0xe10] sm:$0xff] }
 0xa15   :  { %5381 = vmatprep.subr.bf16.mxu0 %v5076_v27  ;;  %5553 = vmatprep.subr.bf16.mxu1 %v5078_v31  ;;  %v5172_v27 = vld [vmem:[#allocation4 + $0xe48] sm:$0xff]  ;;  %v5174_v31 = vld [vmem:[#allocation4 + $0xe58] sm:$0xff] }
 0xa18   :  { %5382 = vmatpush1.bf16.msra.mxu0 %v5075_v32  ;;  %5554 = vmatpush1.bf16.msra.mxu1 %v5077_v47  ;;  %v5171_v32 = vld [vmem:[#allocation4 + $0xe40] sm:$0xff]  ;;  %v5173_v47 = vld [vmem:[#allocation4 + $0xe50] sm:$0xff] }
 0xa19   :  { %5383 = vmatprep.subr.bf16.mxu0 %v5084_v33  ;;  %5555 = vmatprep.subr.bf16.mxu1 %v5086_v34  ;;  %v5180_v33 = vld [vmem:[#allocation4 + $0xe88] sm:$0xff]  ;;  %v5182_v34 = vld [vmem:[#allocation4 + $0xe98] sm:$0xff] }
 0xa1c   :  { %5384 = vmatpush1.bf16.msra.mxu0 %v5083_v2  ;;  %5556 = vmatpush1.bf16.msra.mxu1 %v5085_v5  ;;  %v5179_v2 = vld [vmem:[#allocation4 + $0xe80] sm:$0xff]  ;;  %v5181_v5 = vld [vmem:[#allocation4 + $0xe90] sm:$0xff] }
 0xa1d   :  { %5385 = vmatprep.subr.bf16.mxu0 %v5092_v49  ;;  %5557 = vmatprep.subr.bf16.mxu1 %v5094_v53  ;;  %v5188_v49 = vld [vmem:[#allocation4 + $0xec8] sm:$0xff]  ;;  %v5190_v53 = vld [vmem:[#allocation4 + $0xed8] sm:$0xff] }
 0xa20   :  { %5386 = vmatpush1.bf16.msra.mxu0 %v5091_v39  ;;  %5558 = vmatpush1.bf16.msra.mxu1 %v5093_v43  ;;  %v5187_v39 = vld [vmem:[#allocation4 + $0xec0] sm:$0xff]  ;;  %v5189_v43 = vld [vmem:[#allocation4 + $0xed0] sm:$0xff] }
 0xa21   :  { %5398 = vmatprep.subr.bf16.mxu0 %v5100_v45  ;;  %5570 = vmatprep.subr.bf16.mxu1 %v5102_v46  ;;  %v5196_v45 = vld [vmem:[#allocation4 + $0xf08] sm:$0xff]  ;;  %v5198_v46 = vld [vmem:[#allocation4 + $0xf18] sm:$0xff] }
 0xa23   :  { %5388 = vmatmul.mubr.bf16.vlgmr.msra.gmra.mrb[24].mxu0 %v7888_v16  ;;  %5560 = vmatmul.mubr.bf16.vlgmr.msra.gmra.mrb[24].mxu1 %v7888_v16 }
 0xa24   :  { %5399 = vmatpush1.bf16.msra.mxu0 %v5099_v60  ;;  %5571 = vmatpush1.bf16.msra.mxu1 %v5101_v50  ;;  %v5195_v60 = vld [vmem:[#allocation4 + $0xf00] sm:$0xff]  ;;  %v5197_v50 = vld [vmem:[#allocation4 + $0xf10] sm:$0xff] }
 0xa25   :  { %5400 = vmatprep.subr.bf16.mxu0 %v5108_v21  ;;  %5572 = vmatprep.subr.bf16.mxu1 %v5110_v51  ;;  %v5204_v21 = vld [vmem:[#allocation4 + $0xf48] sm:$0xff]  ;;  %v5206_v51 = vld [vmem:[#allocation4 + $0xf58] sm:$0xff] }
 0xa26   :  { %5430 = vmatprep.mubr.bf16.mxu0 %v7894_v56  ;;  %5602 = vmatprep.mubr.bf16.mxu1 %v7894_v56 }
 0xa28   :  { %5401 = vmatpush1.bf16.msra.mxu0 %v5107_v54  ;;  %5573 = vmatpush1.bf16.msra.mxu1 %v5109_v55  ;;  %v5203_v54 = vld [vmem:[#allocation4 + $0xf40] sm:$0xff]  ;;  %v5205_v55 = vld [vmem:[#allocation4 + $0xf50] sm:$0xff] }
 0xa29   :  { %5402 = vmatprep.subr.bf16.mxu0 %v5116_v58  ;;  %5574 = vmatprep.subr.bf16.mxu1 %v5118_v30  ;;  %v5212_v58 = vld [vmem:[#allocation4 + $0xf88] sm:$0xff]  ;;  %v5214_v30 = vld [vmem:[#allocation4 + $0xf98] sm:$0xff] }
 0xa2c   :  { %5403 = vmatpush1.bf16.msra.mxu0 %v5115_v59  ;;  %5575 = vmatpush1.bf16.msra.mxu1 %v5117_v61  ;;  %v5211_v59 = vld [vmem:[#allocation4 + $0xf80] sm:$0xff]  ;;  %v5213_v61 = vld [vmem:[#allocation4 + $0xf90] sm:$0xff] }
 0xa2d   :  { %5404 = vmatprep.subr.bf16.mxu0 %v5124_v62  ;;  %5576 = vmatprep.subr.bf16.mxu1 %v5126_v7  ;;  %v5220_v62 = vld [vmem:[#allocation4 + $0xfc8] sm:$0xff]  ;;  %v5222_v7 = vld [vmem:[#allocation4 + $0xfd8] sm:$0xff] }
 0xa30   :  { %5405 = vmatpush1.bf16.msra.mxu0 %v5123_v23  ;;  %5577 = vmatpush1.bf16.msra.mxu1 %v5125_v15  ;;  %v5219_v23 = vld [vmem:[#allocation4 + $0xfc0] sm:$0xff]  ;;  %v5221_v15 = vld [vmem:[#allocation4 + $0xfd0] sm:$0xff] }
 0xa31   :  { %5406 = vmatprep.subr.bf16.mxu0 %v5132_v38  ;;  %5578 = vmatprep.subr.bf16.mxu1 %v5134_v36  ;;  %v4720_v38 = vld [vmem:[#allocation4 + $0x28] sm:$0xff]  ;;  %v4722_v36 = vld [vmem:[#allocation4 + $0x38] sm:$0xff] }
 0xa34   :  { %5407 = vmatpush1.bf16.msra.mxu0 %v5131_v52  ;;  %5579 = vmatpush1.bf16.msra.mxu1 %v5133_v1  ;;  %v4719_v52 = vld [vmem:[#allocation4 + $0x20] sm:$0xff]  ;;  %v4721_v1 = vld [vmem:[#allocation4 + $0x30] sm:$0xff] }
 0xa35   :  { %5408 = vmatprep.subr.bf16.mxu0 %v5140_v28  ;;  %5580 = vmatprep.subr.bf16.mxu1 %v5142_v18  ;;  %v4728_v28 = vld [vmem:[#allocation4 + $0x68] sm:$0xff]  ;;  %v4730_v18 = vld [vmem:[#allocation4 + $0x78] sm:$0xff] }
 0xa38   :  { %5409 = vmatpush1.bf16.msra.mxu0 %v5139_v10  ;;  %5581 = vmatpush1.bf16.msra.mxu1 %v5141_v48  ;;  %v4727_v10 = vld [vmem:[#allocation4 + $0x60] sm:$0xff]  ;;  %v4729_v48 = vld [vmem:[#allocation4 + $0x70] sm:$0xff] }
 0xa39   :  { %5410 = vmatprep.subr.bf16.mxu0 %v5148_v29  ;;  %5582 = vmatprep.subr.bf16.mxu1 %v5150_v19  ;;  %v4736_v29 = vld [vmem:[#allocation4 + $0xa8] sm:$0xff]  ;;  %v4738_v19 = vld [vmem:[#allocation4 + $0xb8] sm:$0xff] }
 0xa3c   :  { %5411 = vmatpush1.bf16.msra.mxu0 %v5147_v57  ;;  %5583 = vmatpush1.bf16.msra.mxu1 %v5149_v20  ;;  %v4735_v57 = vld [vmem:[#allocation4 + $0xa0] sm:$0xff]  ;;  %v4737_v20 = vld [vmem:[#allocation4 + $0xb0] sm:$0xff] }
 0xa3d   :  { %5412 = vmatprep.subr.bf16.mxu0 %v5156_v0  ;;  %5584 = vmatprep.subr.bf16.mxu1 %v5158_v3  ;;  %v4744_v0 = vld [vmem:[#allocation4 + $0xe8] sm:$0xff]  ;;  %v4746_v3 = vld [vmem:[#allocation4 + $0xf8] sm:$0xff] }
 0xa40   :  { %5413 = vmatpush1.bf16.msra.mxu0 %v5155_v22  ;;  %5585 = vmatpush1.bf16.msra.mxu1 %v5157_v17  ;;  %v4743_v22 = vld [vmem:[#allocation4 + $0xe0] sm:$0xff]  ;;  %v4745_v17 = vld [vmem:[#allocation4 + $0xf0] sm:$0xff] }
 0xa41   :  { %5414 = vmatprep.subr.bf16.mxu0 %v5164_v24  ;;  %5586 = vmatprep.subr.bf16.mxu1 %v5166_v25  ;;  %v4752_v24 = vld [vmem:[#allocation4 + $0x128] sm:$0xff]  ;;  %v4754_v25 = vld [vmem:[#allocation4 + $0x138] sm:$0xff] }
 0xa44   :  { %5415 = vmatpush1.bf16.msra.mxu0 %v5163_v4  ;;  %5587 = vmatpush1.bf16.msra.mxu1 %v5165_v26  ;;  %v4753_v4 = vld [vmem:[#allocation4 + $0x130] sm:$0xff]  ;;  %v4760_v26 = vld [vmem:[#allocation4 + $0x168] sm:$0xff] }
 0xa45   :  { %5416 = vmatprep.subr.bf16.mxu0 %v5172_v27  ;;  %5588 = vmatprep.subr.bf16.mxu1 %v5174_v31  ;;  %v4762_v27 = vld [vmem:[#allocation4 + $0x178] sm:$0xff]  ;;  %v4759_v31 = vld [vmem:[#allocation4 + $0x160] sm:$0xff] }
 0xa48   :  { %5417 = vmatpush1.bf16.msra.mxu0 %v5171_v32  ;;  %5589 = vmatpush1.bf16.msra.mxu1 %v5173_v47  ;;  %v4761_v32 = vld [vmem:[#allocation4 + $0x170] sm:$0xff]  ;;  %v4768_v47 = vld [vmem:[#allocation4 + $0x1a8] sm:$0xff] }
 0xa49   :  { %5418 = vmatprep.subr.bf16.mxu0 %v5180_v33  ;;  %5590 = vmatprep.subr.bf16.mxu1 %v5182_v34  ;;  %v4770_v33 = vld [vmem:[#allocation4 + $0x1b8] sm:$0xff]  ;;  %v4767_v34 = vld [vmem:[#allocation4 + $0x1a0] sm:$0xff] }
 0xa4c   :  { %5419 = vmatpush1.bf16.msra.mxu0 %v5179_v2  ;;  %5591 = vmatpush1.bf16.msra.mxu1 %v5181_v5  ;;  %v4769_v2 = vld [vmem:[#allocation4 + $0x1b0] sm:$0xff]  ;;  %v4776_v5 = vld [vmem:[#allocation4 + $0x1e8] sm:$0xff] }
 0xa4d   :  { %5420 = vmatprep.subr.bf16.mxu0 %v5188_v49  ;;  %5592 = vmatprep.subr.bf16.mxu1 %v5190_v53  ;;  %v4778_v49 = vld [vmem:[#allocation4 + $0x1f8] sm:$0xff]  ;;  %v4775_v53 = vld [vmem:[#allocation4 + $0x1e0] sm:$0xff] }
 0xa50   :  { %5421 = vmatpush1.bf16.msra.mxu0 %v5187_v39  ;;  %5593 = vmatpush1.bf16.msra.mxu1 %v5189_v43  ;;  %v4777_v39 = vld [vmem:[#allocation4 + $0x1f0] sm:$0xff]  ;;  %v4784_v43 = vld [vmem:[#allocation4 + $0x228] sm:$0xff] }
 0xa51   :  { %5422 = vmatprep.subr.bf16.mxu0 %v5196_v45  ;;  %5594 = vmatprep.subr.bf16.mxu1 %v5198_v46  ;;  %v4786_v45 = vld [vmem:[#allocation4 + $0x238] sm:$0xff]  ;;  %v4783_v46 = vld [vmem:[#allocation4 + $0x220] sm:$0xff] }
 0xa54   :  { %5423 = vmatpush1.bf16.msra.mxu0 %v5195_v60  ;;  %5595 = vmatpush1.bf16.msra.mxu1 %v5197_v50  ;;  %v4785_v60 = vld [vmem:[#allocation4 + $0x230] sm:$0xff]  ;;  %v4792_v50 = vld [vmem:[#allocation4 + $0x268] sm:$0xff] }
 0xa55   :  { %5424 = vmatprep.subr.bf16.mxu0 %v5204_v21  ;;  %5596 = vmatprep.subr.bf16.mxu1 %v5206_v51  ;;  %v4794_v21 = vld [vmem:[#allocation4 + $0x278] sm:$0xff]  ;;  %v4791_v51 = vld [vmem:[#allocation4 + $0x260] sm:$0xff] }
 0xa58   :  { %5425 = vmatpush1.bf16.msra.mxu0 %v5203_v54  ;;  %5597 = vmatpush1.bf16.msra.mxu1 %v5205_v55  ;;  %v4793_v54 = vld [vmem:[#allocation4 + $0x270] sm:$0xff]  ;;  %v4800_v55 = vld [vmem:[#allocation4 + $0x2a8] sm:$0xff] }
 0xa59   :  { %5426 = vmatprep.subr.bf16.mxu0 %v5212_v58  ;;  %5598 = vmatprep.subr.bf16.mxu1 %v5214_v30  ;;  %v4802_v58 = vld [vmem:[#allocation4 + $0x2b8] sm:$0xff]  ;;  %v4799_v30 = vld [vmem:[#allocation4 + $0x2a0] sm:$0xff] }
 0xa5c   :  { %5427 = vmatpush1.bf16.msra.mxu0 %v5211_v59  ;;  %5599 = vmatpush1.bf16.msra.mxu1 %v5213_v61  ;;  %v4801_v59 = vld [vmem:[#allocation4 + $0x2b0] sm:$0xff]  ;;  %v4808_v61 = vld [vmem:[#allocation4 + $0x2e8] sm:$0xff] }
 0xa5d   :  { %5428 = vmatprep.subr.bf16.mxu0 %v5220_v62  ;;  %5600 = vmatprep.subr.bf16.mxu1 %v5222_v7  ;;  %v4810_v62 = vld [vmem:[#allocation4 + $0x2f8] sm:$0xff]  ;;  %v4807_v7 = vld [vmem:[#allocation4 + $0x2e0] sm:$0xff] }
 0xa60   :  { %5429 = vmatpush1.bf16.msra.mxu0 %v5219_v23  ;;  %5601 = vmatpush1.bf16.msra.mxu1 %v5221_v15  ;;  %v4809_v23 = vld [vmem:[#allocation4 + $0x2f0] sm:$0xff]  ;;  %v4816_v15 = vld [vmem:[#allocation4 + $0x328] sm:$0xff] }
 0xa61   :  { %5613 = vmatprep.subr.bf16.mxu0 %v4720_v38  ;;  %5785 = vmatprep.subr.bf16.mxu1 %v4722_v36  ;;  %v4818_v38 = vld [vmem:[#allocation4 + $0x338] sm:$0xff]  ;;  %v4815_v36 = vld [vmem:[#allocation4 + $0x320] sm:$0xff] }
 0xa63   :  { %5431 = vmatmul.mubr.bf16.vlgmr.msra.gmra.mrb[24].mxu0 %v7890_v44  ;;  %5603 = vmatmul.mubr.bf16.vlgmr.msra.gmra.mrb[24].mxu1 %v7890_v44 }
 0xa64   :  { %5614 = vmatpush1.bf16.msra.mxu0 %v4719_v52  ;;  %5786 = vmatpush1.bf16.msra.mxu1 %v4721_v1  ;;  %v4817_v52 = vld [vmem:[#allocation4 + $0x330] sm:$0xff]  ;;  %v4824_v1 = vld [vmem:[#allocation4 + $0x368] sm:$0xff] }
 0xa65   :  { %5615 = vmatprep.subr.bf16.mxu0 %v4728_v28  ;;  %5787 = vmatprep.subr.bf16.mxu1 %v4730_v18  ;;  %v4826_v28 = vld [vmem:[#allocation4 + $0x378] sm:$0xff]  ;;  %v4823_v18 = vld [vmem:[#allocation4 + $0x360] sm:$0xff] }
 0xa66   :  { %5645 = vmatprep.mubr.bf16.mxu0 %v7862_v13  ;;  %5817 = vmatprep.mubr.bf16.mxu1 %v7862_v13  ;;  %v4751_v13 = vld [vmem:[#allocation4 + $0x120] sm:$0xff] }
 0xa68   :  { %5616 = vmatpush1.bf16.msra.mxu0 %v4727_v10  ;;  %5788 = vmatpush1.bf16.msra.mxu1 %v4729_v48  ;;  %v4825_v10 = vld [vmem:[#allocation4 + $0x370] sm:$0xff]  ;;  %v4832_v48 = vld [vmem:[#allocation4 + $0x3a8] sm:$0xff] }
 0xa69   :  { %5617 = vmatprep.subr.bf16.mxu0 %v4736_v29  ;;  %5789 = vmatprep.subr.bf16.mxu1 %v4738_v19  ;;  %v4834_v29 = vld [vmem:[#allocation4 + $0x3b8] sm:$0xff]  ;;  %v4831_v19 = vld [vmem:[#allocation4 + $0x3a0] sm:$0xff] }
 0xa6c   :  { %5618 = vmatpush1.bf16.msra.mxu0 %v4735_v57  ;;  %5790 = vmatpush1.bf16.msra.mxu1 %v4737_v20  ;;  %v4833_v57 = vld [vmem:[#allocation4 + $0x3b0] sm:$0xff]  ;;  %v4840_v20 = vld [vmem:[#allocation4 + $0x3e8] sm:$0xff] }
 0xa6d   :  { %5619 = vmatprep.subr.bf16.mxu0 %v4744_v0  ;;  %5791 = vmatprep.subr.bf16.mxu1 %v4746_v3  ;;  %v4842_v0 = vld [vmem:[#allocation4 + $0x3f8] sm:$0xff]  ;;  %v4839_v3 = vld [vmem:[#allocation4 + $0x3e0] sm:$0xff] }
 0xa70   :  { %5620 = vmatpush1.bf16.msra.mxu0 %v4743_v22  ;;  %5792 = vmatpush1.bf16.msra.mxu1 %v4745_v17  ;;  %v4841_v22 = vld [vmem:[#allocation4 + $0x3f0] sm:$0xff]  ;;  %v4848_v17 = vld [vmem:[#allocation4 + $0x428] sm:$0xff] }
 0xa71   :  { %5621 = vmatprep.subr.bf16.mxu0 %v4752_v24  ;;  %5793 = vmatprep.subr.bf16.mxu1 %v4754_v25  ;;  %v4850_v24 = vld [vmem:[#allocation4 + $0x438] sm:$0xff]  ;;  %v4847_v25 = vld [vmem:[#allocation4 + $0x420] sm:$0xff] }
 0xa74   :  { %5622 = vmatpush1.bf16.msra.mxu0 %v4751_v13  ;;  %5794 = vmatpush1.bf16.msra.mxu1 %v4753_v4  ;;  %v4849_v13 = vld [vmem:[#allocation4 + $0x430] sm:$0xff]  ;;  %v4856_v4 = vld [vmem:[#allocation4 + $0x468] sm:$0xff] }
 0xa75   :  { %5623 = vmatprep.subr.bf16.mxu0 %v4760_v26  ;;  %5795 = vmatprep.subr.bf16.mxu1 %v4762_v27  ;;  %v4858_v26 = vld [vmem:[#allocation4 + $0x478] sm:$0xff]  ;;  %v4855_v27 = vld [vmem:[#allocation4 + $0x460] sm:$0xff] }
 0xa78   :  { %5624 = vmatpush1.bf16.msra.mxu0 %v4759_v31  ;;  %5796 = vmatpush1.bf16.msra.mxu1 %v4761_v32  ;;  %v4857_v31 = vld [vmem:[#allocation4 + $0x470] sm:$0xff]  ;;  %v4864_v32 = vld [vmem:[#allocation4 + $0x4a8] sm:$0xff] }
 0xa79   :  { %5625 = vmatprep.subr.bf16.mxu0 %v4768_v47  ;;  %5797 = vmatprep.subr.bf16.mxu1 %v4770_v33  ;;  %v4866_v47 = vld [vmem:[#allocation4 + $0x4b8] sm:$0xff]  ;;  %v4863_v33 = vld [vmem:[#allocation4 + $0x4a0] sm:$0xff] }
 0xa7c   :  { %5626 = vmatpush1.bf16.msra.mxu0 %v4767_v34  ;;  %5798 = vmatpush1.bf16.msra.mxu1 %v4769_v2  ;;  %v4865_v34 = vld [vmem:[#allocation4 + $0x4b0] sm:$0xff]  ;;  %v4872_v2 = vld [vmem:[#allocation4 + $0x4e8] sm:$0xff] }
 0xa7d   :  { %5627 = vmatprep.subr.bf16.mxu0 %v4776_v5  ;;  %5799 = vmatprep.subr.bf16.mxu1 %v4778_v49  ;;  %v4871_v5 = vld [vmem:[#allocation4 + $0x4e0] sm:$0xff]  ;;  %v4873_v49 = vld [vmem:[#allocation4 + $0x4f0] sm:$0xff] }
 0xa80   :  { %5628 = vmatpush1.bf16.msra.mxu0 %v4775_v53  ;;  %5800 = vmatpush1.bf16.msra.mxu1 %v4777_v39  ;;  %v4880_v53 = vld [vmem:[#allocation4 + $0x528] sm:$0xff]  ;;  %v4882_v39 = vld [vmem:[#allocation4 + $0x538] sm:$0xff] }
 0xa81   :  { %5629 = vmatprep.subr.bf16.mxu0 %v4784_v43  ;;  %5801 = vmatprep.subr.bf16.mxu1 %v4786_v45  ;;  %v4881_v43 = vld [vmem:[#allocation4 + $0x530] sm:$0xff]  ;;  %v4888_v45 = vld [vmem:[#allocation4 + $0x568] sm:$0xff] }
 0xa84   :  { %5630 = vmatpush1.bf16.msra.mxu0 %v4783_v46  ;;  %5802 = vmatpush1.bf16.msra.mxu1 %v4785_v60  ;;  %v4890_v46 = vld [vmem:[#allocation4 + $0x578] sm:$0xff]  ;;  %v4887_v60 = vld [vmem:[#allocation4 + $0x560] sm:$0xff] }
 0xa85   :  { %5631 = vmatprep.subr.bf16.mxu0 %v4792_v50  ;;  %5803 = vmatprep.subr.bf16.mxu1 %v4794_v21  ;;  %v4889_v50 = vld [vmem:[#allocation4 + $0x570] sm:$0xff]  ;;  %v4896_v21 = vld [vmem:[#allocation4 + $0x5a8] sm:$0xff] }
 0xa88   :  { %5632 = vmatpush1.bf16.msra.mxu0 %v4791_v51  ;;  %5804 = vmatpush1.bf16.msra.mxu1 %v4793_v54  ;;  %v4898_v51 = vld [vmem:[#allocation4 + $0x5b8] sm:$0xff]  ;;  %v4895_v54 = vld [vmem:[#allocation4 + $0x5a0] sm:$0xff] }
 0xa89   :  { %5633 = vmatprep.subr.bf16.mxu0 %v4800_v55  ;;  %5805 = vmatprep.subr.bf16.mxu1 %v4802_v58  ;;  %v4897_v55 = vld [vmem:[#allocation4 + $0x5b0] sm:$0xff]  ;;  %v4904_v58 = vld [vmem:[#allocation4 + $0x5e8] sm:$0xff] }
 0xa8c   :  { %5634 = vmatpush1.bf16.msra.mxu0 %v4799_v30  ;;  %5806 = vmatpush1.bf16.msra.mxu1 %v4801_v59  ;;  %v4906_v30 = vld [vmem:[#allocation4 + $0x5f8] sm:$0xff]  ;;  %v4903_v59 = vld [vmem:[#allocation4 + $0x5e0] sm:$0xff] }
 0xa8d   :  { %5635 = vmatprep.subr.bf16.mxu0 %v4808_v61  ;;  %5807 = vmatprep.subr.bf16.mxu1 %v4810_v62  ;;  %v4905_v61 = vld [vmem:[#allocation4 + $0x5f0] sm:$0xff]  ;;  %v4912_v62 = vld [vmem:[#allocation4 + $0x628] sm:$0xff] }
 0xa90   :  { %5636 = vmatpush1.bf16.msra.mxu0 %v4807_v7  ;;  %5808 = vmatpush1.bf16.msra.mxu1 %v4809_v23  ;;  %v4914_v7 = vld [vmem:[#allocation4 + $0x638] sm:$0xff]  ;;  %v4911_v23 = vld [vmem:[#allocation4 + $0x620] sm:$0xff] }
 0xa91   :  { %5637 = vmatprep.subr.bf16.mxu0 %v4816_v15  ;;  %5809 = vmatprep.subr.bf16.mxu1 %v4818_v38  ;;  %v4913_v15 = vld [vmem:[#allocation4 + $0x630] sm:$0xff]  ;;  %v4920_v38 = vld [vmem:[#allocation4 + $0x668] sm:$0xff] }
 0xa94   :  { %5638 = vmatpush1.bf16.msra.mxu0 %v4815_v36  ;;  %5810 = vmatpush1.bf16.msra.mxu1 %v4817_v52  ;;  %v4922_v36 = vld [vmem:[#allocation4 + $0x678] sm:$0xff]  ;;  %v4919_v52 = vld [vmem:[#allocation4 + $0x660] sm:$0xff] }
 0xa95   :  { %5639 = vmatprep.subr.bf16.mxu0 %v4824_v1  ;;  %5811 = vmatprep.subr.bf16.mxu1 %v4826_v28  ;;  %v4921_v1 = vld [vmem:[#allocation4 + $0x670] sm:$0xff]  ;;  %v4928_v28 = vld [vmem:[#allocation4 + $0x6a8] sm:$0xff] }
 0xa98   :  { %5640 = vmatpush1.bf16.msra.mxu0 %v4823_v18  ;;  %5812 = vmatpush1.bf16.msra.mxu1 %v4825_v10  ;;  %v4930_v18 = vld [vmem:[#allocation4 + $0x6b8] sm:$0xff]  ;;  %v4927_v10 = vld [vmem:[#allocation4 + $0x6a0] sm:$0xff] }
 0xa99   :  { %5641 = vmatprep.subr.bf16.mxu0 %v4832_v48  ;;  %5813 = vmatprep.subr.bf16.mxu1 %v4834_v29  ;;  %v4929_v48 = vld [vmem:[#allocation4 + $0x6b0] sm:$0xff]  ;;  %v4936_v29 = vld [vmem:[#allocation4 + $0x6e8] sm:$0xff] }
 0xa9c   :  { %5642 = vmatpush1.bf16.msra.mxu0 %v4831_v19  ;;  %5814 = vmatpush1.bf16.msra.mxu1 %v4833_v57  ;;  %v4938_v19 = vld [vmem:[#allocation4 + $0x6f8] sm:$0xff]  ;;  %v4935_v57 = vld [vmem:[#allocation4 + $0x6e0] sm:$0xff] }
 0xa9d   :  { %5643 = vmatprep.subr.bf16.mxu0 %v4840_v20  ;;  %5815 = vmatprep.subr.bf16.mxu1 %v4842_v0  ;;  %v4937_v20 = vld [vmem:[#allocation4 + $0x6f0] sm:$0xff]  ;;  %v4944_v0 = vld [vmem:[#allocation4 + $0x728] sm:$0xff] }
 0xaa0   :  { %5644 = vmatpush1.bf16.msra.mxu0 %v4839_v3  ;;  %5816 = vmatpush1.bf16.msra.mxu1 %v4841_v22  ;;  %v4946_v3 = vld [vmem:[#allocation4 + $0x738] sm:$0xff]  ;;  %v4943_v22 = vld [vmem:[#allocation4 + $0x720] sm:$0xff] }
 0xaa1   :  { %5656 = vmatprep.subr.bf16.mxu0 %v4848_v17  ;;  %5828 = vmatprep.subr.bf16.mxu1 %v4850_v24  ;;  %v4945_v17 = vld [vmem:[#allocation4 + $0x730] sm:$0xff]  ;;  %v4952_v24 = vld [vmem:[#allocation4 + $0x768] sm:$0xff] }
 0xaa3   :  { %5646 = vmatmul.mubr.bf16.vlgmr.msra.gmra.mrb[28].mxu0 %v7858_v63  ;;  %5818 = vmatmul.mubr.bf16.vlgmr.msra.gmra.mrb[28].mxu1 %v7858_v63  ;;  %v4874_v63 = vld [vmem:[#allocation4 + $0x4f8] sm:$0xff] }
 0xaa4   :  { %5657 = vmatpush1.bf16.msra.mxu0 %v4847_v25  ;;  %5829 = vmatpush1.bf16.msra.mxu1 %v4849_v13  ;;  %v4954_v25 = vld [vmem:[#allocation4 + $0x778] sm:$0xff]  ;;  %v4951_v13 = vld [vmem:[#allocation4 + $0x760] sm:$0xff] }
 0xaa5   :  { %5658 = vmatprep.subr.bf16.mxu0 %v4856_v4  ;;  %5830 = vmatprep.subr.bf16.mxu1 %v4858_v26  ;;  %v4953_v4 = vld [vmem:[#allocation4 + $0x770] sm:$0xff]  ;;  %v4960_v26 = vld [vmem:[#allocation4 + $0x7a8] sm:$0xff] }
 0xaa6   :  { %5688 = vmatprep.mubr.bf16.mxu0 %v7864_v14  ;;  %5860 = vmatprep.mubr.bf16.mxu1 %v7864_v14  ;;  %v4879_v14 = vld [vmem:[#allocation4 + $0x520] sm:$0xff] }
 0xaa8   :  { %5659 = vmatpush1.bf16.msra.mxu0 %v4855_v27  ;;  %5831 = vmatpush1.bf16.msra.mxu1 %v4857_v31  ;;  %v4962_v27 = vld [vmem:[#allocation4 + $0x7b8] sm:$0xff]  ;;  %v4959_v31 = vld [vmem:[#allocation4 + $0x7a0] sm:$0xff] }
 0xaa9   :  { %5660 = vmatprep.subr.bf16.mxu0 %v4864_v32  ;;  %5832 = vmatprep.subr.bf16.mxu1 %v4866_v47  ;;  %v4961_v32 = vld [vmem:[#allocation4 + $0x7b0] sm:$0xff]  ;;  %v4968_v47 = vld [vmem:[#allocation4 + $0x7e8] sm:$0xff] }
 0xaac   :  { %5661 = vmatpush1.bf16.msra.mxu0 %v4863_v33  ;;  %5833 = vmatpush1.bf16.msra.mxu1 %v4865_v34  ;;  %v4970_v33 = vld [vmem:[#allocation4 + $0x7f8] sm:$0xff]  ;;  %v4967_v34 = vld [vmem:[#allocation4 + $0x7e0] sm:$0xff] }
 0xaad   :  { %5662 = vmatprep.subr.bf16.mxu0 %v4872_v2  ;;  %5834 = vmatprep.subr.bf16.mxu1 %v4874_v63  ;;  %v4969_v2 = vld [vmem:[#allocation4 + $0x7f0] sm:$0xff]  ;;  %v4976_v63 = vld [vmem:[#allocation4 + $0x828] sm:$0xff] }
 0xab0   :  { %5663 = vmatpush1.bf16.msra.mxu0 %v4871_v5  ;;  %5835 = vmatpush1.bf16.msra.mxu1 %v4873_v49  ;;  %v4978_v5 = vld [vmem:[#allocation4 + $0x838] sm:$0xff]  ;;  %v4975_v49 = vld [vmem:[#allocation4 + $0x820] sm:$0xff] }
 0xab1   :  { %5664 = vmatprep.subr.bf16.mxu0 %v4880_v53  ;;  %5836 = vmatprep.subr.bf16.mxu1 %v4882_v39  ;;  %v4977_v53 = vld [vmem:[#allocation4 + $0x830] sm:$0xff]  ;;  %v4984_v39 = vld [vmem:[#allocation4 + $0x868] sm:$0xff] }
 0xab4   :  { %5665 = vmatpush1.bf16.msra.mxu0 %v4879_v14  ;;  %5837 = vmatpush1.bf16.msra.mxu1 %v4881_v43  ;;  %v4986_v14 = vld [vmem:[#allocation4 + $0x878] sm:$0xff]  ;;  %v4983_v43 = vld [vmem:[#allocation4 + $0x860] sm:$0xff] }
 0xab5   :  { %5666 = vmatprep.subr.bf16.mxu0 %v4888_v45  ;;  %5838 = vmatprep.subr.bf16.mxu1 %v4890_v46  ;;  %v4985_v45 = vld [vmem:[#allocation4 + $0x870] sm:$0xff]  ;;  %v4992_v46 = vld [vmem:[#allocation4 + $0x8a8] sm:$0xff] }
 0xab8   :  { %5667 = vmatpush1.bf16.msra.mxu0 %v4887_v60  ;;  %5839 = vmatpush1.bf16.msra.mxu1 %v4889_v50  ;;  %v4994_v60 = vld [vmem:[#allocation4 + $0x8b8] sm:$0xff]  ;;  %v4991_v50 = vld [vmem:[#allocation4 + $0x8a0] sm:$0xff] }
 0xab9   :  { %5668 = vmatprep.subr.bf16.mxu0 %v4896_v21  ;;  %5840 = vmatprep.subr.bf16.mxu1 %v4898_v51  ;;  %v4993_v21 = vld [vmem:[#allocation4 + $0x8b0] sm:$0xff]  ;;  %v5000_v51 = vld [vmem:[#allocation4 + $0x8e8] sm:$0xff] }
 0xabc   :  { %5669 = vmatpush1.bf16.msra.mxu0 %v4895_v54  ;;  %5841 = vmatpush1.bf16.msra.mxu1 %v4897_v55  ;;  %v4999_v54 = vld [vmem:[#allocation4 + $0x8e0] sm:$0xff]  ;;  %v5001_v55 = vld [vmem:[#allocation4 + $0x8f0] sm:$0xff] }
 0xabd   :  { %5670 = vmatprep.subr.bf16.mxu0 %v4904_v58  ;;  %5842 = vmatprep.subr.bf16.mxu1 %v4906_v30  ;;  %v5008_v58 = vld [vmem:[#allocation4 + $0x928] sm:$0xff]  ;;  %v5010_v30 = vld [vmem:[#allocation4 + $0x938] sm:$0xff] }
 0xac0   :  { %5671 = vmatpush1.bf16.msra.mxu0 %v4903_v59  ;;  %5843 = vmatpush1.bf16.msra.mxu1 %v4905_v61  ;;  %v5009_v59 = vld [vmem:[#allocation4 + $0x930] sm:$0xff]  ;;  %v5016_v61 = vld [vmem:[#allocation4 + $0x968] sm:$0xff] }
 0xac1   :  { %5672 = vmatprep.subr.bf16.mxu0 %v4912_v62  ;;  %5844 = vmatprep.subr.bf16.mxu1 %v4914_v7  ;;  %v5018_v62 = vld [vmem:[#allocation4 + $0x978] sm:$0xff]  ;;  %v5015_v7 = vld [vmem:[#allocation4 + $0x960] sm:$0xff] }
 0xac4   :  { %5673 = vmatpush1.bf16.msra.mxu0 %v4911_v23  ;;  %5845 = vmatpush1.bf16.msra.mxu1 %v4913_v15  ;;  %v5017_v23 = vld [vmem:[#allocation4 + $0x970] sm:$0xff]  ;;  %v5024_v15 = vld [vmem:[#allocation4 + $0x9a8] sm:$0xff] }
 0xac5   :  { %5674 = vmatprep.subr.bf16.mxu0 %v4920_v38  ;;  %5846 = vmatprep.subr.bf16.mxu1 %v4922_v36  ;;  %v5026_v38 = vld [vmem:[#allocation4 + $0x9b8] sm:$0xff]  ;;  %v5023_v36 = vld [vmem:[#allocation4 + $0x9a0] sm:$0xff] }
 0xac8   :  { %5675 = vmatpush1.bf16.msra.mxu0 %v4919_v52  ;;  %5847 = vmatpush1.bf16.msra.mxu1 %v4921_v1  ;;  %v5025_v52 = vld [vmem:[#allocation4 + $0x9b0] sm:$0xff]  ;;  %v5032_v1 = vld [vmem:[#allocation4 + $0x9e8] sm:$0xff] }
 0xac9   :  { %5676 = vmatprep.subr.bf16.mxu0 %v4928_v28  ;;  %5848 = vmatprep.subr.bf16.mxu1 %v4930_v18  ;;  %v5034_v28 = vld [vmem:[#allocation4 + $0x9f8] sm:$0xff]  ;;  %v5031_v18 = vld [vmem:[#allocation4 + $0x9e0] sm:$0xff] }
 0xacc   :  { %5677 = vmatpush1.bf16.msra.mxu0 %v4927_v10  ;;  %5849 = vmatpush1.bf16.msra.mxu1 %v4929_v48  ;;  %v5033_v10 = vld [vmem:[#allocation4 + $0x9f0] sm:$0xff]  ;;  %v5040_v48 = vld [vmem:[#allocation4 + $0xa28] sm:$0xff] }
 0xacd   :  { %5678 = vmatprep.subr.bf16.mxu0 %v4936_v29  ;;  %5850 = vmatprep.subr.bf16.mxu1 %v4938_v19  ;;  %v5042_v29 = vld [vmem:[#allocation4 + $0xa38] sm:$0xff]  ;;  %v5039_v19 = vld [vmem:[#allocation4 + $0xa20] sm:$0xff] }
 0xad0   :  { %5679 = vmatpush1.bf16.msra.mxu0 %v4935_v57  ;;  %5851 = vmatpush1.bf16.msra.mxu1 %v4937_v20  ;;  %v5041_v57 = vld [vmem:[#allocation4 + $0xa30] sm:$0xff]  ;;  %v5048_v20 = vld [vmem:[#allocation4 + $0xa68] sm:$0xff] }
 0xad1   :  { %5680 = vmatprep.subr.bf16.mxu0 %v4944_v0  ;;  %5852 = vmatprep.subr.bf16.mxu1 %v4946_v3  ;;  %v5050_v0 = vld [vmem:[#allocation4 + $0xa78] sm:$0xff]  ;;  %v5047_v3 = vld [vmem:[#allocation4 + $0xa60] sm:$0xff] }
 0xad4   :  { %5681 = vmatpush1.bf16.msra.mxu0 %v4943_v22  ;;  %5853 = vmatpush1.bf16.msra.mxu1 %v4945_v17  ;;  %v5049_v22 = vld [vmem:[#allocation4 + $0xa70] sm:$0xff]  ;;  %v5056_v17 = vld [vmem:[#allocation4 + $0xaa8] sm:$0xff] }
 0xad5   :  { %5682 = vmatprep.subr.bf16.mxu0 %v4952_v24  ;;  %5854 = vmatprep.subr.bf16.mxu1 %v4954_v25  ;;  %v5058_v24 = vld [vmem:[#allocation4 + $0xab8] sm:$0xff]  ;;  %v5055_v25 = vld [vmem:[#allocation4 + $0xaa0] sm:$0xff] }
 0xad8   :  { %5683 = vmatpush1.bf16.msra.mxu0 %v4951_v13  ;;  %5855 = vmatpush1.bf16.msra.mxu1 %v4953_v4  ;;  %v5057_v13 = vld [vmem:[#allocation4 + $0xab0] sm:$0xff]  ;;  %v5064_v4 = vld [vmem:[#allocation4 + $0xae8] sm:$0xff] }
 0xad9   :  { %5684 = vmatprep.subr.bf16.mxu0 %v4960_v26  ;;  %5856 = vmatprep.subr.bf16.mxu1 %v4962_v27  ;;  %v5066_v26 = vld [vmem:[#allocation4 + $0xaf8] sm:$0xff]  ;;  %v5063_v27 = vld [vmem:[#allocation4 + $0xae0] sm:$0xff] }
 0xadc   :  { %5685 = vmatpush1.bf16.msra.mxu0 %v4959_v31  ;;  %5857 = vmatpush1.bf16.msra.mxu1 %v4961_v32  ;;  %v5065_v31 = vld [vmem:[#allocation4 + $0xaf0] sm:$0xff]  ;;  %v5072_v32 = vld [vmem:[#allocation4 + $0xb28] sm:$0xff] }
 0xadd   :  { %5686 = vmatprep.subr.bf16.mxu0 %v4968_v47  ;;  %5858 = vmatprep.subr.bf16.mxu1 %v4970_v33  ;;  %v5074_v47 = vld [vmem:[#allocation4 + $0xb38] sm:$0xff]  ;;  %v5071_v33 = vld [vmem:[#allocation4 + $0xb20] sm:$0xff] }
 0xae0   :  { %5687 = vmatpush1.bf16.msra.mxu0 %v4967_v34  ;;  %5859 = vmatpush1.bf16.msra.mxu1 %v4969_v2  ;;  %v5073_v34 = vld [vmem:[#allocation4 + $0xb30] sm:$0xff]  ;;  %v5080_v2 = vld [vmem:[#allocation4 + $0xb68] sm:$0xff] }
 0xae1   :  { %5699 = vmatprep.subr.bf16.mxu0 %v4976_v63  ;;  %5871 = vmatprep.subr.bf16.mxu1 %v4978_v5  ;;  %v5082_v63 = vld [vmem:[#allocation4 + $0xb78] sm:$0xff]  ;;  %v5079_v5 = vld [vmem:[#allocation4 + $0xb60] sm:$0xff] }
 0xae3   :  { %5689 = vmatmul.mubr.bf16.vlgmr.msra.gmra.mrb[28].mxu0 %v7860_v35  ;;  %5861 = vmatmul.mubr.bf16.vlgmr.msra.gmra.mrb[28].mxu1 %v7860_v35  ;;  %v5002_v35 = vld [vmem:[#allocation4 + $0x8f8] sm:$0xff] }
 0xae4   :  { %5700 = vmatpush1.bf16.msra.mxu0 %v4975_v49  ;;  %5872 = vmatpush1.bf16.msra.mxu1 %v4977_v53  ;;  %v5081_v49 = vld [vmem:[#allocation4 + $0xb70] sm:$0xff]  ;;  %v5088_v53 = vld [vmem:[#allocation4 + $0xba8] sm:$0xff] }
 0xae5   :  { %5701 = vmatprep.subr.bf16.mxu0 %v4984_v39  ;;  %5873 = vmatprep.subr.bf16.mxu1 %v4986_v14  ;;  %v5090_v39 = vld [vmem:[#allocation4 + $0xbb8] sm:$0xff]  ;;  %v5087_v14 = vld [vmem:[#allocation4 + $0xba0] sm:$0xff] }
 0xae6   :  { %5731 = vmatprep.mubr.bf16.mxu0 %v7892_v37  ;;  %5903 = vmatprep.mubr.bf16.mxu1 %v7892_v37  ;;  %v5007_v37 = vld [vmem:[#allocation4 + $0x920] sm:$0xff] }
 0xae8   :  { %5702 = vmatpush1.bf16.msra.mxu0 %v4983_v43  ;;  %5874 = vmatpush1.bf16.msra.mxu1 %v4985_v45  ;;  %v5089_v43 = vld [vmem:[#allocation4 + $0xbb0] sm:$0xff]  ;;  %v5096_v45 = vld [vmem:[#allocation4 + $0xbe8] sm:$0xff] }
 0xae9   :  { %5703 = vmatprep.subr.bf16.mxu0 %v4992_v46  ;;  %5875 = vmatprep.subr.bf16.mxu1 %v4994_v60  ;;  %v5098_v46 = vld [vmem:[#allocation4 + $0xbf8] sm:$0xff]  ;;  %v5095_v60 = vld [vmem:[#allocation4 + $0xbe0] sm:$0xff] }
 0xaec   :  { %5704 = vmatpush1.bf16.msra.mxu0 %v4991_v50  ;;  %5876 = vmatpush1.bf16.msra.mxu1 %v4993_v21  ;;  %v5097_v50 = vld [vmem:[#allocation4 + $0xbf0] sm:$0xff]  ;;  %v5104_v21 = vld [vmem:[#allocation4 + $0xc28] sm:$0xff] }
 0xaed   :  { %5705 = vmatprep.subr.bf16.mxu0 %v5000_v51  ;;  %5877 = vmatprep.subr.bf16.mxu1 %v5002_v35  ;;  %v5106_v51 = vld [vmem:[#allocation4 + $0xc38] sm:$0xff]  ;;  %v5103_v35 = vld [vmem:[#allocation4 + $0xc20] sm:$0xff] }
 0xaf0   :  { %5706 = vmatpush1.bf16.msra.mxu0 %v4999_v54  ;;  %5878 = vmatpush1.bf16.msra.mxu1 %v5001_v55  ;;  %v5105_v54 = vld [vmem:[#allocation4 + $0xc30] sm:$0xff]  ;;  %v5112_v55 = vld [vmem:[#allocation4 + $0xc68] sm:$0xff] }
 0xaf1   :  { %5707 = vmatprep.subr.bf16.mxu0 %v5008_v58  ;;  %5879 = vmatprep.subr.bf16.mxu1 %v5010_v30  ;;  %v5114_v58 = vld [vmem:[#allocation4 + $0xc78] sm:$0xff]  ;;  %v5111_v30 = vld [vmem:[#allocation4 + $0xc60] sm:$0xff] }
 0xaf4   :  { %5708 = vmatpush1.bf16.msra.mxu0 %v5007_v37  ;;  %5880 = vmatpush1.bf16.msra.mxu1 %v5009_v59  ;;  %v5113_v37 = vld [vmem:[#allocation4 + $0xc70] sm:$0xff]  ;;  %v5120_v59 = vld [vmem:[#allocation4 + $0xca8] sm:$0xff] }
 0xaf5   :  { %5709 = vmatprep.subr.bf16.mxu0 %v5016_v61  ;;  %5881 = vmatprep.subr.bf16.mxu1 %v5018_v62  ;;  %v5122_v61 = vld [vmem:[#allocation4 + $0xcb8] sm:$0xff]  ;;  %v5119_v62 = vld [vmem:[#allocation4 + $0xca0] sm:$0xff] }
 0xaf8   :  { %5710 = vmatpush1.bf16.msra.mxu0 %v5015_v7  ;;  %5882 = vmatpush1.bf16.msra.mxu1 %v5017_v23  ;;  %v5121_v7 = vld [vmem:[#allocation4 + $0xcb0] sm:$0xff]  ;;  %v5128_v23 = vld [vmem:[#allocation4 + $0xce8] sm:$0xff] }
 0xaf9   :  { %5711 = vmatprep.subr.bf16.mxu0 %v5024_v15  ;;  %5883 = vmatprep.subr.bf16.mxu1 %v5026_v38  ;;  %v5127_v15 = vld [vmem:[#allocation4 + $0xce0] sm:$0xff]  ;;  %v5129_v38 = vld [vmem:[#allocation4 + $0xcf0] sm:$0xff] }
 0xafc   :  { %5712 = vmatpush1.bf16.msra.mxu0 %v5023_v36  ;;  %5884 = vmatpush1.bf16.msra.mxu1 %v5025_v52  ;;  %v5136_v36 = vld [vmem:[#allocation4 + $0xd28] sm:$0xff]  ;;  %v5138_v52 = vld [vmem:[#allocation4 + $0xd38] sm:$0xff] }
 0xafd   :  { %5713 = vmatprep.subr.bf16.mxu0 %v5032_v1  ;;  %5885 = vmatprep.subr.bf16.mxu1 %v5034_v28  ;;  %v7926_v1 = vld [vmem:[#allocation14] sm:$0xff]  ;;  %v5137_v28 = vld [vmem:[#allocation4 + $0xd30] sm:$0xff] }
 0xb00   :  { %5714 = vmatpush1.bf16.msra.mxu0 %v5031_v18  ;;  %5886 = vmatpush1.bf16.msra.mxu1 %v5033_v10  ;;  %v5144_v18 = vld [vmem:[#allocation4 + $0xd68] sm:$0xff]  ;;  %v5146_v10 = vld [vmem:[#allocation4 + $0xd78] sm:$0xff] }
 0xb01   :  { %5715 = vmatprep.subr.bf16.mxu0 %v5040_v48  ;;  %5887 = vmatprep.subr.bf16.mxu1 %v5042_v29  ;;  %v5232_v48 = vrot.slane %v7926_v1, %v7705_v8  ;;  %v5240_v29 = vrot.slane %v7926_v1, %v7708_v9 }
 0xb04   :  { %5716 = vmatpush1.bf16.msra.mxu0 %v5039_v19  ;;  %5888 = vmatpush1.bf16.msra.mxu1 %v5041_v57  ;;  %v5236_v19 = vrot.slane %v7926_v1, %v7713_v11  ;;  %v5244_v57 = vrot.slane %v7926_v1, %v7716_v12 }
 0xb05   :  { %5717 = vmatprep.subr.bf16.mxu0 %v5048_v20  ;;  %5889 = vmatprep.subr.bf16.mxu1 %v5050_v0  ;;  %v5143_v20 = vld [vmem:[#allocation4 + $0xd60] sm:$0xff]  ;;  %v5145_v0 = vld [vmem:[#allocation4 + $0xd70] sm:$0xff] }
 0xb08   :  { %5718 = vmatpush1.bf16.msra.mxu0 %v5047_v3  ;;  %5890 = vmatpush1.bf16.msra.mxu1 %v5049_v22 }
 0xb09   :  { %5719 = vmatprep.subr.bf16.mxu0 %v5056_v17  ;;  %5891 = vmatprep.subr.bf16.mxu1 %v5058_v24  ;;  %v5152_v17 = vld [vmem:[#allocation4 + $0xda8] sm:$0xff]  ;;  %v5154_v24 = vld [vmem:[#allocation4 + $0xdb8] sm:$0xff] }
 0xb0c   :  { %5720 = vmatpush1.bf16.msra.mxu0 %v5055_v25  ;;  %5892 = vmatpush1.bf16.msra.mxu1 %v5057_v13 }
 0xb0d   :  { %5721 = vmatprep.subr.bf16.mxu0 %v5064_v4  ;;  %5893 = vmatprep.subr.bf16.mxu1 %v5066_v26 }
 0xb10   :  { %5722 = vmatpush1.bf16.msra.mxu0 %v5063_v27  ;;  %5894 = vmatpush1.bf16.msra.mxu1 %v5065_v31 }
 0xb11   :  { %5723 = vmatprep.subr.bf16.mxu0 %v5072_v32  ;;  %5895 = vmatprep.subr.bf16.mxu1 %v5074_v47 }
 0xb14   :  { %5724 = vmatpush1.bf16.msra.mxu0 %v5071_v33  ;;  %5896 = vmatpush1.bf16.msra.mxu1 %v5073_v34 }
 0xb15   :  { %5725 = vmatprep.subr.bf16.mxu0 %v5080_v2  ;;  %5897 = vmatprep.subr.bf16.mxu1 %v5082_v63 }
 0xb18   :  { %5726 = vmatpush1.bf16.msra.mxu0 %v5079_v5  ;;  %5898 = vmatpush1.bf16.msra.mxu1 %v5081_v49  ;;  %v5151_v5 = vld [vmem:[#allocation4 + $0xda0] sm:$0xff]  ;;  %v5153_v49 = vld [vmem:[#allocation4 + $0xdb0] sm:$0xff] }
 0xb19   :  { %5727 = vmatprep.subr.bf16.mxu0 %v5088_v53  ;;  %5899 = vmatprep.subr.bf16.mxu1 %v5090_v39 }
 0xb1c   :  { %5728 = vmatpush1.bf16.msra.mxu0 %v5087_v14  ;;  %5900 = vmatpush1.bf16.msra.mxu1 %v5089_v43  ;;  %v5160_v14 = vld [vmem:[#allocation4 + $0xde8] sm:$0xff]  ;;  %v5162_v43 = vld [vmem:[#allocation4 + $0xdf8] sm:$0xff] }
 0xb1d   :  { %5729 = vmatprep.subr.bf16.mxu0 %v5096_v45  ;;  %5901 = vmatprep.subr.bf16.mxu1 %v5098_v46 }
 0xb20   :  { %5730 = vmatpush1.bf16.msra.mxu0 %v5095_v60  ;;  %5902 = vmatpush1.bf16.msra.mxu1 %v5097_v50 }
 0xb21   :  { %5742 = vmatprep.subr.bf16.mxu0 %v5104_v21  ;;  %5914 = vmatprep.subr.bf16.mxu1 %v5106_v51 }
 0xb23   :  { %5732 = vmatmul.mubr.bf16.vlgmr.msra.gmra.mrb[28].mxu0 %v7888_v16  ;;  %5904 = vmatmul.mubr.bf16.vlgmr.msra.gmra.mrb[28].mxu1 %v7888_v16  ;;  %v5130_v16 = vld [vmem:[#allocation4 + $0xcf8] sm:$0xff] }
 0xb24   :  { %5743 = vmatpush1.bf16.msra.mxu0 %v5103_v35  ;;  %5915 = vmatpush1.bf16.msra.mxu1 %v5105_v54 }
 0xb25   :  { %5744 = vmatprep.subr.bf16.mxu0 %v5112_v55  ;;  %5916 = vmatprep.subr.bf16.mxu1 %v5114_v58 }
 0xb26   :  { %5774 = vmatprep.mubr.bf16.mxu0 %v7894_v56  ;;  %5946 = vmatprep.mubr.bf16.mxu1 %v7894_v56  ;;  %v5135_v56 = vld [vmem:[#allocation4 + $0xd20] sm:$0xff] }
 0xb28   :  { %5745 = vmatpush1.bf16.msra.mxu0 %v5111_v30  ;;  %5917 = vmatpush1.bf16.msra.mxu1 %v5113_v37  ;;  %v5159_v30 = vld [vmem:[#allocation4 + $0xde0] sm:$0xff]  ;;  %v5161_v37 = vld [vmem:[#allocation4 + $0xdf0] sm:$0xff] }
 0xb29   :  { %5746 = vmatprep.subr.bf16.mxu0 %v5120_v59  ;;  %5918 = vmatprep.subr.bf16.mxu1 %v5122_v61 }
 0xb2c   :  { %5747 = vmatpush1.bf16.msra.mxu0 %v5119_v62  ;;  %5919 = vmatpush1.bf16.msra.mxu1 %v5121_v7  ;;  %v5168_v62 = vld [vmem:[#allocation4 + $0xe28] sm:$0xff]  ;;  %v5170_v7 = vld [vmem:[#allocation4 + $0xe38] sm:$0xff] }
 0xb2d   :  { %5748 = vmatprep.subr.bf16.mxu0 %v5128_v23  ;;  %5920 = vmatprep.subr.bf16.mxu1 %v5130_v16  ;;  %v5167_v23 = vld [vmem:[#allocation4 + $0xe20] sm:$0xff]  ;;  %v5169_v16 = vld [vmem:[#allocation4 + $0xe30] sm:$0xff] }
 0xb30   :  { %5749 = vmatpush1.bf16.msra.mxu0 %v5127_v15  ;;  %5921 = vmatpush1.bf16.msra.mxu1 %v5129_v38  ;;  %v5176_v15 = vld [vmem:[#allocation4 + $0xe68] sm:$0xff]  ;;  %v5178_v38 = vld [vmem:[#allocation4 + $0xe78] sm:$0xff] }
 0xb31   :  { %5750 = vmatprep.subr.bf16.mxu0 %v5136_v36  ;;  %5922 = vmatprep.subr.bf16.mxu1 %v5138_v52  ;;  %v5175_v36 = vld [vmem:[#allocation4 + $0xe60] sm:$0xff]  ;;  %v5177_v52 = vld [vmem:[#allocation4 + $0xe70] sm:$0xff] }
 0xb34   :  { %5751 = vmatpush1.bf16.msra.mxu0 %v5135_v56  ;;  %5923 = vmatpush1.bf16.msra.mxu1 %v5137_v28  ;;  %v5184_v56 = vld [vmem:[#allocation4 + $0xea8] sm:$0xff]  ;;  %v5186_v28 = vld [vmem:[#allocation4 + $0xeb8] sm:$0xff] }
 0xb35   :  { %5752 = vmatprep.subr.bf16.mxu0 %v5144_v18  ;;  %5924 = vmatprep.subr.bf16.mxu1 %v5146_v10  ;;  %v5183_v18 = vld [vmem:[#allocation4 + $0xea0] sm:$0xff]  ;;  %v5185_v10 = vld [vmem:[#allocation4 + $0xeb0] sm:$0xff] }
 0xb36   :  { %v5432_v3 = vpop.f32.mrb[24].mxu0  ;;  %v5604_v22 = vpop.f32.mrb[24].mxu1 }
 0xb37   :  { %v6920_v25 = vadd.f32 %v5432_v3, %v5232_v48  ;;  %v6924_v13 = vadd.f32 %v5604_v22, %v5240_v29  ;;  %v5434_v4 = vpop.f32.mrb[25].mxu0  ;;  %v5606_v26 = vpop.f32.mrb[25].mxu1  ;;  %v5199_v3 = vld [vmem:[#allocation4 + $0xf20] sm:$0xff]  ;;  %v5201_v22 = vld [vmem:[#allocation4 + $0xf30] sm:$0xff] }
 0xb38   :  { %v6921_v27 = vadd.f32 %v5434_v4, %v5236_v19  ;;  %v6925_v31 = vadd.f32 %v5606_v26, %v5244_v57  ;;  %v5436_v32 = vpop.f32.mrb[26].mxu0  ;;  %v5608_v47 = vpop.f32.mrb[26].mxu1  ;;  %5753 = vmatpush1.bf16.msra.mxu0 %v5143_v20  ;;  %5925 = vmatpush1.bf16.msra.mxu1 %v5145_v0  ;;  %v5200_v20 = vld [vmem:[#allocation4 + $0xf28] sm:$0xff]  ;;  %v5202_v0 = vld [vmem:[#allocation4 + $0xf38] sm:$0xff] }
 0xb39   :  { %v6922_v33 = vadd.f32 %v5436_v32, %v5232_v48  ;;  %v6926_v34 = vadd.f32 %v5608_v47, %v5240_v29  ;;  %v5438_v2 = vpop.f32.mrb[27].mxu0  ;;  %v5610_v63 = vpop.f32.mrb[27].mxu1  ;;  %5754 = vmatprep.subr.bf16.mxu0 %v5152_v17  ;;  %5926 = vmatprep.subr.bf16.mxu1 %v5154_v24  ;;  %v5957_v45 = vmax.f32 %v6920_v25, 0.0  ;;  %v5959_v46 = vmax.f32 %v6924_v13, 0.0  ;;  %v5192_v48 = vld [vmem:[#allocation4 + $0xee8] sm:$0xff]  ;;  %v5194_v29 = vld [vmem:[#allocation4 + $0xef8] sm:$0xff] }
 0xb3a   :  { %v6923_v53 = vadd.f32 %v5438_v2, %v5236_v19  ;;  %v6927_v39 = vadd.f32 %v5610_v63, %v5244_v57  ;;  %v5958_v21 = vmax.f32 %v6921_v27, 0.0  ;;  %v5960_v51 = vmax.f32 %v6925_v31, 0.0  ;;  %v5191_v19 = vld [vmem:[#allocation4 + $0xee0] sm:$0xff]  ;;  %v5193_v57 = vld [vmem:[#allocation4 + $0xef0] sm:$0xff]  ;;  %v5208_v17 = vld [vmem:[#allocation4 + $0xf68] sm:$0xff] }
 0xb3b   :  { %v5965_v60 = vmax.f32 %v6922_v33, 0.0  ;;  %v5967_v50 = vmax.f32 %v6926_v34, 0.0  ;;  %v5210_v24 = vld [vmem:[#allocation4 + $0xf78] sm:$0xff]  ;;  %v5207_v25 = vld [vmem:[#allocation4 + $0xf60] sm:$0xff]  ;;  %v5209_v13 = vld [vmem:[#allocation4 + $0xf70] sm:$0xff]  ;;  %v5248_v2 = vrot.slane %v7926_v1, %v7747_v40  ;;  %v5256_v63 = vrot.slane %v7926_v1, %v7750_v6 }
 0xb3c   :  { %v5966_v35 = vmax.f32 %v6923_v53, 0.0  ;;  %v5968_v54 = vmax.f32 %v6927_v39, 0.0  ;;  %5755 = vmatpush1.bf16.msra.mxu0 %v5151_v5  ;;  %5927 = vmatpush1.bf16.msra.mxu1 %v5153_v49  ;;  %v5216_v4 = vld [vmem:[#allocation4 + $0xfa8] sm:$0xff]  ;;  %v5218_v26 = vld [vmem:[#allocation4 + $0xfb8] sm:$0xff]  ;;  %v5215_v27 = vld [vmem:[#allocation4 + $0xfa0] sm:$0xff]  ;;  %v5252_v5 = vrot.slane %v7926_v1, %v7753_v41  ;;  %v5260_v49 = vrot.slane %v7926_v1, %v7756_v42 }
 0xb3d   :  { %v7936_v55 = vpack.c.bf16 %v5965_v60, %v5957_v45  ;;  %v7938_v58 = vpack.c.bf16 %v5967_v50, %v5959_v46  ;;  %5756 = vmatprep.subr.bf16.mxu0 %v5160_v14  ;;  %5928 = vmatprep.subr.bf16.mxu1 %v5162_v43  ;;  %v5217_v31 = vld [vmem:[#allocation4 + $0xfb0] sm:$0xff]  ;;  %v5224_v32 = vld [vmem:[#allocation4 + $0xfe8] sm:$0xff]  ;;  %v5226_v47 = vld [vmem:[#allocation4 + $0xff8] sm:$0xff] }
 0xb3e   :  { %v7940_v59 = vpack.c.bf16 %v5966_v35, %v5958_v21  ;;  %v7942_v61 = vpack.c.bf16 %v5968_v54, %v5960_v51  ;;  %v5223_v33 = vld [vmem:[#allocation4 + $0xfe0] sm:$0xff]  ;;  %v5225_v34 = vld [vmem:[#allocation4 + $0xff0] sm:$0xff] }
 0xb40   :  { %5757 = vmatpush1.bf16.msra.mxu0 %v5159_v30  ;;  %5929 = vmatpush1.bf16.msra.mxu1 %v5161_v37 }
 0xb41   :  { %5758 = vmatprep.subr.bf16.mxu0 %v5168_v62  ;;  %5930 = vmatprep.subr.bf16.mxu1 %v5170_v7 }
 0xb44   :  { %5759 = vmatpush1.bf16.msra.mxu0 %v5167_v23  ;;  %5931 = vmatpush1.bf16.msra.mxu1 %v5169_v16 }
 0xb45   :  { %5760 = vmatprep.subr.bf16.mxu0 %v5176_v15  ;;  %5932 = vmatprep.subr.bf16.mxu1 %v5178_v38 }
 0xb48   :  { %5761 = vmatpush1.bf16.msra.mxu0 %v5175_v36  ;;  %5933 = vmatpush1.bf16.msra.mxu1 %v5177_v52 }
 0xb49   :  { %5762 = vmatprep.subr.bf16.mxu0 %v5184_v56  ;;  %5934 = vmatprep.subr.bf16.mxu1 %v5186_v28 }
 0xb4c   :  { %5763 = vmatpush1.bf16.msra.mxu0 %v5183_v18  ;;  %5935 = vmatpush1.bf16.msra.mxu1 %v5185_v10 }
 0xb4d   :  { %5764 = vmatprep.subr.bf16.mxu0 %v5192_v48  ;;  %5936 = vmatprep.subr.bf16.mxu1 %v5194_v29 }
 0xb50   :  { %5765 = vmatpush1.bf16.msra.mxu0 %v5191_v19  ;;  %5937 = vmatpush1.bf16.msra.mxu1 %v5193_v57 }
 0xb51   :  { %5766 = vmatprep.subr.bf16.mxu0 %v5200_v20  ;;  %5938 = vmatprep.subr.bf16.mxu1 %v5202_v0 }
 0xb54   :  { %5767 = vmatpush1.bf16.msra.mxu0 %v5199_v3  ;;  %5939 = vmatpush1.bf16.msra.mxu1 %v5201_v22 }
 0xb55   :  { %5768 = vmatprep.subr.bf16.mxu0 %v5208_v17  ;;  %5940 = vmatprep.subr.bf16.mxu1 %v5210_v24 }
 0xb58   :  { %5769 = vmatpush1.bf16.msra.mxu0 %v5207_v25  ;;  %5941 = vmatpush1.bf16.msra.mxu1 %v5209_v13 }
 0xb59   :  { %5770 = vmatprep.subr.bf16.mxu0 %v5216_v4  ;;  %5942 = vmatprep.subr.bf16.mxu1 %v5218_v26 }
 0xb5c   :  { %5771 = vmatpush1.bf16.msra.mxu0 %v5215_v27  ;;  %5943 = vmatpush1.bf16.msra.mxu1 %v5217_v31 }
 0xb5d   :  { %5772 = vmatprep.subr.bf16.mxu0 %v5224_v32  ;;  %5944 = vmatprep.subr.bf16.mxu1 %v5226_v47 }
 0xb60   :  { %5773 = vmatpush1.bf16.msra.mxu0 %v5223_v33  ;;  %5945 = vmatpush1.bf16.msra.mxu1 %v5225_v34 }
 0xb63   :  { %5775 = vmatmul.mubr.bf16.vlgmr.msra.gmra.mrb[28].mxu0 %v7890_v44  ;;  %5947 = vmatmul.mubr.bf16.vlgmr.msra.gmra.mrb[28].mxu1 %v7890_v44 }
 0xc36   :  { %v5776_v53 = vpop.f32.mrb[28].mxu0  ;;  %v5948_v39 = vpop.f32.mrb[28].mxu1 }
 0xc37   :  { %v6928_v14 = vadd.f32 %v5776_v53, %v5248_v2  ;;  %v6932_v43 = vadd.f32 %v5948_v39, %v5256_v63  ;;  %v5778_v45 = vpop.f32.mrb[29].mxu0  ;;  %v5950_v46 = vpop.f32.mrb[29].mxu1 }
 0xc38   :  { %v6929_v60 = vadd.f32 %v5778_v45, %v5252_v5  ;;  %v6933_v44 = vadd.f32 %v5950_v46, %v5260_v49  ;;  %v5780_v50 = vpop.f32.mrb[30].mxu0  ;;  %v5952_v21 = vpop.f32.mrb[30].mxu1 }
 0xc39   :  { %v6930_v40 = vadd.f32 %v5780_v50, %v5248_v2  ;;  %v6934_v51 = vadd.f32 %v5952_v21, %v5256_v63  ;;  %v5782_v35 = vpop.f32.mrb[31].mxu0  ;;  %v5954_v6 = vpop.f32.mrb[31].mxu1  ;;  %v5961_v41 = vmax.f32 %v6928_v14, 0.0  ;;  %v5963_v37 = vmax.f32 %v6932_v43, 0.0 }
 0xc3a   :  { %v6931_v54 = vadd.f32 %v5782_v35, %v5252_v5  ;;  %v6935_v30 = vadd.f32 %v5954_v6, %v5260_v49  ;;  %v5962_v1 = vmax.f32 %v6929_v60, 0.0  ;;  %v5964_v7 = vmax.f32 %v6933_v44, 0.0 }
 0xc3b   :  { %v5969_v62 = vmax.f32 %v6930_v40, 0.0  ;;  %v5971_v42 = vmax.f32 %v6934_v51, 0.0 }
 0xc3c   :  { %v5970_v23 = vmax.f32 %v6931_v54, 0.0  ;;  %v5972_v16 = vmax.f32 %v6935_v30, 0.0 }
 0xc3d   :  { %v7954_v15 = vpack.c.bf16 %v5969_v62, %v5961_v41  ;;  %v7956_v38 = vpack.c.bf16 %v5971_v42, %v5963_v37 }
 0xc3e   :  { %v7958_v36 = vpack.c.bf16 %v5970_v23, %v5962_v1  ;;  %v7960_v52 = vpack.c.bf16 %v5972_v16, %v5964_v7 }
 0xc3f   :  { %7417 = dma.done.wait [#allocation7 + $0x3], 32768 }
 0xc40   :  { %7418 = vsyncadd [#allocation7 + $0x3], 4294934528  ;;  %6299 = vmatprep.mubr.bf16.mxu0 %v7940_v59  ;;  %6471 = vmatprep.mubr.bf16.mxu1 %v7940_v59  ;;  %v5990_v56 = vld [vmem:[#allocation5 + $0x8] sm:$0xff]  ;;  %v5992_v28 = vld [vmem:[#allocation5 + $0x18] sm:$0xff] }
 0xc41   :  { %v5989_v18 = vld [vmem:[#allocation5] sm:$0xff]  ;;  %6267 = vmatprep.subr.bf16.mxu0 %v5990_v56  ;;  %6439 = vmatprep.subr.bf16.mxu1 %v5992_v28  ;;  %v5991_v10 = vld [vmem:[#allocation5 + $0x10] sm:$0xff]  ;;  %v5994_v48 = vld [vmem:[#allocation5 + $0x28] sm:$0xff] }
 0xc42   :  { %v5996_v29 = vld [vmem:[#allocation5 + $0x38] sm:$0xff]  ;;  %6268 = vmatpush1.bf16.msra.mxu0 %v5989_v18  ;;  %6440 = vmatpush1.bf16.msra.mxu1 %v5991_v10  ;;  %v5993_v19 = vld [vmem:[#allocation5 + $0x20] sm:$0xff]  ;;  %v5995_v57 = vld [vmem:[#allocation5 + $0x30] sm:$0xff] }
 0xc43   :  { %6269 = vmatprep.subr.bf16.mxu0 %v5994_v48  ;;  %6441 = vmatprep.subr.bf16.mxu1 %v5996_v29  ;;  %v5998_v20 = vld [vmem:[#allocation5 + $0x48] sm:$0xff]  ;;  %v6000_v0 = vld [vmem:[#allocation5 + $0x58] sm:$0xff]  ;;  %v5997_v59 = vld [vmem:[#allocation5 + $0x40] sm:$0xff] }
 0xc44   :  { %v5999_v3 = vld [vmem:[#allocation5 + $0x50] sm:$0xff]  ;;  %v6002_v22 = vld [vmem:[#allocation5 + $0x68] sm:$0xff]  ;;  %v6004_v17 = vld [vmem:[#allocation5 + $0x78] sm:$0xff] }
 0xc45   :  { %v6001_v24 = vld [vmem:[#allocation5 + $0x60] sm:$0xff]  ;;  %v6003_v25 = vld [vmem:[#allocation5 + $0x70] sm:$0xff]  ;;  %v6006_v13 = vld [vmem:[#allocation5 + $0x88] sm:$0xff] }
 0xc46   :  { %6270 = vmatpush1.bf16.msra.mxu0 %v5993_v19  ;;  %6442 = vmatpush1.bf16.msra.mxu1 %v5995_v57  ;;  %v6008_v4 = vld [vmem:[#allocation5 + $0x98] sm:$0xff]  ;;  %v6005_v26 = vld [vmem:[#allocation5 + $0x80] sm:$0xff]  ;;  %v6007_v27 = vld [vmem:[#allocation5 + $0x90] sm:$0xff] }
 0xc47   :  { %6271 = vmatprep.subr.bf16.mxu0 %v5998_v20  ;;  %6443 = vmatprep.subr.bf16.mxu1 %v6000_v0  ;;  %v6010_v31 = vld [vmem:[#allocation5 + $0xa8] sm:$0xff]  ;;  %v6012_v32 = vld [vmem:[#allocation5 + $0xb8] sm:$0xff]  ;;  %v6009_v47 = vld [vmem:[#allocation5 + $0xa0] sm:$0xff] }
 0xc48   :  { %v6011_v33 = vld [vmem:[#allocation5 + $0xb0] sm:$0xff]  ;;  %v6014_v34 = vld [vmem:[#allocation5 + $0xc8] sm:$0xff]  ;;  %v6016_v2 = vld [vmem:[#allocation5 + $0xd8] sm:$0xff] }
 0xc49   :  { %v6013_v63 = vld [vmem:[#allocation5 + $0xc0] sm:$0xff]  ;;  %v6015_v5 = vld [vmem:[#allocation5 + $0xd0] sm:$0xff]  ;;  %v6018_v49 = vld [vmem:[#allocation5 + $0xe8] sm:$0xff] }
 0xc4a   :  { %6272 = vmatpush1.bf16.msra.mxu0 %v5997_v59  ;;  %6444 = vmatpush1.bf16.msra.mxu1 %v5999_v3  ;;  %v6020_v53 = vld [vmem:[#allocation5 + $0xf8] sm:$0xff]  ;;  %v6017_v39 = vld [vmem:[#allocation5 + $0xe0] sm:$0xff]  ;;  %v6019_v14 = vld [vmem:[#allocation5 + $0xf0] sm:$0xff] }
 0xc4b   :  { %6273 = vmatprep.subr.bf16.mxu0 %v6002_v22  ;;  %6445 = vmatprep.subr.bf16.mxu1 %v6004_v17  ;;  %v6022_v43 = vld [vmem:[#allocation5 + $0x108] sm:$0xff]  ;;  %v6024_v45 = vld [vmem:[#allocation5 + $0x118] sm:$0xff]  ;;  %v6021_v46 = vld [vmem:[#allocation5 + $0x100] sm:$0xff] }
 0xc4c   :  { %v6023_v60 = vld [vmem:[#allocation5 + $0x110] sm:$0xff]  ;;  %v6026_v44 = vld [vmem:[#allocation5 + $0x128] sm:$0xff]  ;;  %v6028_v50 = vld [vmem:[#allocation5 + $0x138] sm:$0xff] }
 0xc4d   :  { %v6025_v21 = vld [vmem:[#allocation5 + $0x120] sm:$0xff]  ;;  %v6027_v40 = vld [vmem:[#allocation5 + $0x130] sm:$0xff]  ;;  %v6030_v51 = vld [vmem:[#allocation5 + $0x148] sm:$0xff] }
 0xc4e   :  { %6274 = vmatpush1.bf16.msra.mxu0 %v6001_v24  ;;  %6446 = vmatpush1.bf16.msra.mxu1 %v6003_v25  ;;  %v6032_v35 = vld [vmem:[#allocation5 + $0x158] sm:$0xff]  ;;  %v6029_v6 = vld [vmem:[#allocation5 + $0x140] sm:$0xff]  ;;  %v6031_v54 = vld [vmem:[#allocation5 + $0x150] sm:$0xff] }
 0xc4f   :  { %6275 = vmatprep.subr.bf16.mxu0 %v6006_v13  ;;  %6447 = vmatprep.subr.bf16.mxu1 %v6008_v4  ;;  %v6034_v30 = vld [vmem:[#allocation5 + $0x168] sm:$0xff]  ;;  %v6036_v41 = vld [vmem:[#allocation5 + $0x178] sm:$0xff]  ;;  %v6033_v37 = vld [vmem:[#allocation5 + $0x160] sm:$0xff] }
 0xc50   :  { %v6035_v62 = vld [vmem:[#allocation5 + $0x170] sm:$0xff]  ;;  %v6038_v42 = vld [vmem:[#allocation5 + $0x188] sm:$0xff]  ;;  %v6040_v1 = vld [vmem:[#allocation5 + $0x198] sm:$0xff] }
 0xc51   :  { %v6037_v7 = vld [vmem:[#allocation5 + $0x180] sm:$0xff]  ;;  %v6039_v23 = vld [vmem:[#allocation5 + $0x190] sm:$0xff]  ;;  %v6042_v16 = vld [vmem:[#allocation5 + $0x1a8] sm:$0xff] }
 0xc52   :  { %6276 = vmatpush1.bf16.msra.mxu0 %v6005_v26  ;;  %6448 = vmatpush1.bf16.msra.mxu1 %v6007_v27  ;;  %v6044_v56 = vld [vmem:[#allocation5 + $0x1b8] sm:$0xff]  ;;  %v6041_v28 = vld [vmem:[#allocation5 + $0x1a0] sm:$0xff]  ;;  %v6043_v18 = vld [vmem:[#allocation5 + $0x1b0] sm:$0xff] }
 0xc53   :  { %6277 = vmatprep.subr.bf16.mxu0 %v6010_v31  ;;  %6449 = vmatprep.subr.bf16.mxu1 %v6012_v32  ;;  %v6046_v10 = vld [vmem:[#allocation5 + $0x1c8] sm:$0xff]  ;;  %v6048_v48 = vld [vmem:[#allocation5 + $0x1d8] sm:$0xff]  ;;  %v6045_v29 = vld [vmem:[#allocation5 + $0x1c0] sm:$0xff] }
 0xc54   :  { %v6047_v19 = vld [vmem:[#allocation5 + $0x1d0] sm:$0xff]  ;;  %v6050_v57 = vld [vmem:[#allocation5 + $0x1e8] sm:$0xff]  ;;  %v6052_v20 = vld [vmem:[#allocation5 + $0x1f8] sm:$0xff] }
 0xc55   :  { %v6049_v0 = vld [vmem:[#allocation5 + $0x1e0] sm:$0xff]  ;;  %v6051_v59 = vld [vmem:[#allocation5 + $0x1f0] sm:$0xff]  ;;  %v6054_v3 = vld [vmem:[#allocation5 + $0x208] sm:$0xff] }
 0xc56   :  { %6278 = vmatpush1.bf16.msra.mxu0 %v6009_v47  ;;  %6450 = vmatpush1.bf16.msra.mxu1 %v6011_v33  ;;  %v6056_v22 = vld [vmem:[#allocation5 + $0x218] sm:$0xff]  ;;  %v6053_v17 = vld [vmem:[#allocation5 + $0x200] sm:$0xff]  ;;  %v6055_v24 = vld [vmem:[#allocation5 + $0x210] sm:$0xff] }
 0xc57   :  { %6279 = vmatprep.subr.bf16.mxu0 %v6014_v34  ;;  %6451 = vmatprep.subr.bf16.mxu1 %v6016_v2  ;;  %v6058_v25 = vld [vmem:[#allocation5 + $0x228] sm:$0xff]  ;;  %v6060_v13 = vld [vmem:[#allocation5 + $0x238] sm:$0xff]  ;;  %v6057_v4 = vld [vmem:[#allocation5 + $0x220] sm:$0xff] }
 0xc58   :  { %v6059_v26 = vld [vmem:[#allocation5 + $0x230] sm:$0xff]  ;;  %v6062_v27 = vld [vmem:[#allocation5 + $0x248] sm:$0xff]  ;;  %v6064_v31 = vld [vmem:[#allocation5 + $0x258] sm:$0xff] }
 0xc59   :  { %v6061_v32 = vld [vmem:[#allocation5 + $0x240] sm:$0xff]  ;;  %v6063_v47 = vld [vmem:[#allocation5 + $0x250] sm:$0xff]  ;;  %v6066_v33 = vld [vmem:[#allocation5 + $0x268] sm:$0xff] }
 0xc5a   :  { %6280 = vmatpush1.bf16.msra.mxu0 %v6013_v63  ;;  %6452 = vmatpush1.bf16.msra.mxu1 %v6015_v5  ;;  %v6065_v34 = vld [vmem:[#allocation5 + $0x260] sm:$0xff]  ;;  %v6067_v2 = vld [vmem:[#allocation5 + $0x270] sm:$0xff]  ;;  %v6070_v63 = vld [vmem:[#allocation5 + $0x288] sm:$0xff] }
 0xc5b   :  { %6281 = vmatprep.subr.bf16.mxu0 %v6018_v49  ;;  %6453 = vmatprep.subr.bf16.mxu1 %v6020_v53  ;;  %v6072_v5 = vld [vmem:[#allocation5 + $0x298] sm:$0xff]  ;;  %v6071_v49 = vld [vmem:[#allocation5 + $0x290] sm:$0xff]  ;;  %v6074_v53 = vld [vmem:[#allocation5 + $0x2a8] sm:$0xff] }
 0xc5e   :  { %6282 = vmatpush1.bf16.msra.mxu0 %v6017_v39  ;;  %6454 = vmatpush1.bf16.msra.mxu1 %v6019_v14  ;;  %v6076_v39 = vld [vmem:[#allocation5 + $0x2b8] sm:$0xff]  ;;  %v6073_v14 = vld [vmem:[#allocation5 + $0x2a0] sm:$0xff] }
 0xc5f   :  { %6283 = vmatprep.subr.bf16.mxu0 %v6022_v43  ;;  %6455 = vmatprep.subr.bf16.mxu1 %v6024_v45  ;;  %v6075_v43 = vld [vmem:[#allocation5 + $0x2b0] sm:$0xff]  ;;  %v6078_v45 = vld [vmem:[#allocation5 + $0x2c8] sm:$0xff] }
 0xc62   :  { %6284 = vmatpush1.bf16.msra.mxu0 %v6021_v46  ;;  %6456 = vmatpush1.bf16.msra.mxu1 %v6023_v60  ;;  %v6080_v46 = vld [vmem:[#allocation5 + $0x2d8] sm:$0xff]  ;;  %v6077_v60 = vld [vmem:[#allocation5 + $0x2c0] sm:$0xff] }
 0xc63   :  { %6285 = vmatprep.subr.bf16.mxu0 %v6026_v44  ;;  %6457 = vmatprep.subr.bf16.mxu1 %v6028_v50  ;;  %v6079_v44 = vld [vmem:[#allocation5 + $0x2d0] sm:$0xff]  ;;  %v6082_v50 = vld [vmem:[#allocation5 + $0x2e8] sm:$0xff] }
 0xc66   :  { %6286 = vmatpush1.bf16.msra.mxu0 %v6025_v21  ;;  %6458 = vmatpush1.bf16.msra.mxu1 %v6027_v40  ;;  %v6084_v21 = vld [vmem:[#allocation5 + $0x2f8] sm:$0xff]  ;;  %v6081_v40 = vld [vmem:[#allocation5 + $0x2e0] sm:$0xff] }
 0xc67   :  { %6287 = vmatprep.subr.bf16.mxu0 %v6030_v51  ;;  %6459 = vmatprep.subr.bf16.mxu1 %v6032_v35  ;;  %v6083_v51 = vld [vmem:[#allocation5 + $0x2f0] sm:$0xff]  ;;  %v6086_v35 = vld [vmem:[#allocation5 + $0x308] sm:$0xff] }
 0xc6a   :  { %6288 = vmatpush1.bf16.msra.mxu0 %v6029_v6  ;;  %6460 = vmatpush1.bf16.msra.mxu1 %v6031_v54  ;;  %v6088_v6 = vld [vmem:[#allocation5 + $0x318] sm:$0xff]  ;;  %v6085_v54 = vld [vmem:[#allocation5 + $0x300] sm:$0xff] }
 0xc6b   :  { %6289 = vmatprep.subr.bf16.mxu0 %v6034_v30  ;;  %6461 = vmatprep.subr.bf16.mxu1 %v6036_v41  ;;  %v6087_v30 = vld [vmem:[#allocation5 + $0x310] sm:$0xff]  ;;  %v6090_v41 = vld [vmem:[#allocation5 + $0x328] sm:$0xff] }
 0xc6e   :  { %6290 = vmatpush1.bf16.msra.mxu0 %v6033_v37  ;;  %6462 = vmatpush1.bf16.msra.mxu1 %v6035_v62  ;;  %v6092_v37 = vld [vmem:[#allocation5 + $0x338] sm:$0xff]  ;;  %v6089_v62 = vld [vmem:[#allocation5 + $0x320] sm:$0xff] }
 0xc6f   :  { %6291 = vmatprep.subr.bf16.mxu0 %v6038_v42  ;;  %6463 = vmatprep.subr.bf16.mxu1 %v6040_v1  ;;  %v6091_v42 = vld [vmem:[#allocation5 + $0x330] sm:$0xff]  ;;  %v6094_v1 = vld [vmem:[#allocation5 + $0x348] sm:$0xff] }
 0xc72   :  { %6292 = vmatpush1.bf16.msra.mxu0 %v6037_v7  ;;  %6464 = vmatpush1.bf16.msra.mxu1 %v6039_v23  ;;  %v6096_v7 = vld [vmem:[#allocation5 + $0x358] sm:$0xff]  ;;  %v6093_v23 = vld [vmem:[#allocation5 + $0x340] sm:$0xff] }
 0xc73   :  { %6293 = vmatprep.subr.bf16.mxu0 %v6042_v16  ;;  %6465 = vmatprep.subr.bf16.mxu1 %v6044_v56  ;;  %v6095_v16 = vld [vmem:[#allocation5 + $0x350] sm:$0xff]  ;;  %v6098_v56 = vld [vmem:[#allocation5 + $0x368] sm:$0xff] }
 0xc76   :  { %6294 = vmatpush1.bf16.msra.mxu0 %v6041_v28  ;;  %6466 = vmatpush1.bf16.msra.mxu1 %v6043_v18  ;;  %v6100_v28 = vld [vmem:[#allocation5 + $0x378] sm:$0xff]  ;;  %v6097_v18 = vld [vmem:[#allocation5 + $0x360] sm:$0xff] }
 0xc77   :  { %6295 = vmatprep.subr.bf16.mxu0 %v6046_v10  ;;  %6467 = vmatprep.subr.bf16.mxu1 %v6048_v48  ;;  %v6099_v10 = vld [vmem:[#allocation5 + $0x370] sm:$0xff]  ;;  %v6102_v48 = vld [vmem:[#allocation5 + $0x388] sm:$0xff] }
 0xc7a   :  { %6296 = vmatpush1.bf16.msra.mxu0 %v6045_v29  ;;  %6468 = vmatpush1.bf16.msra.mxu1 %v6047_v19  ;;  %v6104_v29 = vld [vmem:[#allocation5 + $0x398] sm:$0xff]  ;;  %v6101_v19 = vld [vmem:[#allocation5 + $0x380] sm:$0xff] }
 0xc7b   :  { %6297 = vmatprep.subr.bf16.mxu0 %v6050_v57  ;;  %6469 = vmatprep.subr.bf16.mxu1 %v6052_v20  ;;  %v6103_v57 = vld [vmem:[#allocation5 + $0x390] sm:$0xff]  ;;  %v6106_v20 = vld [vmem:[#allocation5 + $0x3a8] sm:$0xff] }
 0xc7e   :  { %6298 = vmatpush1.bf16.msra.mxu0 %v6049_v0  ;;  %6470 = vmatpush1.bf16.msra.mxu1 %v6051_v59  ;;  %v6108_v0 = vld [vmem:[#allocation5 + $0x3b8] sm:$0xff]  ;;  %v6105_v59 = vld [vmem:[#allocation5 + $0x3a0] sm:$0xff] }
 0xc7f   :  { %6310 = vmatprep.subr.bf16.mxu0 %v6054_v3  ;;  %6482 = vmatprep.subr.bf16.mxu1 %v6056_v22  ;;  %v6107_v3 = vld [vmem:[#allocation5 + $0x3b0] sm:$0xff]  ;;  %v6110_v22 = vld [vmem:[#allocation5 + $0x3c8] sm:$0xff] }
 0xc81   :  { %6300 = vmatmul.mubr.bf16.vlgmr.msra.gmra.mrb[32].mxu0 %v7936_v55  ;;  %6472 = vmatmul.mubr.bf16.vlgmr.msra.gmra.mrb[32].mxu1 %v7936_v55  ;;  %v6068_v55 = vld [vmem:[#allocation5 + $0x278] sm:$0xff] }
 0xc82   :  { %6311 = vmatpush1.bf16.msra.mxu0 %v6053_v17  ;;  %6483 = vmatpush1.bf16.msra.mxu1 %v6055_v24  ;;  %v6112_v17 = vld [vmem:[#allocation5 + $0x3d8] sm:$0xff]  ;;  %v6109_v24 = vld [vmem:[#allocation5 + $0x3c0] sm:$0xff] }
 0xc83   :  { %6312 = vmatprep.subr.bf16.mxu0 %v6058_v25  ;;  %6484 = vmatprep.subr.bf16.mxu1 %v6060_v13  ;;  %v6111_v25 = vld [vmem:[#allocation5 + $0x3d0] sm:$0xff]  ;;  %v6114_v13 = vld [vmem:[#allocation5 + $0x3e8] sm:$0xff] }
 0xc84   :  { %6342 = vmatprep.mubr.bf16.mxu0 %v7942_v61  ;;  %6514 = vmatprep.mubr.bf16.mxu1 %v7942_v61  ;;  %v6069_v61 = vld [vmem:[#allocation5 + $0x280] sm:$0xff] }
 0xc86   :  { %6313 = vmatpush1.bf16.msra.mxu0 %v6057_v4  ;;  %6485 = vmatpush1.bf16.msra.mxu1 %v6059_v26  ;;  %v6116_v4 = vld [vmem:[#allocation5 + $0x3f8] sm:$0xff]  ;;  %v6113_v26 = vld [vmem:[#allocation5 + $0x3e0] sm:$0xff] }
 0xc87   :  { %6314 = vmatprep.subr.bf16.mxu0 %v6062_v27  ;;  %6486 = vmatprep.subr.bf16.mxu1 %v6064_v31  ;;  %v6115_v27 = vld [vmem:[#allocation5 + $0x3f0] sm:$0xff]  ;;  %v6118_v31 = vld [vmem:[#allocation5 + $0x408] sm:$0xff] }
 0xc8a   :  { %6315 = vmatpush1.bf16.msra.mxu0 %v6061_v32  ;;  %6487 = vmatpush1.bf16.msra.mxu1 %v6063_v47  ;;  %v6120_v32 = vld [vmem:[#allocation5 + $0x418] sm:$0xff]  ;;  %v6117_v47 = vld [vmem:[#allocation5 + $0x400] sm:$0xff] }
 0xc8b   :  { %6316 = vmatprep.subr.bf16.mxu0 %v6066_v33  ;;  %6488 = vmatprep.subr.bf16.mxu1 %v6068_v55  ;;  %v6119_v33 = vld [vmem:[#allocation5 + $0x410] sm:$0xff]  ;;  %v6122_v55 = vld [vmem:[#allocation5 + $0x428] sm:$0xff] }
 0xc8e   :  { %6317 = vmatpush1.bf16.msra.mxu0 %v6065_v34  ;;  %6489 = vmatpush1.bf16.msra.mxu1 %v6067_v2  ;;  %v6124_v34 = vld [vmem:[#allocation5 + $0x438] sm:$0xff]  ;;  %v6121_v2 = vld [vmem:[#allocation5 + $0x420] sm:$0xff] }
 0xc8f   :  { %6318 = vmatprep.subr.bf16.mxu0 %v6070_v63  ;;  %6490 = vmatprep.subr.bf16.mxu1 %v6072_v5  ;;  %v6123_v63 = vld [vmem:[#allocation5 + $0x430] sm:$0xff]  ;;  %v6126_v5 = vld [vmem:[#allocation5 + $0x448] sm:$0xff] }
 0xc92   :  { %6319 = vmatpush1.bf16.msra.mxu0 %v6069_v61  ;;  %6491 = vmatpush1.bf16.msra.mxu1 %v6071_v49  ;;  %v6128_v61 = vld [vmem:[#allocation5 + $0x458] sm:$0xff]  ;;  %v6125_v49 = vld [vmem:[#allocation5 + $0x440] sm:$0xff] }
 0xc93   :  { %6320 = vmatprep.subr.bf16.mxu0 %v6074_v53  ;;  %6492 = vmatprep.subr.bf16.mxu1 %v6076_v39  ;;  %v6127_v53 = vld [vmem:[#allocation5 + $0x450] sm:$0xff]  ;;  %v6130_v39 = vld [vmem:[#allocation5 + $0x468] sm:$0xff] }
 0xc96   :  { %6321 = vmatpush1.bf16.msra.mxu0 %v6073_v14  ;;  %6493 = vmatpush1.bf16.msra.mxu1 %v6075_v43  ;;  %v6129_v14 = vld [vmem:[#allocation5 + $0x460] sm:$0xff]  ;;  %v6131_v43 = vld [vmem:[#allocation5 + $0x470] sm:$0xff] }
 0xc97   :  { %6322 = vmatprep.subr.bf16.mxu0 %v6078_v45  ;;  %6494 = vmatprep.subr.bf16.mxu1 %v6080_v46  ;;  %v6134_v45 = vld [vmem:[#allocation5 + $0x488] sm:$0xff]  ;;  %v6136_v46 = vld [vmem:[#allocation5 + $0x498] sm:$0xff] }
 0xc9a   :  { %6323 = vmatpush1.bf16.msra.mxu0 %v6077_v60  ;;  %6495 = vmatpush1.bf16.msra.mxu1 %v6079_v44  ;;  %v6135_v60 = vld [vmem:[#allocation5 + $0x490] sm:$0xff]  ;;  %v6138_v44 = vld [vmem:[#allocation5 + $0x4a8] sm:$0xff] }
 0xc9b   :  { %6324 = vmatprep.subr.bf16.mxu0 %v6082_v50  ;;  %6496 = vmatprep.subr.bf16.mxu1 %v6084_v21  ;;  %v6140_v50 = vld [vmem:[#allocation5 + $0x4b8] sm:$0xff]  ;;  %v6137_v21 = vld [vmem:[#allocation5 + $0x4a0] sm:$0xff] }
 0xc9e   :  { %6325 = vmatpush1.bf16.msra.mxu0 %v6081_v40  ;;  %6497 = vmatpush1.bf16.msra.mxu1 %v6083_v51  ;;  %v6139_v40 = vld [vmem:[#allocation5 + $0x4b0] sm:$0xff]  ;;  %v6142_v51 = vld [vmem:[#allocation5 + $0x4c8] sm:$0xff] }
 0xc9f   :  { %6326 = vmatprep.subr.bf16.mxu0 %v6086_v35  ;;  %6498 = vmatprep.subr.bf16.mxu1 %v6088_v6  ;;  %v6144_v35 = vld [vmem:[#allocation5 + $0x4d8] sm:$0xff]  ;;  %v6141_v6 = vld [vmem:[#allocation5 + $0x4c0] sm:$0xff] }
 0xca2   :  { %6327 = vmatpush1.bf16.msra.mxu0 %v6085_v54  ;;  %6499 = vmatpush1.bf16.msra.mxu1 %v6087_v30  ;;  %v6143_v54 = vld [vmem:[#allocation5 + $0x4d0] sm:$0xff]  ;;  %v6146_v30 = vld [vmem:[#allocation5 + $0x4e8] sm:$0xff] }
 0xca3   :  { %6328 = vmatprep.subr.bf16.mxu0 %v6090_v41  ;;  %6500 = vmatprep.subr.bf16.mxu1 %v6092_v37  ;;  %v6148_v41 = vld [vmem:[#allocation5 + $0x4f8] sm:$0xff]  ;;  %v6145_v37 = vld [vmem:[#allocation5 + $0x4e0] sm:$0xff] }
 0xca6   :  { %6329 = vmatpush1.bf16.msra.mxu0 %v6089_v62  ;;  %6501 = vmatpush1.bf16.msra.mxu1 %v6091_v42  ;;  %v6147_v62 = vld [vmem:[#allocation5 + $0x4f0] sm:$0xff]  ;;  %v6150_v42 = vld [vmem:[#allocation5 + $0x508] sm:$0xff] }
 0xca7   :  { %6330 = vmatprep.subr.bf16.mxu0 %v6094_v1  ;;  %6502 = vmatprep.subr.bf16.mxu1 %v6096_v7  ;;  %v6152_v1 = vld [vmem:[#allocation5 + $0x518] sm:$0xff]  ;;  %v6149_v7 = vld [vmem:[#allocation5 + $0x500] sm:$0xff] }
 0xcaa   :  { %6331 = vmatpush1.bf16.msra.mxu0 %v6093_v23  ;;  %6503 = vmatpush1.bf16.msra.mxu1 %v6095_v16  ;;  %v6151_v23 = vld [vmem:[#allocation5 + $0x510] sm:$0xff]  ;;  %v6154_v16 = vld [vmem:[#allocation5 + $0x528] sm:$0xff] }
 0xcab   :  { %6332 = vmatprep.subr.bf16.mxu0 %v6098_v56  ;;  %6504 = vmatprep.subr.bf16.mxu1 %v6100_v28  ;;  %v6156_v56 = vld [vmem:[#allocation5 + $0x538] sm:$0xff]  ;;  %v6153_v28 = vld [vmem:[#allocation5 + $0x520] sm:$0xff] }
 0xcae   :  { %6333 = vmatpush1.bf16.msra.mxu0 %v6097_v18  ;;  %6505 = vmatpush1.bf16.msra.mxu1 %v6099_v10  ;;  %v6155_v18 = vld [vmem:[#allocation5 + $0x530] sm:$0xff]  ;;  %v6158_v10 = vld [vmem:[#allocation5 + $0x548] sm:$0xff] }
 0xcaf   :  { %6334 = vmatprep.subr.bf16.mxu0 %v6102_v48  ;;  %6506 = vmatprep.subr.bf16.mxu1 %v6104_v29  ;;  %v6160_v48 = vld [vmem:[#allocation5 + $0x558] sm:$0xff]  ;;  %v6157_v29 = vld [vmem:[#allocation5 + $0x540] sm:$0xff] }
 0xcb2   :  { %6335 = vmatpush1.bf16.msra.mxu0 %v6101_v19  ;;  %6507 = vmatpush1.bf16.msra.mxu1 %v6103_v57  ;;  %v6159_v19 = vld [vmem:[#allocation5 + $0x550] sm:$0xff]  ;;  %v6162_v57 = vld [vmem:[#allocation5 + $0x568] sm:$0xff] }
 0xcb3   :  { %6336 = vmatprep.subr.bf16.mxu0 %v6106_v20  ;;  %6508 = vmatprep.subr.bf16.mxu1 %v6108_v0  ;;  %v6164_v20 = vld [vmem:[#allocation5 + $0x578] sm:$0xff]  ;;  %v6161_v0 = vld [vmem:[#allocation5 + $0x560] sm:$0xff] }
 0xcb6   :  { %6337 = vmatpush1.bf16.msra.mxu0 %v6105_v59  ;;  %6509 = vmatpush1.bf16.msra.mxu1 %v6107_v3  ;;  %v6163_v59 = vld [vmem:[#allocation5 + $0x570] sm:$0xff]  ;;  %v6166_v3 = vld [vmem:[#allocation5 + $0x588] sm:$0xff] }
 0xcb7   :  { %6338 = vmatprep.subr.bf16.mxu0 %v6110_v22  ;;  %6510 = vmatprep.subr.bf16.mxu1 %v6112_v17  ;;  %v6168_v22 = vld [vmem:[#allocation5 + $0x598] sm:$0xff]  ;;  %v6165_v17 = vld [vmem:[#allocation5 + $0x580] sm:$0xff] }
 0xcba   :  { %6339 = vmatpush1.bf16.msra.mxu0 %v6109_v24  ;;  %6511 = vmatpush1.bf16.msra.mxu1 %v6111_v25  ;;  %v6167_v24 = vld [vmem:[#allocation5 + $0x590] sm:$0xff]  ;;  %v6170_v25 = vld [vmem:[#allocation5 + $0x5a8] sm:$0xff] }
 0xcbb   :  { %6340 = vmatprep.subr.bf16.mxu0 %v6114_v13  ;;  %6512 = vmatprep.subr.bf16.mxu1 %v6116_v4  ;;  %v6172_v13 = vld [vmem:[#allocation5 + $0x5b8] sm:$0xff]  ;;  %v6169_v4 = vld [vmem:[#allocation5 + $0x5a0] sm:$0xff] }
 0xcbe   :  { %6341 = vmatpush1.bf16.msra.mxu0 %v6113_v26  ;;  %6513 = vmatpush1.bf16.msra.mxu1 %v6115_v27  ;;  %v6171_v26 = vld [vmem:[#allocation5 + $0x5b0] sm:$0xff]  ;;  %v6174_v27 = vld [vmem:[#allocation5 + $0x5c8] sm:$0xff] }
 0xcbf   :  { %6353 = vmatprep.subr.bf16.mxu0 %v6118_v31  ;;  %6525 = vmatprep.subr.bf16.mxu1 %v6120_v32  ;;  %v6176_v31 = vld [vmem:[#allocation5 + $0x5d8] sm:$0xff]  ;;  %v6173_v32 = vld [vmem:[#allocation5 + $0x5c0] sm:$0xff] }
 0xcc1   :  { %6343 = vmatmul.mubr.bf16.vlgmr.msra.gmra.mrb[32].mxu0 %v7938_v58  ;;  %6515 = vmatmul.mubr.bf16.vlgmr.msra.gmra.mrb[32].mxu1 %v7938_v58  ;;  %v6132_v58 = vld [vmem:[#allocation5 + $0x478] sm:$0xff] }
 0xcc2   :  { %6354 = vmatpush1.bf16.msra.mxu0 %v6117_v47  ;;  %6526 = vmatpush1.bf16.msra.mxu1 %v6119_v33  ;;  %v6175_v47 = vld [vmem:[#allocation5 + $0x5d0] sm:$0xff]  ;;  %v6178_v33 = vld [vmem:[#allocation5 + $0x5e8] sm:$0xff] }
 0xcc3   :  { %6355 = vmatprep.subr.bf16.mxu0 %v6122_v55  ;;  %6527 = vmatprep.subr.bf16.mxu1 %v6124_v34  ;;  %v6180_v55 = vld [vmem:[#allocation5 + $0x5f8] sm:$0xff]  ;;  %v6177_v34 = vld [vmem:[#allocation5 + $0x5e0] sm:$0xff] }
 0xcc4   :  { %6385 = vmatprep.mubr.bf16.mxu0 %v7958_v36  ;;  %6557 = vmatprep.mubr.bf16.mxu1 %v7958_v36  ;;  %v6133_v36 = vld [vmem:[#allocation5 + $0x480] sm:$0xff] }
 0xcc6   :  { %6356 = vmatpush1.bf16.msra.mxu0 %v6121_v2  ;;  %6528 = vmatpush1.bf16.msra.mxu1 %v6123_v63  ;;  %v6179_v2 = vld [vmem:[#allocation5 + $0x5f0] sm:$0xff]  ;;  %v6182_v63 = vld [vmem:[#allocation5 + $0x608] sm:$0xff] }
 0xcc7   :  { %6357 = vmatprep.subr.bf16.mxu0 %v6126_v5  ;;  %6529 = vmatprep.subr.bf16.mxu1 %v6128_v61  ;;  %v6184_v5 = vld [vmem:[#allocation5 + $0x618] sm:$0xff]  ;;  %v6181_v61 = vld [vmem:[#allocation5 + $0x600] sm:$0xff] }
 0xcca   :  { %6358 = vmatpush1.bf16.msra.mxu0 %v6125_v49  ;;  %6530 = vmatpush1.bf16.msra.mxu1 %v6127_v53  ;;  %v6183_v49 = vld [vmem:[#allocation5 + $0x610] sm:$0xff]  ;;  %v6186_v53 = vld [vmem:[#allocation5 + $0x628] sm:$0xff] }
 0xccb   :  { %6359 = vmatprep.subr.bf16.mxu0 %v6130_v39  ;;  %6531 = vmatprep.subr.bf16.mxu1 %v6132_v58  ;;  %v6188_v39 = vld [vmem:[#allocation5 + $0x638] sm:$0xff]  ;;  %v6185_v58 = vld [vmem:[#allocation5 + $0x620] sm:$0xff] }
 0xcce   :  { %6360 = vmatpush1.bf16.msra.mxu0 %v6129_v14  ;;  %6532 = vmatpush1.bf16.msra.mxu1 %v6131_v43  ;;  %v6187_v14 = vld [vmem:[#allocation5 + $0x630] sm:$0xff]  ;;  %v6190_v43 = vld [vmem:[#allocation5 + $0x648] sm:$0xff] }
 0xccf   :  { %6361 = vmatprep.subr.bf16.mxu0 %v6134_v45  ;;  %6533 = vmatprep.subr.bf16.mxu1 %v6136_v46  ;;  %v6192_v45 = vld [vmem:[#allocation5 + $0x658] sm:$0xff]  ;;  %v6189_v46 = vld [vmem:[#allocation5 + $0x640] sm:$0xff] }
 0xcd2   :  { %6362 = vmatpush1.bf16.msra.mxu0 %v6133_v36  ;;  %6534 = vmatpush1.bf16.msra.mxu1 %v6135_v60  ;;  %v6191_v36 = vld [vmem:[#allocation5 + $0x650] sm:$0xff]  ;;  %v6194_v60 = vld [vmem:[#allocation5 + $0x668] sm:$0xff] }
 0xcd3   :  { %6363 = vmatprep.subr.bf16.mxu0 %v6138_v44  ;;  %6535 = vmatprep.subr.bf16.mxu1 %v6140_v50  ;;  %v6193_v44 = vld [vmem:[#allocation5 + $0x660] sm:$0xff]  ;;  %v6195_v50 = vld [vmem:[#allocation5 + $0x670] sm:$0xff] }
 0xcd6   :  { %6364 = vmatpush1.bf16.msra.mxu0 %v6137_v21  ;;  %6536 = vmatpush1.bf16.msra.mxu1 %v6139_v40  ;;  %v6198_v21 = vld [vmem:[#allocation5 + $0x688] sm:$0xff]  ;;  %v6200_v40 = vld [vmem:[#allocation5 + $0x698] sm:$0xff] }
 0xcd7   :  { %6365 = vmatprep.subr.bf16.mxu0 %v6142_v51  ;;  %6537 = vmatprep.subr.bf16.mxu1 %v6144_v35  ;;  %v6199_v51 = vld [vmem:[#allocation5 + $0x690] sm:$0xff]  ;;  %v6202_v35 = vld [vmem:[#allocation5 + $0x6a8] sm:$0xff] }
 0xcda   :  { %6366 = vmatpush1.bf16.msra.mxu0 %v6141_v6  ;;  %6538 = vmatpush1.bf16.msra.mxu1 %v6143_v54  ;;  %v6204_v6 = vld [vmem:[#allocation5 + $0x6b8] sm:$0xff]  ;;  %v6201_v54 = vld [vmem:[#allocation5 + $0x6a0] sm:$0xff] }
 0xcdb   :  { %6367 = vmatprep.subr.bf16.mxu0 %v6146_v30  ;;  %6539 = vmatprep.subr.bf16.mxu1 %v6148_v41  ;;  %v6203_v30 = vld [vmem:[#allocation5 + $0x6b0] sm:$0xff]  ;;  %v6206_v41 = vld [vmem:[#allocation5 + $0x6c8] sm:$0xff] }
 0xcde   :  { %6368 = vmatpush1.bf16.msra.mxu0 %v6145_v37  ;;  %6540 = vmatpush1.bf16.msra.mxu1 %v6147_v62  ;;  %v6208_v37 = vld [vmem:[#allocation5 + $0x6d8] sm:$0xff]  ;;  %v6205_v62 = vld [vmem:[#allocation5 + $0x6c0] sm:$0xff] }
 0xcdf   :  { %6369 = vmatprep.subr.bf16.mxu0 %v6150_v42  ;;  %6541 = vmatprep.subr.bf16.mxu1 %v6152_v1  ;;  %v6207_v42 = vld [vmem:[#allocation5 + $0x6d0] sm:$0xff]  ;;  %v6210_v1 = vld [vmem:[#allocation5 + $0x6e8] sm:$0xff] }
 0xce2   :  { %6370 = vmatpush1.bf16.msra.mxu0 %v6149_v7  ;;  %6542 = vmatpush1.bf16.msra.mxu1 %v6151_v23  ;;  %v6212_v7 = vld [vmem:[#allocation5 + $0x6f8] sm:$0xff]  ;;  %v6209_v23 = vld [vmem:[#allocation5 + $0x6e0] sm:$0xff] }
 0xce3   :  { %6371 = vmatprep.subr.bf16.mxu0 %v6154_v16  ;;  %6543 = vmatprep.subr.bf16.mxu1 %v6156_v56  ;;  %v6211_v16 = vld [vmem:[#allocation5 + $0x6f0] sm:$0xff]  ;;  %v6214_v56 = vld [vmem:[#allocation5 + $0x708] sm:$0xff] }
 0xce6   :  { %6372 = vmatpush1.bf16.msra.mxu0 %v6153_v28  ;;  %6544 = vmatpush1.bf16.msra.mxu1 %v6155_v18  ;;  %v6216_v28 = vld [vmem:[#allocation5 + $0x718] sm:$0xff]  ;;  %v6213_v18 = vld [vmem:[#allocation5 + $0x700] sm:$0xff] }
 0xce7   :  { %6373 = vmatprep.subr.bf16.mxu0 %v6158_v10  ;;  %6545 = vmatprep.subr.bf16.mxu1 %v6160_v48  ;;  %v6215_v10 = vld [vmem:[#allocation5 + $0x710] sm:$0xff]  ;;  %v6218_v48 = vld [vmem:[#allocation5 + $0x728] sm:$0xff] }
 0xcea   :  { %6374 = vmatpush1.bf16.msra.mxu0 %v6157_v29  ;;  %6546 = vmatpush1.bf16.msra.mxu1 %v6159_v19  ;;  %v6220_v29 = vld [vmem:[#allocation5 + $0x738] sm:$0xff]  ;;  %v6217_v19 = vld [vmem:[#allocation5 + $0x720] sm:$0xff] }
 0xceb   :  { %6375 = vmatprep.subr.bf16.mxu0 %v6162_v57  ;;  %6547 = vmatprep.subr.bf16.mxu1 %v6164_v20  ;;  %v6219_v57 = vld [vmem:[#allocation5 + $0x730] sm:$0xff]  ;;  %v6222_v20 = vld [vmem:[#allocation5 + $0x748] sm:$0xff] }
 0xcee   :  { %6376 = vmatpush1.bf16.msra.mxu0 %v6161_v0  ;;  %6548 = vmatpush1.bf16.msra.mxu1 %v6163_v59  ;;  %v6224_v0 = vld [vmem:[#allocation5 + $0x758] sm:$0xff]  ;;  %v6221_v59 = vld [vmem:[#allocation5 + $0x740] sm:$0xff] }
 0xcef   :  { %6377 = vmatprep.subr.bf16.mxu0 %v6166_v3  ;;  %6549 = vmatprep.subr.bf16.mxu1 %v6168_v22  ;;  %v6223_v3 = vld [vmem:[#allocation5 + $0x750] sm:$0xff]  ;;  %v6226_v22 = vld [vmem:[#allocation5 + $0x768] sm:$0xff] }
 0xcf2   :  { %6378 = vmatpush1.bf16.msra.mxu0 %v6165_v17  ;;  %6550 = vmatpush1.bf16.msra.mxu1 %v6167_v24  ;;  %v6228_v17 = vld [vmem:[#allocation5 + $0x778] sm:$0xff]  ;;  %v6225_v24 = vld [vmem:[#allocation5 + $0x760] sm:$0xff] }
 0xcf3   :  { %6379 = vmatprep.subr.bf16.mxu0 %v6170_v25  ;;  %6551 = vmatprep.subr.bf16.mxu1 %v6172_v13  ;;  %v6227_v25 = vld [vmem:[#allocation5 + $0x770] sm:$0xff]  ;;  %v6230_v13 = vld [vmem:[#allocation5 + $0x788] sm:$0xff] }
 0xcf6   :  { %6380 = vmatpush1.bf16.msra.mxu0 %v6169_v4  ;;  %6552 = vmatpush1.bf16.msra.mxu1 %v6171_v26  ;;  %v6232_v4 = vld [vmem:[#allocation5 + $0x798] sm:$0xff]  ;;  %v6229_v26 = vld [vmem:[#allocation5 + $0x780] sm:$0xff] }
 0xcf7   :  { %6381 = vmatprep.subr.bf16.mxu0 %v6174_v27  ;;  %6553 = vmatprep.subr.bf16.mxu1 %v6176_v31  ;;  %v6231_v27 = vld [vmem:[#allocation5 + $0x790] sm:$0xff]  ;;  %v6234_v31 = vld [vmem:[#allocation5 + $0x7a8] sm:$0xff] }
 0xcfa   :  { %6382 = vmatpush1.bf16.msra.mxu0 %v6173_v32  ;;  %6554 = vmatpush1.bf16.msra.mxu1 %v6175_v47  ;;  %v6236_v32 = vld [vmem:[#allocation5 + $0x7b8] sm:$0xff]  ;;  %v6233_v47 = vld [vmem:[#allocation5 + $0x7a0] sm:$0xff] }
 0xcfb   :  { %6383 = vmatprep.subr.bf16.mxu0 %v6178_v33  ;;  %6555 = vmatprep.subr.bf16.mxu1 %v6180_v55  ;;  %v6235_v33 = vld [vmem:[#allocation5 + $0x7b0] sm:$0xff]  ;;  %v6238_v55 = vld [vmem:[#allocation5 + $0x7c8] sm:$0xff] }
 0xcfe   :  { %6384 = vmatpush1.bf16.msra.mxu0 %v6177_v34  ;;  %6556 = vmatpush1.bf16.msra.mxu1 %v6179_v2  ;;  %v6240_v34 = vld [vmem:[#allocation5 + $0x7d8] sm:$0xff]  ;;  %v6237_v2 = vld [vmem:[#allocation5 + $0x7c0] sm:$0xff] }
 0xcff   :  { %6396 = vmatprep.subr.bf16.mxu0 %v6182_v63  ;;  %6568 = vmatprep.subr.bf16.mxu1 %v6184_v5  ;;  %v6239_v63 = vld [vmem:[#allocation5 + $0x7d0] sm:$0xff]  ;;  %v6242_v5 = vld [vmem:[#allocation5 + $0x7e8] sm:$0xff] }
 0xd01   :  { %6386 = vmatmul.mubr.bf16.vlgmr.msra.gmra.mrb[32].mxu0 %v7954_v15  ;;  %6558 = vmatmul.mubr.bf16.vlgmr.msra.gmra.mrb[32].mxu1 %v7954_v15  ;;  %v6196_v15 = vld [vmem:[#allocation5 + $0x678] sm:$0xff] }
 0xd02   :  { %6397 = vmatpush1.bf16.msra.mxu0 %v6181_v61  ;;  %6569 = vmatpush1.bf16.msra.mxu1 %v6183_v49  ;;  %v6244_v61 = vld [vmem:[#allocation5 + $0x7f8] sm:$0xff]  ;;  %v6241_v49 = vld [vmem:[#allocation5 + $0x7e0] sm:$0xff] }
 0xd03   :  { %6398 = vmatprep.subr.bf16.mxu0 %v6186_v53  ;;  %6570 = vmatprep.subr.bf16.mxu1 %v6188_v39  ;;  %v6243_v53 = vld [vmem:[#allocation5 + $0x7f0] sm:$0xff] }
 0xd04   :  { %6428 = vmatprep.mubr.bf16.mxu0 %v7960_v52  ;;  %6600 = vmatprep.mubr.bf16.mxu1 %v7960_v52  ;;  %v6197_v52 = vld [vmem:[#allocation5 + $0x680] sm:$0xff]  ;;  %v6245_v39 = vld [vmem:[#allocation16] sm:$0xf] }
 0xd06   :  { %6399 = vmatpush1.bf16.msra.mxu0 %v6185_v58  ;;  %6571 = vmatpush1.bf16.msra.mxu1 %v6187_v14  ;;  %v6250_v58 = vrot.slane %v6245_v39, %v7705_v8  ;;  %v6258_v14 = vrot.slane %v6245_v39, %v7708_v9 }
 0xd07   :  { %6400 = vmatprep.subr.bf16.mxu0 %v6190_v43  ;;  %6572 = vmatprep.subr.bf16.mxu1 %v6192_v45  ;;  %v6254_v43 = vrot.slane %v6245_v39, %v7713_v11  ;;  %v6262_v45 = vrot.slane %v6245_v39, %v7716_v12 }
 0xd0a   :  { %6401 = vmatpush1.bf16.msra.mxu0 %v6189_v46  ;;  %6573 = vmatpush1.bf16.msra.mxu1 %v6191_v36 }
 0xd0b   :  { %6402 = vmatprep.subr.bf16.mxu0 %v6194_v60  ;;  %6574 = vmatprep.subr.bf16.mxu1 %v6196_v15 }
 0xd0e   :  { %6403 = vmatpush1.bf16.msra.mxu0 %v6193_v44  ;;  %6575 = vmatpush1.bf16.msra.mxu1 %v6195_v50 }
 0xd0f   :  { %6404 = vmatprep.subr.bf16.mxu0 %v6198_v21  ;;  %6576 = vmatprep.subr.bf16.mxu1 %v6200_v40 }
 0xd12   :  { %6405 = vmatpush1.bf16.msra.mxu0 %v6197_v52  ;;  %6577 = vmatpush1.bf16.msra.mxu1 %v6199_v51 }
 0xd13   :  { %6406 = vmatprep.subr.bf16.mxu0 %v6202_v35  ;;  %6578 = vmatprep.subr.bf16.mxu1 %v6204_v6 }
 0xd16   :  { %6407 = vmatpush1.bf16.msra.mxu0 %v6201_v54  ;;  %6579 = vmatpush1.bf16.msra.mxu1 %v6203_v30 }
 0xd17   :  { %6408 = vmatprep.subr.bf16.mxu0 %v6206_v41  ;;  %6580 = vmatprep.subr.bf16.mxu1 %v6208_v37 }
 0xd1a   :  { %6409 = vmatpush1.bf16.msra.mxu0 %v6205_v62  ;;  %6581 = vmatpush1.bf16.msra.mxu1 %v6207_v42 }
 0xd1b   :  { %6410 = vmatprep.subr.bf16.mxu0 %v6210_v1  ;;  %6582 = vmatprep.subr.bf16.mxu1 %v6212_v7 }
 0xd1e   :  { %6411 = vmatpush1.bf16.msra.mxu0 %v6209_v23  ;;  %6583 = vmatpush1.bf16.msra.mxu1 %v6211_v16 }
 0xd1f   :  { %6412 = vmatprep.subr.bf16.mxu0 %v6214_v56  ;;  %6584 = vmatprep.subr.bf16.mxu1 %v6216_v28 }
 0xd22   :  { %6413 = vmatpush1.bf16.msra.mxu0 %v6213_v18  ;;  %6585 = vmatpush1.bf16.msra.mxu1 %v6215_v10 }
 0xd23   :  { %6414 = vmatprep.subr.bf16.mxu0 %v6218_v48  ;;  %6586 = vmatprep.subr.bf16.mxu1 %v6220_v29 }
 0xd26   :  { %6415 = vmatpush1.bf16.msra.mxu0 %v6217_v19  ;;  %6587 = vmatpush1.bf16.msra.mxu1 %v6219_v57 }
 0xd27   :  { %6416 = vmatprep.subr.bf16.mxu0 %v6222_v20  ;;  %6588 = vmatprep.subr.bf16.mxu1 %v6224_v0 }
 0xd2a   :  { %6417 = vmatpush1.bf16.msra.mxu0 %v6221_v59  ;;  %6589 = vmatpush1.bf16.msra.mxu1 %v6223_v3 }
 0xd2b   :  { %6418 = vmatprep.subr.bf16.mxu0 %v6226_v22  ;;  %6590 = vmatprep.subr.bf16.mxu1 %v6228_v17 }
 0xd2e   :  { %6419 = vmatpush1.bf16.msra.mxu0 %v6225_v24  ;;  %6591 = vmatpush1.bf16.msra.mxu1 %v6227_v25 }
 0xd2f   :  { %6420 = vmatprep.subr.bf16.mxu0 %v6230_v13  ;;  %6592 = vmatprep.subr.bf16.mxu1 %v6232_v4 }
 0xd32   :  { %6421 = vmatpush1.bf16.msra.mxu0 %v6229_v26  ;;  %6593 = vmatpush1.bf16.msra.mxu1 %v6231_v27 }
 0xd33   :  { %6422 = vmatprep.subr.bf16.mxu0 %v6234_v31  ;;  %6594 = vmatprep.subr.bf16.mxu1 %v6236_v32 }
 0xd36   :  { %6423 = vmatpush1.bf16.msra.mxu0 %v6233_v47  ;;  %6595 = vmatpush1.bf16.msra.mxu1 %v6235_v33 }
 0xd37   :  { %6424 = vmatprep.subr.bf16.mxu0 %v6238_v55  ;;  %6596 = vmatprep.subr.bf16.mxu1 %v6240_v34 }
 0xd3a   :  { %6425 = vmatpush1.bf16.msra.mxu0 %v6237_v2  ;;  %6597 = vmatpush1.bf16.msra.mxu1 %v6239_v63 }
 0xd3b   :  { %6426 = vmatprep.subr.bf16.mxu0 %v6242_v5  ;;  %6598 = vmatprep.subr.bf16.mxu1 %v6244_v61 }
 0xd3e   :  { %6427 = vmatpush1.bf16.msra.mxu0 %v6241_v49  ;;  %6599 = vmatpush1.bf16.msra.mxu1 %v6243_v53 }
 0xd41   :  { %6429 = vmatmul.mubr.bf16.vlgmr.msra.gmra.mrb[32].mxu0 %v7956_v38  ;;  %6601 = vmatmul.mubr.bf16.vlgmr.msra.gmra.mrb[32].mxu1 %v7956_v38 }
 0xe14   :  { %v6430_v46 = vpop.f32.mrb[32].mxu0  ;;  %v6602_v36 = vpop.f32.mrb[32].mxu1 }
 0xe15   :  { %v6936_v60 = vadd.f32 %v6430_v46, %v6250_v58  ;;  %v6940_v15 = vadd.f32 %v6602_v36, %v6258_v14  ;;  %v6432_v44 = vpop.f32.mrb[33].mxu0  ;;  %v6604_v50 = vpop.f32.mrb[33].mxu1 }
 0xe16   :  { %v6937_v21 = vadd.f32 %v6432_v44, %v6254_v43  ;;  %v6941_v40 = vadd.f32 %v6604_v50, %v6262_v45  ;;  %v6434_v52 = vpop.f32.mrb[34].mxu0  ;;  %v6606_v51 = vpop.f32.mrb[34].mxu1 }
 0xe17   :  { %v6938_v38 = vadd.f32 %v6434_v52, %v6250_v58  ;;  %v6942_v35 = vadd.f32 %v6606_v51, %v6258_v14  ;;  %v6436_v6 = vpop.f32.mrb[35].mxu0  ;;  %v6608_v8 = vpop.f32.mrb[35].mxu1  ;;  %v6611_v30 = vmax.f32 %v6936_v60, 0.0  ;;  %v6613_v11 = vmax.f32 %v6940_v15, 0.0 }
 0xe18   :  { %v6939_v54 = vadd.f32 %v6436_v6, %v6254_v43  ;;  %v6943_v9 = vadd.f32 %v6608_v8, %v6262_v45  ;;  %v6612_v37 = vmax.f32 %v6937_v21, 0.0  ;;  %v6614_v62 = vmax.f32 %v6941_v40, 0.0 }
 0xe19   :  { %v6615_v41 = vmax.f32 %v6938_v38, 0.0  ;;  %v6617_v12 = vmax.f32 %v6942_v35, 0.0 }
 0xe1a   :  { %v6616_v42 = vmax.f32 %v6939_v54, 0.0  ;;  %v6618_v1 = vmax.f32 %v6943_v9, 0.0 }
 0xe1b   :  { %v7982_v7 = vpack.c.bf16 %v6615_v41, %v6611_v30  ;;  %v7984_v23 = vpack.c.bf16 %v6617_v12, %v6613_v11 }
 0xe1c   :  { %v6620_v16 = vpack.c.bf16 %v6616_v42, %v6612_v37  ;;  %v6622_v56 = vpack.c.bf16 %v6618_v1, %v6614_v62 }
 0xe1d   :  { %7419 = dma.done.wait [#allocation7 + $0x4], 4096 }
 0xe1e   :  { %7420 = vsyncadd [#allocation7 + $0x4], 4294963200  ;;  %6702 = vmatprep.mubr.bf16.mxu0 %v6620_v16  ;;  %6743 = vmatprep.mubr.bf16.mxu1 %v6622_v56  ;;  %v6639_v28 = vld [vmem:[#allocation6 + $0x40] sm:$0xff]  ;;  %v6640_v29 = vld [vmem:[#allocation6 + $0x48] sm:$0xff]  ;;  %s7454_s9 = smov [#allocation19]  }
 0xe1f   :  { %v6655_v18 = vld [vmem:[#allocation6 + $0xc0] sm:$0xff]  ;;  %6828 = vmatprep.subr.bf16.mxu0 %v6639_v28  ;;  %v6656_v19 = vld [vmem:[#allocation6 + $0xc8] sm:$0xff]  ;;  %v6641_v0 = vld [vmem:[#allocation6 + $0x50] sm:$0xff]  ;;  %s6759_s15 = sshll.u32 %s7454_s9, 4  ;;  %s6760_s15 = int_to_ptr.vmem [resolvable:$true] %s6759_s15 }
 0xe20   :  { %v6631_v10 = vld [vmem:[#allocation6] sm:$0xff]  ;;  %6850 = vmatprep.subr.bf16.mxu1 %v6655_v18  ;;  %v6632_v57 = vld [vmem:[#allocation6 + $0x8] sm:$0xff]  ;;  %v6657_v59 = vld [vmem:[#allocation6 + $0xd0] sm:$0xff]  ;;  %s7381_s26 = scalar_lea.vmem %s6760_s15, 256  ;;  %p7386_p1 = scmp.lt.s32.totalorder %s6760_s15, %s6760_s15 }
 0xe21   :  { %v6647_v48 = vld [vmem:[#allocation6 + $0x80] sm:$0xff]  ;;  %6829 = vmatpush3.bf16.msra.mxu0 %v6631_v10  ;;  %v6648_v20 = vld [vmem:[#allocation6 + $0x88] sm:$0xff]  ;;  %v6633_v3 = vld [vmem:[#allocation6 + $0x10] sm:$0xff]  ;;  %p7382_p0 = scmp.ne.s32.totalorder %s6760_s15, %s7381_s26  ;;  %p7387_p2 = scmp.lt.s32.totalorder %s7381_s26, %s7381_s26 }
 0xe22   :  { %6851 = vmatpush3.bf16.msra.mxu1 %v6647_v48  ;;  %6830 = vmatprep.subr.bf16.mxu0 %v6640_v29  ;;  %v6649_v22 = vld [vmem:[#allocation6 + $0x90] sm:$0xff]  ;;  %v6642_v17 = vld [vmem:[#allocation6 + $0x58] sm:$0xff]  ;;  %v6643_v4 = vld [vmem:[#allocation6 + $0x60] sm:$0xff] }
 0xe23   :  { %6852 = vmatprep.subr.bf16.mxu1 %v6656_v19  ;;  %v6658_v24 = vld [vmem:[#allocation6 + $0xd8] sm:$0xff]  ;;  %v6659_v26 = vld [vmem:[#allocation6 + $0xe0] sm:$0xff]  ;;  %v6644_v32 = vld [vmem:[#allocation6 + $0x68] sm:$0xff]  ;;  %p7388_p3 = por %p7387_p2, %p7386_p1 }
 0xe24   :  { %v6634_v25 = vld [vmem:[#allocation6 + $0x18] sm:$0xff]  ;;  %v6635_v27 = vld [vmem:[#allocation6 + $0x20] sm:$0xff]  ;;  %v6660_v47 = vld [vmem:[#allocation6 + $0xe8] sm:$0xff] }
 0xe25   :  { %6831 = vmatpush3.bf16.msra.mxu0 %v6632_v57  ;;  %v6650_v13 = vld [vmem:[#allocation6 + $0x98] sm:$0xff]  ;;  %v6651_v31 = vld [vmem:[#allocation6 + $0xa0] sm:$0xff]  ;;  %v6636_v33 = vld [vmem:[#allocation6 + $0x28] sm:$0xff]  ;;  %p7389_p4 = pnand %p7388_p3, %p7382_p0 }
 0xe26   :  { %6853 = vmatpush3.bf16.msra.mxu1 %v6648_v20  ;;  %6832 = vmatprep.subr.bf16.mxu0 %v6641_v0  ;;  %v6652_v55 = vld [vmem:[#allocation6 + $0xa8] sm:$0xff]  ;;  %v6645_v34 = vld [vmem:[#allocation6 + $0x70] sm:$0xff]  ;;  %v6646_v61 = vld [vmem:[#allocation6 + $0x78] sm:$0xff] }
 0xe27   :  { %6854 = vmatprep.subr.bf16.mxu1 %v6657_v59  ;;  %v6661_v2 = vld [vmem:[#allocation6 + $0xf0] sm:$0xff]  ;;  %v6662_v49 = vld [vmem:[#allocation6 + $0xf8] sm:$0xff] }
 0xe28   :  { %v6637_v63 = vld [vmem:[#allocation6 + $0x30] sm:$0xff]  ;;  %v6638_v53 = vld [vmem:[#allocation6 + $0x38] sm:$0xff] }
 0xe29   :  { %6833 = vmatpush3.bf16.msra.mxu0 %v6633_v3  ;;  %v6653_v5 = vld [vmem:[#allocation6 + $0xb0] sm:$0xff]  ;;  %v6654_v39 = vld [vmem:[#allocation6 + $0xb8] sm:$0xff] }
 0xe2a   :  { %6855 = vmatpush3.bf16.msra.mxu1 %v6649_v22  ;;  %6834 = vmatprep.subr.bf16.mxu0 %v6642_v17  ;;  %v6822_v43 = vld [vmem:[#allocation17] ss:$0 sm:$0xff] }
 0xe2b   :  { %6856 = vmatprep.subr.bf16.mxu1 %v6658_v24 }
 0xe2d   :  { %6835 = vmatpush3.bf16.msra.mxu0 %v6634_v25 }
 0xe2e   :  { %6857 = vmatpush3.bf16.msra.mxu1 %v6650_v13  ;;  %6836 = vmatprep.subr.bf16.mxu0 %v6643_v4 }
 0xe2f   :  { %6858 = vmatprep.subr.bf16.mxu1 %v6659_v26 }
 0xe31   :  { %6837 = vmatpush3.bf16.msra.mxu0 %v6635_v27 }
 0xe32   :  { %6859 = vmatpush3.bf16.msra.mxu1 %v6651_v31  ;;  %6838 = vmatprep.subr.bf16.mxu0 %v6644_v32 }
 0xe33   :  { %6860 = vmatprep.subr.bf16.mxu1 %v6660_v47 }
 0xe35   :  { %6839 = vmatpush3.bf16.msra.mxu0 %v6636_v33 }
 0xe36   :  { %6861 = vmatpush3.bf16.msra.mxu1 %v6652_v55  ;;  %6840 = vmatprep.subr.bf16.mxu0 %v6645_v34 }
 0xe37   :  { %6862 = vmatprep.subr.bf16.mxu1 %v6661_v2 }
 0xe39   :  { %6841 = vmatpush3.bf16.msra.mxu0 %v6637_v63 }
 0xe3a   :  { %6863 = vmatpush3.bf16.msra.mxu1 %v6653_v5  ;;  %6842 = vmatprep.subr.bf16.mxu0 %v6646_v61 }
 0xe3b   :  { %6864 = vmatprep.subr.bf16.mxu1 %v6662_v49 }
 0xe3d   :  { %6843 = vmatpush3.bf16.msra.mxu0 %v6638_v53 }
 0xe3e   :  { %6865 = vmatpush3.bf16.msra.mxu1 %v6654_v39 }
 0xe40   :  { %6703 = vmatmul.mubr.bf16.vlgmr.msra.gmra.mrb[36].mxu0 %v7982_v7 }
 0xe41   :  { %6744 = vmatmul.mubr.bf16.vlgmr.msra.gmra.mrb[36].mxu1 %v7984_v23 }
 0xf13   :  { %v6844_v58 = vpop.f32.mrb[36].mxu0 }
 0xf14   :  { %v6866_v14 = vpop.f32.mrb[36].mxu1  ;;  %v6845_v45 = vpop.f32.mrb[37].mxu0 }
 0xf15   :  { %v6867_v46 = vpop.f32.mrb[37].mxu1  ;;  %v6846_v36 = vadd.f32 %v6845_v45, %v6844_v58  ;;  %v6847_v15 = vpop.f32.mrb[38].mxu0 }
 0xf16   :  { %v6868_v60 = vadd.f32 %v6867_v46, %v6866_v14  ;;  %v6869_v44 = vpop.f32.mrb[38].mxu1  ;;  %v6848_v50 = vpop.f32.mrb[39].mxu0 }
 0xf17   :  { %v6870_v21 = vpop.f32.mrb[39].mxu1  ;;  %v6705_v40 = vadd.f32 %v6846_v36, %v6822_v43  ;;  %v6849_v52 = vadd.f32 %v6848_v50, %v6847_v15 }
 0xf18   :  { %v6871_v51 = vadd.f32 %v6870_v21, %v6869_v44 }
 0xf19   :  { %v6746_v38 = vadd.f32 %v6868_v60, %v6705_v40  ;;  %v6708_v35 = vadd.f32 %v6849_v52, %v6822_v43 }
 0xf1b   :  { %6752 = vst [vmem:[#allocation19] sm:$0xff] %v6746_v38  ;;  %v6749_v6 = vadd.f32 %v6871_v51, %v6708_v35 }
 0xf1d   :  { %6753 = vst [vmem:[#allocation19 + $0x8] sm:$0xff] %v6749_v6 }
 0xf1e   :  { %7392 = shalt.err (!%p7389_p4)
}
 0xf1f   :  { %s7393_s19 = scalar_lea.hbm %s8011_s11, 256 }
 0xf20   :  { %p7394_p5 = scmp.ne.s32.totalorder %s8011_s11, %s7393_s19  ;;  %p7397_p6 = scmp.lt.u32.totalorder %s7393_s19, %s8011_s11 }
 0xf22   :  { %p7399_p7 = pnand %p7397_p6, %p7394_p5 }
 0xf24   :  { %7402 = shalt.err (!%p7399_p7)
}
 0xf25   :  { %s7455_s29 = smov 128   ;;  %s7456_s30 = smov 8  }
 0xf26   :  { %6765 = dma.vmem_to_hbm [thread:$0]  %s6760_s15, 256, %s8011_s11, [#allocation10], %s7455_s29, %s7455_s29, %s7456_s30  }
 0xf27   :  { %7421 = dma.done.wait [#allocation10], 256  }
 0xf28   :  { %7422 = vsyncadd [#allocation10], 4294967040 }
 0xf29   :  { %6769 = vsyncpa [#allocation9], 1 }
 0xf2a   :  { %6770 = vsyncpa [#allocation12], 1 }
 0xf2b   :  { %6771 = vsyncpa [#allocation15], 1 }
 0xf2c   :  { %6772 = vsyncpa [#allocation18], 1 }
 0xf2d   :  { %6773 = vsyncpa [#allocation10], 1 }
 0xf2e   :  { %6774 = vsyncmov [#allocation7] }
 0xf31   :  { %s6775_s4 = vpop.sfrf %6774 }
 0xf32   :  { %p6823_p8 = scmp.ne.s32.totalorder %s6775_s4, 0 }
 0xf34   :  { %6779 = shalt.err (%p6823_p8)  }
 0xf35   :  { %6781 = vsyncmov [#allocation7 + $0x1] }
 0xf38   :  { %s6782_s16 = vpop.sfrf %6781 }
 0xf39   :  { %p6824_p9 = scmp.ne.s32.totalorder %s6782_s16, 0 }
 0xf3b   :  { %6786 = shalt.err (%p6824_p9)  }
 0xf3c   :  { %6788 = vsyncmov [#allocation7 + $0x2] }
 0xf3f   :  { %s6789_s5 = vpop.sfrf %6788 }
 0xf40   :  { %p6825_p10 = scmp.ne.s32.totalorder %s6789_s5, 0 }
 0xf42   :  { %6793 = shalt.err (%p6825_p10)  }
 0xf43   :  { %6795 = vsyncmov [#allocation7 + $0x3] }
 0xf46   :  { %s6796_s11 = vpop.sfrf %6795 }
 0xf47   :  { %p6826_p11 = scmp.ne.s32.totalorder %s6796_s11, 0 }
 0xf49   :  { %6800 = shalt.err (%p6826_p11)  }
 0xf4a   :  { %6802 = vsyncmov [#allocation7 + $0x4] }
 0xf4d   :  { %s6803_s17 = vpop.sfrf %6802 }
 0xf4e   :  { %p6827_p12 = scmp.ne.s32.totalorder %s6803_s17, 0 }
 0xf50   :  { %6807 = shalt.err (%p6827_p12)  }

</bundles_post_ra>
